<compile_context>
chip_gen: v6e
topology: v6e:2x2x1
jax: 0.10.0
libtpu: 0.0.40
codegen_flags: <defaults>
</compile_context>

<pallas_src>
import jax
import jax.numpy as jnp
from jax.experimental import pallas as pl
from jax.experimental.pallas import tpu as pltpu


def _round_up(x, m):
    return ((x + m - 1) // m) * m


def _sigmoid(x):
    # sigmoid(x) == 0.5 * tanh(x / 2) + 0.5 exactly; tanh runs on the EUP,
    # so there is no divide added to the serial VPU path.
    return 0.5 * jnp.tanh(0.5 * x) + 0.5


# ----------------------------------------------------------------------------
# Fused kernel: all LSTM layers + last-timestep FC head in one pallas_call.
# ----------------------------------------------------------------------------
def _make_fused_kernel(num_layers, seq_len, batch, hp):
    T, B, Hp = seq_len, batch, hp

    def kernel(*args):
        # args = [x2d, (w_ih, w_hh, b) * num_layers, w1, b1, w2, b2, out]
        x_ref = args[0]                                   # (B*T, F), batch-major
        lstm_refs = args[1:1 + 3 * num_layers]
        w1_ref, b1_ref, w2_ref, b2_ref = args[1 + 3 * num_layers:
                                              5 + 3 * num_layers]
        out_ref = args[5 + 3 * num_layers]

        # ---- Layer-0 input projection, hoisted (independent of h): one MXU
        # matmul for all timesteps.  Per-timestep (B, 4Hp) rows assembled with
        # static row slices + concat, off the critical path.
        gx_all = (jnp.dot(x_ref[...], lstm_refs[0][...],
                          preferred_element_type=jnp.float32)
                  + lstm_refs[2][...])                    # (B*T, 4Hp)
        gx = [jnp.concatenate(
                  [gx_all[b * T + t:b * T + t + 1, :] for b in range(B)],
                  axis=0)
              for t in range(T)]                          # T x (B, 4Hp)

        h = None
        for layer in range(num_layers):
            w_hh = lstm_refs[3 * layer + 1][...]          # (Hp, 4Hp)
            last_layer = layer == num_layers - 1
            if not last_layer:
                w_ih_next = lstm_refs[3 * (layer + 1)][...]       # (Hp, 4Hp)
                b_next = jnp.broadcast_to(                        # hoisted bcast
                    lstm_refs[3 * (layer + 1) + 2][...], (B, 4 * Hp))

            h = jnp.zeros((B, Hp), jnp.float32)
            c = jnp.zeros((B, Hp), jnp.float32)
            gx_next = []

            # Statically unrolled time recurrence (T small): only h @ W_hh and
            # the gate nonlinearities sit on the serial chain.
            # TODO(synk): hold W_hh in MXU weight registers across the loop
            # (pltpu.matmul_push_rhs / matmul_acc_lhs / matmul_pop) to skip the
            # per-step RHS re-push; kept as jnp.dot for lowering portability
            # across v5e/v6e/v7x.
            # TODO(synk): at larger T/B/H, switch to lax.fori_loop(unroll=k)
            # with gx staged in VMEM to bound live ranges (v7x: 64 MiB VMEM).
            for t in range(T):
                gates = gx[t] + jnp.dot(h, w_hh,
                                        preferred_element_type=jnp.float32)
                # Hp-aligned slices -> whole-vreg selects, no lane rotates.
                i_g = _sigmoid(gates[:, 0 * Hp:1 * Hp])
                f_g = _sigmoid(gates[:, 1 * Hp:2 * Hp])
                g_g = jnp.tanh(gates[:, 2 * Hp:3 * Hp])
                o_g = _sigmoid(gates[:, 3 * Hp:4 * Hp])
                c = f_g * c + i_g * g_g
                h = o_g * jnp.tanh(c)
                if not last_layer:
                    # Next layer's input projection issued while the MXU is
                    # otherwise idle; replaces the old hseq VMEM scratch and
                    # its masked partial stores.
                    # TODO(synk): inter-layer LSTM dropout omitted
                    # (inference-mode identity).
                    gx_next.append(
                        jnp.dot(h, w_ih_next,
                                preferred_element_type=jnp.float32) + b_next)
            gx = gx_next

        # ---- FC head on the final timestep: Linear -> ReLU -> Dropout(id) -> Linear.
        hid = (jnp.dot(h, w1_ref[...], preferred_element_type=jnp.float32)
               + b1_ref[...])                             # (B, Hmid_p) lane-dense
        hid = jnp.maximum(hid, 0.0)
        # TODO(synk): FC dropout omitted (inference-mode identity).
        out_ref[...] = (jnp.dot(hid, w2_ref[...],
                                preferred_element_type=jnp.float32)
                        + b2_ref[...])

    return kernel


# ----------------------------------------------------------------------------
# Wrapper
# ----------------------------------------------------------------------------
@jax.jit
def lstm_controller_forward(packed, x_bti):
    """x_bti: (B, T, input_size) f32, batch_first like PyTorch. Returns (B, O)."""
    B, T, F = x_bti.shape
    num_layers = len(packed["lstm"])
    Hp = packed["lstm"][0]["w_hh"].shape[0]
    O = packed["fc"]["w2"].shape[1]

    # Free row-major collapse (no transpose, no extra HBM pass): row b*T + t.
    x2d = x_bti.reshape(B * T, F)

    flat_inputs = [x2d]
    in_specs = [pl.BlockSpec((B * T, F), lambda: (0, 0))]
    for lp in packed["lstm"]:
        flat_inputs += [lp["w_ih"], lp["w_hh"], lp["b"]]
        in_specs += [pl.BlockSpec(lp["w_ih"].shape, lambda: (0, 0)),
                     pl.BlockSpec(lp["w_hh"].shape, lambda: (0, 0)),
                     pl.BlockSpec(lp["b"].shape, lambda: (0, 0))]
    fc = packed["fc"]
    flat_inputs += [fc["w1"], fc["b1"], fc["w2"], fc["b2"]]
    in_specs += [pl.BlockSpec(fc["w1"].shape, lambda: (0, 0)),
                 pl.BlockSpec(fc["b1"].shape, lambda: (0, 0)),
                 pl.BlockSpec(fc["w2"].shape, lambda: (0, 0)),
                 pl.BlockSpec(fc["b2"].shape, lambda: (0, 0))]

    kernel = _make_fused_kernel(num_layers, T, B, Hp)
    # NOTE: gridless single-TC launch.  On v7x (2 TensorCores) a batch-tiled
    # grid with dimension_semantics=("parallel",) pays off once B is large
    # enough to split; at B=2 it is pure overhead, so it is gated off here.
    return pl.pallas_call(
        kernel,
        out_shape=jax.ShapeDtypeStruct((B, O), jnp.float32),
        in_specs=in_specs,
        out_specs=pl.BlockSpec((B, O), lambda: (0, 0)),
        compiler_params=pltpu.CompilerParams(vmem_limit_bytes=32 * 1024 * 1024),
    )(*flat_inputs)


# ----------------------------------------------------------------------------
# Params (mirror PyTorch uniform(-1/sqrt(fan), 1/sqrt(fan)) init), then pack.
# ----------------------------------------------------------------------------
def init_params(key, input_size, hidden_size, num_layers, output_size):
    H = hidden_size
    Hmid = H // 2
    bound = 1.0 / float(H) ** 0.5
    raw = {"lstm": [], "fc": {}}
    for layer in range(num_layers):
        in_feat = input_size if layer == 0 else H
        key, k1, k2, k3, k4 = jax.random.split(key, 5)
        raw["lstm"].append({
            "w_ih": jax.random.uniform(k1, (4 * H, in_feat), jnp.float32, -bound, bound),
            "w_hh": jax.random.uniform(k2, (4 * H, H), jnp.float32, -bound, bound),
            "b_ih": jax.random.uniform(k3, (4 * H,), jnp.float32, -bound, bound),
            "b_hh": jax.random.uniform(k4, (4 * H,), jnp.float32, -bound, bound),
        })
    b1b = 1.0 / float(H) ** 0.5
    b2b = 1.0 / float(Hmid) ** 0.5
    key, k1, k2, k3, k4 = jax.random.split(key, 5)
    raw["fc"] = {
        "w1": jax.random.uniform(k1, (Hmid, H), jnp.float32, -b1b, b1b),
        "b1": jax.random.uniform(k2, (Hmid,), jnp.float32, -b1b, b1b),
        "w2": jax.random.uniform(k3, (output_size, Hmid), jnp.float32, -b2b, b2b),
        "b2": jax.random.uniform(k4, (output_size,), jnp.float32, -b2b, b2b),
    }
    return raw


def pack_params(raw, input_size, hidden_size):
    """Transpose, fuse biases, gate-pack with H lane-padded to a 128 multiple."""
    H = hidden_size
    Hp = _round_up(H, 128)
    Hmid = H // 2
    Hmid_p = _round_up(Hmid, 128)
    packed = {"lstm": [], "fc": {}}
    for layer, lp in enumerate(raw["lstm"]):
        in_feat = input_size if layer == 0 else H
        in_pad = input_size if layer == 0 else Hp
        w_ih_t = lp["w_ih"].T.astype(jnp.float32)        # (in_feat, 4H)
        w_hh_t = lp["w_hh"].T.astype(jnp.float32)        # (H, 4H)
        bias = (lp["b_ih"] + lp["b_hh"]).astype(jnp.float32)
        w_ih_p = jnp.zeros((in_pad, 4 * Hp), jnp.float32)
        w_hh_p = jnp.zeros((Hp, 4 * Hp), jnp.float32)
        b_p = jnp.zeros((1, 4 * Hp), jnp.float32)
        for g in range(4):                               # gate order [i, f, g, o]
            w_ih_p = w_ih_p.at[:in_feat, g * Hp:g * Hp + H].set(
                w_ih_t[:, g * H:(g + 1) * H])
            w_hh_p = w_hh_p.at[:H, g * Hp:g * Hp + H].set(
                w_hh_t[:, g * H:(g + 1) * H])
            b_p = b_p.at[0, g * Hp:g * Hp + H].set(bias[g * H:(g + 1) * H])
        packed["lstm"].append({"w_ih": w_ih_p, "w_hh": w_hh_p, "b": b_p})
    fc = raw["fc"]
    O = fc["w2"].shape[0]
    packed["fc"] = {
        "w1": jnp.zeros((Hp, Hmid_p), jnp.float32).at[:H, :Hmid].set(fc["w1"].T),
        "b1": jnp.zeros((1, Hmid_p), jnp.float32).at[0, :Hmid].set(fc["b1"]),
        "w2": jnp.zeros((Hmid_p, O), jnp.float32).at[:Hmid, :].set(fc["w2"].T),
        "b2": fc["b2"].reshape(1, O).astype(jnp.float32),
    }
    return packed


# ----------------------------------------------------------------------------
# Pure-JAX reference on the RAW (unpadded) weights — PyTorch-faithful.
# ----------------------------------------------------------------------------
def _reference_forward(raw, x_bti):
    hp = jax.lax.Precision.HIGHEST
    B, T, _ = x_bti.shape
    seq = x_bti
    for lp in raw["lstm"]:
        H = lp["w_hh"].shape[1]
        w_ih_t, w_hh_t = lp["w_ih"].T, lp["w_hh"].T
        b = (lp["b_ih"] + lp["b_hh"])[None, :]
        h = jnp.zeros((B, H), jnp.float32)
        c = jnp.zeros((B, H), jnp.float32)
        outs = []
        for t in range(T):
            x_t = seq[:, t, :]
            gates = (jnp.dot(x_t, w_ih_t, precision=hp)
                     + jnp.dot(h, w_hh_t, precision=hp) + b)
            i_g = jax.nn.sigmoid(gates[:, 0 * H:1 * H])
            f_g = jax.nn.sigmoid(gates[:, 1 * H:2 * H])
            g_g = jnp.tanh(gates[:, 2 * H:3 * H])
            o_g = jax.nn.sigmoid(gates[:, 3 * H:4 * H])
            c = f_g * c + i_g * g_g
            h = o_g * jnp.tanh(c)
            outs.append(h)
        seq = jnp.stack(outs, axis=1)
    last = seq[:, -1, :]
    fc = raw["fc"]
    hid = jax.nn.relu(jnp.dot(last, fc["w1"].T, precision=hp) + fc["b1"][None, :])
    return jnp.dot(hid, fc["w2"].T, precision=hp) + fc["b2"][None, :]


if __name__ == "__main__":
    input_size = 16
    hidden_size = 32
    num_layers = 2
    output_size = 4
    dropout_rate = 0.1   # identity at inference (model.eval() semantics)

    batch = 2
    seq = 8

    key = jax.random.PRNGKey(0)
    key, xk = jax.random.split(key)
    x = jax.random.normal(xk, (batch, seq, input_size), jnp.float32)

    raw = init_params(key, input_size, hidden_size, num_layers, output_size)
    packed = pack_params(raw, input_size, hidden_size)

    out = jax.block_until_ready(lstm_controller_forward(packed, x))
    assert out.shape == (batch, output_size), out.shape

    ref = _reference_forward(raw, x)
    # Kernel matmuls use default MXU precision (reference uses HIGHEST); the
    # T-step recurrence compounds the difference, hence the 2e-3 tolerance.
    assert jnp.allclose(out, ref, atol=2e-3, rtol=2e-3), (out, ref)

    print("KERNEL_OK")
</pallas_src>

<mosaic_0001>
module attributes {stable_mosaic.version = 11 : i64} {
  func.func @kernel(%arg0: memref<16x16xf32, #tpu.memory_space<vmem>>, %arg1: memref<16x512xf32, #tpu.memory_space<vmem>>, %arg2: memref<128x512xf32, #tpu.memory_space<vmem>>, %arg3: memref<1x512xf32, #tpu.memory_space<vmem>>, %arg4: memref<128x512xf32, #tpu.memory_space<vmem>>, %arg5: memref<128x512xf32, #tpu.memory_space<vmem>>, %arg6: memref<1x512xf32, #tpu.memory_space<vmem>>, %arg7: memref<128x128xf32, #tpu.memory_space<vmem>>, %arg8: memref<1x128xf32, #tpu.memory_space<vmem>>, %arg9: memref<128x4xf32, #tpu.memory_space<vmem>>, %arg10: memref<1x4xf32, #tpu.memory_space<vmem>>, %arg11: memref<2x4xf32, #tpu.memory_space<vmem>>) attributes {dimension_semantics = [], scalar_prefetch = 0 : i64, scratch_operands = 0 : i64, tpu.core_type = #tpu.core_type<tc>} {
    %c0 = arith.constant 0 : index
    %c0_0 = arith.constant 0 : index
    %0 = vector.load %arg0[%c0, %c0_0] : memref<16x16xf32, #tpu.memory_space<vmem>>, vector<16x16xf32>
    %c0_1 = arith.constant 0 : index
    %c0_2 = arith.constant 0 : index
    %1 = vector.load %arg1[%c0_1, %c0_2] : memref<16x512xf32, #tpu.memory_space<vmem>>, vector<16x512xf32>
    %cst = arith.constant dense<0.000000e+00> : vector<16x512xf32>
    %2 = tpu.matmul %0, %1, %cst {dimension_numbers = #tpu.dot_dimension_numbers<[1], [0], [0], [1], [0, 0, 1, 1], [], []>} : vector<16x16xf32>, vector<16x512xf32>, vector<16x512xf32> -> vector<16x512xf32>
    %c0_3 = arith.constant 0 : index
    %c0_4 = arith.constant 0 : index
    %3 = vector.load %arg3[%c0_3, %c0_4] : memref<1x512xf32, #tpu.memory_space<vmem>>, vector<1x512xf32>
    %4 = vector.broadcast %3 : vector<1x512xf32> to vector<16x512xf32>
    %5 = arith.addf %2, %4 : vector<16x512xf32>
    %6 = vector.extract_strided_slice %5 {offsets = [0, 0], sizes = [1, 512], strides = [1, 1]} : vector<16x512xf32> to vector<1x512xf32>
    %7 = vector.extract_strided_slice %5 {offsets = [8, 0], sizes = [1, 512], strides = [1, 1]} : vector<16x512xf32> to vector<1x512xf32>
    %8 = tpu.concatenate %6, %7 in 0 : vector<1x512xf32>, vector<1x512xf32> -> vector<2x512xf32>
    %9 = vector.extract_strided_slice %5 {offsets = [1, 0], sizes = [1, 512], strides = [1, 1]} : vector<16x512xf32> to vector<1x512xf32>
    %10 = vector.extract_strided_slice %5 {offsets = [9, 0], sizes = [1, 512], strides = [1, 1]} : vector<16x512xf32> to vector<1x512xf32>
    %11 = tpu.concatenate %9, %10 in 0 : vector<1x512xf32>, vector<1x512xf32> -> vector<2x512xf32>
    %12 = vector.extract_strided_slice %5 {offsets = [2, 0], sizes = [1, 512], strides = [1, 1]} : vector<16x512xf32> to vector<1x512xf32>
    %13 = vector.extract_strided_slice %5 {offsets = [10, 0], sizes = [1, 512], strides = [1, 1]} : vector<16x512xf32> to vector<1x512xf32>
    %14 = tpu.concatenate %12, %13 in 0 : vector<1x512xf32>, vector<1x512xf32> -> vector<2x512xf32>
    %15 = vector.extract_strided_slice %5 {offsets = [3, 0], sizes = [1, 512], strides = [1, 1]} : vector<16x512xf32> to vector<1x512xf32>
    %16 = vector.extract_strided_slice %5 {offsets = [11, 0], sizes = [1, 512], strides = [1, 1]} : vector<16x512xf32> to vector<1x512xf32>
    %17 = tpu.concatenate %15, %16 in 0 : vector<1x512xf32>, vector<1x512xf32> -> vector<2x512xf32>
    %18 = vector.extract_strided_slice %5 {offsets = [4, 0], sizes = [1, 512], strides = [1, 1]} : vector<16x512xf32> to vector<1x512xf32>
    %19 = vector.extract_strided_slice %5 {offsets = [12, 0], sizes = [1, 512], strides = [1, 1]} : vector<16x512xf32> to vector<1x512xf32>
    %20 = tpu.concatenate %18, %19 in 0 : vector<1x512xf32>, vector<1x512xf32> -> vector<2x512xf32>
    %21 = vector.extract_strided_slice %5 {offsets = [5, 0], sizes = [1, 512], strides = [1, 1]} : vector<16x512xf32> to vector<1x512xf32>
    %22 = vector.extract_strided_slice %5 {offsets = [13, 0], sizes = [1, 512], strides = [1, 1]} : vector<16x512xf32> to vector<1x512xf32>
    %23 = tpu.concatenate %21, %22 in 0 : vector<1x512xf32>, vector<1x512xf32> -> vector<2x512xf32>
    %24 = vector.extract_strided_slice %5 {offsets = [6, 0], sizes = [1, 512], strides = [1, 1]} : vector<16x512xf32> to vector<1x512xf32>
    %25 = vector.extract_strided_slice %5 {offsets = [14, 0], sizes = [1, 512], strides = [1, 1]} : vector<16x512xf32> to vector<1x512xf32>
    %26 = tpu.concatenate %24, %25 in 0 : vector<1x512xf32>, vector<1x512xf32> -> vector<2x512xf32>
    %27 = vector.extract_strided_slice %5 {offsets = [7, 0], sizes = [1, 512], strides = [1, 1]} : vector<16x512xf32> to vector<1x512xf32>
    %28 = vector.extract_strided_slice %5 {offsets = [15, 0], sizes = [1, 512], strides = [1, 1]} : vector<16x512xf32> to vector<1x512xf32>
    %29 = tpu.concatenate %27, %28 in 0 : vector<1x512xf32>, vector<1x512xf32> -> vector<2x512xf32>
    %c0_5 = arith.constant 0 : index
    %c0_6 = arith.constant 0 : index
    %30 = vector.load %arg2[%c0_5, %c0_6] : memref<128x512xf32, #tpu.memory_space<vmem>>, vector<128x512xf32>
    %c0_7 = arith.constant 0 : index
    %c0_8 = arith.constant 0 : index
    %31 = vector.load %arg4[%c0_7, %c0_8] : memref<128x512xf32, #tpu.memory_space<vmem>>, vector<128x512xf32>
    %c0_9 = arith.constant 0 : index
    %c0_10 = arith.constant 0 : index
    %32 = vector.load %arg6[%c0_9, %c0_10] : memref<1x512xf32, #tpu.memory_space<vmem>>, vector<1x512xf32>
    %33 = vector.shape_cast %32 : vector<1x512xf32> to vector<1x512xf32>
    %34 = vector.broadcast %33 : vector<1x512xf32> to vector<2x512xf32>
    %cst_11 = arith.constant 0.000000e+00 : f32
    %35 = vector.broadcast %cst_11 : f32 to vector<2x128xf32>
    %cst_12 = arith.constant 0.000000e+00 : f32
    %36 = vector.broadcast %cst_12 : f32 to vector<2x128xf32>
    %cst_13 = arith.constant dense<0.000000e+00> : vector<2x512xf32>
    %37 = tpu.matmul %35, %30, %cst_13 {dimension_numbers = #tpu.dot_dimension_numbers<[1], [0], [0], [1], [0, 0, 1, 1], [], []>} : vector<2x128xf32>, vector<128x512xf32>, vector<2x512xf32> -> vector<2x512xf32>
    %38 = arith.addf %8, %37 : vector<2x512xf32>
    %39 = vector.extract_strided_slice %38 {offsets = [0, 0], sizes = [2, 128], strides = [1, 1]} : vector<2x512xf32> to vector<2x128xf32>
    %cst_14 = arith.constant 5.000000e-01 : f32
    %40 = vector.broadcast %cst_14 : f32 to vector<2x128xf32>
    %41 = arith.mulf %40, %39 : vector<2x128xf32>
    %42 = math.tanh %41 : vector<2x128xf32>
    %cst_15 = arith.constant 5.000000e-01 : f32
    %43 = vector.broadcast %cst_15 : f32 to vector<2x128xf32>
    %44 = arith.mulf %43, %42 : vector<2x128xf32>
    %cst_16 = arith.constant 5.000000e-01 : f32
    %45 = vector.broadcast %cst_16 : f32 to vector<2x128xf32>
    %46 = arith.addf %44, %45 : vector<2x128xf32>
    %47 = vector.extract_strided_slice %38 {offsets = [0, 128], sizes = [2, 128], strides = [1, 1]} : vector<2x512xf32> to vector<2x128xf32>
    %cst_17 = arith.constant 5.000000e-01 : f32
    %48 = vector.broadcast %cst_17 : f32 to vector<2x128xf32>
    %49 = arith.mulf %48, %47 : vector<2x128xf32>
    %50 = math.tanh %49 : vector<2x128xf32>
    %cst_18 = arith.constant 5.000000e-01 : f32
    %51 = vector.broadcast %cst_18 : f32 to vector<2x128xf32>
    %52 = arith.mulf %51, %50 : vector<2x128xf32>
    %cst_19 = arith.constant 5.000000e-01 : f32
    %53 = vector.broadcast %cst_19 : f32 to vector<2x128xf32>
    %54 = arith.addf %52, %53 : vector<2x128xf32>
    %55 = vector.extract_strided_slice %38 {offsets = [0, 256], sizes = [2, 128], strides = [1, 1]} : vector<2x512xf32> to vector<2x128xf32>
    %56 = math.tanh %55 : vector<2x128xf32>
    %57 = vector.extract_strided_slice %38 {offsets = [0, 384], sizes = [2, 128], strides = [1, 1]} : vector<2x512xf32> to vector<2x128xf32>
    %cst_20 = arith.constant 5.000000e-01 : f32
    %58 = vector.broadcast %cst_20 : f32 to vector<2x128xf32>
    %59 = arith.mulf %58, %57 : vector<2x128xf32>
    %60 = math.tanh %59 : vector<2x128xf32>
    %cst_21 = arith.constant 5.000000e-01 : f32
    %61 = vector.broadcast %cst_21 : f32 to vector<2x128xf32>
    %62 = arith.mulf %61, %60 : vector<2x128xf32>
    %cst_22 = arith.constant 5.000000e-01 : f32
    %63 = vector.broadcast %cst_22 : f32 to vector<2x128xf32>
    %64 = arith.addf %62, %63 : vector<2x128xf32>
    %65 = arith.mulf %54, %36 : vector<2x128xf32>
    %66 = arith.mulf %46, %56 : vector<2x128xf32>
    %67 = arith.addf %65, %66 : vector<2x128xf32>
    %68 = math.tanh %67 : vector<2x128xf32>
    %69 = arith.mulf %64, %68 : vector<2x128xf32>
    %cst_23 = arith.constant dense<0.000000e+00> : vector<2x512xf32>
    %70 = tpu.matmul %69, %31, %cst_23 {dimension_numbers = #tpu.dot_dimension_numbers<[1], [0], [0], [1], [0, 0, 1, 1], [], []>} : vector<2x128xf32>, vector<128x512xf32>, vector<2x512xf32> -> vector<2x512xf32>
    %71 = arith.addf %70, %34 : vector<2x512xf32>
    %cst_24 = arith.constant dense<0.000000e+00> : vector<2x512xf32>
    %72 = tpu.matmul %69, %30, %cst_24 {dimension_numbers = #tpu.dot_dimension_numbers<[1], [0], [0], [1], [0, 0, 1, 1], [], []>} : vector<2x128xf32>, vector<128x512xf32>, vector<2x512xf32> -> vector<2x512xf32>
    %73 = arith.addf %11, %72 : vector<2x512xf32>
    %74 = vector.extract_strided_slice %73 {offsets = [0, 0], sizes = [2, 128], strides = [1, 1]} : vector<2x512xf32> to vector<2x128xf32>
    %cst_25 = arith.constant 5.000000e-01 : f32
    %75 = vector.broadcast %cst_25 : f32 to vector<2x128xf32>
    %76 = arith.mulf %75, %74 : vector<2x128xf32>
    %77 = math.tanh %76 : vector<2x128xf32>
    %cst_26 = arith.constant 5.000000e-01 : f32
    %78 = vector.broadcast %cst_26 : f32 to vector<2x128xf32>
    %79 = arith.mulf %78, %77 : vector<2x128xf32>
    %cst_27 = arith.constant 5.000000e-01 : f32
    %80 = vector.broadcast %cst_27 : f32 to vector<2x128xf32>
    %81 = arith.addf %79, %80 : vector<2x128xf32>
    %82 = vector.extract_strided_slice %73 {offsets = [0, 128], sizes = [2, 128], strides = [1, 1]} : vector<2x512xf32> to vector<2x128xf32>
    %cst_28 = arith.constant 5.000000e-01 : f32
    %83 = vector.broadcast %cst_28 : f32 to vector<2x128xf32>
    %84 = arith.mulf %83, %82 : vector<2x128xf32>
    %85 = math.tanh %84 : vector<2x128xf32>
    %cst_29 = arith.constant 5.000000e-01 : f32
    %86 = vector.broadcast %cst_29 : f32 to vector<2x128xf32>
    %87 = arith.mulf %86, %85 : vector<2x128xf32>
    %cst_30 = arith.constant 5.000000e-01 : f32
    %88 = vector.broadcast %cst_30 : f32 to vector<2x128xf32>
    %89 = arith.addf %87, %88 : vector<2x128xf32>
    %90 = vector.extract_strided_slice %73 {offsets = [0, 256], sizes = [2, 128], strides = [1, 1]} : vector<2x512xf32> to vector<2x128xf32>
    %91 = math.tanh %90 : vector<2x128xf32>
    %92 = vector.extract_strided_slice %73 {offsets = [0, 384], sizes = [2, 128], strides = [1, 1]} : vector<2x512xf32> to vector<2x128xf32>
    %cst_31 = arith.constant 5.000000e-01 : f32
    %93 = vector.broadcast %cst_31 : f32 to vector<2x128xf32>
    %94 = arith.mulf %93, %92 : vector<2x128xf32>
    %95 = math.tanh %94 : vector<2x128xf32>
    %cst_32 = arith.constant 5.000000e-01 : f32
    %96 = vector.broadcast %cst_32 : f32 to vector<2x128xf32>
    %97 = arith.mulf %96, %95 : vector<2x128xf32>
    %cst_33 = arith.constant 5.000000e-01 : f32
    %98 = vector.broadcast %cst_33 : f32 to vector<2x128xf32>
    %99 = arith.addf %97, %98 : vector<2x128xf32>
    %100 = arith.mulf %89, %67 : vector<2x128xf32>
    %101 = arith.mulf %81, %91 : vector<2x128xf32>
    %102 = arith.addf %100, %101 : vector<2x128xf32>
    %103 = math.tanh %102 : vector<2x128xf32>
    %104 = arith.mulf %99, %103 : vector<2x128xf32>
    %cst_34 = arith.constant dense<0.000000e+00> : vector<2x512xf32>
    %105 = tpu.matmul %104, %31, %cst_34 {dimension_numbers = #tpu.dot_dimension_numbers<[1], [0], [0], [1], [0, 0, 1, 1], [], []>} : vector<2x128xf32>, vector<128x512xf32>, vector<2x512xf32> -> vector<2x512xf32>
    %106 = arith.addf %105, %34 : vector<2x512xf32>
    %cst_35 = arith.constant dense<0.000000e+00> : vector<2x512xf32>
    %107 = tpu.matmul %104, %30, %cst_35 {dimension_numbers = #tpu.dot_dimension_numbers<[1], [0], [0], [1], [0, 0, 1, 1], [], []>} : vector<2x128xf32>, vector<128x512xf32>, vector<2x512xf32> -> vector<2x512xf32>
    %108 = arith.addf %14, %107 : vector<2x512xf32>
    %109 = vector.extract_strided_slice %108 {offsets = [0, 0], sizes = [2, 128], strides = [1, 1]} : vector<2x512xf32> to vector<2x128xf32>
    %cst_36 = arith.constant 5.000000e-01 : f32
    %110 = vector.broadcast %cst_36 : f32 to vector<2x128xf32>
    %111 = arith.mulf %110, %109 : vector<2x128xf32>
    %112 = math.tanh %111 : vector<2x128xf32>
    %cst_37 = arith.constant 5.000000e-01 : f32
    %113 = vector.broadcast %cst_37 : f32 to vector<2x128xf32>
    %114 = arith.mulf %113, %112 : vector<2x128xf32>
    %cst_38 = arith.constant 5.000000e-01 : f32
    %115 = vector.broadcast %cst_38 : f32 to vector<2x128xf32>
    %116 = arith.addf %114, %115 : vector<2x128xf32>
    %117 = vector.extract_strided_slice %108 {offsets = [0, 128], sizes = [2, 128], strides = [1, 1]} : vector<2x512xf32> to vector<2x128xf32>
    %cst_39 = arith.constant 5.000000e-01 : f32
    %118 = vector.broadcast %cst_39 : f32 to vector<2x128xf32>
    %119 = arith.mulf %118, %117 : vector<2x128xf32>
    %120 = math.tanh %119 : vector<2x128xf32>
    %cst_40 = arith.constant 5.000000e-01 : f32
    %121 = vector.broadcast %cst_40 : f32 to vector<2x128xf32>
    %122 = arith.mulf %121, %120 : vector<2x128xf32>
    %cst_41 = arith.constant 5.000000e-01 : f32
    %123 = vector.broadcast %cst_41 : f32 to vector<2x128xf32>
    %124 = arith.addf %122, %123 : vector<2x128xf32>
    %125 = vector.extract_strided_slice %108 {offsets = [0, 256], sizes = [2, 128], strides = [1, 1]} : vector<2x512xf32> to vector<2x128xf32>
    %126 = math.tanh %125 : vector<2x128xf32>
    %127 = vector.extract_strided_slice %108 {offsets = [0, 384], sizes = [2, 128], strides = [1, 1]} : vector<2x512xf32> to vector<2x128xf32>
    %cst_42 = arith.constant 5.000000e-01 : f32
    %128 = vector.broadcast %cst_42 : f32 to vector<2x128xf32>
    %129 = arith.mulf %128, %127 : vector<2x128xf32>
    %130 = math.tanh %129 : vector<2x128xf32>
    %cst_43 = arith.constant 5.000000e-01 : f32
    %131 = vector.broadcast %cst_43 : f32 to vector<2x128xf32>
    %132 = arith.mulf %131, %130 : vector<2x128xf32>
    %cst_44 = arith.constant 5.000000e-01 : f32
    %133 = vector.broadcast %cst_44 : f32 to vector<2x128xf32>
    %134 = arith.addf %132, %133 : vector<2x128xf32>
    %135 = arith.mulf %124, %102 : vector<2x128xf32>
    %136 = arith.mulf %116, %126 : vector<2x128xf32>
    %137 = arith.addf %135, %136 : vector<2x128xf32>
    %138 = math.tanh %137 : vector<2x128xf32>
    %139 = arith.mulf %134, %138 : vector<2x128xf32>
    %cst_45 = arith.constant dense<0.000000e+00> : vector<2x512xf32>
    %140 = tpu.matmul %139, %31, %cst_45 {dimension_numbers = #tpu.dot_dimension_numbers<[1], [0], [0], [1], [0, 0, 1, 1], [], []>} : vector<2x128xf32>, vector<128x512xf32>, vector<2x512xf32> -> vector<2x512xf32>
    %141 = arith.addf %140, %34 : vector<2x512xf32>
    %cst_46 = arith.constant dense<0.000000e+00> : vector<2x512xf32>
    %142 = tpu.matmul %139, %30, %cst_46 {dimension_numbers = #tpu.dot_dimension_numbers<[1], [0], [0], [1], [0, 0, 1, 1], [], []>} : vector<2x128xf32>, vector<128x512xf32>, vector<2x512xf32> -> vector<2x512xf32>
    %143 = arith.addf %17, %142 : vector<2x512xf32>
    %144 = vector.extract_strided_slice %143 {offsets = [0, 0], sizes = [2, 128], strides = [1, 1]} : vector<2x512xf32> to vector<2x128xf32>
    %cst_47 = arith.constant 5.000000e-01 : f32
    %145 = vector.broadcast %cst_47 : f32 to vector<2x128xf32>
    %146 = arith.mulf %145, %144 : vector<2x128xf32>
    %147 = math.tanh %146 : vector<2x128xf32>
    %cst_48 = arith.constant 5.000000e-01 : f32
    %148 = vector.broadcast %cst_48 : f32 to vector<2x128xf32>
    %149 = arith.mulf %148, %147 : vector<2x128xf32>
    %cst_49 = arith.constant 5.000000e-01 : f32
    %150 = vector.broadcast %cst_49 : f32 to vector<2x128xf32>
    %151 = arith.addf %149, %150 : vector<2x128xf32>
    %152 = vector.extract_strided_slice %143 {offsets = [0, 128], sizes = [2, 128], strides = [1, 1]} : vector<2x512xf32> to vector<2x128xf32>
    %cst_50 = arith.constant 5.000000e-01 : f32
    %153 = vector.broadcast %cst_50 : f32 to vector<2x128xf32>
    %154 = arith.mulf %153, %152 : vector<2x128xf32>
    %155 = math.tanh %154 : vector<2x128xf32>
    %cst_51 = arith.constant 5.000000e-01 : f32
    %156 = vector.broadcast %cst_51 : f32 to vector<2x128xf32>
    %157 = arith.mulf %156, %155 : vector<2x128xf32>
    %cst_52 = arith.constant 5.000000e-01 : f32
    %158 = vector.broadcast %cst_52 : f32 to vector<2x128xf32>
    %159 = arith.addf %157, %158 : vector<2x128xf32>
    %160 = vector.extract_strided_slice %143 {offsets = [0, 256], sizes = [2, 128], strides = [1, 1]} : vector<2x512xf32> to vector<2x128xf32>
    %161 = math.tanh %160 : vector<2x128xf32>
    %162 = vector.extract_strided_slice %143 {offsets = [0, 384], sizes = [2, 128], strides = [1, 1]} : vector<2x512xf32> to vector<2x128xf32>
    %cst_53 = arith.constant 5.000000e-01 : f32
    %163 = vector.broadcast %cst_53 : f32 to vector<2x128xf32>
    %164 = arith.mulf %163, %162 : vector<2x128xf32>
    %165 = math.tanh %164 : vector<2x128xf32>
    %cst_54 = arith.constant 5.000000e-01 : f32
    %166 = vector.broadcast %cst_54 : f32 to vector<2x128xf32>
    %167 = arith.mulf %166, %165 : vector<2x128xf32>
    %cst_55 = arith.constant 5.000000e-01 : f32
    %168 = vector.broadcast %cst_55 : f32 to vector<2x128xf32>
    %169 = arith.addf %167, %168 : vector<2x128xf32>
    %170 = arith.mulf %159, %137 : vector<2x128xf32>
    %171 = arith.mulf %151, %161 : vector<2x128xf32>
    %172 = arith.addf %170, %171 : vector<2x128xf32>
    %173 = math.tanh %172 : vector<2x128xf32>
    %174 = arith.mulf %169, %173 : vector<2x128xf32>
    %cst_56 = arith.constant dense<0.000000e+00> : vector<2x512xf32>
    %175 = tpu.matmul %174, %31, %cst_56 {dimension_numbers = #tpu.dot_dimension_numbers<[1], [0], [0], [1], [0, 0, 1, 1], [], []>} : vector<2x128xf32>, vector<128x512xf32>, vector<2x512xf32> -> vector<2x512xf32>
    %176 = arith.addf %175, %34 : vector<2x512xf32>
    %cst_57 = arith.constant dense<0.000000e+00> : vector<2x512xf32>
    %177 = tpu.matmul %174, %30, %cst_57 {dimension_numbers = #tpu.dot_dimension_numbers<[1], [0], [0], [1], [0, 0, 1, 1], [], []>} : vector<2x128xf32>, vector<128x512xf32>, vector<2x512xf32> -> vector<2x512xf32>
    %178 = arith.addf %20, %177 : vector<2x512xf32>
    %179 = vector.extract_strided_slice %178 {offsets = [0, 0], sizes = [2, 128], strides = [1, 1]} : vector<2x512xf32> to vector<2x128xf32>
    %cst_58 = arith.constant 5.000000e-01 : f32
    %180 = vector.broadcast %cst_58 : f32 to vector<2x128xf32>
    %181 = arith.mulf %180, %179 : vector<2x128xf32>
    %182 = math.tanh %181 : vector<2x128xf32>
    %cst_59 = arith.constant 5.000000e-01 : f32
    %183 = vector.broadcast %cst_59 : f32 to vector<2x128xf32>
    %184 = arith.mulf %183, %182 : vector<2x128xf32>
    %cst_60 = arith.constant 5.000000e-01 : f32
    %185 = vector.broadcast %cst_60 : f32 to vector<2x128xf32>
    %186 = arith.addf %184, %185 : vector<2x128xf32>
    %187 = vector.extract_strided_slice %178 {offsets = [0, 128], sizes = [2, 128], strides = [1, 1]} : vector<2x512xf32> to vector<2x128xf32>
    %cst_61 = arith.constant 5.000000e-01 : f32
    %188 = vector.broadcast %cst_61 : f32 to vector<2x128xf32>
    %189 = arith.mulf %188, %187 : vector<2x128xf32>
    %190 = math.tanh %189 : vector<2x128xf32>
    %cst_62 = arith.constant 5.000000e-01 : f32
    %191 = vector.broadcast %cst_62 : f32 to vector<2x128xf32>
    %192 = arith.mulf %191, %190 : vector<2x128xf32>
    %cst_63 = arith.constant 5.000000e-01 : f32
    %193 = vector.broadcast %cst_63 : f32 to vector<2x128xf32>
    %194 = arith.addf %192, %193 : vector<2x128xf32>
    %195 = vector.extract_strided_slice %178 {offsets = [0, 256], sizes = [2, 128], strides = [1, 1]} : vector<2x512xf32> to vector<2x128xf32>
    %196 = math.tanh %195 : vector<2x128xf32>
    %197 = vector.extract_strided_slice %178 {offsets = [0, 384], sizes = [2, 128], strides = [1, 1]} : vector<2x512xf32> to vector<2x128xf32>
    %cst_64 = arith.constant 5.000000e-01 : f32
    %198 = vector.broadcast %cst_64 : f32 to vector<2x128xf32>
    %199 = arith.mulf %198, %197 : vector<2x128xf32>
    %200 = math.tanh %199 : vector<2x128xf32>
    %cst_65 = arith.constant 5.000000e-01 : f32
    %201 = vector.broadcast %cst_65 : f32 to vector<2x128xf32>
    %202 = arith.mulf %201, %200 : vector<2x128xf32>
    %cst_66 = arith.constant 5.000000e-01 : f32
    %203 = vector.broadcast %cst_66 : f32 to vector<2x128xf32>
    %204 = arith.addf %202, %203 : vector<2x128xf32>
    %205 = arith.mulf %194, %172 : vector<2x128xf32>
    %206 = arith.mulf %186, %196 : vector<2x128xf32>
    %207 = arith.addf %205, %206 : vector<2x128xf32>
    %208 = math.tanh %207 : vector<2x128xf32>
    %209 = arith.mulf %204, %208 : vector<2x128xf32>
    %cst_67 = arith.constant dense<0.000000e+00> : vector<2x512xf32>
    %210 = tpu.matmul %209, %31, %cst_67 {dimension_numbers = #tpu.dot_dimension_numbers<[1], [0], [0], [1], [0, 0, 1, 1], [], []>} : vector<2x128xf32>, vector<128x512xf32>, vector<2x512xf32> -> vector<2x512xf32>
    %211 = arith.addf %210, %34 : vector<2x512xf32>
    %cst_68 = arith.constant dense<0.000000e+00> : vector<2x512xf32>
    %212 = tpu.matmul %209, %30, %cst_68 {dimension_numbers = #tpu.dot_dimension_numbers<[1], [0], [0], [1], [0, 0, 1, 1], [], []>} : vector<2x128xf32>, vector<128x512xf32>, vector<2x512xf32> -> vector<2x512xf32>
    %213 = arith.addf %23, %212 : vector<2x512xf32>
    %214 = vector.extract_strided_slice %213 {offsets = [0, 0], sizes = [2, 128], strides = [1, 1]} : vector<2x512xf32> to vector<2x128xf32>
    %cst_69 = arith.constant 5.000000e-01 : f32
    %215 = vector.broadcast %cst_69 : f32 to vector<2x128xf32>
    %216 = arith.mulf %215, %214 : vector<2x128xf32>
    %217 = math.tanh %216 : vector<2x128xf32>
    %cst_70 = arith.constant 5.000000e-01 : f32
    %218 = vector.broadcast %cst_70 : f32 to vector<2x128xf32>
    %219 = arith.mulf %218, %217 : vector<2x128xf32>
    %cst_71 = arith.constant 5.000000e-01 : f32
    %220 = vector.broadcast %cst_71 : f32 to vector<2x128xf32>
    %221 = arith.addf %219, %220 : vector<2x128xf32>
    %222 = vector.extract_strided_slice %213 {offsets = [0, 128], sizes = [2, 128], strides = [1, 1]} : vector<2x512xf32> to vector<2x128xf32>
    %cst_72 = arith.constant 5.000000e-01 : f32
    %223 = vector.broadcast %cst_72 : f32 to vector<2x128xf32>
    %224 = arith.mulf %223, %222 : vector<2x128xf32>
    %225 = math.tanh %224 : vector<2x128xf32>
    %cst_73 = arith.constant 5.000000e-01 : f32
    %226 = vector.broadcast %cst_73 : f32 to vector<2x128xf32>
    %227 = arith.mulf %226, %225 : vector<2x128xf32>
    %cst_74 = arith.constant 5.000000e-01 : f32
    %228 = vector.broadcast %cst_74 : f32 to vector<2x128xf32>
    %229 = arith.addf %227, %228 : vector<2x128xf32>
    %230 = vector.extract_strided_slice %213 {offsets = [0, 256], sizes = [2, 128], strides = [1, 1]} : vector<2x512xf32> to vector<2x128xf32>
    %231 = math.tanh %230 : vector<2x128xf32>
    %232 = vector.extract_strided_slice %213 {offsets = [0, 384], sizes = [2, 128], strides = [1, 1]} : vector<2x512xf32> to vector<2x128xf32>
    %cst_75 = arith.constant 5.000000e-01 : f32
    %233 = vector.broadcast %cst_75 : f32 to vector<2x128xf32>
    %234 = arith.mulf %233, %232 : vector<2x128xf32>
    %235 = math.tanh %234 : vector<2x128xf32>
    %cst_76 = arith.constant 5.000000e-01 : f32
    %236 = vector.broadcast %cst_76 : f32 to vector<2x128xf32>
    %237 = arith.mulf %236, %235 : vector<2x128xf32>
    %cst_77 = arith.constant 5.000000e-01 : f32
    %238 = vector.broadcast %cst_77 : f32 to vector<2x128xf32>
    %239 = arith.addf %237, %238 : vector<2x128xf32>
    %240 = arith.mulf %229, %207 : vector<2x128xf32>
    %241 = arith.mulf %221, %231 : vector<2x128xf32>
    %242 = arith.addf %240, %241 : vector<2x128xf32>
    %243 = math.tanh %242 : vector<2x128xf32>
    %244 = arith.mulf %239, %243 : vector<2x128xf32>
    %cst_78 = arith.constant dense<0.000000e+00> : vector<2x512xf32>
    %245 = tpu.matmul %244, %31, %cst_78 {dimension_numbers = #tpu.dot_dimension_numbers<[1], [0], [0], [1], [0, 0, 1, 1], [], []>} : vector<2x128xf32>, vector<128x512xf32>, vector<2x512xf32> -> vector<2x512xf32>
    %246 = arith.addf %245, %34 : vector<2x512xf32>
    %cst_79 = arith.constant dense<0.000000e+00> : vector<2x512xf32>
    %247 = tpu.matmul %244, %30, %cst_79 {dimension_numbers = #tpu.dot_dimension_numbers<[1], [0], [0], [1], [0, 0, 1, 1], [], []>} : vector<2x128xf32>, vector<128x512xf32>, vector<2x512xf32> -> vector<2x512xf32>
    %248 = arith.addf %26, %247 : vector<2x512xf32>
    %249 = vector.extract_strided_slice %248 {offsets = [0, 0], sizes = [2, 128], strides = [1, 1]} : vector<2x512xf32> to vector<2x128xf32>
    %cst_80 = arith.constant 5.000000e-01 : f32
    %250 = vector.broadcast %cst_80 : f32 to vector<2x128xf32>
    %251 = arith.mulf %250, %249 : vector<2x128xf32>
    %252 = math.tanh %251 : vector<2x128xf32>
    %cst_81 = arith.constant 5.000000e-01 : f32
    %253 = vector.broadcast %cst_81 : f32 to vector<2x128xf32>
    %254 = arith.mulf %253, %252 : vector<2x128xf32>
    %cst_82 = arith.constant 5.000000e-01 : f32
    %255 = vector.broadcast %cst_82 : f32 to vector<2x128xf32>
    %256 = arith.addf %254, %255 : vector<2x128xf32>
    %257 = vector.extract_strided_slice %248 {offsets = [0, 128], sizes = [2, 128], strides = [1, 1]} : vector<2x512xf32> to vector<2x128xf32>
    %cst_83 = arith.constant 5.000000e-01 : f32
    %258 = vector.broadcast %cst_83 : f32 to vector<2x128xf32>
    %259 = arith.mulf %258, %257 : vector<2x128xf32>
    %260 = math.tanh %259 : vector<2x128xf32>
    %cst_84 = arith.constant 5.000000e-01 : f32
    %261 = vector.broadcast %cst_84 : f32 to vector<2x128xf32>
    %262 = arith.mulf %261, %260 : vector<2x128xf32>
    %cst_85 = arith.constant 5.000000e-01 : f32
    %263 = vector.broadcast %cst_85 : f32 to vector<2x128xf32>
    %264 = arith.addf %262, %263 : vector<2x128xf32>
    %265 = vector.extract_strided_slice %248 {offsets = [0, 256], sizes = [2, 128], strides = [1, 1]} : vector<2x512xf32> to vector<2x128xf32>
    %266 = math.tanh %265 : vector<2x128xf32>
    %267 = vector.extract_strided_slice %248 {offsets = [0, 384], sizes = [2, 128], strides = [1, 1]} : vector<2x512xf32> to vector<2x128xf32>
    %cst_86 = arith.constant 5.000000e-01 : f32
    %268 = vector.broadcast %cst_86 : f32 to vector<2x128xf32>
    %269 = arith.mulf %268, %267 : vector<2x128xf32>
    %270 = math.tanh %269 : vector<2x128xf32>
    %cst_87 = arith.constant 5.000000e-01 : f32
    %271 = vector.broadcast %cst_87 : f32 to vector<2x128xf32>
    %272 = arith.mulf %271, %270 : vector<2x128xf32>
    %cst_88 = arith.constant 5.000000e-01 : f32
    %273 = vector.broadcast %cst_88 : f32 to vector<2x128xf32>
    %274 = arith.addf %272, %273 : vector<2x128xf32>
    %275 = arith.mulf %264, %242 : vector<2x128xf32>
    %276 = arith.mulf %256, %266 : vector<2x128xf32>
    %277 = arith.addf %275, %276 : vector<2x128xf32>
    %278 = math.tanh %277 : vector<2x128xf32>
    %279 = arith.mulf %274, %278 : vector<2x128xf32>
    %cst_89 = arith.constant dense<0.000000e+00> : vector<2x512xf32>
    %280 = tpu.matmul %279, %31, %cst_89 {dimension_numbers = #tpu.dot_dimension_numbers<[1], [0], [0], [1], [0, 0, 1, 1], [], []>} : vector<2x128xf32>, vector<128x512xf32>, vector<2x512xf32> -> vector<2x512xf32>
    %281 = arith.addf %280, %34 : vector<2x512xf32>
    %cst_90 = arith.constant dense<0.000000e+00> : vector<2x512xf32>
    %282 = tpu.matmul %279, %30, %cst_90 {dimension_numbers = #tpu.dot_dimension_numbers<[1], [0], [0], [1], [0, 0, 1, 1], [], []>} : vector<2x128xf32>, vector<128x512xf32>, vector<2x512xf32> -> vector<2x512xf32>
    %283 = arith.addf %29, %282 : vector<2x512xf32>
    %284 = vector.extract_strided_slice %283 {offsets = [0, 0], sizes = [2, 128], strides = [1, 1]} : vector<2x512xf32> to vector<2x128xf32>
    %cst_91 = arith.constant 5.000000e-01 : f32
    %285 = vector.broadcast %cst_91 : f32 to vector<2x128xf32>
    %286 = arith.mulf %285, %284 : vector<2x128xf32>
    %287 = math.tanh %286 : vector<2x128xf32>
    %cst_92 = arith.constant 5.000000e-01 : f32
    %288 = vector.broadcast %cst_92 : f32 to vector<2x128xf32>
    %289 = arith.mulf %288, %287 : vector<2x128xf32>
    %cst_93 = arith.constant 5.000000e-01 : f32
    %290 = vector.broadcast %cst_93 : f32 to vector<2x128xf32>
    %291 = arith.addf %289, %290 : vector<2x128xf32>
    %292 = vector.extract_strided_slice %283 {offsets = [0, 128], sizes = [2, 128], strides = [1, 1]} : vector<2x512xf32> to vector<2x128xf32>
    %cst_94 = arith.constant 5.000000e-01 : f32
    %293 = vector.broadcast %cst_94 : f32 to vector<2x128xf32>
    %294 = arith.mulf %293, %292 : vector<2x128xf32>
    %295 = math.tanh %294 : vector<2x128xf32>
    %cst_95 = arith.constant 5.000000e-01 : f32
    %296 = vector.broadcast %cst_95 : f32 to vector<2x128xf32>
    %297 = arith.mulf %296, %295 : vector<2x128xf32>
    %cst_96 = arith.constant 5.000000e-01 : f32
    %298 = vector.broadcast %cst_96 : f32 to vector<2x128xf32>
    %299 = arith.addf %297, %298 : vector<2x128xf32>
    %300 = vector.extract_strided_slice %283 {offsets = [0, 256], sizes = [2, 128], strides = [1, 1]} : vector<2x512xf32> to vector<2x128xf32>
    %301 = math.tanh %300 : vector<2x128xf32>
    %302 = vector.extract_strided_slice %283 {offsets = [0, 384], sizes = [2, 128], strides = [1, 1]} : vector<2x512xf32> to vector<2x128xf32>
    %cst_97 = arith.constant 5.000000e-01 : f32
    %303 = vector.broadcast %cst_97 : f32 to vector<2x128xf32>
    %304 = arith.mulf %303, %302 : vector<2x128xf32>
    %305 = math.tanh %304 : vector<2x128xf32>
    %cst_98 = arith.constant 5.000000e-01 : f32
    %306 = vector.broadcast %cst_98 : f32 to vector<2x128xf32>
    %307 = arith.mulf %306, %305 : vector<2x128xf32>
    %cst_99 = arith.constant 5.000000e-01 : f32
    %308 = vector.broadcast %cst_99 : f32 to vector<2x128xf32>
    %309 = arith.addf %307, %308 : vector<2x128xf32>
    %310 = arith.mulf %299, %277 : vector<2x128xf32>
    %311 = arith.mulf %291, %301 : vector<2x128xf32>
    %312 = arith.addf %310, %311 : vector<2x128xf32>
    %313 = math.tanh %312 : vector<2x128xf32>
    %314 = arith.mulf %309, %313 : vector<2x128xf32>
    %cst_100 = arith.constant dense<0.000000e+00> : vector<2x512xf32>
    %315 = tpu.matmul %314, %31, %cst_100 {dimension_numbers = #tpu.dot_dimension_numbers<[1], [0], [0], [1], [0, 0, 1, 1], [], []>} : vector<2x128xf32>, vector<128x512xf32>, vector<2x512xf32> -> vector<2x512xf32>
    %316 = arith.addf %315, %34 : vector<2x512xf32>
    %c0_101 = arith.constant 0 : index
    %c0_102 = arith.constant 0 : index
    %317 = vector.load %arg5[%c0_101, %c0_102] : memref<128x512xf32, #tpu.memory_space<vmem>>, vector<128x512xf32>
    %cst_103 = arith.constant 0.000000e+00 : f32
    %318 = vector.broadcast %cst_103 : f32 to vector<2x128xf32>
    %cst_104 = arith.constant 0.000000e+00 : f32
    %319 = vector.broadcast %cst_104 : f32 to vector<2x128xf32>
    %cst_105 = arith.constant dense<0.000000e+00> : vector<2x512xf32>
    %320 = tpu.matmul %318, %317, %cst_105 {dimension_numbers = #tpu.dot_dimension_numbers<[1], [0], [0], [1], [0, 0, 1, 1], [], []>} : vector<2x128xf32>, vector<128x512xf32>, vector<2x512xf32> -> vector<2x512xf32>
    %321 = arith.addf %71, %320 : vector<2x512xf32>
    %322 = vector.extract_strided_slice %321 {offsets = [0, 0], sizes = [2, 128], strides = [1, 1]} : vector<2x512xf32> to vector<2x128xf32>
    %cst_106 = arith.constant 5.000000e-01 : f32
    %323 = vector.broadcast %cst_106 : f32 to vector<2x128xf32>
    %324 = arith.mulf %323, %322 : vector<2x128xf32>
    %325 = math.tanh %324 : vector<2x128xf32>
    %cst_107 = arith.constant 5.000000e-01 : f32
    %326 = vector.broadcast %cst_107 : f32 to vector<2x128xf32>
    %327 = arith.mulf %326, %325 : vector<2x128xf32>
    %cst_108 = arith.constant 5.000000e-01 : f32
    %328 = vector.broadcast %cst_108 : f32 to vector<2x128xf32>
    %329 = arith.addf %327, %328 : vector<2x128xf32>
    %330 = vector.extract_strided_slice %321 {offsets = [0, 128], sizes = [2, 128], strides = [1, 1]} : vector<2x512xf32> to vector<2x128xf32>
    %cst_109 = arith.constant 5.000000e-01 : f32
    %331 = vector.broadcast %cst_109 : f32 to vector<2x128xf32>
    %332 = arith.mulf %331, %330 : vector<2x128xf32>
    %333 = math.tanh %332 : vector<2x128xf32>
    %cst_110 = arith.constant 5.000000e-01 : f32
    %334 = vector.broadcast %cst_110 : f32 to vector<2x128xf32>
    %335 = arith.mulf %334, %333 : vector<2x128xf32>
    %cst_111 = arith.constant 5.000000e-01 : f32
    %336 = vector.broadcast %cst_111 : f32 to vector<2x128xf32>
    %337 = arith.addf %335, %336 : vector<2x128xf32>
    %338 = vector.extract_strided_slice %321 {offsets = [0, 256], sizes = [2, 128], strides = [1, 1]} : vector<2x512xf32> to vector<2x128xf32>
    %339 = math.tanh %338 : vector<2x128xf32>
    %340 = vector.extract_strided_slice %321 {offsets = [0, 384], sizes = [2, 128], strides = [1, 1]} : vector<2x512xf32> to vector<2x128xf32>
    %cst_112 = arith.constant 5.000000e-01 : f32
    %341 = vector.broadcast %cst_112 : f32 to vector<2x128xf32>
    %342 = arith.mulf %341, %340 : vector<2x128xf32>
    %343 = math.tanh %342 : vector<2x128xf32>
    %cst_113 = arith.constant 5.000000e-01 : f32
    %344 = vector.broadcast %cst_113 : f32 to vector<2x128xf32>
    %345 = arith.mulf %344, %343 : vector<2x128xf32>
    %cst_114 = arith.constant 5.000000e-01 : f32
    %346 = vector.broadcast %cst_114 : f32 to vector<2x128xf32>
    %347 = arith.addf %345, %346 : vector<2x128xf32>
    %348 = arith.mulf %337, %319 : vector<2x128xf32>
    %349 = arith.mulf %329, %339 : vector<2x128xf32>
    %350 = arith.addf %348, %349 : vector<2x128xf32>
    %351 = math.tanh %350 : vector<2x128xf32>
    %352 = arith.mulf %347, %351 : vector<2x128xf32>
    %cst_115 = arith.constant dense<0.000000e+00> : vector<2x512xf32>
    %353 = tpu.matmul %352, %317, %cst_115 {dimension_numbers = #tpu.dot_dimension_numbers<[1], [0], [0], [1], [0, 0, 1, 1], [], []>} : vector<2x128xf32>, vector<128x512xf32>, vector<2x512xf32> -> vector<2x512xf32>
    %354 = arith.addf %106, %353 : vector<2x512xf32>
    %355 = vector.extract_strided_slice %354 {offsets = [0, 0], sizes = [2, 128], strides = [1, 1]} : vector<2x512xf32> to vector<2x128xf32>
    %cst_116 = arith.constant 5.000000e-01 : f32
    %356 = vector.broadcast %cst_116 : f32 to vector<2x128xf32>
    %357 = arith.mulf %356, %355 : vector<2x128xf32>
    %358 = math.tanh %357 : vector<2x128xf32>
    %cst_117 = arith.constant 5.000000e-01 : f32
    %359 = vector.broadcast %cst_117 : f32 to vector<2x128xf32>
    %360 = arith.mulf %359, %358 : vector<2x128xf32>
    %cst_118 = arith.constant 5.000000e-01 : f32
    %361 = vector.broadcast %cst_118 : f32 to vector<2x128xf32>
    %362 = arith.addf %360, %361 : vector<2x128xf32>
    %363 = vector.extract_strided_slice %354 {offsets = [0, 128], sizes = [2, 128], strides = [1, 1]} : vector<2x512xf32> to vector<2x128xf32>
    %cst_119 = arith.constant 5.000000e-01 : f32
    %364 = vector.broadcast %cst_119 : f32 to vector<2x128xf32>
    %365 = arith.mulf %364, %363 : vector<2x128xf32>
    %366 = math.tanh %365 : vector<2x128xf32>
    %cst_120 = arith.constant 5.000000e-01 : f32
    %367 = vector.broadcast %cst_120 : f32 to vector<2x128xf32>
    %368 = arith.mulf %367, %366 : vector<2x128xf32>
    %cst_121 = arith.constant 5.000000e-01 : f32
    %369 = vector.broadcast %cst_121 : f32 to vector<2x128xf32>
    %370 = arith.addf %368, %369 : vector<2x128xf32>
    %371 = vector.extract_strided_slice %354 {offsets = [0, 256], sizes = [2, 128], strides = [1, 1]} : vector<2x512xf32> to vector<2x128xf32>
    %372 = math.tanh %371 : vector<2x128xf32>
    %373 = vector.extract_strided_slice %354 {offsets = [0, 384], sizes = [2, 128], strides = [1, 1]} : vector<2x512xf32> to vector<2x128xf32>
    %cst_122 = arith.constant 5.000000e-01 : f32
    %374 = vector.broadcast %cst_122 : f32 to vector<2x128xf32>
    %375 = arith.mulf %374, %373 : vector<2x128xf32>
    %376 = math.tanh %375 : vector<2x128xf32>
    %cst_123 = arith.constant 5.000000e-01 : f32
    %377 = vector.broadcast %cst_123 : f32 to vector<2x128xf32>
    %378 = arith.mulf %377, %376 : vector<2x128xf32>
    %cst_124 = arith.constant 5.000000e-01 : f32
    %379 = vector.broadcast %cst_124 : f32 to vector<2x128xf32>
    %380 = arith.addf %378, %379 : vector<2x128xf32>
    %381 = arith.mulf %370, %350 : vector<2x128xf32>
    %382 = arith.mulf %362, %372 : vector<2x128xf32>
    %383 = arith.addf %381, %382 : vector<2x128xf32>
    %384 = math.tanh %383 : vector<2x128xf32>
    %385 = arith.mulf %380, %384 : vector<2x128xf32>
    %cst_125 = arith.constant dense<0.000000e+00> : vector<2x512xf32>
    %386 = tpu.matmul %385, %317, %cst_125 {dimension_numbers = #tpu.dot_dimension_numbers<[1], [0], [0], [1], [0, 0, 1, 1], [], []>} : vector<2x128xf32>, vector<128x512xf32>, vector<2x512xf32> -> vector<2x512xf32>
    %387 = arith.addf %141, %386 : vector<2x512xf32>
    %388 = vector.extract_strided_slice %387 {offsets = [0, 0], sizes = [2, 128], strides = [1, 1]} : vector<2x512xf32> to vector<2x128xf32>
    %cst_126 = arith.constant 5.000000e-01 : f32
    %389 = vector.broadcast %cst_126 : f32 to vector<2x128xf32>
    %390 = arith.mulf %389, %388 : vector<2x128xf32>
    %391 = math.tanh %390 : vector<2x128xf32>
    %cst_127 = arith.constant 5.000000e-01 : f32
    %392 = vector.broadcast %cst_127 : f32 to vector<2x128xf32>
    %393 = arith.mulf %392, %391 : vector<2x128xf32>
    %cst_128 = arith.constant 5.000000e-01 : f32
    %394 = vector.broadcast %cst_128 : f32 to vector<2x128xf32>
    %395 = arith.addf %393, %394 : vector<2x128xf32>
    %396 = vector.extract_strided_slice %387 {offsets = [0, 128], sizes = [2, 128], strides = [1, 1]} : vector<2x512xf32> to vector<2x128xf32>
    %cst_129 = arith.constant 5.000000e-01 : f32
    %397 = vector.broadcast %cst_129 : f32 to vector<2x128xf32>
    %398 = arith.mulf %397, %396 : vector<2x128xf32>
    %399 = math.tanh %398 : vector<2x128xf32>
    %cst_130 = arith.constant 5.000000e-01 : f32
    %400 = vector.broadcast %cst_130 : f32 to vector<2x128xf32>
    %401 = arith.mulf %400, %399 : vector<2x128xf32>
    %cst_131 = arith.constant 5.000000e-01 : f32
    %402 = vector.broadcast %cst_131 : f32 to vector<2x128xf32>
    %403 = arith.addf %401, %402 : vector<2x128xf32>
    %404 = vector.extract_strided_slice %387 {offsets = [0, 256], sizes = [2, 128], strides = [1, 1]} : vector<2x512xf32> to vector<2x128xf32>
    %405 = math.tanh %404 : vector<2x128xf32>
    %406 = vector.extract_strided_slice %387 {offsets = [0, 384], sizes = [2, 128], strides = [1, 1]} : vector<2x512xf32> to vector<2x128xf32>
    %cst_132 = arith.constant 5.000000e-01 : f32
    %407 = vector.broadcast %cst_132 : f32 to vector<2x128xf32>
    %408 = arith.mulf %407, %406 : vector<2x128xf32>
    %409 = math.tanh %408 : vector<2x128xf32>
    %cst_133 = arith.constant 5.000000e-01 : f32
    %410 = vector.broadcast %cst_133 : f32 to vector<2x128xf32>
    %411 = arith.mulf %410, %409 : vector<2x128xf32>
    %cst_134 = arith.constant 5.000000e-01 : f32
    %412 = vector.broadcast %cst_134 : f32 to vector<2x128xf32>
    %413 = arith.addf %411, %412 : vector<2x128xf32>
    %414 = arith.mulf %403, %383 : vector<2x128xf32>
    %415 = arith.mulf %395, %405 : vector<2x128xf32>
    %416 = arith.addf %414, %415 : vector<2x128xf32>
    %417 = math.tanh %416 : vector<2x128xf32>
    %418 = arith.mulf %413, %417 : vector<2x128xf32>
    %cst_135 = arith.constant dense<0.000000e+00> : vector<2x512xf32>
    %419 = tpu.matmul %418, %317, %cst_135 {dimension_numbers = #tpu.dot_dimension_numbers<[1], [0], [0], [1], [0, 0, 1, 1], [], []>} : vector<2x128xf32>, vector<128x512xf32>, vector<2x512xf32> -> vector<2x512xf32>
    %420 = arith.addf %176, %419 : vector<2x512xf32>
    %421 = vector.extract_strided_slice %420 {offsets = [0, 0], sizes = [2, 128], strides = [1, 1]} : vector<2x512xf32> to vector<2x128xf32>
    %cst_136 = arith.constant 5.000000e-01 : f32
    %422 = vector.broadcast %cst_136 : f32 to vector<2x128xf32>
    %423 = arith.mulf %422, %421 : vector<2x128xf32>
    %424 = math.tanh %423 : vector<2x128xf32>
    %cst_137 = arith.constant 5.000000e-01 : f32
    %425 = vector.broadcast %cst_137 : f32 to vector<2x128xf32>
    %426 = arith.mulf %425, %424 : vector<2x128xf32>
    %cst_138 = arith.constant 5.000000e-01 : f32
    %427 = vector.broadcast %cst_138 : f32 to vector<2x128xf32>
    %428 = arith.addf %426, %427 : vector<2x128xf32>
    %429 = vector.extract_strided_slice %420 {offsets = [0, 128], sizes = [2, 128], strides = [1, 1]} : vector<2x512xf32> to vector<2x128xf32>
    %cst_139 = arith.constant 5.000000e-01 : f32
    %430 = vector.broadcast %cst_139 : f32 to vector<2x128xf32>
    %431 = arith.mulf %430, %429 : vector<2x128xf32>
    %432 = math.tanh %431 : vector<2x128xf32>
    %cst_140 = arith.constant 5.000000e-01 : f32
    %433 = vector.broadcast %cst_140 : f32 to vector<2x128xf32>
    %434 = arith.mulf %433, %432 : vector<2x128xf32>
    %cst_141 = arith.constant 5.000000e-01 : f32
    %435 = vector.broadcast %cst_141 : f32 to vector<2x128xf32>
    %436 = arith.addf %434, %435 : vector<2x128xf32>
    %437 = vector.extract_strided_slice %420 {offsets = [0, 256], sizes = [2, 128], strides = [1, 1]} : vector<2x512xf32> to vector<2x128xf32>
    %438 = math.tanh %437 : vector<2x128xf32>
    %439 = vector.extract_strided_slice %420 {offsets = [0, 384], sizes = [2, 128], strides = [1, 1]} : vector<2x512xf32> to vector<2x128xf32>
    %cst_142 = arith.constant 5.000000e-01 : f32
    %440 = vector.broadcast %cst_142 : f32 to vector<2x128xf32>
    %441 = arith.mulf %440, %439 : vector<2x128xf32>
    %442 = math.tanh %441 : vector<2x128xf32>
    %cst_143 = arith.constant 5.000000e-01 : f32
    %443 = vector.broadcast %cst_143 : f32 to vector<2x128xf32>
    %444 = arith.mulf %443, %442 : vector<2x128xf32>
    %cst_144 = arith.constant 5.000000e-01 : f32
    %445 = vector.broadcast %cst_144 : f32 to vector<2x128xf32>
    %446 = arith.addf %444, %445 : vector<2x128xf32>
    %447 = arith.mulf %436, %416 : vector<2x128xf32>
    %448 = arith.mulf %428, %438 : vector<2x128xf32>
    %449 = arith.addf %447, %448 : vector<2x128xf32>
    %450 = math.tanh %449 : vector<2x128xf32>
    %451 = arith.mulf %446, %450 : vector<2x128xf32>
    %cst_145 = arith.constant dense<0.000000e+00> : vector<2x512xf32>
    %452 = tpu.matmul %451, %317, %cst_145 {dimension_numbers = #tpu.dot_dimension_numbers<[1], [0], [0], [1], [0, 0, 1, 1], [], []>} : vector<2x128xf32>, vector<128x512xf32>, vector<2x512xf32> -> vector<2x512xf32>
    %453 = arith.addf %211, %452 : vector<2x512xf32>
    %454 = vector.extract_strided_slice %453 {offsets = [0, 0], sizes = [2, 128], strides = [1, 1]} : vector<2x512xf32> to vector<2x128xf32>
    %cst_146 = arith.constant 5.000000e-01 : f32
    %455 = vector.broadcast %cst_146 : f32 to vector<2x128xf32>
    %456 = arith.mulf %455, %454 : vector<2x128xf32>
    %457 = math.tanh %456 : vector<2x128xf32>
    %cst_147 = arith.constant 5.000000e-01 : f32
    %458 = vector.broadcast %cst_147 : f32 to vector<2x128xf32>
    %459 = arith.mulf %458, %457 : vector<2x128xf32>
    %cst_148 = arith.constant 5.000000e-01 : f32
    %460 = vector.broadcast %cst_148 : f32 to vector<2x128xf32>
    %461 = arith.addf %459, %460 : vector<2x128xf32>
    %462 = vector.extract_strided_slice %453 {offsets = [0, 128], sizes = [2, 128], strides = [1, 1]} : vector<2x512xf32> to vector<2x128xf32>
    %cst_149 = arith.constant 5.000000e-01 : f32
    %463 = vector.broadcast %cst_149 : f32 to vector<2x128xf32>
    %464 = arith.mulf %463, %462 : vector<2x128xf32>
    %465 = math.tanh %464 : vector<2x128xf32>
    %cst_150 = arith.constant 5.000000e-01 : f32
    %466 = vector.broadcast %cst_150 : f32 to vector<2x128xf32>
    %467 = arith.mulf %466, %465 : vector<2x128xf32>
    %cst_151 = arith.constant 5.000000e-01 : f32
    %468 = vector.broadcast %cst_151 : f32 to vector<2x128xf32>
    %469 = arith.addf %467, %468 : vector<2x128xf32>
    %470 = vector.extract_strided_slice %453 {offsets = [0, 256], sizes = [2, 128], strides = [1, 1]} : vector<2x512xf32> to vector<2x128xf32>
    %471 = math.tanh %470 : vector<2x128xf32>
    %472 = vector.extract_strided_slice %453 {offsets = [0, 384], sizes = [2, 128], strides = [1, 1]} : vector<2x512xf32> to vector<2x128xf32>
    %cst_152 = arith.constant 5.000000e-01 : f32
    %473 = vector.broadcast %cst_152 : f32 to vector<2x128xf32>
    %474 = arith.mulf %473, %472 : vector<2x128xf32>
    %475 = math.tanh %474 : vector<2x128xf32>
    %cst_153 = arith.constant 5.000000e-01 : f32
    %476 = vector.broadcast %cst_153 : f32 to vector<2x128xf32>
    %477 = arith.mulf %476, %475 : vector<2x128xf32>
    %cst_154 = arith.constant 5.000000e-01 : f32
    %478 = vector.broadcast %cst_154 : f32 to vector<2x128xf32>
    %479 = arith.addf %477, %478 : vector<2x128xf32>
    %480 = arith.mulf %469, %449 : vector<2x128xf32>
    %481 = arith.mulf %461, %471 : vector<2x128xf32>
    %482 = arith.addf %480, %481 : vector<2x128xf32>
    %483 = math.tanh %482 : vector<2x128xf32>
    %484 = arith.mulf %479, %483 : vector<2x128xf32>
    %cst_155 = arith.constant dense<0.000000e+00> : vector<2x512xf32>
    %485 = tpu.matmul %484, %317, %cst_155 {dimension_numbers = #tpu.dot_dimension_numbers<[1], [0], [0], [1], [0, 0, 1, 1], [], []>} : vector<2x128xf32>, vector<128x512xf32>, vector<2x512xf32> -> vector<2x512xf32>
    %486 = arith.addf %246, %485 : vector<2x512xf32>
    %487 = vector.extract_strided_slice %486 {offsets = [0, 0], sizes = [2, 128], strides = [1, 1]} : vector<2x512xf32> to vector<2x128xf32>
    %cst_156 = arith.constant 5.000000e-01 : f32
    %488 = vector.broadcast %cst_156 : f32 to vector<2x128xf32>
    %489 = arith.mulf %488, %487 : vector<2x128xf32>
    %490 = math.tanh %489 : vector<2x128xf32>
    %cst_157 = arith.constant 5.000000e-01 : f32
    %491 = vector.broadcast %cst_157 : f32 to vector<2x128xf32>
    %492 = arith.mulf %491, %490 : vector<2x128xf32>
    %cst_158 = arith.constant 5.000000e-01 : f32
    %493 = vector.broadcast %cst_158 : f32 to vector<2x128xf32>
    %494 = arith.addf %492, %493 : vector<2x128xf32>
    %495 = vector.extract_strided_slice %486 {offsets = [0, 128], sizes = [2, 128], strides = [1, 1]} : vector<2x512xf32> to vector<2x128xf32>
    %cst_159 = arith.constant 5.000000e-01 : f32
    %496 = vector.broadcast %cst_159 : f32 to vector<2x128xf32>
    %497 = arith.mulf %496, %495 : vector<2x128xf32>
    %498 = math.tanh %497 : vector<2x128xf32>
    %cst_160 = arith.constant 5.000000e-01 : f32
    %499 = vector.broadcast %cst_160 : f32 to vector<2x128xf32>
    %500 = arith.mulf %499, %498 : vector<2x128xf32>
    %cst_161 = arith.constant 5.000000e-01 : f32
    %501 = vector.broadcast %cst_161 : f32 to vector<2x128xf32>
    %502 = arith.addf %500, %501 : vector<2x128xf32>
    %503 = vector.extract_strided_slice %486 {offsets = [0, 256], sizes = [2, 128], strides = [1, 1]} : vector<2x512xf32> to vector<2x128xf32>
    %504 = math.tanh %503 : vector<2x128xf32>
    %505 = vector.extract_strided_slice %486 {offsets = [0, 384], sizes = [2, 128], strides = [1, 1]} : vector<2x512xf32> to vector<2x128xf32>
    %cst_162 = arith.constant 5.000000e-01 : f32
    %506 = vector.broadcast %cst_162 : f32 to vector<2x128xf32>
    %507 = arith.mulf %506, %505 : vector<2x128xf32>
    %508 = math.tanh %507 : vector<2x128xf32>
    %cst_163 = arith.constant 5.000000e-01 : f32
    %509 = vector.broadcast %cst_163 : f32 to vector<2x128xf32>
    %510 = arith.mulf %509, %508 : vector<2x128xf32>
    %cst_164 = arith.constant 5.000000e-01 : f32
    %511 = vector.broadcast %cst_164 : f32 to vector<2x128xf32>
    %512 = arith.addf %510, %511 : vector<2x128xf32>
    %513 = arith.mulf %502, %482 : vector<2x128xf32>
    %514 = arith.mulf %494, %504 : vector<2x128xf32>
    %515 = arith.addf %513, %514 : vector<2x128xf32>
    %516 = math.tanh %515 : vector<2x128xf32>
    %517 = arith.mulf %512, %516 : vector<2x128xf32>
    %cst_165 = arith.constant dense<0.000000e+00> : vector<2x512xf32>
    %518 = tpu.matmul %517, %317, %cst_165 {dimension_numbers = #tpu.dot_dimension_numbers<[1], [0], [0], [1], [0, 0, 1, 1], [], []>} : vector<2x128xf32>, vector<128x512xf32>, vector<2x512xf32> -> vector<2x512xf32>
    %519 = arith.addf %281, %518 : vector<2x512xf32>
    %520 = vector.extract_strided_slice %519 {offsets = [0, 0], sizes = [2, 128], strides = [1, 1]} : vector<2x512xf32> to vector<2x128xf32>
    %cst_166 = arith.constant 5.000000e-01 : f32
    %521 = vector.broadcast %cst_166 : f32 to vector<2x128xf32>
    %522 = arith.mulf %521, %520 : vector<2x128xf32>
    %523 = math.tanh %522 : vector<2x128xf32>
    %cst_167 = arith.constant 5.000000e-01 : f32
    %524 = vector.broadcast %cst_167 : f32 to vector<2x128xf32>
    %525 = arith.mulf %524, %523 : vector<2x128xf32>
    %cst_168 = arith.constant 5.000000e-01 : f32
    %526 = vector.broadcast %cst_168 : f32 to vector<2x128xf32>
    %527 = arith.addf %525, %526 : vector<2x128xf32>
    %528 = vector.extract_strided_slice %519 {offsets = [0, 128], sizes = [2, 128], strides = [1, 1]} : vector<2x512xf32> to vector<2x128xf32>
    %cst_169 = arith.constant 5.000000e-01 : f32
    %529 = vector.broadcast %cst_169 : f32 to vector<2x128xf32>
    %530 = arith.mulf %529, %528 : vector<2x128xf32>
    %531 = math.tanh %530 : vector<2x128xf32>
    %cst_170 = arith.constant 5.000000e-01 : f32
    %532 = vector.broadcast %cst_170 : f32 to vector<2x128xf32>
    %533 = arith.mulf %532, %531 : vector<2x128xf32>
    %cst_171 = arith.constant 5.000000e-01 : f32
    %534 = vector.broadcast %cst_171 : f32 to vector<2x128xf32>
    %535 = arith.addf %533, %534 : vector<2x128xf32>
    %536 = vector.extract_strided_slice %519 {offsets = [0, 256], sizes = [2, 128], strides = [1, 1]} : vector<2x512xf32> to vector<2x128xf32>
    %537 = math.tanh %536 : vector<2x128xf32>
    %538 = vector.extract_strided_slice %519 {offsets = [0, 384], sizes = [2, 128], strides = [1, 1]} : vector<2x512xf32> to vector<2x128xf32>
    %cst_172 = arith.constant 5.000000e-01 : f32
    %539 = vector.broadcast %cst_172 : f32 to vector<2x128xf32>
    %540 = arith.mulf %539, %538 : vector<2x128xf32>
    %541 = math.tanh %540 : vector<2x128xf32>
    %cst_173 = arith.constant 5.000000e-01 : f32
    %542 = vector.broadcast %cst_173 : f32 to vector<2x128xf32>
    %543 = arith.mulf %542, %541 : vector<2x128xf32>
    %cst_174 = arith.constant 5.000000e-01 : f32
    %544 = vector.broadcast %cst_174 : f32 to vector<2x128xf32>
    %545 = arith.addf %543, %544 : vector<2x128xf32>
    %546 = arith.mulf %535, %515 : vector<2x128xf32>
    %547 = arith.mulf %527, %537 : vector<2x128xf32>
    %548 = arith.addf %546, %547 : vector<2x128xf32>
    %549 = math.tanh %548 : vector<2x128xf32>
    %550 = arith.mulf %545, %549 : vector<2x128xf32>
    %cst_175 = arith.constant dense<0.000000e+00> : vector<2x512xf32>
    %551 = tpu.matmul %550, %317, %cst_175 {dimension_numbers = #tpu.dot_dimension_numbers<[1], [0], [0], [1], [0, 0, 1, 1], [], []>} : vector<2x128xf32>, vector<128x512xf32>, vector<2x512xf32> -> vector<2x512xf32>
    %552 = arith.addf %316, %551 : vector<2x512xf32>
    %553 = vector.extract_strided_slice %552 {offsets = [0, 0], sizes = [2, 128], strides = [1, 1]} : vector<2x512xf32> to vector<2x128xf32>
    %cst_176 = arith.constant 5.000000e-01 : f32
    %554 = vector.broadcast %cst_176 : f32 to vector<2x128xf32>
    %555 = arith.mulf %554, %553 : vector<2x128xf32>
    %556 = math.tanh %555 : vector<2x128xf32>
    %cst_177 = arith.constant 5.000000e-01 : f32
    %557 = vector.broadcast %cst_177 : f32 to vector<2x128xf32>
    %558 = arith.mulf %557, %556 : vector<2x128xf32>
    %cst_178 = arith.constant 5.000000e-01 : f32
    %559 = vector.broadcast %cst_178 : f32 to vector<2x128xf32>
    %560 = arith.addf %558, %559 : vector<2x128xf32>
    %561 = vector.extract_strided_slice %552 {offsets = [0, 128], sizes = [2, 128], strides = [1, 1]} : vector<2x512xf32> to vector<2x128xf32>
    %cst_179 = arith.constant 5.000000e-01 : f32
    %562 = vector.broadcast %cst_179 : f32 to vector<2x128xf32>
    %563 = arith.mulf %562, %561 : vector<2x128xf32>
    %564 = math.tanh %563 : vector<2x128xf32>
    %cst_180 = arith.constant 5.000000e-01 : f32
    %565 = vector.broadcast %cst_180 : f32 to vector<2x128xf32>
    %566 = arith.mulf %565, %564 : vector<2x128xf32>
    %cst_181 = arith.constant 5.000000e-01 : f32
    %567 = vector.broadcast %cst_181 : f32 to vector<2x128xf32>
    %568 = arith.addf %566, %567 : vector<2x128xf32>
    %569 = vector.extract_strided_slice %552 {offsets = [0, 256], sizes = [2, 128], strides = [1, 1]} : vector<2x512xf32> to vector<2x128xf32>
    %570 = math.tanh %569 : vector<2x128xf32>
    %571 = vector.extract_strided_slice %552 {offsets = [0, 384], sizes = [2, 128], strides = [1, 1]} : vector<2x512xf32> to vector<2x128xf32>
    %cst_182 = arith.constant 5.000000e-01 : f32
    %572 = vector.broadcast %cst_182 : f32 to vector<2x128xf32>
    %573 = arith.mulf %572, %571 : vector<2x128xf32>
    %574 = math.tanh %573 : vector<2x128xf32>
    %cst_183 = arith.constant 5.000000e-01 : f32
    %575 = vector.broadcast %cst_183 : f32 to vector<2x128xf32>
    %576 = arith.mulf %575, %574 : vector<2x128xf32>
    %cst_184 = arith.constant 5.000000e-01 : f32
    %577 = vector.broadcast %cst_184 : f32 to vector<2x128xf32>
    %578 = arith.addf %576, %577 : vector<2x128xf32>
    %579 = arith.mulf %568, %548 : vector<2x128xf32>
    %580 = arith.mulf %560, %570 : vector<2x128xf32>
    %581 = arith.addf %579, %580 : vector<2x128xf32>
    %582 = math.tanh %581 : vector<2x128xf32>
    %583 = arith.mulf %578, %582 : vector<2x128xf32>
    %c0_185 = arith.constant 0 : index
    %c0_186 = arith.constant 0 : index
    %584 = vector.load %arg7[%c0_185, %c0_186] : memref<128x128xf32, #tpu.memory_space<vmem>>, vector<128x128xf32>
    %cst_187 = arith.constant dense<0.000000e+00> : vector<2x128xf32>
    %585 = tpu.matmul %583, %584, %cst_187 {dimension_numbers = #tpu.dot_dimension_numbers<[1], [0], [0], [1], [0, 0, 1, 1], [], []>} : vector<2x128xf32>, vector<128x128xf32>, vector<2x128xf32> -> vector<2x128xf32>
    %c0_188 = arith.constant 0 : index
    %c0_189 = arith.constant 0 : index
    %586 = vector.load %arg8[%c0_188, %c0_189] : memref<1x128xf32, #tpu.memory_space<vmem>>, vector<1x128xf32>
    %587 = vector.broadcast %586 : vector<1x128xf32> to vector<2x128xf32>
    %588 = arith.addf %585, %587 : vector<2x128xf32>
    %cst_190 = arith.constant 0.000000e+00 : f32
    %589 = vector.broadcast %cst_190 : f32 to vector<2x128xf32>
    %590 = arith.maximumf %588, %589 : vector<2x128xf32>
    %c0_191 = arith.constant 0 : index
    %c0_192 = arith.constant 0 : index
    %591 = vector.load %arg9[%c0_191, %c0_192] : memref<128x4xf32, #tpu.memory_space<vmem>>, vector<128x4xf32>
    %cst_193 = arith.constant dense<0.000000e+00> : vector<2x4xf32>
    %592 = tpu.matmul %590, %591, %cst_193 {dimension_numbers = #tpu.dot_dimension_numbers<[1], [0], [0], [1], [0, 0, 1, 1], [], []>} : vector<2x128xf32>, vector<128x4xf32>, vector<2x4xf32> -> vector<2x4xf32>
    %c0_194 = arith.constant 0 : index
    %c0_195 = arith.constant 0 : index
    %593 = vector.load %arg10[%c0_194, %c0_195] : memref<1x4xf32, #tpu.memory_space<vmem>>, vector<1x4xf32>
    %594 = vector.broadcast %593 : vector<1x4xf32> to vector<2x4xf32>
    %595 = arith.addf %592, %594 : vector<2x4xf32>
    %c0_196 = arith.constant 0 : index
    %c0_197 = arith.constant 0 : index
    %596 = vector.load %arg11[%c0_196, %c0_197] : memref<2x4xf32, #tpu.memory_space<vmem>>, vector<2x4xf32>
    tpu.vector_store %arg11[%c0_196, %c0_197], %595 {strides = array<i32>} : memref<2x4xf32, #tpu.memory_space<vmem>>, vector<2x4xf32>,
    return
  }
}

</mosaic_0001>

<bundles_post_ra>
// kernel: lstm_controller_forward.1
= control target key start
LH: loop header
LB: loop body
LE: loop exit
PB: predicated region body
PF: predicated region fallthrough
CT: control target
= control target key end

     0   :  { %16 = vsyncpa [#allocation3], 0  ;;  %s8783_s0 = inlined_call_operand.vmem [shape: f32[16,16], index: 0, kind: input, shape index: {}]   ;;  %s8784_s1 = inlined_call_operand.hbm [shape: f32[16,512], index: 1, kind: input, shape index: {}]   ;;  %s8785_s2 = inlined_call_operand.hbm [shape: f32[128,512], index: 2, kind: input, shape index: {}]   ;;  %s8786_s3 = inlined_call_operand.hbm [shape: f32[1,512], index: 3, kind: input, shape index: {}]   ;;  %s8787_s4 = inlined_call_operand.hbm [shape: f32[128,512], index: 4, kind: input, shape index: {}]   ;;  %s8788_s5 = inlined_call_operand.hbm [shape: f32[128,512], index: 5, kind: input, shape index: {}]   ;;  %s8789_s6 = inlined_call_operand.hbm [shape: f32[1,512], index: 6, kind: input, shape index: {}]   ;;  %s8790_s7 = inlined_call_operand.vmem [shape: f32[128,128], index: 7, kind: input, shape index: {}]   ;;  %s8791_s8 = inlined_call_operand.hbm [shape: f32[1,128], index: 8, kind: input, shape index: {}]   ;;  %s8792_s9 = inlined_call_operand.vmem [shape: f32[128,4], index: 9, kind: input, shape index: {}]   ;;  %s8793_s10 = inlined_call_operand.hbm [shape: f32[1,4], index: 10, kind: input, shape index: {}]   ;;  %s8794_s11 = inlined_call_operand.hbm [shape: f32[2,4], index: 11, kind: output, shape index: {}]  }
   0x1   :  { %17 = vsyncpa [#allocation6], 0 }
   0x2   :  { %18 = vsyncpa [#allocation9], 0 }
   0x3   :  { %19 = vsyncpa [#allocation12], 0 }
   0x4   :  { %20 = vsyncpa [#allocation15], 0 }
   0x5   :  { %21 = vsyncpa [#allocation4], 0  ;;  %s5463_s17 = smov [#allocation5]   ;;  %s5464_s19 = smov [#allocation8]  }
   0x6   :  { %s41_s18 = sshll.u32 %s5463_s17, 4  ;;  %s63_s20 = sshll.u32 %s5464_s19, 4  ;;  %s42_s18 = int_to_ptr.vmem [resolvable:$true] %s41_s18  ;;  %s64_s20 = int_to_ptr.vmem [resolvable:$true] %s63_s20 }
   0x7   :  { %s5279_s21 = scalar_lea.vmem %s42_s18, 8192  ;;  %p5284_p1 = scmp.lt.s32.totalorder %s42_s18, %s42_s18 }
   0x8   :  { %p5280_p0 = scmp.ne.s32.totalorder %s42_s18, %s5279_s21  ;;  %p5285_p2 = scmp.lt.s32.totalorder %s5279_s21, %s5279_s21 }
   0xa   :  { %p5286_p3 = por %p5285_p2, %p5284_p1 }
   0xc   :  { %p5287_p4 = pnand %p5286_p3, %p5280_p0 }
   0xe   :  { %5290 = shalt.err (!%p5287_p4)
}
   0xf   :  { %s5465_s22 = smov 512   ;;  %s5466_s23 = smov 32  }
  0x10   :  { %47 = dma.hbm_to_vmem [thread:$0]  %s8785_s2, 8192, %s42_s18, [#allocation6], %s5465_s22, %s5465_s22, %s5466_s23  }
  0x11   :  { %s5299_s26 = scalar_lea.vmem %s64_s20, 8192  ;;  %p5304_p6 = scmp.lt.s32.totalorder %s64_s20, %s64_s20 }
  0x12   :  { %p5300_p5 = scmp.ne.s32.totalorder %s64_s20, %s5299_s26  ;;  %p5305_p7 = scmp.lt.s32.totalorder %s5299_s26, %s5299_s26 }
  0x14   :  { %p5306_p8 = por %p5305_p7, %p5304_p6 }
  0x16   :  { %p5307_p9 = pnand %p5306_p8, %p5300_p5 }
  0x18   :  { %5310 = shalt.err (!%p5307_p9)
}
  0x19   :  { %69 = dma.hbm_to_vmem [thread:$0]  %s8787_s4, 8192, %s64_s20, [#allocation9], %s5465_s22, %s5465_s22, %s5466_s23  }
  0x1a   :  { %s5467_s29 = smov [#allocation11]   ;;  %s5468_s12 = smov [#allocation2]  }
  0x1b   :  { %s88_s30 = sshll.u32 %s5467_s29, 4  ;;  %s29_s13 = sshll.u32 %s5468_s12, 4  ;;  %s89_s30 = int_to_ptr.vmem [resolvable:$true] %s88_s30  ;;  %s30_s13 = int_to_ptr.vmem [resolvable:$true] %s29_s13 }
  0x1c   :  { %s5319_s2 = scalar_lea.vmem %s89_s30, 64  ;;  %p5324_p11 = scmp.lt.s32.totalorder %s89_s30, %s89_s30 }
  0x1d   :  { %p5320_p10 = scmp.ne.s32.totalorder %s89_s30, %s5319_s2  ;;  %p5325_p12 = scmp.lt.s32.totalorder %s5319_s2, %s5319_s2 }
  0x1f   :  { %p5326_p13 = por %p5325_p12, %p5324_p11 }
  0x21   :  { %p5327_p0 = pnand %p5326_p13, %p5320_p10 }
  0x23   :  { %5330 = shalt.err (!%p5327_p0)
}
  0x24   :  { %91 = dma.hbm_to_vmem [thread:$0]  %s8789_s6, 64, %s89_s30, [#allocation12]  }
  0x25   :  { %s5339_s16 = scalar_lea.vmem %s30_s13, 1024  ;;  %p5344_p2 = scmp.lt.s32.totalorder %s30_s13, %s30_s13 }
  0x26   :  { %p5340_p1 = scmp.ne.s32.totalorder %s30_s13, %s5339_s16  ;;  %p5345_p3 = scmp.lt.s32.totalorder %s5339_s16, %s5339_s16 }
  0x28   :  { %p5346_p4 = por %p5345_p3, %p5344_p2 }
  0x2a   :  { %p5347_p5 = pnand %p5346_p4, %p5340_p1 }
  0x2c   :  { %5350 = shalt.err (!%p5347_p5)
}
  0x2d   :  { %35 = dma.hbm_to_vmem [thread:$0]  %s8784_s1, 1024, %s30_s13, [#allocation3], %s5465_s22, %s5465_s22, %s5466_s23  }
  0x2e   :  { %s5469_s18 = smov [#allocation7]   ;;  %s5470_s20 = smov [#allocation10]  }
  0x2f   :  { %s54_s19 = sshll.u32 %s5469_s18, 4  ;;  %s75_s21 = sshll.u32 %s5470_s20, 4  ;;  %s55_s19 = int_to_ptr.vmem [resolvable:$true] %s54_s19  ;;  %s76_s21 = int_to_ptr.vmem [resolvable:$true] %s75_s21 }
  0x30   :  { %s5359_s6 = scalar_lea.vmem %s55_s19, 64  ;;  %p5364_p7 = scmp.lt.s32.totalorder %s55_s19, %s55_s19 }
  0x31   :  { %p5360_p6 = scmp.ne.s32.totalorder %s55_s19, %s5359_s6  ;;  %p5365_p8 = scmp.lt.s32.totalorder %s5359_s6, %s5359_s6 }
  0x33   :  { %p5366_p9 = por %p5365_p8, %p5364_p7 }
  0x35   :  { %p5367_p10 = pnand %p5366_p9, %p5360_p6 }
  0x37   :  { %5370 = shalt.err (!%p5367_p10)
}
  0x38   :  { %57 = dma.hbm_to_vmem [thread:$0]  %s8786_s3, 64, %s55_s19, [#allocation6]  }
  0x39   :  { %s5379_s26 = scalar_lea.vmem %s76_s21, 8192  ;;  %p5384_p12 = scmp.lt.s32.totalorder %s76_s21, %s76_s21 }
  0x3a   :  { %p5380_p11 = scmp.ne.s32.totalorder %s76_s21, %s5379_s26  ;;  %p5385_p13 = scmp.lt.s32.totalorder %s5379_s26, %s5379_s26 }
  0x3c   :  { %p5386_p0 = por %p5385_p13, %p5384_p12 }
  0x3e   :  { %p5387_p1 = pnand %p5386_p0, %p5380_p11 }
  0x40   :  { %5390 = shalt.err (!%p5387_p1)
}
  0x41   :  { %81 = dma.hbm_to_vmem [thread:$0]  %s8788_s5, 8192, %s76_s21, [#allocation9], %s5465_s22, %s5465_s22, %s5466_s23  }
  0x42   :  { %s5471_s28 = smov [#allocation13]   ;;  %s5472_s30 = smov [#allocation14]  }
  0x43   :  { %s100_s29 = sshll.u32 %s5471_s28, 4  ;;  %s112_s12 = sshll.u32 %s5472_s30, 4  ;;  %s101_s29 = int_to_ptr.vmem [resolvable:$true] %s100_s29  ;;  %s113_s12 = int_to_ptr.vmem [resolvable:$true] %s112_s12 }
  0x44   :  { %s5399_s3 = scalar_lea.vmem %s101_s29, 16  ;;  %s5403_s13 = scalar_lea.vmem %s101_s29, 32 }
  0x45   :  { %p5400_p2 = scmp.ne.s32.totalorder %s101_s29, %s5399_s3  ;;  %p5404_p3 = scmp.lt.s32.totalorder %s101_s29, %s101_s29 }
  0x46   :  { %p5405_p4 = scmp.lt.s32.totalorder %s5403_s13, %s5399_s3 }
  0x48   :  { %p5406_p5 = por %p5405_p4, %p5404_p3 }
  0x4a   :  { %p5407_p6 = pnand %p5406_p5, %p5400_p2 }
  0x4c   :  { %5410 = shalt.err (!%p5407_p6)
}
  0x4d   :  { %103 = dma.hbm_to_vmem [thread:$0]  %s8791_s8, 16, %s101_s29, [#allocation12]  }
  0x4e   :  { %s5419_s15 = scalar_lea.vmem %s113_s12, 16  ;;  %s5423_s5 = scalar_lea.vmem %s113_s12, 32 }
  0x4f   :  { %p5420_p7 = scmp.ne.s32.totalorder %s113_s12, %s5419_s15  ;;  %p5424_p8 = scmp.lt.s32.totalorder %s113_s12, %s113_s12 }
  0x50   :  { %p5425_p9 = scmp.lt.s32.totalorder %s5423_s5, %s5419_s15 }
  0x52   :  { %p5426_p10 = por %p5425_p9, %p5424_p8 }
  0x54   :  { %p5427_p11 = pnand %p5426_p10, %p5420_p7 }
  0x56   :  { %5430 = shalt.err (!%p5427_p11)
}
  0x57   :  { %115 = dma.hbm_to_vmem [thread:$0]  %s8793_s10, 16, %s113_s12, [#allocation15]  }
  0x58   :  { %5451 = dma.done.wait [#allocation3], 1024  }
  0x59   :  { %5452 = vsyncadd [#allocation3], 4294966272 }
  0x5a   :  { %5453 = dma.done.wait [#allocation6], 8256  }
  0x5b   :  { %5454 = vsyncadd [#allocation6], 4294959040 }
  0x5c   :  { %5455 = dma.done.wait [#allocation9], 16384  }
  0x5d   :  { %5456 = vsyncadd [#allocation9], 4294950912 }
  0x5e   :  { %5457 = dma.done.wait [#allocation12], 80  }
  0x5f   :  { %5458 = vsyncadd [#allocation12], 4294967216 }
  0x60   :  { %5459 = dma.done.wait [#allocation15], 16  }
  0x61   :  { %5460 = vsyncadd [#allocation15], 4294967280  ;;  %v8795_v0 = vmov 0.0   ;;  %v147_v1 = vld [vmem:[#allocation2 + $0x28] sm:$0xff]  ;;  %v149_v2 = vld [vmem:[#allocation2 + $0x38] sm:$0xff]  ;;  %vm172_vm0 = vcmask 130048  }
  0x62   :  { %243 = vmatprep.mubr.f32.mxu0 %v8795_v0  ;;  %320 = vmatprep.mubr.f32.mxu1 %v8795_v0  ;;  %v146_v3 = vld [vmem:[#allocation2 + $0x20] sm:$0xff]  ;;  %v148_v4 = vld [vmem:[#allocation2 + $0x30] sm:$0xff]  ;;  %v143_v5 = vld [vmem:[#allocation2 + $0x8] sm:$0xff]  ;;  %vm345_vm1 = vcmask 1040384   ;;  %vm5474_vm2 = vmmov 0   ;;  %s5475_s24 = smov [#allocation16]  }
  0x63   :  { %207 = vmatprep.subr.mxu0 %v147_v1  ;;  %284 = vmatprep.subr.mxu1 %v149_v2  ;;  %v145_v6 = vld [vmem:[#allocation2 + $0x18] sm:$0xff]  ;;  %v142_v7 = vld [vmem:[#allocation2] sm:$0xff]  ;;  %v144_v8 = vld [vmem:[#allocation2 + $0x10] sm:$0xff]  ;;  %s4655_s25 = sshll.u32 %s5475_s24, 4  ;;  %vm4647_vm3 = vcmask 25600   ;;  %s4656_s25 = int_to_ptr.vmem [resolvable:$true] %s4655_s25 }
  0x64   :  { %208 = vmatpush1.msra.mxu0 %v146_v3  ;;  %285 = vmatpush1.msra.mxu1 %v148_v4  ;;  %v140_v9 = vld [vmem:[%s8783_s0] sm:$0xff]  ;;  %v5577_v10 = vld [vmem:[#allocation5 + $0x1e8] sm:$0xff]  ;;  %v5579_v11 = vld [vmem:[#allocation5 + $0x1f8] sm:$0xff]  ;;  %s5431_s26 = scalar_lea.vmem %s4656_s25, 32  ;;  %p5436_p13 = scmp.lt.s32.totalorder %s4656_s25, %s4656_s25 }
  0x65   :  { %209 = vmatprep.subr.mxu0 %v143_v5  ;;  %286 = vmatprep.subr.mxu1 %v145_v6  ;;  %v5581_v12 = vld [vmem:[#allocation5 + $0x1e0] sm:$0xff]  ;;  %v5583_v13 = vld [vmem:[#allocation5 + $0x1f0] sm:$0xff]  ;;  %v5587_v14 = vld [vmem:[#allocation5 + $0x1c8] sm:$0xff]  ;;  %p5432_p12 = scmp.ne.s32.totalorder %s4656_s25, %s5431_s26  ;;  %p5437_p0 = scmp.lt.s32.totalorder %s5431_s26, %s5431_s26 }
  0x66   :  { %210 = vmatpush1.msra.mxu0 %v142_v7  ;;  %287 = vmatpush1.msra.mxu1 %v144_v8  ;;  %v5589_v15 = vld [vmem:[#allocation5 + $0x1d8] sm:$0xff]  ;;  %v5593_v16 = vld [vmem:[#allocation5 + $0x1c0] sm:$0xff]  ;;  %v5597_v17 = vld [vmem:[#allocation5 + $0x1d0] sm:$0xff] }
  0x67   :  { %4668 = vmatmul.mubr.msk.f32.vlgmr.msra.gmra.mxu0 %vm172_vm0, %v140_v9  ;;  %636 = vmatprep.subr.mxu0 %v5577_v10  ;;  %v141_v18 = vld [vmem:[%s8783_s0 + $0x8] sm:$0xff]  ;;  %v5608_v20 = vld [vmem:[#allocation5 + $0x1b8] sm:$0xff]  ;;  %v5612_v21 = vld [vmem:[#allocation5 + $0x1a0] sm:$0xff]  ;;  %p5438_p1 = por %p5437_p0, %p5436_p13 }
  0x68   :  { %707 = vmatprep.subr.mxu1 %v5579_v11  ;;  %4670 = vmatmul.mubr.msk.f32.vlgmr.msra.gmra.mxu1 %vm172_vm0, %v140_v9  ;;  %v5604_v19 = vld [vmem:[#allocation5 + $0x1a8] sm:$0xff]  ;;  %v5614_v22 = vld [vmem:[#allocation5 + $0x1b0] sm:$0xff]  ;;  %v5620_v24 = vld [vmem:[#allocation5 + $0x198] sm:$0xff] }
  0x69   :  { %637 = vmatpush1.msra.mxu0 %v5581_v12  ;;  %708 = vmatpush1.msra.mxu1 %v5583_v13  ;;  %v5618_v23 = vld [vmem:[#allocation5 + $0x188] sm:$0xff]  ;;  %v5624_v25 = vld [vmem:[#allocation5 + $0x180] sm:$0xff]  ;;  %v5626_v26 = vld [vmem:[#allocation5 + $0x190] sm:$0xff]  ;;  %p5439_p2 = pnand %p5438_p1, %p5432_p12 }
  0x6a   :  { %638 = vmatprep.subr.mxu0 %v5587_v14  ;;  %709 = vmatprep.subr.mxu1 %v5589_v15  ;;  %v5630_v27 = vld [vmem:[#allocation5 + $0x168] sm:$0xff]  ;;  %v5632_v28 = vld [vmem:[#allocation5 + $0x178] sm:$0xff]  ;;  %v5636_v29 = vld [vmem:[#allocation5 + $0x160] sm:$0xff] }
  0x6b   :  { %249 = vmatprep.mubr.f32.mxu0 %v8795_v0  ;;  %639 = vmatpush1.msra.mxu0 %v5593_v16  ;;  %v5638_v30 = vld [vmem:[#allocation5 + $0x170] sm:$0xff]  ;;  %v5642_v31 = vld [vmem:[#allocation5 + $0x148] sm:$0xff]  ;;  %v5644_v32 = vld [vmem:[#allocation5 + $0x158] sm:$0xff] }
  0x6c   :  { %710 = vmatpush1.msra.mxu1 %v5597_v17  ;;  %4669 = vmatmul.mubr.msk.f32.gmra.mxu0 %vm172_vm0, %v141_v18  ;;  %v5648_v33 = vld [vmem:[#allocation5 + $0x140] sm:$0xff]  ;;  %v5650_v34 = vld [vmem:[#allocation5 + $0x150] sm:$0xff]  ;;  %v5654_v35 = vld [vmem:[#allocation5 + $0x128] sm:$0xff] }
  0x6d   :  { %326 = vmatprep.mubr.f32.mxu1 %v8795_v0  ;;  %640 = vmatprep.subr.mxu0 %v5604_v19  ;;  %v5656_v36 = vld [vmem:[#allocation5 + $0x138] sm:$0xff]  ;;  %v5660_v37 = vld [vmem:[#allocation5 + $0x120] sm:$0xff]  ;;  %v5662_v38 = vld [vmem:[#allocation5 + $0x130] sm:$0xff] }
  0x6e   :  { %711 = vmatprep.subr.mxu1 %v5608_v20  ;;  %4671 = vmatmul.mubr.msk.f32.gmra.mxu1 %vm172_vm0, %v141_v18  ;;  %v5666_v39 = vld [vmem:[#allocation5 + $0x108] sm:$0xff]  ;;  %v5668_v40 = vld [vmem:[#allocation5 + $0x118] sm:$0xff]  ;;  %v5672_v41 = vld [vmem:[#allocation5 + $0x100] sm:$0xff] }
  0x6f   :  { %641 = vmatpush1.msra.mxu0 %v5612_v21  ;;  %712 = vmatpush1.msra.mxu1 %v5614_v22  ;;  %v5674_v42 = vld [vmem:[#allocation5 + $0x110] sm:$0xff]  ;;  %v5678_v43 = vld [vmem:[#allocation5 + $0xe8] sm:$0xff]  ;;  %v5680_v44 = vld [vmem:[#allocation5 + $0xf8] sm:$0xff] }
  0x70   :  { %642 = vmatprep.subr.mxu0 %v5618_v23  ;;  %713 = vmatprep.subr.mxu1 %v5620_v24  ;;  %v5684_v45 = vld [vmem:[#allocation5 + $0xe0] sm:$0xff]  ;;  %v5686_v46 = vld [vmem:[#allocation5 + $0xf0] sm:$0xff]  ;;  %v5690_v47 = vld [vmem:[#allocation5 + $0xc8] sm:$0xff] }
  0x71   :  { %643 = vmatpush1.msra.mxu0 %v5624_v25  ;;  %714 = vmatpush1.msra.mxu1 %v5626_v26  ;;  %9437 = vst [vmem:[#allocation23_spill] sm:$0xff] %v5684_v45  ;;  %9438 = vst [vmem:[#allocation24_spill] sm:$0xff] %v5686_v46  ;;  %v5692_v48 = vld [vmem:[#allocation5 + $0xd8] sm:$0xff]  ;;  %v5696_v49 = vld [vmem:[#allocation5 + $0xc0] sm:$0xff] }
  0x72   :  { %644 = vmatprep.subr.mxu0 %v5630_v27  ;;  %715 = vmatprep.subr.mxu1 %v5632_v28  ;;  %9439 = vst [vmem:[#allocation25_spill] sm:$0xff] %v5690_v47  ;;  %9440 = vst [vmem:[#allocation26_spill] sm:$0xff] %v5692_v48  ;;  %v5698_v50 = vld [vmem:[#allocation5 + $0xd0] sm:$0xff]  ;;  %v5702_v51 = vld [vmem:[#allocation5 + $0xa8] sm:$0xff] }
  0x73   :  { %645 = vmatpush1.msra.mxu0 %v5636_v29  ;;  %716 = vmatpush1.msra.mxu1 %v5638_v30  ;;  %9441 = vst [vmem:[#allocation27_spill] sm:$0xff] %v5696_v49  ;;  %9442 = vst [vmem:[#allocation28_spill] sm:$0xff] %v5698_v50  ;;  %v5704_v52 = vld [vmem:[#allocation5 + $0xb8] sm:$0xff]  ;;  %v5708_v53 = vld [vmem:[#allocation5 + $0xa0] sm:$0xff] }
  0x74   :  { %646 = vmatprep.subr.mxu0 %v5642_v31  ;;  %717 = vmatprep.subr.mxu1 %v5644_v32  ;;  %9443 = vst [vmem:[#allocation29_spill] sm:$0xff] %v5702_v51  ;;  %9444 = vst [vmem:[#allocation30_spill] sm:$0xff] %v5704_v52  ;;  %v5710_v54 = vld [vmem:[#allocation5 + $0xb0] sm:$0xff]  ;;  %v5714_v55 = vld [vmem:[#allocation5 + $0x88] sm:$0xff] }
  0x75   :  { %647 = vmatpush1.msra.mxu0 %v5648_v33  ;;  %718 = vmatpush1.msra.mxu1 %v5650_v34  ;;  %9445 = vst [vmem:[#allocation31_spill] sm:$0xff] %v5708_v53  ;;  %9446 = vst [vmem:[#allocation32_spill] sm:$0xff] %v5710_v54  ;;  %v5716_v56 = vld [vmem:[#allocation5 + $0x98] sm:$0xff]  ;;  %v5720_v57 = vld [vmem:[#allocation5 + $0x80] sm:$0xff] }
  0x76   :  { %648 = vmatprep.subr.mxu0 %v5654_v35  ;;  %719 = vmatprep.subr.mxu1 %v5656_v36  ;;  %9447 = vst [vmem:[#allocation33_spill] sm:$0xff] %v5714_v55  ;;  %9448 = vst [vmem:[#allocation34_spill] sm:$0xff] %v5716_v56  ;;  %v5722_v58 = vld [vmem:[#allocation5 + $0x90] sm:$0xff]  ;;  %v5726_v59 = vld [vmem:[#allocation5 + $0x68] sm:$0xff] }
  0x77   :  { %649 = vmatpush1.msra.mxu0 %v5660_v37  ;;  %720 = vmatpush1.msra.mxu1 %v5662_v38  ;;  %9449 = vst [vmem:[#allocation35_spill] sm:$0xff] %v5720_v57  ;;  %9450 = vst [vmem:[#allocation36_spill] sm:$0xff] %v5722_v58  ;;  %v5728_v60 = vld [vmem:[#allocation5 + $0x78] sm:$0xff]  ;;  %v5732_v61 = vld [vmem:[#allocation5 + $0x60] sm:$0xff] }
  0x78   :  { %650 = vmatprep.subr.mxu0 %v5666_v39  ;;  %721 = vmatprep.subr.mxu1 %v5668_v40  ;;  %9451 = vst [vmem:[#allocation37_spill] sm:$0xff] %v5726_v59  ;;  %9452 = vst [vmem:[#allocation38_spill] sm:$0xff] %v5728_v60  ;;  %v5734_v62 = vld [vmem:[#allocation5 + $0x70] sm:$0xff]  ;;  %v5738_v63 = vld [vmem:[#allocation5 + $0x48] sm:$0xff] }
  0x79   :  { %651 = vmatpush1.msra.mxu0 %v5672_v41  ;;  %722 = vmatpush1.msra.mxu1 %v5674_v42  ;;  %9453 = vst [vmem:[#allocation39_spill] sm:$0xff] %v5732_v61  ;;  %9454 = vst [vmem:[#allocation40_spill] sm:$0xff] %v5734_v62  ;;  %v5740_v1 = vld [vmem:[#allocation5 + $0x58] sm:$0xff]  ;;  %v5744_v2 = vld [vmem:[#allocation5 + $0x40] sm:$0xff] }
  0x7a   :  { %652 = vmatprep.subr.mxu0 %v5678_v43  ;;  %723 = vmatprep.subr.mxu1 %v5680_v44  ;;  %9455 = vst [vmem:[#allocation41_spill] sm:$0xff] %v5738_v63  ;;  %9456 = vst [vmem:[#allocation42_spill] sm:$0xff] %v5740_v1  ;;  %v5746_v3 = vld [vmem:[#allocation5 + $0x50] sm:$0xff]  ;;  %v5750_v4 = vld [vmem:[#allocation5 + $0x28] sm:$0xff] }
  0x7b   :  { %653 = vmatpush1.msra.mxu0 %v5684_v45  ;;  %724 = vmatpush1.msra.mxu1 %v5686_v46  ;;  %9457 = vst [vmem:[#allocation43_spill] sm:$0xff] %v5744_v2  ;;  %9458 = vst [vmem:[#allocation44_spill] sm:$0xff] %v5746_v3  ;;  %v5752_v5 = vld [vmem:[#allocation5 + $0x38] sm:$0xff]  ;;  %v5756_v6 = vld [vmem:[#allocation5 + $0x20] sm:$0xff] }
  0x7c   :  { %654 = vmatprep.subr.mxu0 %v5690_v47  ;;  %725 = vmatprep.subr.mxu1 %v5692_v48  ;;  %9459 = vst [vmem:[#allocation45_spill] sm:$0xff] %v5750_v4  ;;  %9460 = vst [vmem:[#allocation46_spill] sm:$0xff] %v5752_v5  ;;  %v5758_v7 = vld [vmem:[#allocation5 + $0x30] sm:$0xff]  ;;  %v5762_v8 = vld [vmem:[#allocation5 + $0x8] sm:$0xff] }
  0x7d   :  { %655 = vmatpush1.msra.mxu0 %v5696_v49  ;;  %726 = vmatpush1.msra.mxu1 %v5698_v50  ;;  %9461 = vst [vmem:[#allocation47_spill] sm:$0xff] %v5756_v6  ;;  %9462 = vst [vmem:[#allocation48_spill] sm:$0xff] %v5758_v7  ;;  %v5764_v9 = vld [vmem:[#allocation5 + $0x18] sm:$0xff]  ;;  %v5768_v18 = vld [vmem:[#allocation5] sm:$0xff] }
  0x7e   :  { %656 = vmatprep.subr.mxu0 %v5702_v51  ;;  %727 = vmatprep.subr.mxu1 %v5704_v52  ;;  %9463 = vst [vmem:[#allocation49_spill] sm:$0xff] %v5762_v8  ;;  %9464 = vst [vmem:[#allocation50_spill] sm:$0xff] %v5764_v9  ;;  %v5772_v0 = vld [vmem:[#allocation5 + $0x10] sm:$0xff] }
  0x7f   :  { %657 = vmatpush1.msra.mxu0 %v5708_v53  ;;  %728 = vmatpush1.msra.mxu1 %v5710_v54  ;;  %9465 = vst [vmem:[#allocation51_spill] sm:$0xff] %v5768_v18  ;;  %9466 = vst [vmem:[#allocation52_spill] sm:$0xff] %v5772_v0 }
  0x80   :  { %658 = vmatprep.subr.mxu0 %v5714_v55  ;;  %729 = vmatprep.subr.mxu1 %v5716_v56 }
  0x81   :  { %659 = vmatpush1.msra.mxu0 %v5720_v57  ;;  %730 = vmatpush1.msra.mxu1 %v5722_v58 }
  0x82   :  { %660 = vmatprep.subr.mxu0 %v5726_v59  ;;  %731 = vmatprep.subr.mxu1 %v5728_v60 }
  0x83   :  { %661 = vmatpush1.msra.mxu0 %v5732_v61  ;;  %732 = vmatpush1.msra.mxu1 %v5734_v62 }
  0x84   :  { %662 = vmatprep.subr.mxu0 %v5738_v63  ;;  %733 = vmatprep.subr.mxu1 %v5740_v1  ;;  %v5930_v1 = vld [vmem:[#allocation8 + $0x60] sm:$0xff] }
  0x85   :  { %663 = vmatpush1.msra.mxu0 %v5744_v2  ;;  %734 = vmatpush1.msra.mxu1 %v5746_v3  ;;  %v9467_v3 = vmov 0.0   ;;  %v5914_v2 = vld [vmem:[#allocation8 + $0x98] sm:$0xff]  ;;  %9518 = vst [vmem:[#allocation103_spill] sm:$0xff] %v5930_v1 }
  0x86   :  { %664 = vmatprep.subr.mxu0 %v5750_v4  ;;  %735 = vmatprep.subr.mxu1 %v5752_v5  ;;  %v5898_v5 = vld [vmem:[#allocation8 + $0xd0] sm:$0xff]  ;;  %v5906_v4 = vld [vmem:[#allocation8 + $0xa0] sm:$0xff]  ;;  %9513 = vst [vmem:[#allocation98_spill] sm:$0xff] %v5914_v2 }
  0x87   :  { %665 = vmatpush1.msra.mxu0 %v5756_v6  ;;  %736 = vmatpush1.msra.mxu1 %v5758_v7  ;;  %v5784_v7 = vld [vmem:[#allocation8 + $0x1e8] sm:$0xff]  ;;  %v5798_v6 = vld [vmem:[#allocation8 + $0x1d8] sm:$0xff]  ;;  %9507 = vst [vmem:[#allocation92_spill] sm:$0xff] %v5898_v5  ;;  %9510 = vst [vmem:[#allocation95_spill] sm:$0xff] %v5906_v4 }
  0x88   :  { %666 = vmatprep.subr.mxu0 %v5762_v8  ;;  %737 = vmatprep.subr.mxu1 %v5764_v9  ;;  %9468 = vst [vmem:[#allocation53_spill] sm:$0xff] %v5784_v7  ;;  %v5786_v8 = vld [vmem:[#allocation8 + $0x1f8] sm:$0xff]  ;;  %v5796_v9 = vld [vmem:[#allocation8 + $0x1c8] sm:$0xff]  ;;  %9473 = vst [vmem:[#allocation58_spill] sm:$0xff] %v5798_v6 }
  0x89   :  { %667 = vmatpush1.msra.mxu0 %v5768_v18  ;;  %700 = vmatprep.mubr.f32.mxu0 %v9467_v3  ;;  %9469 = vst [vmem:[#allocation54_spill] sm:$0xff] %v5786_v8  ;;  %v5790_v18 = vld [vmem:[#allocation8 + $0x1e0] sm:$0xff]  ;;  %9472 = vst [vmem:[#allocation57_spill] sm:$0xff] %v5796_v9 }
  0x8a   :  { %738 = vmatpush1.msra.mxu1 %v5772_v0  ;;  %771 = vmatprep.mubr.f32.mxu1 %v9467_v3  ;;  %9470 = vst [vmem:[#allocation55_spill] sm:$0xff] %v5790_v18  ;;  %v5792_v0 = vld [vmem:[#allocation8 + $0x1f0] sm:$0xff] }
  0x8b   :  { %701 = vmatmul.mubr.f32.vlgmr.msra.gmra.mxu0 %v9467_v3  ;;  %772 = vmatmul.mubr.f32.vlgmr.msra.gmra.mxu1 %v9467_v3  ;;  %9471 = vst [vmem:[#allocation56_spill] sm:$0xff] %v5792_v0 }
  0x8c   :  { %864 = vmatprep.mubr.f32.mxu0 %v9467_v3  ;;  %935 = vmatprep.mubr.f32.mxu1 %v9467_v3  ;;  %v5802_v3 = vld [vmem:[#allocation8 + $0x1c0] sm:$0xff] }
  0x8d   :  { %800 = vmatprep.subr.mxu0 %v5784_v7  ;;  %871 = vmatprep.subr.mxu1 %v5786_v8  ;;  %9474 = vst [vmem:[#allocation59_spill] sm:$0xff] %v5802_v3  ;;  %v5804_v7 = vld [vmem:[#allocation8 + $0x1d0] sm:$0xff]  ;;  %v5808_v8 = vld [vmem:[#allocation8 + $0x1a8] sm:$0xff] }
  0x8e   :  { %801 = vmatpush1.msra.mxu0 %v5790_v18  ;;  %872 = vmatpush1.msra.mxu1 %v5792_v0  ;;  %9475 = vst [vmem:[#allocation60_spill] sm:$0xff] %v5804_v7  ;;  %9476 = vst [vmem:[#allocation61_spill] sm:$0xff] %v5808_v8  ;;  %v5810_v18 = vld [vmem:[#allocation8 + $0x1b8] sm:$0xff]  ;;  %v5814_v0 = vld [vmem:[#allocation8 + $0x1a0] sm:$0xff] }
  0x8f   :  { %802 = vmatprep.subr.mxu0 %v5796_v9  ;;  %873 = vmatprep.subr.mxu1 %v5798_v6  ;;  %9477 = vst [vmem:[#allocation62_spill] sm:$0xff] %v5810_v18  ;;  %9478 = vst [vmem:[#allocation63_spill] sm:$0xff] %v5814_v0  ;;  %v5816_v9 = vld [vmem:[#allocation8 + $0x1b0] sm:$0xff]  ;;  %v5820_v6 = vld [vmem:[#allocation8 + $0x188] sm:$0xff] }
  0x90   :  { %803 = vmatpush1.msra.mxu0 %v5802_v3  ;;  %874 = vmatpush1.msra.mxu1 %v5804_v7  ;;  %9479 = vst [vmem:[#allocation64_spill] sm:$0xff] %v5816_v9  ;;  %9480 = vst [vmem:[#allocation65_spill] sm:$0xff] %v5820_v6  ;;  %v5822_v3 = vld [vmem:[#allocation8 + $0x198] sm:$0xff]  ;;  %v5826_v7 = vld [vmem:[#allocation8 + $0x180] sm:$0xff] }
  0x91   :  { %804 = vmatprep.subr.mxu0 %v5808_v8  ;;  %875 = vmatprep.subr.mxu1 %v5810_v18  ;;  %9481 = vst [vmem:[#allocation66_spill] sm:$0xff] %v5822_v3  ;;  %9482 = vst [vmem:[#allocation67_spill] sm:$0xff] %v5826_v7  ;;  %v5828_v8 = vld [vmem:[#allocation8 + $0x190] sm:$0xff]  ;;  %v5832_v18 = vld [vmem:[#allocation8 + $0x168] sm:$0xff] }
  0x92   :  { %805 = vmatpush1.msra.mxu0 %v5814_v0  ;;  %876 = vmatpush1.msra.mxu1 %v5816_v9  ;;  %9483 = vst [vmem:[#allocation68_spill] sm:$0xff] %v5828_v8  ;;  %9484 = vst [vmem:[#allocation69_spill] sm:$0xff] %v5832_v18  ;;  %v5834_v0 = vld [vmem:[#allocation8 + $0x178] sm:$0xff]  ;;  %v5838_v9 = vld [vmem:[#allocation8 + $0x160] sm:$0xff] }
  0x93   :  { %806 = vmatprep.subr.mxu0 %v5820_v6  ;;  %877 = vmatprep.subr.mxu1 %v5822_v3  ;;  %9485 = vst [vmem:[#allocation70_spill] sm:$0xff] %v5834_v0  ;;  %9486 = vst [vmem:[#allocation71_spill] sm:$0xff] %v5838_v9  ;;  %v5840_v6 = vld [vmem:[#allocation8 + $0x170] sm:$0xff]  ;;  %v5844_v3 = vld [vmem:[#allocation8 + $0x148] sm:$0xff] }
  0x94   :  { %807 = vmatpush1.msra.mxu0 %v5826_v7  ;;  %878 = vmatpush1.msra.mxu1 %v5828_v8  ;;  %9487 = vst [vmem:[#allocation72_spill] sm:$0xff] %v5840_v6  ;;  %9488 = vst [vmem:[#allocation73_spill] sm:$0xff] %v5844_v3  ;;  %v5846_v7 = vld [vmem:[#allocation8 + $0x158] sm:$0xff]  ;;  %v5850_v8 = vld [vmem:[#allocation8 + $0x140] sm:$0xff] }
  0x95   :  { %808 = vmatprep.subr.mxu0 %v5832_v18  ;;  %879 = vmatprep.subr.mxu1 %v5834_v0  ;;  %9489 = vst [vmem:[#allocation74_spill] sm:$0xff] %v5846_v7  ;;  %9490 = vst [vmem:[#allocation75_spill] sm:$0xff] %v5850_v8  ;;  %v5852_v18 = vld [vmem:[#allocation8 + $0x150] sm:$0xff]  ;;  %v5856_v0 = vld [vmem:[#allocation8 + $0x128] sm:$0xff] }
  0x96   :  { %809 = vmatpush1.msra.mxu0 %v5838_v9  ;;  %880 = vmatpush1.msra.mxu1 %v5840_v6  ;;  %9491 = vst [vmem:[#allocation76_spill] sm:$0xff] %v5852_v18  ;;  %9492 = vst [vmem:[#allocation77_spill] sm:$0xff] %v5856_v0  ;;  %v5858_v9 = vld [vmem:[#allocation8 + $0x138] sm:$0xff]  ;;  %v5862_v6 = vld [vmem:[#allocation8 + $0x120] sm:$0xff] }
  0x97   :  { %810 = vmatprep.subr.mxu0 %v5844_v3  ;;  %881 = vmatprep.subr.mxu1 %v5846_v7  ;;  %9493 = vst [vmem:[#allocation78_spill] sm:$0xff] %v5858_v9  ;;  %9494 = vst [vmem:[#allocation79_spill] sm:$0xff] %v5862_v6  ;;  %v5864_v3 = vld [vmem:[#allocation8 + $0x130] sm:$0xff]  ;;  %v5868_v7 = vld [vmem:[#allocation8 + $0x108] sm:$0xff] }
  0x98   :  { %811 = vmatpush1.msra.mxu0 %v5850_v8  ;;  %882 = vmatpush1.msra.mxu1 %v5852_v18  ;;  %9495 = vst [vmem:[#allocation80_spill] sm:$0xff] %v5864_v3  ;;  %9496 = vst [vmem:[#allocation81_spill] sm:$0xff] %v5868_v7  ;;  %v5870_v8 = vld [vmem:[#allocation8 + $0x118] sm:$0xff]  ;;  %v5874_v18 = vld [vmem:[#allocation8 + $0x100] sm:$0xff] }
  0x99   :  { %812 = vmatprep.subr.mxu0 %v5856_v0  ;;  %883 = vmatprep.subr.mxu1 %v5858_v9  ;;  %9497 = vst [vmem:[#allocation82_spill] sm:$0xff] %v5870_v8  ;;  %9498 = vst [vmem:[#allocation83_spill] sm:$0xff] %v5874_v18  ;;  %v5876_v0 = vld [vmem:[#allocation8 + $0x110] sm:$0xff]  ;;  %v5880_v9 = vld [vmem:[#allocation8 + $0xe8] sm:$0xff] }
  0x9a   :  { %813 = vmatpush1.msra.mxu0 %v5862_v6  ;;  %884 = vmatpush1.msra.mxu1 %v5864_v3  ;;  %9499 = vst [vmem:[#allocation84_spill] sm:$0xff] %v5876_v0  ;;  %9500 = vst [vmem:[#allocation85_spill] sm:$0xff] %v5880_v9  ;;  %v5882_v6 = vld [vmem:[#allocation8 + $0xf8] sm:$0xff]  ;;  %v5886_v3 = vld [vmem:[#allocation8 + $0xe0] sm:$0xff] }
  0x9b   :  { %814 = vmatprep.subr.mxu0 %v5868_v7  ;;  %885 = vmatprep.subr.mxu1 %v5870_v8  ;;  %9501 = vst [vmem:[#allocation86_spill] sm:$0xff] %v5882_v6  ;;  %9502 = vst [vmem:[#allocation87_spill] sm:$0xff] %v5886_v3  ;;  %v5888_v7 = vld [vmem:[#allocation8 + $0xf0] sm:$0xff]  ;;  %v5890_v8 = vld [vmem:[#allocation8 + $0xc8] sm:$0xff] }
  0x9c   :  { %815 = vmatpush1.msra.mxu0 %v5874_v18  ;;  %886 = vmatpush1.msra.mxu1 %v5876_v0  ;;  %9503 = vst [vmem:[#allocation88_spill] sm:$0xff] %v5888_v7  ;;  %9504 = vst [vmem:[#allocation89_spill] sm:$0xff] %v5890_v8  ;;  %v5894_v18 = vld [vmem:[#allocation8 + $0xd8] sm:$0xff]  ;;  %v5896_v0 = vld [vmem:[#allocation8 + $0xc0] sm:$0xff] }
  0x9d   :  { %816 = vmatprep.subr.mxu0 %v5880_v9  ;;  %887 = vmatprep.subr.mxu1 %v5882_v6  ;;  %9505 = vst [vmem:[#allocation90_spill] sm:$0xff] %v5894_v18  ;;  %9506 = vst [vmem:[#allocation91_spill] sm:$0xff] %v5896_v0  ;;  %v5902_v6 = vld [vmem:[#allocation8 + $0xa8] sm:$0xff]  ;;  %v5904_v9 = vld [vmem:[#allocation8 + $0xb8] sm:$0xff] }
  0x9e   :  { %817 = vmatpush1.msra.mxu0 %v5886_v3  ;;  %888 = vmatpush1.msra.mxu1 %v5888_v7  ;;  %9508 = vst [vmem:[#allocation93_spill] sm:$0xff] %v5902_v6  ;;  %9509 = vst [vmem:[#allocation94_spill] sm:$0xff] %v5904_v9  ;;  %v5910_v7 = vld [vmem:[#allocation8 + $0xb0] sm:$0xff]  ;;  %v5912_v3 = vld [vmem:[#allocation8 + $0x88] sm:$0xff] }
  0x9f   :  { %818 = vmatprep.subr.mxu0 %v5890_v8  ;;  %889 = vmatprep.subr.mxu1 %v5894_v18  ;;  %9511 = vst [vmem:[#allocation96_spill] sm:$0xff] %v5910_v7  ;;  %9512 = vst [vmem:[#allocation97_spill] sm:$0xff] %v5912_v3  ;;  %v5918_v18 = vld [vmem:[#allocation8 + $0x80] sm:$0xff]  ;;  %v5920_v8 = vld [vmem:[#allocation8 + $0x90] sm:$0xff] }
  0xa0   :  { %819 = vmatpush1.msra.mxu0 %v5896_v0  ;;  %890 = vmatpush1.msra.mxu1 %v5898_v5  ;;  %9514 = vst [vmem:[#allocation99_spill] sm:$0xff] %v5918_v18  ;;  %9515 = vst [vmem:[#allocation100_spill] sm:$0xff] %v5920_v8  ;;  %v5924_v0 = vld [vmem:[#allocation8 + $0x68] sm:$0xff]  ;;  %v5926_v5 = vld [vmem:[#allocation8 + $0x78] sm:$0xff] }
  0xa1   :  { %820 = vmatprep.subr.mxu0 %v5902_v6  ;;  %891 = vmatprep.subr.mxu1 %v5904_v9  ;;  %9516 = vst [vmem:[#allocation101_spill] sm:$0xff] %v5924_v0  ;;  %9517 = vst [vmem:[#allocation102_spill] sm:$0xff] %v5926_v5  ;;  %v5932_v6 = vld [vmem:[#allocation8 + $0x70] sm:$0xff]  ;;  %v5936_v9 = vld [vmem:[#allocation8 + $0x48] sm:$0xff] }
  0xa2   :  { %821 = vmatpush1.msra.mxu0 %v5906_v4  ;;  %892 = vmatpush1.msra.mxu1 %v5910_v7  ;;  %9519 = vst [vmem:[#allocation104_spill] sm:$0xff] %v5932_v6  ;;  %9520 = vst [vmem:[#allocation105_spill] sm:$0xff] %v5936_v9  ;;  %v5938_v4 = vld [vmem:[#allocation8 + $0x58] sm:$0xff]  ;;  %v5942_v7 = vld [vmem:[#allocation8 + $0x40] sm:$0xff] }
  0xa3   :  { %822 = vmatprep.subr.mxu0 %v5912_v3  ;;  %893 = vmatprep.subr.mxu1 %v5914_v2  ;;  %9521 = vst [vmem:[#allocation106_spill] sm:$0xff] %v5938_v4  ;;  %9522 = vst [vmem:[#allocation107_spill] sm:$0xff] %v5942_v7  ;;  %v5944_v3 = vld [vmem:[#allocation8 + $0x50] sm:$0xff]  ;;  %v5948_v2 = vld [vmem:[#allocation8 + $0x28] sm:$0xff] }
  0xa4   :  { %823 = vmatpush1.msra.mxu0 %v5918_v18  ;;  %894 = vmatpush1.msra.mxu1 %v5920_v8  ;;  %9523 = vst [vmem:[#allocation108_spill] sm:$0xff] %v5944_v3  ;;  %9524 = vst [vmem:[#allocation109_spill] sm:$0xff] %v5948_v2  ;;  %v5950_v18 = vld [vmem:[#allocation8 + $0x38] sm:$0xff]  ;;  %v5954_v8 = vld [vmem:[#allocation8 + $0x20] sm:$0xff] }
  0xa5   :  { %824 = vmatprep.subr.mxu0 %v5924_v0  ;;  %895 = vmatprep.subr.mxu1 %v5926_v5  ;;  %9525 = vst [vmem:[#allocation110_spill] sm:$0xff] %v5950_v18  ;;  %9526 = vst [vmem:[#allocation111_spill] sm:$0xff] %v5954_v8  ;;  %v5956_v0 = vld [vmem:[#allocation8 + $0x30] sm:$0xff]  ;;  %v5960_v5 = vld [vmem:[#allocation8 + $0x8] sm:$0xff] }
  0xa6   :  { %825 = vmatpush1.msra.mxu0 %v5930_v1  ;;  %896 = vmatpush1.msra.mxu1 %v5932_v6  ;;  %9527 = vst [vmem:[#allocation112_spill] sm:$0xff] %v5956_v0  ;;  %9528 = vst [vmem:[#allocation113_spill] sm:$0xff] %v5960_v5  ;;  %v5962_v1 = vld [vmem:[#allocation8 + $0x18] sm:$0xff]  ;;  %v5966_v6 = vld [vmem:[#allocation8] sm:$0xff] }
  0xa7   :  { %826 = vmatprep.subr.mxu0 %v5936_v9  ;;  %897 = vmatprep.subr.mxu1 %v5938_v4  ;;  %9529 = vst [vmem:[#allocation114_spill] sm:$0xff] %v5962_v1  ;;  %9530 = vst [vmem:[#allocation115_spill] sm:$0xff] %v5966_v6  ;;  %v5968_v9 = vld [vmem:[#allocation8 + $0x10] sm:$0xff] }
  0xa8   :  { %827 = vmatpush1.msra.mxu0 %v5942_v7  ;;  %898 = vmatpush1.msra.mxu1 %v5944_v3  ;;  %9531 = vst [vmem:[#allocation116_spill] sm:$0xff] %v5968_v9 }
  0xa9   :  { %828 = vmatprep.subr.mxu0 %v5948_v2  ;;  %899 = vmatprep.subr.mxu1 %v5950_v18  ;;  %v152_v18 = vlaneseq }
  0xaa   :  { %829 = vmatpush1.msra.mxu0 %v5954_v8  ;;  %900 = vmatpush1.msra.mxu1 %v5956_v0  ;;  %v150_v8 = vld [vmem:[#allocation7] sm:$0xf] }
  0xab   :  { %830 = vmatprep.subr.mxu0 %v5960_v5  ;;  %901 = vmatprep.subr.mxu1 %v5962_v1  ;;  %v5978_v2 = vshrl.u32 %v152_v18, 7 }
  0xac   :  { %831 = vmatpush1.msra.mxu0 %v5966_v6  ;;  %902 = vmatpush1.msra.mxu1 %v5968_v9 }
  0xad   :  { %942 = vmatprep.subr.mxu0 %v5577_v10  ;;  %1013 = vmatprep.subr.mxu1 %v5579_v11  ;;  %9532 = vst [vmem:[#allocation117_spill] sm:$0xff] %v5978_v2  ;;  %v8934_v3 = vsub.s32 0, %v5978_v2  ;;  %v8936_v0 = vsub.s32 1, %v5978_v2  ;;  %v8938_v5 = vsub.s32 2, %v5978_v2  ;;  %v8942_v6 = vsub.s32 3, %v5978_v2 }
  0xaf   :  { %v155_v1 = vrot.slane %v150_v8, %v8934_v3  ;;  %v159_v10 = vrot.slane %v150_v8, %v8936_v0  ;;  %v163_v11 = vrot.slane %v150_v8, %v8938_v5  ;;  %v167_v62 = vrot.slane %v150_v8, %v8942_v6 }
 0x127   :  { %v245_v9 = vpop.f32.mrf.mxu0 }
 0x128   :  { %v5990_v18 = vadd.f32 %v245_v9, %v155_v1  ;;  %v322_v7 = vpop.f32.mrf.mxu1 }
 0x129   :  { %v5992_v4 = vadd.f32 %v322_v7, %v163_v11  ;;  %v247_v63 = vpop.f32.mrf.mxu0 }
 0x12a   :  { %v5996_v61 = vadd.f32 %v247_v63, %v159_v10  ;;  %v324_v3 = vpop.f32.mrf.mxu1  ;;  %v354_v0 = vrot.slane %v5990_v18, 1  ;;  %v366_v5 = vrot.slane %v5990_v18, 2  ;;  %v386_v2 = vrot.slane %v5990_v18, 3 }
 0x12b   :  { %v5998_v60 = vadd.f32 %v324_v3, %v167_v62  ;;  %v356_v7 = vrot.slane %v5992_v4, 1  ;;  %v368_v58 = vrot.slane %v5992_v4, 2  ;;  %v388_v57 = vrot.slane %v5992_v4, 3 }
 0x12c   :  { %v251_v59 = vpop.f32.mrf.mxu0  ;;  %v355_v6 = vrot.slane %v5996_v61, 1  ;;  %v367_v3 = vrot.slane %v5996_v61, 2  ;;  %v387_v56 = vrot.slane %v5996_v61, 3  ;;  %v406_v54 = vrot.slane %v5990_v18, 4 }
 0x12d   :  { %v6002_v9 = vadd.f32 %v251_v59, %v155_v1  ;;  %v357_v1 = vrot.slane %v5998_v60, 1  ;;  %v369_v50 = vrot.slane %v5998_v60, 2  ;;  %v407_v47 = vrot.slane %v5996_v61, 4 }
 0x12e   :  { %v328_v8 = vpop.f32.mrf.mxu1  ;;  %v253_v63 = vpop.f32.mrf.mxu0  ;;  %v409_v46 = vrot.slane %v5998_v60, 4 }
 0x12f   :  { %v6011_v55 = vadd.f32 %v253_v63, %v159_v10  ;;  %v6015_v59 = vsel %vm345_vm1, %v354_v0, %v6002_v9  ;;  %v6019_v53 = vadd.f32 %v328_v8, %v163_v11  ;;  %v374_v51 = vrot.slane %v6002_v9, 1 }
 0x130   :  { %9533 = vst [vmem:[#allocation118_spill] sm:$0xff] %v6015_v59  ;;  %v330_v52 = vpop.f32.mrf.mxu1  ;;  %v394_v49 = vrot.slane %v6002_v9, 2  ;;  %v389_v10 = vrot.slane %v5998_v60, 3  ;;  %v414_v0 = vrot.slane %v6002_v9, 3  ;;  %v408_v63 = vrot.slane %v5992_v4, 4 }
 0x131   :  { %v6024_v48 = vadd.f32 %v330_v52, %v167_v62  ;;  %v6031_v59 = vsel %vm345_vm1, %v356_v7, %v6019_v53  ;;  %v6035_v11 = vsel %vm345_vm1, %v355_v6, %v6011_v55  ;;  %v6038_v8 = vsel %vm345_vm1, %v366_v5, %v374_v51 }
 0x132   :  { %9534 = vst [vmem:[#allocation119_spill] sm:$0xff] %v6031_v59  ;;  %9535 = vst [vmem:[#allocation120_spill] sm:$0xff] %v6035_v11  ;;  %v376_v52 = vrot.slane %v6019_v53, 1  ;;  %v434_v7 = vrot.slane %v6002_v9, 4  ;;  %v375_v6 = vrot.slane %v6011_v55, 1  ;;  %v6054_v5 = vsel %vm345_vm1, %v386_v2, %v394_v49 }
 0x133   :  { %9536 = vst [vmem:[#allocation121_spill] sm:$0xff] %v6038_v8  ;;  %v6043_v62 = vsel %vm345_vm1, %v357_v1, %v6024_v48  ;;  %v377_v51 = vrot.slane %v6024_v48, 1  ;;  %9539 = vst [vmem:[#allocation124_spill] sm:$0xff] %v6054_v5  ;;  %v396_v8 = vrot.slane %v6019_v53, 2  ;;  %v395_v1 = vrot.slane %v6011_v55, 2 }
 0x134   :  { %9537 = vst [vmem:[#allocation122_spill] sm:$0xff] %v6043_v62  ;;  %v6049_v59 = vsel %vm345_vm1, %v368_v58, %v376_v52  ;;  %v397_v62 = vrot.slane %v6024_v48, 2  ;;  %v426_v11 = vrot.slane %v5990_v18, 5  ;;  %v6061_v45 = vsel %vm345_vm1, %v367_v3, %v375_v6 }
 0x135   :  { %9538 = vst [vmem:[#allocation123_spill] sm:$0xff] %v6049_v59  ;;  %9540 = vst [vmem:[#allocation125_spill] sm:$0xff] %v6061_v45  ;;  %v6064_v58 = vsel %vm345_vm1, %v369_v50, %v377_v51  ;;  %v6067_v52 = vsel %vm345_vm1, %v406_v54, %v414_v0  ;;  %v416_v49 = vrot.slane %v6019_v53, 3  ;;  %v6071_v2 = vsel %vm345_vm1, %v388_v57, %v396_v8 }
 0x136   :  { %9541 = vst [vmem:[#allocation126_spill] sm:$0xff] %v6064_v58  ;;  %9542 = vst [vmem:[#allocation127_spill] sm:$0xff] %v6067_v52  ;;  %v6074_v5 = vsel %vm345_vm1, %v387_v56, %v395_v1  ;;  %v6077_v59 = vsel %vm345_vm1, %v389_v10, %v397_v62  ;;  %v415_v3 = vrot.slane %v6011_v55, 3  ;;  %v417_v50 = vrot.slane %v6024_v48, 3  ;;  %v9654_v52 = vld [vmem:[#allocation115_spill] sm:$0xff] }
 0x137   :  { %9543 = vst [vmem:[#allocation128_spill] sm:$0xff] %v6071_v2  ;;  %9544 = vst [vmem:[#allocation129_spill] sm:$0xff] %v6074_v5  ;;  %v6081_v6 = vsel %vm345_vm1, %v408_v63, %v416_v49  ;;  %v6085_v54 = vsel %vm345_vm1, %v426_v11, %v434_v7  ;;  %v428_v0 = vrot.slane %v5992_v4, 5  ;;  %v436_v56 = vrot.slane %v6019_v53, 4  ;;  %v6299_v2 = vld [vmem:[#allocation5 + $0x1e8] sm:$0xff]  ;;  %v6302_v5 = vld [vmem:[#allocation5 + $0x1f8] sm:$0xff] }
 0x138   :  { %9545 = vst [vmem:[#allocation130_spill] sm:$0xff] %v6077_v59  ;;  %9546 = vst [vmem:[#allocation131_spill] sm:$0xff] %v6081_v6  ;;  %v6089_v57 = vsel %vm345_vm1, %v407_v47, %v415_v3  ;;  %v427_v10 = vrot.slane %v5996_v61, 5  ;;  %v435_v8 = vrot.slane %v6011_v55, 4  ;;  %v6095_v62 = vsel %vm345_vm1, %v409_v46, %v417_v50  ;;  %v9652_v6 = vld [vmem:[#allocation113_spill] sm:$0xff]  ;;  %v9655_v59 = vld [vmem:[#allocation116_spill] sm:$0xff] }
 0x139   :  { %9547 = vst [vmem:[#allocation132_spill] sm:$0xff] %v6085_v54  ;;  %9548 = vst [vmem:[#allocation133_spill] sm:$0xff] %v6089_v57  ;;  %v429_v63 = vrot.slane %v5998_v60, 5  ;;  %v437_v51 = vrot.slane %v6024_v48, 4  ;;  %v446_v11 = vrot.slane %v5990_v18, 6  ;;  %v6101_v7 = vsel %vm345_vm1, %v428_v0, %v436_v56  ;;  %v9653_v57 = vld [vmem:[#allocation114_spill] sm:$0xff] }
 0x13a   :  { %9549 = vst [vmem:[#allocation134_spill] sm:$0xff] %v6095_v62  ;;  %9550 = vst [vmem:[#allocation135_spill] sm:$0xff] %v6101_v7  ;;  %v6104_v47 = vsel %vm345_vm1, %v427_v10, %v435_v8  ;;  %v454_v1 = vrot.slane %v6002_v9, 5  ;;  %v448_v49 = vrot.slane %v5992_v4, 6  ;;  %v456_v46 = vrot.slane %v6019_v53, 5 }
 0x13b   :  { %9551 = vst [vmem:[#allocation136_spill] sm:$0xff] %v6104_v47  ;;  %v6109_v3 = vsel %vm345_vm1, %v429_v63, %v437_v51  ;;  %v447_v50 = vrot.slane %v5996_v61, 6  ;;  %v455_v54 = vrot.slane %v6011_v55, 5  ;;  %v449_v0 = vrot.slane %v5998_v60, 6 }
 0x13c   :  { %9552 = vst [vmem:[#allocation137_spill] sm:$0xff] %v6109_v3  ;;  %v6115_v62 = vsel %vm345_vm1, %v446_v11, %v454_v1  ;;  %v457_v56 = vrot.slane %v6024_v48, 5  ;;  %v466_v10 = vrot.slane %v5990_v18, 7  ;;  %v6121_v8 = vsel %vm345_vm1, %v448_v49, %v456_v46 }
 0x13d   :  { %9553 = vst [vmem:[#allocation138_spill] sm:$0xff] %v6115_v62  ;;  %9554 = vst [vmem:[#allocation139_spill] sm:$0xff] %v6121_v8  ;;  %v6124_v63 = vsel %vm345_vm1, %v447_v50, %v455_v54  ;;  %v474_v51 = vrot.slane %v6002_v9, 6  ;;  %v468_v3 = vrot.slane %v5992_v4, 7  ;;  %v476_v11 = vrot.slane %v6019_v53, 6 }
 0x13e   :  { %9555 = vst [vmem:[#allocation140_spill] sm:$0xff] %v6124_v63  ;;  %v6129_v7 = vsel %vm345_vm1, %v449_v0, %v457_v56  ;;  %v467_v1 = vrot.slane %v5996_v61, 7  ;;  %v475_v62 = vrot.slane %v6011_v55, 6  ;;  %v469_v49 = vrot.slane %v5998_v60, 7  ;;  %v9651_v63 = vld [vmem:[#allocation112_spill] sm:$0xff] }
 0x13f   :  { %9556 = vst [vmem:[#allocation141_spill] sm:$0xff] %v6129_v7  ;;  %v6135_v47 = vsel %vm345_vm1, %v466_v10, %v474_v51  ;;  %v477_v54 = vrot.slane %v6024_v48, 6  ;;  %v6140_v46 = vsel %vm345_vm1, %v468_v3, %v476_v11  ;;  %v337_v56 = vrot.slane %v6002_v9, 7 }
 0x140   :  { %9557 = vst [vmem:[#allocation142_spill] sm:$0xff] %v6135_v47  ;;  %9558 = vst [vmem:[#allocation143_spill] sm:$0xff] %v6140_v46  ;;  %v6143_v50 = vsel %vm345_vm1, %v467_v1, %v475_v62  ;;  %v338_v7 = vrot.slane %v6011_v55, 7  ;;  %v339_v8 = vrot.slane %v6019_v53, 7 }
 0x141   :  { %9559 = vst [vmem:[#allocation144_spill] sm:$0xff] %v6143_v50  ;;  %v6146_v0 = vsel %vm345_vm1, %v469_v49, %v477_v54  ;;  %v346_v10 = vsel %vm345_vm1, %v5990_v18, %v337_v56  ;;  %v340_v18 = vrot.slane %v6024_v48, 7  ;;  %v9650_v50 = vld [vmem:[#allocation111_spill] sm:$0xff] }
 0x142   :  { %9560 = vst [vmem:[#allocation145_spill] sm:$0xff] %v6146_v0  ;;  %v347_v3 = vsel %vm345_vm1, %v5996_v61, %v338_v7  ;;  %v348_v9 = vsel %vm345_vm1, %v5992_v4, %v339_v8  ;;  %v9649_v0 = vld [vmem:[#allocation110_spill] sm:$0xff] }
 0x143   :  { %v349_v53 = vsel %vm345_vm1, %v5998_v60, %v340_v18  ;;  %v9594_v18 = vld [vmem:[#allocation55_spill] sm:$0xff] }
 0x14b   :  { %v702_v51 = vpop.f32.mrf.mxu0  ;;  %v773_v46 = vpop.f32.mrf.mxu1 }
 0x14c   :  { %v778_v47 = vadd.f32 %v702_v51, %v346_v10  ;;  %v780_v55 = vadd.f32 %v773_v46, %v348_v9 }
 0x14d   :  { %v704_v11 = vpop.f32.mrf.mxu0  ;;  %v775_v54 = vpop.f32.mrf.mxu1 }
 0x14e   :  { %v782_v62 = vmul.f32 0.5, %v778_v47  ;;  %v779_v1 = vadd.f32 %v704_v11, %v347_v3  ;;  %v781_v56 = vadd.f32 %v775_v54, %v349_v53  ;;  %v9595_v54 = vld [vmem:[#allocation56_spill] sm:$0xff]  ;;  %v9596_v53 = vld [vmem:[#allocation57_spill] sm:$0xff] }
 0x150   :  { %4791 = vtanh.f32 %v782_v62  ;;  %v786_v49 = vmul.f32 0.5, %v779_v1  ;;  %v791_v61 = vmul.f32 0.5, %v781_v56  ;;  %v9597_v56 = vld [vmem:[#allocation58_spill] sm:$0xff] }
 0x152   :  { %4793 = vtanh.f32 %v786_v49 }
 0x153   :  { %4795 = vtanh.f32 %v780_v55  ;;  %v9593_v55 = vld [vmem:[#allocation54_spill] sm:$0xff] }
 0x154   :  { %4797 = vtanh.f32 %v791_v61  ;;  %v9598_v61 = vld [vmem:[#allocation59_spill] sm:$0xff] }
 0x15d   :  { %v4792_v7 = vpop.eup %4791 }
 0x15e   :  { %v784_v47 = vmul.f32 0.5, %v4792_v7  ;;  %v9599_v7 = vld [vmem:[#allocation60_spill] sm:$0xff] }
 0x15f   :  { %v4794_v10 = vpop.eup %4793 }
 0x160   :  { %v785_v51 = vadd.f32 0.5, %v784_v47  ;;  %v788_v3 = vmul.f32 0.5, %v4794_v10  ;;  %v4796_v62 = vpop.eup %4795  ;;  %v9600_v47 = vld [vmem:[#allocation61_spill] sm:$0xff]  ;;  %v9601_v10 = vld [vmem:[#allocation62_spill] sm:$0xff] }
 0x161   :  { %v4798_v48 = vpop.eup %4797 }
 0x162   :  { %v789_v11 = vadd.f32 0.5, %v788_v3  ;;  %v796_v8 = vmul.f32 %v4796_v62, %v785_v51  ;;  %v793_v1 = vmul.f32 0.5, %v4798_v48  ;;  %v9602_v51 = vld [vmem:[#allocation63_spill] sm:$0xff]  ;;  %v9603_v3 = vld [vmem:[#allocation64_spill] sm:$0xff]  ;;  %v9605_v62 = vld [vmem:[#allocation66_spill] sm:$0xff] }
 0x163   :  { %v9608_v48 = vld [vmem:[#allocation69_spill] sm:$0xff] }
 0x164   :  { %v795_v4 = vmul.f32 0.0, %v789_v11  ;;  %v794_v49 = vadd.f32 0.5, %v793_v1  ;;  %v9604_v11 = vld [vmem:[#allocation65_spill] sm:$0xff]  ;;  %v9609_v1 = vld [vmem:[#allocation70_spill] sm:$0xff] }
 0x166   :  { %v6160_v46 = vadd.f32 %v796_v8, %v795_v4  ;;  %v9606_v4 = vld [vmem:[#allocation67_spill] sm:$0xff]  ;;  %v9607_v8 = vld [vmem:[#allocation68_spill] sm:$0xff] }
 0x168   :  { %4799 = vtanh.f32 %v6160_v46 }
 0x175   :  { %v4800_v60 = vpop.eup %4799 }
 0x176   :  { %v6163_v9 = vmul.f32 %v4800_v60, %v794_v49  ;;  %v9610_v49 = vld [vmem:[#allocation71_spill] sm:$0xff]  ;;  %v9611_v60 = vld [vmem:[#allocation72_spill] sm:$0xff] }
 0x178   :  { %865 = vmatmul.mubr.f32.vlgmr.msra.gmra.mxu0 %v6163_v9  ;;  %936 = vmatmul.mubr.f32.vlgmr.msra.gmra.mxu1 %v6163_v9 }
 0x179   :  { %943 = vmatpush1.msra.mxu0 %v5581_v12  ;;  %1014 = vmatpush1.msra.mxu1 %v5583_v13  ;;  %v9561_v12 = vld [vmem:[#allocation23_spill] sm:$0xff]  ;;  %v9562_v13 = vld [vmem:[#allocation24_spill] sm:$0xff] }
 0x17a   :  { %944 = vmatprep.subr.mxu0 %v5587_v14  ;;  %1015 = vmatprep.subr.mxu1 %v5589_v15  ;;  %v9563_v14 = vld [vmem:[#allocation25_spill] sm:$0xff]  ;;  %v9564_v15 = vld [vmem:[#allocation26_spill] sm:$0xff]  ;;  %9656 = vst [vmem:[#allocation23_spill] sm:$0xff] %v6299_v2  ;;  %9657 = vst [vmem:[#allocation24_spill] sm:$0xff] %v6302_v5 }
 0x17b   :  { %945 = vmatpush1.msra.mxu0 %v5593_v16  ;;  %1016 = vmatpush1.msra.mxu1 %v5597_v17  ;;  %v9565_v16 = vld [vmem:[#allocation27_spill] sm:$0xff]  ;;  %v9566_v17 = vld [vmem:[#allocation28_spill] sm:$0xff] }
 0x17c   :  { %946 = vmatprep.subr.mxu0 %v5604_v19  ;;  %1017 = vmatprep.subr.mxu1 %v5608_v20  ;;  %v9567_v19 = vld [vmem:[#allocation29_spill] sm:$0xff]  ;;  %v9568_v20 = vld [vmem:[#allocation30_spill] sm:$0xff] }
 0x17d   :  { %947 = vmatpush1.msra.mxu0 %v5612_v21  ;;  %1018 = vmatpush1.msra.mxu1 %v5614_v22  ;;  %v9569_v21 = vld [vmem:[#allocation31_spill] sm:$0xff]  ;;  %v9570_v22 = vld [vmem:[#allocation32_spill] sm:$0xff] }
 0x17e   :  { %948 = vmatprep.subr.mxu0 %v5618_v23  ;;  %1019 = vmatprep.subr.mxu1 %v5620_v24  ;;  %v9571_v23 = vld [vmem:[#allocation33_spill] sm:$0xff]  ;;  %v9572_v24 = vld [vmem:[#allocation34_spill] sm:$0xff] }
 0x17f   :  { %949 = vmatpush1.msra.mxu0 %v5624_v25  ;;  %1020 = vmatpush1.msra.mxu1 %v5626_v26  ;;  %v9573_v25 = vld [vmem:[#allocation35_spill] sm:$0xff]  ;;  %v9574_v26 = vld [vmem:[#allocation36_spill] sm:$0xff] }
 0x180   :  { %950 = vmatprep.subr.mxu0 %v5630_v27  ;;  %1021 = vmatprep.subr.mxu1 %v5632_v28  ;;  %v9575_v27 = vld [vmem:[#allocation37_spill] sm:$0xff]  ;;  %v9576_v28 = vld [vmem:[#allocation38_spill] sm:$0xff] }
 0x181   :  { %951 = vmatpush1.msra.mxu0 %v5636_v29  ;;  %1022 = vmatpush1.msra.mxu1 %v5638_v30  ;;  %v9577_v29 = vld [vmem:[#allocation39_spill] sm:$0xff]  ;;  %v9578_v30 = vld [vmem:[#allocation40_spill] sm:$0xff] }
 0x182   :  { %952 = vmatprep.subr.mxu0 %v5642_v31  ;;  %1023 = vmatprep.subr.mxu1 %v5644_v32  ;;  %v9579_v31 = vld [vmem:[#allocation41_spill] sm:$0xff]  ;;  %v9580_v32 = vld [vmem:[#allocation42_spill] sm:$0xff] }
 0x183   :  { %953 = vmatpush1.msra.mxu0 %v5648_v33  ;;  %1024 = vmatpush1.msra.mxu1 %v5650_v34  ;;  %v9581_v33 = vld [vmem:[#allocation43_spill] sm:$0xff]  ;;  %v9582_v34 = vld [vmem:[#allocation44_spill] sm:$0xff] }
 0x184   :  { %954 = vmatprep.subr.mxu0 %v5654_v35  ;;  %1025 = vmatprep.subr.mxu1 %v5656_v36  ;;  %v9583_v35 = vld [vmem:[#allocation45_spill] sm:$0xff]  ;;  %v9584_v36 = vld [vmem:[#allocation46_spill] sm:$0xff] }
 0x185   :  { %955 = vmatpush1.msra.mxu0 %v5660_v37  ;;  %1026 = vmatpush1.msra.mxu1 %v5662_v38  ;;  %v9585_v37 = vld [vmem:[#allocation47_spill] sm:$0xff]  ;;  %v9586_v38 = vld [vmem:[#allocation48_spill] sm:$0xff] }
 0x186   :  { %956 = vmatprep.subr.mxu0 %v5666_v39  ;;  %1027 = vmatprep.subr.mxu1 %v5668_v40  ;;  %v9587_v39 = vld [vmem:[#allocation49_spill] sm:$0xff]  ;;  %v9588_v40 = vld [vmem:[#allocation50_spill] sm:$0xff] }
 0x187   :  { %957 = vmatpush1.msra.mxu0 %v5672_v41  ;;  %1028 = vmatpush1.msra.mxu1 %v5674_v42  ;;  %v9589_v41 = vld [vmem:[#allocation51_spill] sm:$0xff]  ;;  %v9590_v42 = vmov 0.0  }
 0x188   :  { %958 = vmatprep.subr.mxu0 %v5678_v43  ;;  %1029 = vmatprep.subr.mxu1 %v5680_v44  ;;  %v9591_v43 = vld [vmem:[#allocation52_spill] sm:$0xff]  ;;  %v9592_v44 = vld [vmem:[#allocation53_spill] sm:$0xff] }
 0x189   :  { %959 = vmatpush1.msra.mxu0 %v9561_v12  ;;  %1030 = vmatpush1.msra.mxu1 %v9562_v13  ;;  %v9613_v12 = vld [vmem:[#allocation74_spill] sm:$0xff]  ;;  %v9614_v13 = vld [vmem:[#allocation75_spill] sm:$0xff] }
 0x18a   :  { %960 = vmatprep.subr.mxu0 %v9563_v14  ;;  %1031 = vmatprep.subr.mxu1 %v9564_v15  ;;  %v9615_v14 = vld [vmem:[#allocation76_spill] sm:$0xff]  ;;  %v9616_v15 = vld [vmem:[#allocation77_spill] sm:$0xff] }
 0x18b   :  { %961 = vmatpush1.msra.mxu0 %v9565_v16  ;;  %1032 = vmatpush1.msra.mxu1 %v9566_v17  ;;  %v9617_v16 = vld [vmem:[#allocation78_spill] sm:$0xff]  ;;  %v9618_v17 = vld [vmem:[#allocation79_spill] sm:$0xff] }
 0x18c   :  { %962 = vmatprep.subr.mxu0 %v9567_v19  ;;  %1033 = vmatprep.subr.mxu1 %v9568_v20  ;;  %v9619_v19 = vld [vmem:[#allocation80_spill] sm:$0xff]  ;;  %v9620_v20 = vld [vmem:[#allocation81_spill] sm:$0xff] }
 0x18d   :  { %963 = vmatpush1.msra.mxu0 %v9569_v21  ;;  %1034 = vmatpush1.msra.mxu1 %v9570_v22  ;;  %v9621_v21 = vld [vmem:[#allocation82_spill] sm:$0xff]  ;;  %v9622_v22 = vld [vmem:[#allocation83_spill] sm:$0xff] }
 0x18e   :  { %964 = vmatprep.subr.mxu0 %v9571_v23  ;;  %1035 = vmatprep.subr.mxu1 %v9572_v24  ;;  %v9623_v23 = vld [vmem:[#allocation84_spill] sm:$0xff]  ;;  %v9624_v24 = vld [vmem:[#allocation85_spill] sm:$0xff] }
 0x18f   :  { %965 = vmatpush1.msra.mxu0 %v9573_v25  ;;  %1036 = vmatpush1.msra.mxu1 %v9574_v26  ;;  %v9625_v25 = vld [vmem:[#allocation86_spill] sm:$0xff]  ;;  %v9626_v26 = vld [vmem:[#allocation87_spill] sm:$0xff] }
 0x190   :  { %966 = vmatprep.subr.mxu0 %v9575_v27  ;;  %1037 = vmatprep.subr.mxu1 %v9576_v28  ;;  %v9627_v27 = vld [vmem:[#allocation88_spill] sm:$0xff]  ;;  %v9628_v28 = vld [vmem:[#allocation89_spill] sm:$0xff] }
 0x191   :  { %967 = vmatpush1.msra.mxu0 %v9577_v29  ;;  %1038 = vmatpush1.msra.mxu1 %v9578_v30  ;;  %v9629_v29 = vld [vmem:[#allocation90_spill] sm:$0xff]  ;;  %v9630_v30 = vld [vmem:[#allocation91_spill] sm:$0xff] }
 0x192   :  { %968 = vmatprep.subr.mxu0 %v9579_v31  ;;  %1039 = vmatprep.subr.mxu1 %v9580_v32  ;;  %v9631_v31 = vld [vmem:[#allocation92_spill] sm:$0xff]  ;;  %v9632_v32 = vld [vmem:[#allocation93_spill] sm:$0xff] }
 0x193   :  { %969 = vmatpush1.msra.mxu0 %v9581_v33  ;;  %1040 = vmatpush1.msra.mxu1 %v9582_v34  ;;  %v9633_v33 = vld [vmem:[#allocation94_spill] sm:$0xff]  ;;  %v9634_v34 = vld [vmem:[#allocation95_spill] sm:$0xff] }
 0x194   :  { %970 = vmatprep.subr.mxu0 %v9583_v35  ;;  %1041 = vmatprep.subr.mxu1 %v9584_v36  ;;  %v9635_v35 = vld [vmem:[#allocation96_spill] sm:$0xff]  ;;  %v9636_v36 = vld [vmem:[#allocation97_spill] sm:$0xff] }
 0x195   :  { %971 = vmatpush1.msra.mxu0 %v9585_v37  ;;  %1042 = vmatpush1.msra.mxu1 %v9586_v38  ;;  %v9637_v37 = vld [vmem:[#allocation98_spill] sm:$0xff]  ;;  %v9638_v38 = vld [vmem:[#allocation99_spill] sm:$0xff] }
 0x196   :  { %972 = vmatprep.subr.mxu0 %v9587_v39  ;;  %1043 = vmatprep.subr.mxu1 %v9588_v40  ;;  %v9639_v39 = vld [vmem:[#allocation100_spill] sm:$0xff]  ;;  %v9640_v40 = vld [vmem:[#allocation101_spill] sm:$0xff] }
 0x197   :  { %973 = vmatpush1.msra.mxu0 %v9589_v41  ;;  %1006 = vmatprep.mubr.f32.mxu0 %v9590_v42  ;;  %v9641_v41 = vld [vmem:[#allocation102_spill] sm:$0xff] }
 0x198   :  { %1044 = vmatpush1.msra.mxu1 %v9591_v43  ;;  %1077 = vmatprep.mubr.f32.mxu1 %v9590_v42  ;;  %v9642_v43 = vld [vmem:[#allocation103_spill] sm:$0xff] }
 0x199   :  { %1007 = vmatmul.mubr.f32.vlgmr.msra.gmra.mxu0 %v6163_v9  ;;  %1078 = vmatmul.mubr.f32.vlgmr.msra.gmra.mxu1 %v6163_v9  ;;  %v9612_v9 = vld [vmem:[#allocation73_spill] sm:$0xff] }
 0x19a   :  { %1106 = vmatprep.subr.mxu0 %v9592_v44  ;;  %1177 = vmatprep.subr.mxu1 %v9593_v55  ;;  %v9643_v44 = vld [vmem:[#allocation104_spill] sm:$0xff]  ;;  %v9644_v55 = vld [vmem:[#allocation105_spill] sm:$0xff] }
 0x19b   :  { %1107 = vmatpush1.msra.mxu0 %v9594_v18  ;;  %1178 = vmatpush1.msra.mxu1 %v9595_v54  ;;  %v9645_v18 = vld [vmem:[#allocation106_spill] sm:$0xff]  ;;  %v9646_v54 = vld [vmem:[#allocation107_spill] sm:$0xff] }
 0x19c   :  { %1108 = vmatprep.subr.mxu0 %v9596_v53  ;;  %1179 = vmatprep.subr.mxu1 %v9597_v56  ;;  %v9647_v53 = vld [vmem:[#allocation108_spill] sm:$0xff]  ;;  %v9648_v56 = vld [vmem:[#allocation109_spill] sm:$0xff] }
 0x19d   :  { %1109 = vmatpush1.msra.mxu0 %v9598_v61  ;;  %1180 = vmatpush1.msra.mxu1 %v9599_v7 }
 0x19e   :  { %1110 = vmatprep.subr.mxu0 %v9600_v47  ;;  %1181 = vmatprep.subr.mxu1 %v9601_v10 }
 0x19f   :  { %1111 = vmatpush1.msra.mxu0 %v9602_v51  ;;  %1182 = vmatpush1.msra.mxu1 %v9603_v3 }
 0x1a0   :  { %1112 = vmatprep.subr.mxu0 %v9604_v11  ;;  %1183 = vmatprep.subr.mxu1 %v9605_v62 }
 0x1a1   :  { %1113 = vmatpush1.msra.mxu0 %v9606_v4  ;;  %1184 = vmatpush1.msra.mxu1 %v9607_v8 }
 0x1a2   :  { %1114 = vmatprep.subr.mxu0 %v9608_v48  ;;  %1185 = vmatprep.subr.mxu1 %v9609_v1 }
 0x1a3   :  { %1115 = vmatpush1.msra.mxu0 %v9610_v49  ;;  %1186 = vmatpush1.msra.mxu1 %v9611_v60 }
 0x1a4   :  { %1116 = vmatprep.subr.mxu0 %v9612_v9  ;;  %1187 = vmatprep.subr.mxu1 %v9613_v12 }
 0x1a5   :  { %1117 = vmatpush1.msra.mxu0 %v9614_v13  ;;  %1188 = vmatpush1.msra.mxu1 %v9615_v14 }
 0x1a6   :  { %1118 = vmatprep.subr.mxu0 %v9616_v15  ;;  %1189 = vmatprep.subr.mxu1 %v9617_v16 }
 0x1a7   :  { %1119 = vmatpush1.msra.mxu0 %v9618_v17  ;;  %1190 = vmatpush1.msra.mxu1 %v9619_v19 }
 0x1a8   :  { %1120 = vmatprep.subr.mxu0 %v9620_v20  ;;  %1191 = vmatprep.subr.mxu1 %v9621_v21 }
 0x1a9   :  { %1121 = vmatpush1.msra.mxu0 %v9622_v22  ;;  %1192 = vmatpush1.msra.mxu1 %v9623_v23 }
 0x1aa   :  { %1122 = vmatprep.subr.mxu0 %v9624_v24  ;;  %1193 = vmatprep.subr.mxu1 %v9625_v25 }
 0x1ab   :  { %1123 = vmatpush1.msra.mxu0 %v9626_v26  ;;  %1194 = vmatpush1.msra.mxu1 %v9627_v27 }
 0x1ac   :  { %1124 = vmatprep.subr.mxu0 %v9628_v28  ;;  %1195 = vmatprep.subr.mxu1 %v9629_v29 }
 0x1ad   :  { %1125 = vmatpush1.msra.mxu0 %v9630_v30  ;;  %1196 = vmatpush1.msra.mxu1 %v9631_v31 }
 0x1ae   :  { %1126 = vmatprep.subr.mxu0 %v9632_v32  ;;  %1197 = vmatprep.subr.mxu1 %v9633_v33 }
 0x1af   :  { %1127 = vmatpush1.msra.mxu0 %v9634_v34  ;;  %1198 = vmatpush1.msra.mxu1 %v9635_v35 }
 0x1b0   :  { %1128 = vmatprep.subr.mxu0 %v9636_v36  ;;  %1199 = vmatprep.subr.mxu1 %v9637_v37 }
 0x1b1   :  { %1129 = vmatpush1.msra.mxu0 %v9638_v38  ;;  %1200 = vmatpush1.msra.mxu1 %v9639_v39 }
 0x1b2   :  { %1130 = vmatprep.subr.mxu0 %v9640_v40  ;;  %1201 = vmatprep.subr.mxu1 %v9641_v41 }
 0x1b3   :  { %1131 = vmatpush1.msra.mxu0 %v9642_v43  ;;  %1202 = vmatpush1.msra.mxu1 %v9643_v44 }
 0x1b4   :  { %1132 = vmatprep.subr.mxu0 %v9644_v55  ;;  %1203 = vmatprep.subr.mxu1 %v9645_v18 }
 0x1b5   :  { %1133 = vmatpush1.msra.mxu0 %v9646_v54  ;;  %1204 = vmatpush1.msra.mxu1 %v9647_v53  ;;  %v9663_v53 = vld [vmem:[#allocation120_spill] sm:$0xff]  ;;  %v9664_v54 = vld [vmem:[#allocation119_spill] sm:$0xff] }
 0x1b6   :  { %1134 = vmatprep.subr.mxu0 %v9648_v56  ;;  %1205 = vmatprep.subr.mxu1 %v9649_v0 }
 0x1b7   :  { %1135 = vmatpush1.msra.mxu0 %v9650_v50  ;;  %1206 = vmatpush1.msra.mxu1 %v9651_v63 }
 0x1b8   :  { %1136 = vmatprep.subr.mxu0 %v9652_v6  ;;  %1207 = vmatprep.subr.mxu1 %v9653_v57  ;;  %v9662_v6 = vld [vmem:[#allocation118_spill] sm:$0xff] }
 0x1b9   :  { %1137 = vmatpush1.msra.mxu0 %v9654_v52  ;;  %1208 = vmatpush1.msra.mxu1 %v9655_v59 }
 0x1ba   :  { %1170 = vmatprep.mubr.f32.mxu0 %v9590_v42  ;;  %1241 = vmatprep.mubr.f32.mxu1 %v9590_v42 }
 0x1bb   :  { %1248 = vmatprep.subr.mxu0 %v6299_v2  ;;  %1319 = vmatprep.subr.mxu1 %v6302_v5 }
 0x238   :  { %v6305_v58 = vpop.f32.mrf.mxu0  ;;  %v6307_v45 = vpop.f32.mrf.mxu1 }
 0x239   :  { %9658 = vst [vmem:[#allocation25_spill] sm:$0xff] %v6305_v58  ;;  %9659 = vst [vmem:[#allocation26_spill] sm:$0xff] %v6307_v45  ;;  %v9665_v45 = vld [vmem:[#allocation122_spill] sm:$0xff] }
 0x23a   :  { %v6309_v57 = vpop.f32.mrf.mxu0  ;;  %v6311_v52 = vpop.f32.mrf.mxu1 }
 0x23b   :  { %9660 = vst [vmem:[#allocation27_spill] sm:$0xff] %v6309_v57  ;;  %9661 = vst [vmem:[#allocation28_spill] sm:$0xff] %v6311_v52 }
 0x259   :  { %v1008_v59 = vpop.f32.mrf.mxu0  ;;  %v1079_v50 = vpop.f32.mrf.mxu1 }
 0x25a   :  { %v1084_v63 = vadd.f32 %v1008_v59, %v9662_v6  ;;  %v1086_v18 = vadd.f32 %v1079_v50, %v9664_v54  ;;  %v6352_v54 = vld [vmem:[#allocation5 + $0x1b0] sm:$0xff] }
 0x25b   :  { %v1010_v0 = vpop.f32.mrf.mxu0  ;;  %v1081_v58 = vpop.f32.mrf.mxu1 }
 0x25c   :  { %v1088_v56 = vmul.f32 0.5, %v1084_v63  ;;  %v1085_v2 = vadd.f32 %v1010_v0, %v9663_v53  ;;  %v1087_v55 = vadd.f32 %v1081_v58, %v9665_v45 }
 0x25e   :  { %4801 = vtanh.f32 %v1088_v56  ;;  %v1092_v5 = vmul.f32 0.5, %v1085_v2  ;;  %v1097_v57 = vmul.f32 0.5, %v1087_v55  ;;  %v6346_v55 = vld [vmem:[#allocation5 + $0x1b8] sm:$0xff]  ;;  %v6355_v56 = vld [vmem:[#allocation5 + $0x188] sm:$0xff] }
 0x260   :  { %4803 = vtanh.f32 %v1092_v5 }
 0x261   :  { %4805 = vtanh.f32 %v1086_v18  ;;  %v6349_v18 = vld [vmem:[#allocation5 + $0x1a0] sm:$0xff] }
 0x262   :  { %4807 = vtanh.f32 %v1097_v57  ;;  %v6328_v57 = vld [vmem:[#allocation5 + $0x1f0] sm:$0xff] }
 0x26b   :  { %v4802_v44 = vpop.eup %4801 }
 0x26c   :  { %v1090_v52 = vmul.f32 0.5, %v4802_v44  ;;  %v6343_v44 = vld [vmem:[#allocation5 + $0x1a8] sm:$0xff] }
 0x26d   :  { %v4804_v43 = vpop.eup %4803 }
 0x26e   :  { %v1091_v41 = vadd.f32 0.5, %v1090_v52  ;;  %v1094_v59 = vmul.f32 0.5, %v4804_v43  ;;  %v4806_v6 = vpop.eup %4805  ;;  %v6325_v52 = vld [vmem:[#allocation5 + $0x1e0] sm:$0xff]  ;;  %v6340_v43 = vld [vmem:[#allocation5 + $0x1d0] sm:$0xff] }
 0x26f   :  { %v4808_v5 = vpop.eup %4807 }
 0x270   :  { %v1095_v63 = vadd.f32 0.5, %v1094_v59  ;;  %v1102_v40 = vmul.f32 %v4806_v6, %v1091_v41  ;;  %v1099_v2 = vmul.f32 0.5, %v4808_v5  ;;  %v6337_v41 = vld [vmem:[#allocation5 + $0x1c0] sm:$0xff]  ;;  %v6358_v59 = vld [vmem:[#allocation5 + $0x198] sm:$0xff] }
 0x271   :  { %v6361_v6 = vld [vmem:[#allocation5 + $0x180] sm:$0xff]  ;;  %v6370_v5 = vld [vmem:[#allocation5 + $0x178] sm:$0xff] }
 0x272   :  { %v1101_v0 = vmul.f32 %v1095_v63, %v6160_v46  ;;  %v1100_v50 = vadd.f32 0.5, %v1099_v2  ;;  %v6331_v46 = vld [vmem:[#allocation5 + $0x1c8] sm:$0xff]  ;;  %v6364_v63 = vld [vmem:[#allocation5 + $0x190] sm:$0xff]  ;;  %9668 = vst [vmem:[#allocation31_spill] sm:$0xff] %v6370_v5  ;;  %v6373_v2 = vld [vmem:[#allocation5 + $0x160] sm:$0xff] }
 0x273   :  { %9666 = vst [vmem:[#allocation29_spill] sm:$0xff] %v6364_v63  ;;  %9669 = vst [vmem:[#allocation32_spill] sm:$0xff] %v6373_v2 }
 0x274   :  { %v6318_v53 = vadd.f32 %v1102_v40, %v1101_v0  ;;  %v6334_v40 = vld [vmem:[#allocation5 + $0x1d8] sm:$0xff]  ;;  %v6367_v0 = vld [vmem:[#allocation5 + $0x168] sm:$0xff] }
 0x275   :  { %9667 = vst [vmem:[#allocation30_spill] sm:$0xff] %v6367_v0 }
 0x276   :  { %4809 = vtanh.f32 %v6318_v53 }
 0x283   :  { %v4810_v45 = vpop.eup %4809 }
 0x284   :  { %v6321_v58 = vmul.f32 %v4810_v45, %v1100_v50  ;;  %v6376_v50 = vld [vmem:[#allocation5 + $0x170] sm:$0xff]  ;;  %v6379_v45 = vld [vmem:[#allocation5 + $0x148] sm:$0xff] }
 0x285   :  { %9670 = vst [vmem:[#allocation33_spill] sm:$0xff] %v6376_v50  ;;  %9671 = vst [vmem:[#allocation34_spill] sm:$0xff] %v6379_v45 }
 0x286   :  { %1171 = vmatmul.mubr.f32.vlgmr.msra.gmra.mxu0 %v6321_v58  ;;  %1242 = vmatmul.mubr.f32.vlgmr.msra.gmra.mxu1 %v6321_v58 }
 0x287   :  { %1249 = vmatpush1.msra.mxu0 %v6325_v52  ;;  %1320 = vmatpush1.msra.mxu1 %v6328_v57 }
 0x288   :  { %1250 = vmatprep.subr.mxu0 %v6331_v46  ;;  %1321 = vmatprep.subr.mxu1 %v6334_v40 }
 0x289   :  { %1251 = vmatpush1.msra.mxu0 %v6337_v41  ;;  %1322 = vmatpush1.msra.mxu1 %v6340_v43 }
 0x28a   :  { %1252 = vmatprep.subr.mxu0 %v6343_v44  ;;  %1323 = vmatprep.subr.mxu1 %v6346_v55 }
 0x28b   :  { %1253 = vmatpush1.msra.mxu0 %v6349_v18  ;;  %1324 = vmatpush1.msra.mxu1 %v6352_v54 }
 0x28c   :  { %1254 = vmatprep.subr.mxu0 %v6355_v56  ;;  %1325 = vmatprep.subr.mxu1 %v6358_v59 }
 0x28d   :  { %1255 = vmatpush1.msra.mxu0 %v6361_v6  ;;  %1326 = vmatpush1.msra.mxu1 %v6364_v63  ;;  %v6382_v63 = vld [vmem:[#allocation5 + $0x158] sm:$0xff] }
 0x28e   :  { %1256 = vmatprep.subr.mxu0 %v6367_v0  ;;  %1327 = vmatprep.subr.mxu1 %v6370_v5  ;;  %9672 = vst [vmem:[#allocation35_spill] sm:$0xff] %v6382_v63  ;;  %v6385_v0 = vld [vmem:[#allocation5 + $0x140] sm:$0xff]  ;;  %v6388_v5 = vld [vmem:[#allocation5 + $0x150] sm:$0xff] }
 0x28f   :  { %1257 = vmatpush1.msra.mxu0 %v6373_v2  ;;  %1328 = vmatpush1.msra.mxu1 %v6376_v50  ;;  %9673 = vst [vmem:[#allocation36_spill] sm:$0xff] %v6385_v0  ;;  %9674 = vst [vmem:[#allocation37_spill] sm:$0xff] %v6388_v5  ;;  %v6391_v2 = vld [vmem:[#allocation5 + $0x128] sm:$0xff]  ;;  %v6394_v50 = vld [vmem:[#allocation5 + $0x138] sm:$0xff] }
 0x290   :  { %1258 = vmatprep.subr.mxu0 %v6379_v45  ;;  %1329 = vmatprep.subr.mxu1 %v6382_v63  ;;  %9675 = vst [vmem:[#allocation38_spill] sm:$0xff] %v6391_v2  ;;  %9676 = vst [vmem:[#allocation39_spill] sm:$0xff] %v6394_v50  ;;  %v6397_v45 = vld [vmem:[#allocation5 + $0x120] sm:$0xff]  ;;  %v6400_v63 = vld [vmem:[#allocation5 + $0x130] sm:$0xff] }
 0x291   :  { %1259 = vmatpush1.msra.mxu0 %v6385_v0  ;;  %1330 = vmatpush1.msra.mxu1 %v6388_v5  ;;  %9677 = vst [vmem:[#allocation40_spill] sm:$0xff] %v6397_v45  ;;  %9678 = vst [vmem:[#allocation41_spill] sm:$0xff] %v6400_v63  ;;  %v6403_v0 = vld [vmem:[#allocation5 + $0x108] sm:$0xff]  ;;  %v6406_v5 = vld [vmem:[#allocation5 + $0x118] sm:$0xff] }
 0x292   :  { %1260 = vmatprep.subr.mxu0 %v6391_v2  ;;  %1331 = vmatprep.subr.mxu1 %v6394_v50  ;;  %9679 = vst [vmem:[#allocation42_spill] sm:$0xff] %v6403_v0  ;;  %9680 = vst [vmem:[#allocation43_spill] sm:$0xff] %v6406_v5  ;;  %v6409_v2 = vld [vmem:[#allocation5 + $0x100] sm:$0xff]  ;;  %v6412_v50 = vld [vmem:[#allocation5 + $0x110] sm:$0xff] }
 0x293   :  { %1261 = vmatpush1.msra.mxu0 %v6397_v45  ;;  %1332 = vmatpush1.msra.mxu1 %v6400_v63  ;;  %9681 = vst [vmem:[#allocation44_spill] sm:$0xff] %v6409_v2  ;;  %9682 = vst [vmem:[#allocation45_spill] sm:$0xff] %v6412_v50  ;;  %v6415_v45 = vld [vmem:[#allocation5 + $0xe8] sm:$0xff]  ;;  %v6418_v63 = vld [vmem:[#allocation5 + $0xf8] sm:$0xff] }
 0x294   :  { %1262 = vmatprep.subr.mxu0 %v6403_v0  ;;  %1333 = vmatprep.subr.mxu1 %v6406_v5  ;;  %9683 = vst [vmem:[#allocation46_spill] sm:$0xff] %v6415_v45  ;;  %9684 = vst [vmem:[#allocation47_spill] sm:$0xff] %v6418_v63  ;;  %v6421_v0 = vld [vmem:[#allocation5 + $0xe0] sm:$0xff]  ;;  %v6424_v5 = vld [vmem:[#allocation5 + $0xf0] sm:$0xff] }
 0x295   :  { %1263 = vmatpush1.msra.mxu0 %v6409_v2  ;;  %1334 = vmatpush1.msra.mxu1 %v6412_v50  ;;  %9685 = vst [vmem:[#allocation48_spill] sm:$0xff] %v6421_v0  ;;  %9686 = vst [vmem:[#allocation49_spill] sm:$0xff] %v6424_v5  ;;  %v6427_v2 = vld [vmem:[#allocation5 + $0xc8] sm:$0xff]  ;;  %v6430_v50 = vld [vmem:[#allocation5 + $0xd8] sm:$0xff] }
 0x296   :  { %1264 = vmatprep.subr.mxu0 %v6415_v45  ;;  %1335 = vmatprep.subr.mxu1 %v6418_v63  ;;  %9687 = vst [vmem:[#allocation50_spill] sm:$0xff] %v6427_v2  ;;  %9688 = vst [vmem:[#allocation51_spill] sm:$0xff] %v6430_v50  ;;  %v6433_v45 = vld [vmem:[#allocation5 + $0xc0] sm:$0xff]  ;;  %v6436_v63 = vld [vmem:[#allocation5 + $0xd0] sm:$0xff] }
 0x297   :  { %1265 = vmatpush1.msra.mxu0 %v6421_v0  ;;  %1336 = vmatpush1.msra.mxu1 %v6424_v5  ;;  %9689 = vst [vmem:[#allocation52_spill] sm:$0xff] %v6433_v45  ;;  %9690 = vst [vmem:[#allocation53_spill] sm:$0xff] %v6436_v63  ;;  %v6439_v0 = vld [vmem:[#allocation5 + $0xa8] sm:$0xff]  ;;  %v6442_v5 = vld [vmem:[#allocation5 + $0xb8] sm:$0xff] }
 0x298   :  { %1266 = vmatprep.subr.mxu0 %v6427_v2  ;;  %1337 = vmatprep.subr.mxu1 %v6430_v50  ;;  %9691 = vst [vmem:[#allocation54_spill] sm:$0xff] %v6439_v0  ;;  %9692 = vst [vmem:[#allocation55_spill] sm:$0xff] %v6442_v5  ;;  %v6445_v2 = vld [vmem:[#allocation5 + $0xa0] sm:$0xff]  ;;  %v6448_v50 = vld [vmem:[#allocation5 + $0xb0] sm:$0xff] }
 0x299   :  { %1267 = vmatpush1.msra.mxu0 %v6433_v45  ;;  %1338 = vmatpush1.msra.mxu1 %v6436_v63  ;;  %9693 = vst [vmem:[#allocation56_spill] sm:$0xff] %v6445_v2  ;;  %9694 = vst [vmem:[#allocation57_spill] sm:$0xff] %v6448_v50  ;;  %v6451_v45 = vld [vmem:[#allocation5 + $0x88] sm:$0xff]  ;;  %v6454_v63 = vld [vmem:[#allocation5 + $0x98] sm:$0xff] }
 0x29a   :  { %1268 = vmatprep.subr.mxu0 %v6439_v0  ;;  %1339 = vmatprep.subr.mxu1 %v6442_v5  ;;  %9695 = vst [vmem:[#allocation58_spill] sm:$0xff] %v6451_v45  ;;  %9696 = vst [vmem:[#allocation59_spill] sm:$0xff] %v6454_v63  ;;  %v6457_v0 = vld [vmem:[#allocation5 + $0x80] sm:$0xff]  ;;  %v6460_v5 = vld [vmem:[#allocation5 + $0x90] sm:$0xff] }
 0x29b   :  { %1269 = vmatpush1.msra.mxu0 %v6445_v2  ;;  %1340 = vmatpush1.msra.mxu1 %v6448_v50  ;;  %9697 = vst [vmem:[#allocation60_spill] sm:$0xff] %v6457_v0  ;;  %9698 = vst [vmem:[#allocation61_spill] sm:$0xff] %v6460_v5  ;;  %v6463_v2 = vld [vmem:[#allocation5 + $0x68] sm:$0xff]  ;;  %v6466_v50 = vld [vmem:[#allocation5 + $0x78] sm:$0xff] }
 0x29c   :  { %1270 = vmatprep.subr.mxu0 %v6451_v45  ;;  %1341 = vmatprep.subr.mxu1 %v6454_v63  ;;  %9699 = vst [vmem:[#allocation62_spill] sm:$0xff] %v6463_v2  ;;  %9700 = vst [vmem:[#allocation63_spill] sm:$0xff] %v6466_v50  ;;  %v6469_v45 = vld [vmem:[#allocation5 + $0x60] sm:$0xff]  ;;  %v6472_v63 = vld [vmem:[#allocation5 + $0x70] sm:$0xff] }
 0x29d   :  { %1271 = vmatpush1.msra.mxu0 %v6457_v0  ;;  %1342 = vmatpush1.msra.mxu1 %v6460_v5  ;;  %9701 = vst [vmem:[#allocation64_spill] sm:$0xff] %v6469_v45  ;;  %9702 = vst [vmem:[#allocation65_spill] sm:$0xff] %v6472_v63  ;;  %v6475_v0 = vld [vmem:[#allocation5 + $0x48] sm:$0xff]  ;;  %v6478_v5 = vld [vmem:[#allocation5 + $0x58] sm:$0xff] }
 0x29e   :  { %1272 = vmatprep.subr.mxu0 %v6463_v2  ;;  %1343 = vmatprep.subr.mxu1 %v6466_v50  ;;  %9703 = vst [vmem:[#allocation66_spill] sm:$0xff] %v6475_v0  ;;  %9704 = vst [vmem:[#allocation67_spill] sm:$0xff] %v6478_v5  ;;  %v6481_v2 = vld [vmem:[#allocation5 + $0x40] sm:$0xff]  ;;  %v6484_v50 = vld [vmem:[#allocation5 + $0x50] sm:$0xff] }
 0x29f   :  { %1273 = vmatpush1.msra.mxu0 %v6469_v45  ;;  %1344 = vmatpush1.msra.mxu1 %v6472_v63  ;;  %9705 = vst [vmem:[#allocation68_spill] sm:$0xff] %v6481_v2  ;;  %9706 = vst [vmem:[#allocation69_spill] sm:$0xff] %v6484_v50  ;;  %v6487_v45 = vld [vmem:[#allocation5 + $0x28] sm:$0xff]  ;;  %v6490_v63 = vld [vmem:[#allocation5 + $0x38] sm:$0xff] }
 0x2a0   :  { %1274 = vmatprep.subr.mxu0 %v6475_v0  ;;  %1345 = vmatprep.subr.mxu1 %v6478_v5  ;;  %9707 = vst [vmem:[#allocation70_spill] sm:$0xff] %v6487_v45  ;;  %9708 = vst [vmem:[#allocation71_spill] sm:$0xff] %v6490_v63  ;;  %v6493_v0 = vld [vmem:[#allocation5 + $0x20] sm:$0xff]  ;;  %v6496_v5 = vld [vmem:[#allocation5 + $0x30] sm:$0xff] }
 0x2a1   :  { %1275 = vmatpush1.msra.mxu0 %v6481_v2  ;;  %1346 = vmatpush1.msra.mxu1 %v6484_v50  ;;  %9709 = vst [vmem:[#allocation72_spill] sm:$0xff] %v6493_v0  ;;  %9710 = vst [vmem:[#allocation73_spill] sm:$0xff] %v6496_v5  ;;  %v6499_v2 = vld [vmem:[#allocation5 + $0x8] sm:$0xff]  ;;  %v6502_v50 = vld [vmem:[#allocation5 + $0x18] sm:$0xff] }
 0x2a2   :  { %1276 = vmatprep.subr.mxu0 %v6487_v45  ;;  %1347 = vmatprep.subr.mxu1 %v6490_v63  ;;  %9711 = vst [vmem:[#allocation74_spill] sm:$0xff] %v6499_v2  ;;  %9712 = vst [vmem:[#allocation75_spill] sm:$0xff] %v6502_v50  ;;  %v6505_v45 = vld [vmem:[#allocation5] sm:$0xff]  ;;  %v6509_v63 = vld [vmem:[#allocation5 + $0x10] sm:$0xff] }
 0x2a3   :  { %1277 = vmatpush1.msra.mxu0 %v6493_v0  ;;  %1348 = vmatpush1.msra.mxu1 %v6496_v5  ;;  %9713 = vst [vmem:[#allocation76_spill] sm:$0xff] %v6505_v45  ;;  %9714 = vst [vmem:[#allocation77_spill] sm:$0xff] %v6509_v63  ;;  %v6524_v5 = vld [vmem:[#allocation8 + $0x1f0] sm:$0xff] }
 0x2a4   :  { %1278 = vmatprep.subr.mxu0 %v6499_v2  ;;  %1349 = vmatprep.subr.mxu1 %v6502_v50  ;;  %v6515_v2 = vld [vmem:[#allocation8 + $0x1e8] sm:$0xff]  ;;  %v6518_v50 = vld [vmem:[#allocation8 + $0x1f8] sm:$0xff]  ;;  %9718 = vst [vmem:[#allocation81_spill] sm:$0xff] %v6524_v5 }
 0x2a5   :  { %1279 = vmatpush1.msra.mxu0 %v6505_v45  ;;  %1312 = vmatprep.mubr.f32.mxu0 %v9590_v42  ;;  %9715 = vst [vmem:[#allocation78_spill] sm:$0xff] %v6515_v2  ;;  %9716 = vst [vmem:[#allocation79_spill] sm:$0xff] %v6518_v50  ;;  %v6521_v45 = vld [vmem:[#allocation8 + $0x1e0] sm:$0xff] }
 0x2a6   :  { %1350 = vmatpush1.msra.mxu1 %v6509_v63  ;;  %1383 = vmatprep.mubr.f32.mxu1 %v9590_v42  ;;  %9717 = vst [vmem:[#allocation80_spill] sm:$0xff] %v6521_v45  ;;  %v6527_v63 = vld [vmem:[#allocation8 + $0x1c8] sm:$0xff] }
 0x2a7   :  { %1313 = vmatmul.mubr.f32.vlgmr.msra.gmra.mxu0 %v6321_v58  ;;  %1384 = vmatmul.mubr.f32.vlgmr.msra.gmra.mxu1 %v6321_v58  ;;  %9719 = vst [vmem:[#allocation82_spill] sm:$0xff] %v6527_v63  ;;  %v6530_v58 = vld [vmem:[#allocation8 + $0x1d8] sm:$0xff] }
 0x2a8   :  { %1412 = vmatprep.subr.mxu0 %v6515_v2  ;;  %1483 = vmatprep.subr.mxu1 %v6518_v50  ;;  %9720 = vst [vmem:[#allocation83_spill] sm:$0xff] %v6530_v58 }
 0x2a9   :  { %1413 = vmatpush1.msra.mxu0 %v6521_v45  ;;  %1484 = vmatpush1.msra.mxu1 %v6524_v5 }
 0x2aa   :  { %1414 = vmatprep.subr.mxu0 %v6527_v63  ;;  %1485 = vmatprep.subr.mxu1 %v6530_v58 }
 0x2ab   :  { %1415 = vmatpush1.msra.mxu0 %v9598_v61  ;;  %1486 = vmatpush1.msra.mxu1 %v9599_v7  ;;  %v9721_v61 = vld [vmem:[#allocation101_spill] sm:$0xff]  ;;  %v9722_v7 = vld [vmem:[#allocation102_spill] sm:$0xff] }
 0x2ac   :  { %1416 = vmatprep.subr.mxu0 %v9600_v47  ;;  %1487 = vmatprep.subr.mxu1 %v9601_v10  ;;  %v9723_v47 = vld [vmem:[#allocation103_spill] sm:$0xff]  ;;  %v9724_v10 = vld [vmem:[#allocation104_spill] sm:$0xff] }
 0x2ad   :  { %1417 = vmatpush1.msra.mxu0 %v9602_v51  ;;  %1488 = vmatpush1.msra.mxu1 %v9603_v3  ;;  %v9725_v51 = vld [vmem:[#allocation105_spill] sm:$0xff]  ;;  %v9726_v3 = vld [vmem:[#allocation106_spill] sm:$0xff] }
 0x2ae   :  { %1418 = vmatprep.subr.mxu0 %v9604_v11  ;;  %1489 = vmatprep.subr.mxu1 %v9605_v62  ;;  %v9727_v11 = vld [vmem:[#allocation107_spill] sm:$0xff]  ;;  %v9728_v62 = vld [vmem:[#allocation108_spill] sm:$0xff] }
 0x2af   :  { %1419 = vmatpush1.msra.mxu0 %v9606_v4  ;;  %1490 = vmatpush1.msra.mxu1 %v9607_v8  ;;  %v9729_v4 = vld [vmem:[#allocation109_spill] sm:$0xff]  ;;  %v9730_v8 = vld [vmem:[#allocation110_spill] sm:$0xff] }
 0x2b0   :  { %1420 = vmatprep.subr.mxu0 %v9608_v48  ;;  %1491 = vmatprep.subr.mxu1 %v9609_v1  ;;  %v9731_v48 = vld [vmem:[#allocation111_spill] sm:$0xff]  ;;  %v9732_v1 = vld [vmem:[#allocation112_spill] sm:$0xff] }
 0x2b1   :  { %1421 = vmatpush1.msra.mxu0 %v9610_v49  ;;  %1492 = vmatpush1.msra.mxu1 %v9611_v60  ;;  %v9733_v49 = vld [vmem:[#allocation113_spill] sm:$0xff]  ;;  %v9734_v60 = vld [vmem:[#allocation114_spill] sm:$0xff] }
 0x2b2   :  { %1422 = vmatprep.subr.mxu0 %v9612_v9  ;;  %1493 = vmatprep.subr.mxu1 %v9613_v12  ;;  %v9735_v9 = vld [vmem:[#allocation115_spill] sm:$0xff]  ;;  %v9736_v12 = vld [vmem:[#allocation116_spill] sm:$0xff] }
 0x2b3   :  { %1423 = vmatpush1.msra.mxu0 %v9614_v13  ;;  %1494 = vmatpush1.msra.mxu1 %v9615_v14  ;;  %v9737_v13 = vld [vmem:[#allocation23_spill] sm:$0xff]  ;;  %v9738_v14 = vld [vmem:[#allocation24_spill] sm:$0xff] }
 0x2b4   :  { %1424 = vmatprep.subr.mxu0 %v9616_v15  ;;  %1495 = vmatprep.subr.mxu1 %v9617_v16 }
 0x2b5   :  { %1425 = vmatpush1.msra.mxu0 %v9618_v17  ;;  %1496 = vmatpush1.msra.mxu1 %v9619_v19 }
 0x2b6   :  { %1426 = vmatprep.subr.mxu0 %v9620_v20  ;;  %1497 = vmatprep.subr.mxu1 %v9621_v21  ;;  %v9743_v21 = vld [vmem:[#allocation121_spill] sm:$0xff] }
 0x2b7   :  { %1427 = vmatpush1.msra.mxu0 %v9622_v22  ;;  %1498 = vmatpush1.msra.mxu1 %v9623_v23 }
 0x2b8   :  { %1428 = vmatprep.subr.mxu0 %v9624_v24  ;;  %1499 = vmatprep.subr.mxu1 %v9625_v25 }
 0x2b9   :  { %1429 = vmatpush1.msra.mxu0 %v9626_v26  ;;  %1500 = vmatpush1.msra.mxu1 %v9627_v27  ;;  %v9744_v26 = vld [vmem:[#allocation125_spill] sm:$0xff] }
 0x2ba   :  { %1430 = vmatprep.subr.mxu0 %v9628_v28  ;;  %1501 = vmatprep.subr.mxu1 %v9629_v29  ;;  %v9745_v28 = vld [vmem:[#allocation123_spill] sm:$0xff] }
 0x2bb   :  { %1431 = vmatpush1.msra.mxu0 %v9630_v30  ;;  %1502 = vmatpush1.msra.mxu1 %v9631_v31 }
 0x2bc   :  { %1432 = vmatprep.subr.mxu0 %v9632_v32  ;;  %1503 = vmatprep.subr.mxu1 %v9633_v33  ;;  %v9746_v32 = vld [vmem:[#allocation126_spill] sm:$0xff] }
 0x2bd   :  { %1433 = vmatpush1.msra.mxu0 %v9634_v34  ;;  %1504 = vmatpush1.msra.mxu1 %v9635_v35 }
 0x2be   :  { %1434 = vmatprep.subr.mxu0 %v9636_v36  ;;  %1505 = vmatprep.subr.mxu1 %v9637_v37 }
 0x2bf   :  { %1435 = vmatpush1.msra.mxu0 %v9638_v38  ;;  %1506 = vmatpush1.msra.mxu1 %v9639_v39 }
 0x2c0   :  { %1436 = vmatprep.subr.mxu0 %v9721_v61  ;;  %1507 = vmatprep.subr.mxu1 %v9722_v7 }
 0x2c1   :  { %1437 = vmatpush1.msra.mxu0 %v9723_v47  ;;  %1508 = vmatpush1.msra.mxu1 %v9724_v10 }
 0x2c2   :  { %1438 = vmatprep.subr.mxu0 %v9725_v51  ;;  %1509 = vmatprep.subr.mxu1 %v9726_v3 }
 0x2c3   :  { %1439 = vmatpush1.msra.mxu0 %v9727_v11  ;;  %1510 = vmatpush1.msra.mxu1 %v9728_v62 }
 0x2c4   :  { %1440 = vmatprep.subr.mxu0 %v9729_v4  ;;  %1511 = vmatprep.subr.mxu1 %v9730_v8 }
 0x2c5   :  { %1441 = vmatpush1.msra.mxu0 %v9731_v48  ;;  %1512 = vmatpush1.msra.mxu1 %v9732_v1  ;;  %v9748_v48 = vld [vmem:[#allocation30_spill] sm:$0xff]  ;;  %v9749_v1 = vld [vmem:[#allocation31_spill] sm:$0xff] }
 0x2c6   :  { %1442 = vmatprep.subr.mxu0 %v9733_v49  ;;  %1513 = vmatprep.subr.mxu1 %v9734_v60  ;;  %v9750_v49 = vld [vmem:[#allocation32_spill] sm:$0xff]  ;;  %v9751_v60 = vld [vmem:[#allocation33_spill] sm:$0xff] }
 0x2c7   :  { %1443 = vmatpush1.msra.mxu0 %v9735_v9  ;;  %1514 = vmatpush1.msra.mxu1 %v9736_v12  ;;  %v9752_v9 = vld [vmem:[#allocation34_spill] sm:$0xff]  ;;  %v9753_v12 = vld [vmem:[#allocation35_spill] sm:$0xff] }
 0x2c8   :  { %1476 = vmatprep.mubr.f32.mxu0 %v9590_v42  ;;  %1547 = vmatprep.mubr.f32.mxu1 %v9590_v42 }
 0x2c9   :  { %1554 = vmatprep.subr.mxu0 %v9737_v13  ;;  %1625 = vmatprep.subr.mxu1 %v9738_v14 }
 0x346   :  { %v6595_v15 = vpop.f32.mrf.mxu0  ;;  %v6597_v16 = vpop.f32.mrf.mxu1 }
 0x347   :  { %9739 = vst [vmem:[#allocation84_spill] sm:$0xff] %v6595_v15  ;;  %9740 = vst [vmem:[#allocation85_spill] sm:$0xff] %v6597_v16  ;;  %v9783_v16 = vld [vmem:[#allocation65_spill] sm:$0xff]  ;;  %v9785_v15 = vld [vmem:[#allocation67_spill] sm:$0xff] }
 0x348   :  { %v6599_v17 = vpop.f32.mrf.mxu0  ;;  %v6601_v19 = vpop.f32.mrf.mxu1 }
 0x349   :  { %9741 = vst [vmem:[#allocation86_spill] sm:$0xff] %v6599_v17  ;;  %9742 = vst [vmem:[#allocation87_spill] sm:$0xff] %v6601_v19  ;;  %v9782_v19 = vld [vmem:[#allocation64_spill] sm:$0xff]  ;;  %v9784_v17 = vld [vmem:[#allocation66_spill] sm:$0xff] }
 0x367   :  { %v1314_v20 = vpop.f32.mrf.mxu0  ;;  %v1385_v23 = vpop.f32.mrf.mxu1 }
 0x368   :  { %v1390_v22 = vadd.f32 %v1314_v20, %v9743_v21  ;;  %v1392_v29 = vadd.f32 %v1385_v23, %v9745_v28  ;;  %v9754_v20 = vld [vmem:[#allocation36_spill] sm:$0xff]  ;;  %v9755_v21 = vld [vmem:[#allocation37_spill] sm:$0xff]  ;;  %v9757_v23 = vld [vmem:[#allocation39_spill] sm:$0xff] }
 0x369   :  { %v1316_v24 = vpop.f32.mrf.mxu0  ;;  %v1387_v31 = vpop.f32.mrf.mxu1  ;;  %v9762_v28 = vld [vmem:[#allocation44_spill] sm:$0xff] }
 0x36a   :  { %v1394_v25 = vmul.f32 0.5, %v1390_v22  ;;  %v1391_v27 = vadd.f32 %v1316_v24, %v9744_v26  ;;  %v1393_v33 = vadd.f32 %v1387_v31, %v9746_v32  ;;  %v9756_v22 = vld [vmem:[#allocation38_spill] sm:$0xff]  ;;  %v9758_v24 = vld [vmem:[#allocation40_spill] sm:$0xff]  ;;  %v9765_v31 = vld [vmem:[#allocation47_spill] sm:$0xff] }
 0x36b   :  { %v9760_v26 = vld [vmem:[#allocation42_spill] sm:$0xff]  ;;  %v9766_v32 = vld [vmem:[#allocation48_spill] sm:$0xff] }
 0x36c   :  { %4811 = vtanh.f32 %v1394_v25  ;;  %v1398_v30 = vmul.f32 0.5, %v1391_v27  ;;  %v1403_v34 = vmul.f32 0.5, %v1393_v33  ;;  %v9759_v25 = vld [vmem:[#allocation41_spill] sm:$0xff]  ;;  %v9761_v27 = vld [vmem:[#allocation43_spill] sm:$0xff] }
 0x36d   :  { %v9767_v33 = vld [vmem:[#allocation49_spill] sm:$0xff] }
 0x36e   :  { %4813 = vtanh.f32 %v1398_v30  ;;  %v9764_v30 = vld [vmem:[#allocation46_spill] sm:$0xff] }
 0x36f   :  { %4815 = vtanh.f32 %v1392_v29  ;;  %v9763_v29 = vld [vmem:[#allocation45_spill] sm:$0xff] }
 0x370   :  { %4817 = vtanh.f32 %v1403_v34  ;;  %v9768_v34 = vld [vmem:[#allocation50_spill] sm:$0xff] }
 0x379   :  { %v4812_v35 = vpop.eup %4811 }
 0x37a   :  { %v1396_v36 = vmul.f32 0.5, %v4812_v35  ;;  %v9769_v35 = vld [vmem:[#allocation51_spill] sm:$0xff] }
 0x37b   :  { %v4814_v37 = vpop.eup %4813 }
 0x37c   :  { %v1397_v38 = vadd.f32 0.5, %v1396_v36  ;;  %v1400_v39 = vmul.f32 0.5, %v4814_v37  ;;  %v4816_v61 = vpop.eup %4815  ;;  %v9770_v36 = vld [vmem:[#allocation52_spill] sm:$0xff]  ;;  %v9771_v37 = vld [vmem:[#allocation53_spill] sm:$0xff] }
 0x37d   :  { %v4818_v3 = vpop.eup %4817 }
 0x37e   :  { %v1401_v7 = vadd.f32 0.5, %v1400_v39  ;;  %v1408_v47 = vmul.f32 %v4816_v61, %v1397_v38  ;;  %v1405_v11 = vmul.f32 0.5, %v4818_v3  ;;  %v9772_v38 = vld [vmem:[#allocation54_spill] sm:$0xff]  ;;  %v9773_v39 = vld [vmem:[#allocation55_spill] sm:$0xff]  ;;  %v9774_v61 = vld [vmem:[#allocation56_spill] sm:$0xff] }
 0x37f   :  { %v9778_v3 = vld [vmem:[#allocation60_spill] sm:$0xff] }
 0x380   :  { %v1407_v10 = vmul.f32 %v1401_v7, %v6318_v53  ;;  %v1406_v62 = vadd.f32 0.5, %v1405_v11  ;;  %v9747_v53 = vld [vmem:[#allocation29_spill] sm:$0xff] }
 0x381   :  { %v9775_v7 = vld [vmem:[#allocation57_spill] sm:$0xff] }
 0x382   :  { %v6608_v51 = vadd.f32 %v1408_v47, %v1407_v10  ;;  %v9776_v47 = vld [vmem:[#allocation58_spill] sm:$0xff]  ;;  %v9777_v10 = vld [vmem:[#allocation59_spill] sm:$0xff]  ;;  %v9779_v11 = vld [vmem:[#allocation61_spill] sm:$0xff] }
 0x384   :  { %4819 = vtanh.f32 %v6608_v51 }
 0x391   :  { %v4820_v4 = vpop.eup %4819 }
 0x392   :  { %v6611_v8 = vmul.f32 %v4820_v4, %v1406_v62  ;;  %v9780_v62 = vld [vmem:[#allocation62_spill] sm:$0xff]  ;;  %v9781_v4 = vld [vmem:[#allocation63_spill] sm:$0xff] }
 0x394   :  { %1477 = vmatmul.mubr.f32.vlgmr.msra.gmra.mxu0 %v6611_v8  ;;  %1548 = vmatmul.mubr.f32.vlgmr.msra.gmra.mxu1 %v6611_v8 }
 0x395   :  { %1555 = vmatpush1.msra.mxu0 %v6325_v52  ;;  %1626 = vmatpush1.msra.mxu1 %v6328_v57 }
 0x396   :  { %1556 = vmatprep.subr.mxu0 %v6331_v46  ;;  %1627 = vmatprep.subr.mxu1 %v6334_v40 }
 0x397   :  { %1557 = vmatpush1.msra.mxu0 %v6337_v41  ;;  %1628 = vmatpush1.msra.mxu1 %v6340_v43 }
 0x398   :  { %1558 = vmatprep.subr.mxu0 %v6343_v44  ;;  %1629 = vmatprep.subr.mxu1 %v6346_v55 }
 0x399   :  { %1559 = vmatpush1.msra.mxu0 %v6349_v18  ;;  %1630 = vmatpush1.msra.mxu1 %v6352_v54 }
 0x39a   :  { %1560 = vmatprep.subr.mxu0 %v6355_v56  ;;  %1631 = vmatprep.subr.mxu1 %v6358_v59 }
 0x39b   :  { %1561 = vmatpush1.msra.mxu0 %v6361_v6  ;;  %1632 = vmatpush1.msra.mxu1 %v9747_v53 }
 0x39c   :  { %1562 = vmatprep.subr.mxu0 %v9748_v48  ;;  %1633 = vmatprep.subr.mxu1 %v9749_v1 }
 0x39d   :  { %1563 = vmatpush1.msra.mxu0 %v9750_v49  ;;  %1634 = vmatpush1.msra.mxu1 %v9751_v60 }
 0x39e   :  { %1564 = vmatprep.subr.mxu0 %v9752_v9  ;;  %1635 = vmatprep.subr.mxu1 %v9753_v12 }
 0x39f   :  { %1565 = vmatpush1.msra.mxu0 %v9754_v20  ;;  %1636 = vmatpush1.msra.mxu1 %v9755_v21 }
 0x3a0   :  { %1566 = vmatprep.subr.mxu0 %v9756_v22  ;;  %1637 = vmatprep.subr.mxu1 %v9757_v23 }
 0x3a1   :  { %1567 = vmatpush1.msra.mxu0 %v9758_v24  ;;  %1638 = vmatpush1.msra.mxu1 %v9759_v25 }
 0x3a2   :  { %1568 = vmatprep.subr.mxu0 %v9760_v26  ;;  %1639 = vmatprep.subr.mxu1 %v9761_v27 }
 0x3a3   :  { %1569 = vmatpush1.msra.mxu0 %v9762_v28  ;;  %1640 = vmatpush1.msra.mxu1 %v9763_v29 }
 0x3a4   :  { %1570 = vmatprep.subr.mxu0 %v9764_v30  ;;  %1641 = vmatprep.subr.mxu1 %v9765_v31 }
 0x3a5   :  { %1571 = vmatpush1.msra.mxu0 %v9766_v32  ;;  %1642 = vmatpush1.msra.mxu1 %v9767_v33 }
 0x3a6   :  { %1572 = vmatprep.subr.mxu0 %v9768_v34  ;;  %1643 = vmatprep.subr.mxu1 %v9769_v35 }
 0x3a7   :  { %1573 = vmatpush1.msra.mxu0 %v9770_v36  ;;  %1644 = vmatpush1.msra.mxu1 %v9771_v37 }
 0x3a8   :  { %1574 = vmatprep.subr.mxu0 %v9772_v38  ;;  %1645 = vmatprep.subr.mxu1 %v9773_v39 }
 0x3a9   :  { %1575 = vmatpush1.msra.mxu0 %v9774_v61  ;;  %1646 = vmatpush1.msra.mxu1 %v9775_v7  ;;  %v9786_v7 = vld [vmem:[#allocation68_spill] sm:$0xff] }
 0x3aa   :  { %1576 = vmatprep.subr.mxu0 %v9776_v47  ;;  %1647 = vmatprep.subr.mxu1 %v9777_v10  ;;  %v9787_v47 = vld [vmem:[#allocation69_spill] sm:$0xff]  ;;  %v9788_v10 = vld [vmem:[#allocation70_spill] sm:$0xff] }
 0x3ab   :  { %1577 = vmatpush1.msra.mxu0 %v9778_v3  ;;  %1648 = vmatpush1.msra.mxu1 %v9779_v11  ;;  %v9789_v3 = vld [vmem:[#allocation71_spill] sm:$0xff] }
 0x3ac   :  { %1578 = vmatprep.subr.mxu0 %v9780_v62  ;;  %1649 = vmatprep.subr.mxu1 %v9781_v4  ;;  %v9790_v62 = vld [vmem:[#allocation73_spill] sm:$0xff]  ;;  %v9791_v4 = vld [vmem:[#allocation74_spill] sm:$0xff] }
 0x3ad   :  { %1579 = vmatpush1.msra.mxu0 %v9782_v19  ;;  %1650 = vmatpush1.msra.mxu1 %v9783_v16  ;;  %v9792_v19 = vld [vmem:[#allocation75_spill] sm:$0xff]  ;;  %v9793_v16 = vld [vmem:[#allocation76_spill] sm:$0xff] }
 0x3ae   :  { %1580 = vmatprep.subr.mxu0 %v9784_v17  ;;  %1651 = vmatprep.subr.mxu1 %v9785_v15  ;;  %v9794_v15 = vld [vmem:[#allocation77_spill] sm:$0xff] }
 0x3af   :  { %1581 = vmatpush1.msra.mxu0 %v9786_v7  ;;  %1652 = vmatpush1.msra.mxu1 %v9787_v47 }
 0x3b0   :  { %1582 = vmatprep.subr.mxu0 %v9788_v10  ;;  %1653 = vmatprep.subr.mxu1 %v9789_v3 }
 0x3b1   :  { %1583 = vmatpush1.msra.mxu0 %v6493_v0  ;;  %1654 = vmatpush1.msra.mxu1 %v9790_v62 }
 0x3b2   :  { %1584 = vmatprep.subr.mxu0 %v9791_v4  ;;  %1655 = vmatprep.subr.mxu1 %v9792_v19  ;;  %v9858_v4 = vld [vmem:[#allocation129_spill] sm:$0xff] }
 0x3b3   :  { %1585 = vmatpush1.msra.mxu0 %v9793_v16  ;;  %1618 = vmatprep.mubr.f32.mxu0 %v9590_v42  ;;  %v6687_v16 = vld [vmem:[#allocation8 + $0x1c0] sm:$0xff] }
 0x3b4   :  { %1656 = vmatpush1.msra.mxu1 %v9794_v15  ;;  %1689 = vmatprep.mubr.f32.mxu1 %v9590_v42  ;;  %9795 = vst [vmem:[#allocation88_spill] sm:$0xff] %v6687_v16  ;;  %v6690_v15 = vld [vmem:[#allocation8 + $0x1d0] sm:$0xff] }
 0x3b5   :  { %1619 = vmatmul.mubr.f32.vlgmr.msra.gmra.mxu0 %v6611_v8  ;;  %1690 = vmatmul.mubr.f32.vlgmr.msra.gmra.mxu1 %v6611_v8  ;;  %9796 = vst [vmem:[#allocation89_spill] sm:$0xff] %v6690_v15  ;;  %v6693_v8 = vld [vmem:[#allocation8 + $0x1a8] sm:$0xff] }
 0x3b6   :  { %1718 = vmatprep.subr.mxu0 %v6515_v2  ;;  %1789 = vmatprep.subr.mxu1 %v6518_v50  ;;  %9797 = vst [vmem:[#allocation90_spill] sm:$0xff] %v6693_v8  ;;  %v6696_v50 = vld [vmem:[#allocation8 + $0x1b8] sm:$0xff] }
 0x3b7   :  { %1719 = vmatpush1.msra.mxu0 %v6521_v45  ;;  %1790 = vmatpush1.msra.mxu1 %v6524_v5  ;;  %9798 = vst [vmem:[#allocation91_spill] sm:$0xff] %v6696_v50  ;;  %v6699_v5 = vld [vmem:[#allocation8 + $0x1a0] sm:$0xff] }
 0x3b8   :  { %1720 = vmatprep.subr.mxu0 %v6527_v63  ;;  %1791 = vmatprep.subr.mxu1 %v6530_v58  ;;  %9799 = vst [vmem:[#allocation92_spill] sm:$0xff] %v6699_v5  ;;  %v6702_v58 = vld [vmem:[#allocation8 + $0x1b0] sm:$0xff] }
 0x3b9   :  { %1721 = vmatpush1.msra.mxu0 %v6687_v16  ;;  %1792 = vmatpush1.msra.mxu1 %v6690_v15  ;;  %9800 = vst [vmem:[#allocation93_spill] sm:$0xff] %v6702_v58  ;;  %v6705_v16 = vld [vmem:[#allocation8 + $0x188] sm:$0xff]  ;;  %v6708_v15 = vld [vmem:[#allocation8 + $0x198] sm:$0xff] }
 0x3ba   :  { %1722 = vmatprep.subr.mxu0 %v6693_v8  ;;  %1793 = vmatprep.subr.mxu1 %v6696_v50  ;;  %9801 = vst [vmem:[#allocation94_spill] sm:$0xff] %v6705_v16  ;;  %9802 = vst [vmem:[#allocation95_spill] sm:$0xff] %v6708_v15  ;;  %v6711_v8 = vld [vmem:[#allocation8 + $0x180] sm:$0xff]  ;;  %v6714_v50 = vld [vmem:[#allocation8 + $0x190] sm:$0xff] }
 0x3bb   :  { %1723 = vmatpush1.msra.mxu0 %v6699_v5  ;;  %1794 = vmatpush1.msra.mxu1 %v6702_v58  ;;  %9803 = vst [vmem:[#allocation96_spill] sm:$0xff] %v6711_v8  ;;  %9804 = vst [vmem:[#allocation97_spill] sm:$0xff] %v6714_v50  ;;  %v6717_v5 = vld [vmem:[#allocation8 + $0x168] sm:$0xff]  ;;  %v6720_v58 = vld [vmem:[#allocation8 + $0x178] sm:$0xff] }
 0x3bc   :  { %1724 = vmatprep.subr.mxu0 %v6705_v16  ;;  %1795 = vmatprep.subr.mxu1 %v6708_v15  ;;  %9805 = vst [vmem:[#allocation98_spill] sm:$0xff] %v6717_v5  ;;  %9806 = vst [vmem:[#allocation99_spill] sm:$0xff] %v6720_v58  ;;  %v6723_v16 = vld [vmem:[#allocation8 + $0x160] sm:$0xff]  ;;  %v6726_v15 = vld [vmem:[#allocation8 + $0x170] sm:$0xff] }
 0x3bd   :  { %1725 = vmatpush1.msra.mxu0 %v6711_v8  ;;  %1796 = vmatpush1.msra.mxu1 %v6714_v50  ;;  %9807 = vst [vmem:[#allocation100_spill] sm:$0xff] %v6723_v16  ;;  %9808 = vst [vmem:[#allocation118_spill] sm:$0xff] %v6726_v15  ;;  %v6729_v8 = vld [vmem:[#allocation8 + $0x148] sm:$0xff]  ;;  %v6732_v50 = vld [vmem:[#allocation8 + $0x158] sm:$0xff] }
 0x3be   :  { %1726 = vmatprep.subr.mxu0 %v6717_v5  ;;  %1797 = vmatprep.subr.mxu1 %v6720_v58  ;;  %9809 = vst [vmem:[#allocation120_spill] sm:$0xff] %v6729_v8  ;;  %9810 = vst [vmem:[#allocation119_spill] sm:$0xff] %v6732_v50  ;;  %v6735_v5 = vld [vmem:[#allocation8 + $0x140] sm:$0xff]  ;;  %v6738_v58 = vld [vmem:[#allocation8 + $0x150] sm:$0xff] }
 0x3bf   :  { %1727 = vmatpush1.msra.mxu0 %v6723_v16  ;;  %1798 = vmatpush1.msra.mxu1 %v6726_v15  ;;  %9811 = vst [vmem:[#allocation122_spill] sm:$0xff] %v6735_v5  ;;  %9812 = vst [vmem:[#allocation101_spill] sm:$0xff] %v6738_v58  ;;  %v6741_v16 = vld [vmem:[#allocation8 + $0x128] sm:$0xff]  ;;  %v6744_v15 = vld [vmem:[#allocation8 + $0x138] sm:$0xff] }
 0x3c0   :  { %1728 = vmatprep.subr.mxu0 %v6729_v8  ;;  %1799 = vmatprep.subr.mxu1 %v6732_v50  ;;  %9813 = vst [vmem:[#allocation102_spill] sm:$0xff] %v6741_v16  ;;  %9814 = vst [vmem:[#allocation103_spill] sm:$0xff] %v6744_v15  ;;  %v6747_v8 = vld [vmem:[#allocation8 + $0x120] sm:$0xff]  ;;  %v6750_v50 = vld [vmem:[#allocation8 + $0x130] sm:$0xff] }
 0x3c1   :  { %1729 = vmatpush1.msra.mxu0 %v6735_v5  ;;  %1800 = vmatpush1.msra.mxu1 %v6738_v58  ;;  %9815 = vst [vmem:[#allocation104_spill] sm:$0xff] %v6747_v8  ;;  %9816 = vst [vmem:[#allocation105_spill] sm:$0xff] %v6750_v50  ;;  %v6753_v5 = vld [vmem:[#allocation8 + $0x108] sm:$0xff]  ;;  %v6756_v58 = vld [vmem:[#allocation8 + $0x118] sm:$0xff] }
 0x3c2   :  { %1730 = vmatprep.subr.mxu0 %v6741_v16  ;;  %1801 = vmatprep.subr.mxu1 %v6744_v15  ;;  %9817 = vst [vmem:[#allocation106_spill] sm:$0xff] %v6753_v5  ;;  %9818 = vst [vmem:[#allocation107_spill] sm:$0xff] %v6756_v58  ;;  %v6759_v16 = vld [vmem:[#allocation8 + $0x100] sm:$0xff]  ;;  %v6762_v15 = vld [vmem:[#allocation8 + $0x110] sm:$0xff] }
 0x3c3   :  { %1731 = vmatpush1.msra.mxu0 %v6747_v8  ;;  %1802 = vmatpush1.msra.mxu1 %v6750_v50  ;;  %9819 = vst [vmem:[#allocation108_spill] sm:$0xff] %v6759_v16  ;;  %9820 = vst [vmem:[#allocation109_spill] sm:$0xff] %v6762_v15  ;;  %v6765_v8 = vld [vmem:[#allocation8 + $0xe8] sm:$0xff]  ;;  %v6768_v50 = vld [vmem:[#allocation8 + $0xf8] sm:$0xff] }
 0x3c4   :  { %1732 = vmatprep.subr.mxu0 %v6753_v5  ;;  %1803 = vmatprep.subr.mxu1 %v6756_v58  ;;  %9821 = vst [vmem:[#allocation110_spill] sm:$0xff] %v6765_v8  ;;  %9822 = vst [vmem:[#allocation111_spill] sm:$0xff] %v6768_v50  ;;  %v6771_v5 = vld [vmem:[#allocation8 + $0xe0] sm:$0xff]  ;;  %v6774_v58 = vld [vmem:[#allocation8 + $0xf0] sm:$0xff] }
 0x3c5   :  { %1733 = vmatpush1.msra.mxu0 %v6759_v16  ;;  %1804 = vmatpush1.msra.mxu1 %v6762_v15  ;;  %9823 = vst [vmem:[#allocation112_spill] sm:$0xff] %v6771_v5  ;;  %9824 = vst [vmem:[#allocation113_spill] sm:$0xff] %v6774_v58  ;;  %v6777_v16 = vld [vmem:[#allocation8 + $0xc8] sm:$0xff]  ;;  %v6780_v15 = vld [vmem:[#allocation8 + $0xd8] sm:$0xff] }
 0x3c6   :  { %1734 = vmatprep.subr.mxu0 %v6765_v8  ;;  %1805 = vmatprep.subr.mxu1 %v6768_v50  ;;  %9825 = vst [vmem:[#allocation114_spill] sm:$0xff] %v6777_v16  ;;  %9826 = vst [vmem:[#allocation115_spill] sm:$0xff] %v6780_v15  ;;  %v6783_v8 = vld [vmem:[#allocation8 + $0xc0] sm:$0xff]  ;;  %v6786_v50 = vld [vmem:[#allocation8 + $0xd0] sm:$0xff] }
 0x3c7   :  { %1735 = vmatpush1.msra.mxu0 %v6771_v5  ;;  %1806 = vmatpush1.msra.mxu1 %v6774_v58  ;;  %9827 = vst [vmem:[#allocation116_spill] sm:$0xff] %v6783_v8  ;;  %9828 = vst [vmem:[#allocation23_spill] sm:$0xff] %v6786_v50  ;;  %v6789_v5 = vld [vmem:[#allocation8 + $0xa8] sm:$0xff]  ;;  %v6792_v58 = vld [vmem:[#allocation8 + $0xb8] sm:$0xff] }
 0x3c8   :  { %1736 = vmatprep.subr.mxu0 %v6777_v16  ;;  %1807 = vmatprep.subr.mxu1 %v6780_v15  ;;  %9829 = vst [vmem:[#allocation24_spill] sm:$0xff] %v6789_v5  ;;  %9830 = vst [vmem:[#allocation121_spill] sm:$0xff] %v6792_v58  ;;  %v6795_v16 = vld [vmem:[#allocation8 + $0xa0] sm:$0xff]  ;;  %v6798_v15 = vld [vmem:[#allocation8 + $0xb0] sm:$0xff] }
 0x3c9   :  { %1737 = vmatpush1.msra.mxu0 %v6783_v8  ;;  %1808 = vmatpush1.msra.mxu1 %v6786_v50  ;;  %9831 = vst [vmem:[#allocation125_spill] sm:$0xff] %v6795_v16  ;;  %9832 = vst [vmem:[#allocation123_spill] sm:$0xff] %v6798_v15  ;;  %v6801_v8 = vld [vmem:[#allocation8 + $0x88] sm:$0xff]  ;;  %v6804_v50 = vld [vmem:[#allocation8 + $0x98] sm:$0xff] }
 0x3ca   :  { %1738 = vmatprep.subr.mxu0 %v6789_v5  ;;  %1809 = vmatprep.subr.mxu1 %v6792_v58  ;;  %9833 = vst [vmem:[#allocation126_spill] sm:$0xff] %v6801_v8  ;;  %9834 = vst [vmem:[#allocation29_spill] sm:$0xff] %v6804_v50  ;;  %v6807_v5 = vld [vmem:[#allocation8 + $0x80] sm:$0xff]  ;;  %v6810_v58 = vld [vmem:[#allocation8 + $0x90] sm:$0xff] }
 0x3cb   :  { %1739 = vmatpush1.msra.mxu0 %v6795_v16  ;;  %1810 = vmatpush1.msra.mxu1 %v6798_v15  ;;  %9835 = vst [vmem:[#allocation30_spill] sm:$0xff] %v6807_v5  ;;  %9836 = vst [vmem:[#allocation31_spill] sm:$0xff] %v6810_v58  ;;  %v6813_v16 = vld [vmem:[#allocation8 + $0x68] sm:$0xff]  ;;  %v6816_v15 = vld [vmem:[#allocation8 + $0x78] sm:$0xff] }
 0x3cc   :  { %1740 = vmatprep.subr.mxu0 %v6801_v8  ;;  %1811 = vmatprep.subr.mxu1 %v6804_v50  ;;  %9837 = vst [vmem:[#allocation32_spill] sm:$0xff] %v6813_v16  ;;  %9838 = vst [vmem:[#allocation33_spill] sm:$0xff] %v6816_v15  ;;  %v6819_v8 = vld [vmem:[#allocation8 + $0x60] sm:$0xff]  ;;  %v6822_v50 = vld [vmem:[#allocation8 + $0x70] sm:$0xff] }
 0x3cd   :  { %1741 = vmatpush1.msra.mxu0 %v6807_v5  ;;  %1812 = vmatpush1.msra.mxu1 %v6810_v58  ;;  %9839 = vst [vmem:[#allocation34_spill] sm:$0xff] %v6819_v8  ;;  %9840 = vst [vmem:[#allocation35_spill] sm:$0xff] %v6822_v50  ;;  %v6825_v5 = vld [vmem:[#allocation8 + $0x48] sm:$0xff]  ;;  %v6828_v58 = vld [vmem:[#allocation8 + $0x58] sm:$0xff] }
 0x3ce   :  { %1742 = vmatprep.subr.mxu0 %v6813_v16  ;;  %1813 = vmatprep.subr.mxu1 %v6816_v15  ;;  %9841 = vst [vmem:[#allocation36_spill] sm:$0xff] %v6825_v5  ;;  %9842 = vst [vmem:[#allocation37_spill] sm:$0xff] %v6828_v58  ;;  %v6831_v16 = vld [vmem:[#allocation8 + $0x40] sm:$0xff]  ;;  %v6834_v15 = vld [vmem:[#allocation8 + $0x50] sm:$0xff] }
 0x3cf   :  { %1743 = vmatpush1.msra.mxu0 %v6819_v8  ;;  %1814 = vmatpush1.msra.mxu1 %v6822_v50  ;;  %9843 = vst [vmem:[#allocation38_spill] sm:$0xff] %v6831_v16  ;;  %9844 = vst [vmem:[#allocation39_spill] sm:$0xff] %v6834_v15  ;;  %v6837_v8 = vld [vmem:[#allocation8 + $0x28] sm:$0xff]  ;;  %v6840_v50 = vld [vmem:[#allocation8 + $0x38] sm:$0xff] }
 0x3d0   :  { %1744 = vmatprep.subr.mxu0 %v6825_v5  ;;  %1815 = vmatprep.subr.mxu1 %v6828_v58  ;;  %9845 = vst [vmem:[#allocation40_spill] sm:$0xff] %v6837_v8  ;;  %9846 = vst [vmem:[#allocation41_spill] sm:$0xff] %v6840_v50  ;;  %v6843_v5 = vld [vmem:[#allocation8 + $0x20] sm:$0xff]  ;;  %v6846_v58 = vld [vmem:[#allocation8 + $0x30] sm:$0xff] }
 0x3d1   :  { %1745 = vmatpush1.msra.mxu0 %v6831_v16  ;;  %1816 = vmatpush1.msra.mxu1 %v6834_v15  ;;  %9847 = vst [vmem:[#allocation42_spill] sm:$0xff] %v6843_v5  ;;  %9848 = vst [vmem:[#allocation43_spill] sm:$0xff] %v6846_v58  ;;  %v6849_v16 = vld [vmem:[#allocation8 + $0x8] sm:$0xff]  ;;  %v6852_v15 = vld [vmem:[#allocation8 + $0x18] sm:$0xff] }
 0x3d2   :  { %1746 = vmatprep.subr.mxu0 %v6837_v8  ;;  %1817 = vmatprep.subr.mxu1 %v6840_v50  ;;  %9849 = vst [vmem:[#allocation44_spill] sm:$0xff] %v6849_v16  ;;  %9850 = vst [vmem:[#allocation45_spill] sm:$0xff] %v6852_v15  ;;  %v6855_v8 = vld [vmem:[#allocation8] sm:$0xff]  ;;  %v6858_v50 = vld [vmem:[#allocation8 + $0x10] sm:$0xff] }
 0x3d3   :  { %1747 = vmatpush1.msra.mxu0 %v6843_v5  ;;  %1818 = vmatpush1.msra.mxu1 %v6846_v58  ;;  %9851 = vst [vmem:[#allocation46_spill] sm:$0xff] %v6855_v8  ;;  %9852 = vst [vmem:[#allocation47_spill] sm:$0xff] %v6858_v50  ;;  %v9857_v63 = vld [vmem:[#allocation124_spill] sm:$0xff] }
 0x3d4   :  { %1748 = vmatprep.subr.mxu0 %v6849_v16  ;;  %1819 = vmatprep.subr.mxu1 %v6852_v15 }
 0x3d5   :  { %1749 = vmatpush1.msra.mxu0 %v6855_v8  ;;  %1820 = vmatpush1.msra.mxu1 %v6858_v50 }
 0x3d6   :  { %1782 = vmatprep.mubr.f32.mxu0 %v9590_v42  ;;  %1853 = vmatprep.mubr.f32.mxu1 %v9590_v42 }
 0x3d7   :  { %1860 = vmatprep.subr.mxu0 %v9737_v13  ;;  %1931 = vmatprep.subr.mxu1 %v9738_v14  ;;  %v9859_v13 = vld [vmem:[#allocation128_spill] sm:$0xff] }
 0x454   :  { %v6865_v16 = vpop.f32.mrf.mxu0  ;;  %v6867_v58 = vpop.f32.mrf.mxu1 }
 0x455   :  { %9853 = vst [vmem:[#allocation48_spill] sm:$0xff] %v6865_v16  ;;  %9854 = vst [vmem:[#allocation49_spill] sm:$0xff] %v6867_v58  ;;  %v9860_v58 = vld [vmem:[#allocation130_spill] sm:$0xff] }
 0x456   :  { %v6869_v15 = vpop.f32.mrf.mxu0  ;;  %v6871_v5 = vpop.f32.mrf.mxu1 }
 0x457   :  { %9855 = vst [vmem:[#allocation50_spill] sm:$0xff] %v6869_v15  ;;  %9856 = vst [vmem:[#allocation51_spill] sm:$0xff] %v6871_v5 }
 0x475   :  { %v1620_v8 = vpop.f32.mrf.mxu0  ;;  %v1691_v50 = vpop.f32.mrf.mxu1 }
 0x476   :  { %v1696_v45 = vadd.f32 %v1620_v8, %v9857_v63  ;;  %v1698_v62 = vadd.f32 %v1691_v50, %v9859_v13  ;;  %v9913_v13 = vld [vmem:[#allocation110_spill] sm:$0xff] }
 0x477   :  { %v1622_v2 = vpop.f32.mrf.mxu0  ;;  %v1693_v16 = vpop.f32.mrf.mxu1 }
 0x478   :  { %v1700_v19 = vmul.f32 0.5, %v1696_v45  ;;  %v1697_v42 = vadd.f32 %v1622_v2, %v9858_v4  ;;  %v1699_v0 = vadd.f32 %v1693_v16, %v9860_v58  ;;  %v9876_v16 = vld [vmem:[#allocation74_spill] sm:$0xff]  ;;  %v9912_v4 = vld [vmem:[#allocation109_spill] sm:$0xff] }
 0x47a   :  { %4821 = vtanh.f32 %v1700_v19  ;;  %v1704_v14 = vmul.f32 0.5, %v1697_v42  ;;  %v1709_v15 = vmul.f32 0.5, %v1699_v0 }
 0x47c   :  { %4823 = vtanh.f32 %v1704_v14  ;;  %v9914_v14 = vld [vmem:[#allocation111_spill] sm:$0xff] }
 0x47d   :  { %4825 = vtanh.f32 %v1698_v62 }
 0x47e   :  { %4827 = vtanh.f32 %v1709_v15  ;;  %v9875_v15 = vld [vmem:[#allocation73_spill] sm:$0xff] }
 0x487   :  { %v4822_v3 = vpop.eup %4821 }
 0x488   :  { %v1702_v5 = vmul.f32 0.5, %v4822_v3  ;;  %v9910_v3 = vld [vmem:[#allocation107_spill] sm:$0xff] }
 0x489   :  { %v4824_v10 = vpop.eup %4823 }
 0x48a   :  { %v1703_v47 = vadd.f32 0.5, %v1702_v5  ;;  %v1706_v63 = vmul.f32 0.5, %v4824_v10  ;;  %v4826_v8 = vpop.eup %4825  ;;  %v9874_v5 = vld [vmem:[#allocation72_spill] sm:$0xff]  ;;  %v9909_v10 = vld [vmem:[#allocation106_spill] sm:$0xff] }
 0x48b   :  { %v4828_v42 = vpop.eup %4827 }
 0x48c   :  { %v1707_v45 = vadd.f32 0.5, %v1706_v63  ;;  %v1714_v7 = vmul.f32 %v4826_v8, %v1703_v47  ;;  %v1711_v50 = vmul.f32 0.5, %v4828_v42  ;;  %v9908_v47 = vld [vmem:[#allocation105_spill] sm:$0xff]  ;;  %v9915_v63 = vld [vmem:[#allocation112_spill] sm:$0xff] }
 0x48d   :  { %v9916_v8 = vld [vmem:[#allocation113_spill] sm:$0xff]  ;;  %v9919_v42 = vld [vmem:[#allocation116_spill] sm:$0xff] }
 0x48e   :  { %v1713_v2 = vmul.f32 %v1707_v45, %v6608_v51  ;;  %v1712_v62 = vadd.f32 0.5, %v1711_v50  ;;  %v9877_v51 = vld [vmem:[#allocation75_spill] sm:$0xff]  ;;  %v9917_v45 = vld [vmem:[#allocation114_spill] sm:$0xff] }
 0x48f   :  { %v9920_v50 = vld [vmem:[#allocation23_spill] sm:$0xff] }
 0x490   :  { %v6878_v19 = vadd.f32 %v1714_v7, %v1713_v2  ;;  %v9907_v7 = vld [vmem:[#allocation104_spill] sm:$0xff]  ;;  %v9918_v2 = vld [vmem:[#allocation115_spill] sm:$0xff] }
 0x492   :  { %4829 = vtanh.f32 %v6878_v19 }
 0x49f   :  { %v4830_v58 = vpop.eup %4829 }
 0x4a0   :  { %v6881_v0 = vmul.f32 %v4830_v58, %v1712_v62  ;;  %v9921_v62 = vld [vmem:[#allocation24_spill] sm:$0xff]  ;;  %v9922_v58 = vld [vmem:[#allocation121_spill] sm:$0xff] }
 0x4a2   :  { %1783 = vmatmul.mubr.f32.vlgmr.msra.gmra.mxu0 %v6881_v0  ;;  %1854 = vmatmul.mubr.f32.vlgmr.msra.gmra.mxu1 %v6881_v0 }
 0x4a3   :  { %1861 = vmatpush1.msra.mxu0 %v6325_v52  ;;  %1932 = vmatpush1.msra.mxu1 %v6328_v57  ;;  %v9861_v52 = vld [vmem:[#allocation57_spill] sm:$0xff]  ;;  %v9862_v57 = vld [vmem:[#allocation58_spill] sm:$0xff] }
 0x4a4   :  { %1862 = vmatprep.subr.mxu0 %v6331_v46  ;;  %1933 = vmatprep.subr.mxu1 %v6334_v40  ;;  %v9863_v46 = vld [vmem:[#allocation59_spill] sm:$0xff]  ;;  %v9864_v40 = vld [vmem:[#allocation60_spill] sm:$0xff] }
 0x4a5   :  { %1863 = vmatpush1.msra.mxu0 %v6337_v41  ;;  %1934 = vmatpush1.msra.mxu1 %v6340_v43  ;;  %v9865_v41 = vld [vmem:[#allocation62_spill] sm:$0xff]  ;;  %v9866_v43 = vld [vmem:[#allocation63_spill] sm:$0xff] }
 0x4a6   :  { %1864 = vmatprep.subr.mxu0 %v6343_v44  ;;  %1935 = vmatprep.subr.mxu1 %v6346_v55  ;;  %v9867_v44 = vld [vmem:[#allocation64_spill] sm:$0xff]  ;;  %v9868_v55 = vld [vmem:[#allocation65_spill] sm:$0xff] }
 0x4a7   :  { %1865 = vmatpush1.msra.mxu0 %v6349_v18  ;;  %1936 = vmatpush1.msra.mxu1 %v6352_v54  ;;  %v9869_v18 = vld [vmem:[#allocation67_spill] sm:$0xff]  ;;  %v9870_v54 = vld [vmem:[#allocation68_spill] sm:$0xff] }
 0x4a8   :  { %1866 = vmatprep.subr.mxu0 %v6355_v56  ;;  %1937 = vmatprep.subr.mxu1 %v6358_v59  ;;  %v9871_v56 = vld [vmem:[#allocation69_spill] sm:$0xff]  ;;  %v9872_v59 = vld [vmem:[#allocation70_spill] sm:$0xff] }
 0x4a9   :  { %1867 = vmatpush1.msra.mxu0 %v6361_v6  ;;  %1938 = vmatpush1.msra.mxu1 %v9747_v53  ;;  %v9873_v6 = vld [vmem:[#allocation71_spill] sm:$0xff]  ;;  %v9878_v53 = vld [vmem:[#allocation76_spill] sm:$0xff] }
 0x4aa   :  { %1868 = vmatprep.subr.mxu0 %v9748_v48  ;;  %1939 = vmatprep.subr.mxu1 %v9749_v1  ;;  %v9880_v48 = vld [vmem:[#allocation77_spill] sm:$0xff]  ;;  %v9881_v1 = vld [vmem:[#allocation78_spill] sm:$0xff] }
 0x4ab   :  { %1869 = vmatpush1.msra.mxu0 %v9750_v49  ;;  %1940 = vmatpush1.msra.mxu1 %v9751_v60  ;;  %v9882_v49 = vld [vmem:[#allocation79_spill] sm:$0xff]  ;;  %v9883_v60 = vld [vmem:[#allocation80_spill] sm:$0xff] }
 0x4ac   :  { %1870 = vmatprep.subr.mxu0 %v9752_v9  ;;  %1941 = vmatprep.subr.mxu1 %v9753_v12  ;;  %v9884_v9 = vld [vmem:[#allocation81_spill] sm:$0xff]  ;;  %v9885_v12 = vld [vmem:[#allocation82_spill] sm:$0xff] }
 0x4ad   :  { %1871 = vmatpush1.msra.mxu0 %v9754_v20  ;;  %1942 = vmatpush1.msra.mxu1 %v9755_v21  ;;  %v9886_v20 = vld [vmem:[#allocation83_spill] sm:$0xff]  ;;  %v9887_v21 = vld [vmem:[#allocation88_spill] sm:$0xff] }
 0x4ae   :  { %1872 = vmatprep.subr.mxu0 %v9756_v22  ;;  %1943 = vmatprep.subr.mxu1 %v9757_v23  ;;  %v9888_v22 = vld [vmem:[#allocation89_spill] sm:$0xff]  ;;  %v9889_v23 = vld [vmem:[#allocation90_spill] sm:$0xff] }
 0x4af   :  { %1873 = vmatpush1.msra.mxu0 %v9758_v24  ;;  %1944 = vmatpush1.msra.mxu1 %v9759_v25  ;;  %v9890_v24 = vld [vmem:[#allocation91_spill] sm:$0xff]  ;;  %v9891_v25 = vld [vmem:[#allocation92_spill] sm:$0xff] }
 0x4b0   :  { %1874 = vmatprep.subr.mxu0 %v9760_v26  ;;  %1945 = vmatprep.subr.mxu1 %v9761_v27  ;;  %v9892_v26 = vld [vmem:[#allocation93_spill] sm:$0xff]  ;;  %v9893_v27 = vld [vmem:[#allocation94_spill] sm:$0xff] }
 0x4b1   :  { %1875 = vmatpush1.msra.mxu0 %v9762_v28  ;;  %1946 = vmatpush1.msra.mxu1 %v9763_v29  ;;  %v9894_v28 = vld [vmem:[#allocation95_spill] sm:$0xff]  ;;  %v9895_v29 = vld [vmem:[#allocation96_spill] sm:$0xff] }
 0x4b2   :  { %1876 = vmatprep.subr.mxu0 %v9764_v30  ;;  %1947 = vmatprep.subr.mxu1 %v9765_v31  ;;  %v9896_v30 = vld [vmem:[#allocation97_spill] sm:$0xff]  ;;  %v9897_v31 = vld [vmem:[#allocation98_spill] sm:$0xff] }
 0x4b3   :  { %1877 = vmatpush1.msra.mxu0 %v9766_v32  ;;  %1948 = vmatpush1.msra.mxu1 %v9767_v33  ;;  %v9898_v32 = vld [vmem:[#allocation99_spill] sm:$0xff]  ;;  %v9899_v33 = vld [vmem:[#allocation100_spill] sm:$0xff] }
 0x4b4   :  { %1878 = vmatprep.subr.mxu0 %v9768_v34  ;;  %1949 = vmatprep.subr.mxu1 %v9769_v35  ;;  %v9900_v34 = vld [vmem:[#allocation118_spill] sm:$0xff]  ;;  %v9901_v35 = vld [vmem:[#allocation120_spill] sm:$0xff] }
 0x4b5   :  { %1879 = vmatpush1.msra.mxu0 %v9770_v36  ;;  %1950 = vmatpush1.msra.mxu1 %v9771_v37  ;;  %v9902_v36 = vld [vmem:[#allocation119_spill] sm:$0xff]  ;;  %v9903_v37 = vld [vmem:[#allocation122_spill] sm:$0xff] }
 0x4b6   :  { %1880 = vmatprep.subr.mxu0 %v9772_v38  ;;  %1951 = vmatprep.subr.mxu1 %v9773_v39  ;;  %v9904_v38 = vld [vmem:[#allocation101_spill] sm:$0xff]  ;;  %v9905_v39 = vld [vmem:[#allocation102_spill] sm:$0xff] }
 0x4b7   :  { %1881 = vmatpush1.msra.mxu0 %v9774_v61  ;;  %1952 = vmatpush1.msra.mxu1 %v9861_v52  ;;  %v9906_v61 = vld [vmem:[#allocation103_spill] sm:$0xff] }
 0x4b8   :  { %1882 = vmatprep.subr.mxu0 %v9862_v57  ;;  %1953 = vmatprep.subr.mxu1 %v9863_v46  ;;  %v9924_v52 = vld [vmem:[#allocation123_spill] sm:$0xff]  ;;  %v9925_v57 = vld [vmem:[#allocation126_spill] sm:$0xff]  ;;  %v9926_v46 = vld [vmem:[#allocation29_spill] sm:$0xff] }
 0x4b9   :  { %1883 = vmatpush1.msra.mxu0 %v9864_v40  ;;  %1954 = vmatpush1.msra.mxu1 %v9779_v11  ;;  %v9911_v11 = vld [vmem:[#allocation108_spill] sm:$0xff]  ;;  %v9927_v40 = vld [vmem:[#allocation30_spill] sm:$0xff] }
 0x4ba   :  { %1884 = vmatprep.subr.mxu0 %v9865_v41  ;;  %1955 = vmatprep.subr.mxu1 %v9866_v43  ;;  %v9928_v41 = vld [vmem:[#allocation31_spill] sm:$0xff]  ;;  %v9929_v43 = vld [vmem:[#allocation32_spill] sm:$0xff] }
 0x4bb   :  { %1885 = vmatpush1.msra.mxu0 %v9867_v44  ;;  %1956 = vmatpush1.msra.mxu1 %v9868_v55  ;;  %v9930_v44 = vld [vmem:[#allocation33_spill] sm:$0xff]  ;;  %v9931_v55 = vld [vmem:[#allocation34_spill] sm:$0xff] }
 0x4bc   :  { %1886 = vmatprep.subr.mxu0 %v9784_v17  ;;  %1957 = vmatprep.subr.mxu1 %v9869_v18  ;;  %v9879_v17 = vmov 0.0   ;;  %v9932_v18 = vld [vmem:[#allocation35_spill] sm:$0xff] }
 0x4bd   :  { %1887 = vmatpush1.msra.mxu0 %v9870_v54  ;;  %1958 = vmatpush1.msra.mxu1 %v9871_v56  ;;  %v9933_v54 = vld [vmem:[#allocation36_spill] sm:$0xff]  ;;  %v9934_v56 = vld [vmem:[#allocation37_spill] sm:$0xff] }
 0x4be   :  { %1888 = vmatprep.subr.mxu0 %v9872_v59  ;;  %1959 = vmatprep.subr.mxu1 %v9873_v6  ;;  %v9935_v59 = vld [vmem:[#allocation38_spill] sm:$0xff]  ;;  %v9936_v6 = vld [vmem:[#allocation39_spill] sm:$0xff] }
 0x4bf   :  { %1889 = vmatpush1.msra.mxu0 %v9874_v5  ;;  %1960 = vmatpush1.msra.mxu1 %v9875_v15  ;;  %v9937_v5 = vld [vmem:[#allocation40_spill] sm:$0xff]  ;;  %v9938_v15 = vld [vmem:[#allocation41_spill] sm:$0xff] }
 0x4c0   :  { %1890 = vmatprep.subr.mxu0 %v9876_v16  ;;  %1961 = vmatprep.subr.mxu1 %v9877_v51  ;;  %v9939_v16 = vld [vmem:[#allocation42_spill] sm:$0xff]  ;;  %v9940_v51 = vld [vmem:[#allocation43_spill] sm:$0xff] }
 0x4c1   :  { %1891 = vmatpush1.msra.mxu0 %v9878_v53  ;;  %1924 = vmatprep.mubr.f32.mxu0 %v9879_v17  ;;  %v9941_v53 = vld [vmem:[#allocation44_spill] sm:$0xff] }
 0x4c2   :  { %1962 = vmatpush1.msra.mxu1 %v9880_v48  ;;  %1995 = vmatprep.mubr.f32.mxu1 %v9879_v17  ;;  %v9942_v48 = vld [vmem:[#allocation45_spill] sm:$0xff] }
 0x4c3   :  { %1925 = vmatmul.mubr.f32.vlgmr.msra.gmra.mxu0 %v6881_v0  ;;  %1996 = vmatmul.mubr.f32.vlgmr.msra.gmra.mxu1 %v6881_v0  ;;  %v9923_v0 = vld [vmem:[#allocation125_spill] sm:$0xff] }
 0x4c4   :  { %2024 = vmatprep.subr.mxu0 %v9881_v1  ;;  %2095 = vmatprep.subr.mxu1 %v9882_v49  ;;  %v9943_v1 = vld [vmem:[#allocation46_spill] sm:$0xff]  ;;  %v9944_v49 = vld [vmem:[#allocation47_spill] sm:$0xff] }
 0x4c5   :  { %2025 = vmatpush1.msra.mxu0 %v9883_v60  ;;  %2096 = vmatpush1.msra.mxu1 %v9884_v9  ;;  %v7017_v60 = vld [vmem:[#allocation5 + $0x1e8] sm:$0xff]  ;;  %v7020_v9 = vld [vmem:[#allocation5 + $0x1f8] sm:$0xff] }
 0x4c6   :  { %2026 = vmatprep.subr.mxu0 %v9885_v12  ;;  %2097 = vmatprep.subr.mxu1 %v9886_v20  ;;  %9945 = vst [vmem:[#allocation52_spill] sm:$0xff] %v7017_v60  ;;  %9946 = vst [vmem:[#allocation53_spill] sm:$0xff] %v7020_v9 }
 0x4c7   :  { %2027 = vmatpush1.msra.mxu0 %v9887_v21  ;;  %2098 = vmatpush1.msra.mxu1 %v9888_v22 }
 0x4c8   :  { %2028 = vmatprep.subr.mxu0 %v9889_v23  ;;  %2099 = vmatprep.subr.mxu1 %v9890_v24 }
 0x4c9   :  { %2029 = vmatpush1.msra.mxu0 %v9891_v25  ;;  %2100 = vmatpush1.msra.mxu1 %v9892_v26 }
 0x4ca   :  { %2030 = vmatprep.subr.mxu0 %v9893_v27  ;;  %2101 = vmatprep.subr.mxu1 %v9894_v28 }
 0x4cb   :  { %2031 = vmatpush1.msra.mxu0 %v9895_v29  ;;  %2102 = vmatpush1.msra.mxu1 %v9896_v30 }
 0x4cc   :  { %2032 = vmatprep.subr.mxu0 %v9897_v31  ;;  %2103 = vmatprep.subr.mxu1 %v9898_v32 }
 0x4cd   :  { %2033 = vmatpush1.msra.mxu0 %v9899_v33  ;;  %2104 = vmatpush1.msra.mxu1 %v9900_v34 }
 0x4ce   :  { %2034 = vmatprep.subr.mxu0 %v9901_v35  ;;  %2105 = vmatprep.subr.mxu1 %v9902_v36 }
 0x4cf   :  { %2035 = vmatpush1.msra.mxu0 %v9903_v37  ;;  %2106 = vmatpush1.msra.mxu1 %v9904_v38 }
 0x4d0   :  { %2036 = vmatprep.subr.mxu0 %v9905_v39  ;;  %2107 = vmatprep.subr.mxu1 %v9906_v61 }
 0x4d1   :  { %2037 = vmatpush1.msra.mxu0 %v9907_v7  ;;  %2108 = vmatpush1.msra.mxu1 %v9908_v47 }
 0x4d2   :  { %2038 = vmatprep.subr.mxu0 %v9909_v10  ;;  %2109 = vmatprep.subr.mxu1 %v9910_v3 }
 0x4d3   :  { %2039 = vmatpush1.msra.mxu0 %v9911_v11  ;;  %2110 = vmatpush1.msra.mxu1 %v9912_v4 }
 0x4d4   :  { %2040 = vmatprep.subr.mxu0 %v9913_v13  ;;  %2111 = vmatprep.subr.mxu1 %v9914_v14 }
 0x4d5   :  { %2041 = vmatpush1.msra.mxu0 %v9915_v63  ;;  %2112 = vmatpush1.msra.mxu1 %v9916_v8 }
 0x4d6   :  { %2042 = vmatprep.subr.mxu0 %v9917_v45  ;;  %2113 = vmatprep.subr.mxu1 %v9918_v2 }
 0x4d7   :  { %2043 = vmatpush1.msra.mxu0 %v9919_v42  ;;  %2114 = vmatpush1.msra.mxu1 %v9920_v50 }
 0x4d8   :  { %2044 = vmatprep.subr.mxu0 %v9921_v62  ;;  %2115 = vmatprep.subr.mxu1 %v9922_v58 }
 0x4d9   :  { %2045 = vmatpush1.msra.mxu0 %v9923_v0  ;;  %2116 = vmatpush1.msra.mxu1 %v9924_v52 }
 0x4da   :  { %2046 = vmatprep.subr.mxu0 %v9925_v57  ;;  %2117 = vmatprep.subr.mxu1 %v9926_v46 }
 0x4db   :  { %2047 = vmatpush1.msra.mxu0 %v9927_v40  ;;  %2118 = vmatpush1.msra.mxu1 %v9928_v41 }
 0x4dc   :  { %2048 = vmatprep.subr.mxu0 %v9929_v43  ;;  %2119 = vmatprep.subr.mxu1 %v9930_v44 }
 0x4dd   :  { %2049 = vmatpush1.msra.mxu0 %v9931_v55  ;;  %2120 = vmatpush1.msra.mxu1 %v9932_v18 }
 0x4de   :  { %2050 = vmatprep.subr.mxu0 %v9933_v54  ;;  %2121 = vmatprep.subr.mxu1 %v9934_v56 }
 0x4df   :  { %2051 = vmatpush1.msra.mxu0 %v9935_v59  ;;  %2122 = vmatpush1.msra.mxu1 %v9936_v6  ;;  %v9952_v6 = vld [vmem:[#allocation133_spill] sm:$0xff]  ;;  %v9953_v59 = vld [vmem:[#allocation131_spill] sm:$0xff] }
 0x4e0   :  { %2052 = vmatprep.subr.mxu0 %v9937_v5  ;;  %2123 = vmatprep.subr.mxu1 %v9938_v15 }
 0x4e1   :  { %2053 = vmatpush1.msra.mxu0 %v9939_v16  ;;  %2124 = vmatpush1.msra.mxu1 %v9940_v51 }
 0x4e2   :  { %2054 = vmatprep.subr.mxu0 %v9941_v53  ;;  %2125 = vmatprep.subr.mxu1 %v9942_v48  ;;  %v9951_v53 = vld [vmem:[#allocation127_spill] sm:$0xff] }
 0x4e3   :  { %2055 = vmatpush1.msra.mxu0 %v9943_v1  ;;  %2126 = vmatpush1.msra.mxu1 %v9944_v49 }
 0x4e4   :  { %2088 = vmatprep.mubr.f32.mxu0 %v9879_v17  ;;  %2159 = vmatprep.mubr.f32.mxu1 %v9879_v17 }
 0x4e5   :  { %2166 = vmatprep.subr.mxu0 %v7017_v60  ;;  %2237 = vmatprep.subr.mxu1 %v7020_v9 }
 0x562   :  { %v7023_v12 = vpop.f32.mrf.mxu0  ;;  %v7025_v20 = vpop.f32.mrf.mxu1 }
 0x563   :  { %9947 = vst [vmem:[#allocation54_spill] sm:$0xff] %v7023_v12  ;;  %9948 = vst [vmem:[#allocation55_spill] sm:$0xff] %v7025_v20  ;;  %v9954_v20 = vld [vmem:[#allocation134_spill] sm:$0xff] }
 0x564   :  { %v7027_v48 = vpop.f32.mrf.mxu0  ;;  %v7029_v1 = vpop.f32.mrf.mxu1 }
 0x565   :  { %9949 = vst [vmem:[#allocation56_spill] sm:$0xff] %v7027_v48  ;;  %9950 = vst [vmem:[#allocation61_spill] sm:$0xff] %v7029_v1 }
 0x583   :  { %v1926_v49 = vpop.f32.mrf.mxu0  ;;  %v1997_v16 = vpop.f32.mrf.mxu1 }
 0x584   :  { %v2002_v51 = vadd.f32 %v1926_v49, %v9951_v53  ;;  %v2004_v56 = vadd.f32 %v1997_v16, %v9953_v59 }
 0x585   :  { %v1928_v15 = vpop.f32.mrf.mxu0  ;;  %v1999_v12 = vpop.f32.mrf.mxu1 }
 0x586   :  { %v2006_v5 = vmul.f32 0.5, %v2002_v51  ;;  %v2003_v60 = vadd.f32 %v1928_v15, %v9952_v6  ;;  %v2005_v54 = vadd.f32 %v1999_v12, %v9954_v20  ;;  %v7070_v12 = vld [vmem:[#allocation5 + $0x1b0] sm:$0xff]  ;;  %v7073_v20 = vld [vmem:[#allocation5 + $0x188] sm:$0xff] }
 0x588   :  { %4831 = vtanh.f32 %v2006_v5  ;;  %v2010_v9 = vmul.f32 0.5, %v2003_v60  ;;  %v2015_v48 = vmul.f32 0.5, %v2005_v54  ;;  %v7064_v60 = vld [vmem:[#allocation5 + $0x1b8] sm:$0xff] }
 0x58a   :  { %4833 = vtanh.f32 %v2010_v9  ;;  %v7067_v9 = vld [vmem:[#allocation5 + $0x1a0] sm:$0xff] }
 0x58b   :  { %4835 = vtanh.f32 %v2004_v56 }
 0x58c   :  { %4837 = vtanh.f32 %v2015_v48  ;;  %v7058_v48 = vld [vmem:[#allocation5 + $0x1d0] sm:$0xff] }
 0x595   :  { %v4832_v18 = vpop.eup %4831 }
 0x596   :  { %v2008_v1 = vmul.f32 0.5, %v4832_v18  ;;  %v7055_v18 = vld [vmem:[#allocation5 + $0x1c0] sm:$0xff] }
 0x597   :  { %v4834_v55 = vpop.eup %4833 }
 0x598   :  { %v2009_v44 = vadd.f32 0.5, %v2008_v1  ;;  %v2012_v53 = vmul.f32 0.5, %v4834_v55  ;;  %v4836_v49 = vpop.eup %4835  ;;  %v7043_v55 = vld [vmem:[#allocation5 + $0x1e0] sm:$0xff]  ;;  %v7061_v1 = vld [vmem:[#allocation5 + $0x1a8] sm:$0xff] }
 0x599   :  { %v4838_v56 = vpop.eup %4837 }
 0x59a   :  { %v2013_v51 = vadd.f32 0.5, %v2012_v53  ;;  %v2020_v43 = vmul.f32 %v4836_v49, %v2009_v44  ;;  %v2017_v59 = vmul.f32 0.5, %v4838_v56  ;;  %v7046_v44 = vld [vmem:[#allocation5 + $0x1f0] sm:$0xff]  ;;  %v7076_v53 = vld [vmem:[#allocation5 + $0x198] sm:$0xff]  ;;  %v7079_v49 = vld [vmem:[#allocation5 + $0x180] sm:$0xff] }
 0x59b   :  { %v7088_v56 = vld [vmem:[#allocation5 + $0x178] sm:$0xff] }
 0x59c   :  { %v2019_v6 = vmul.f32 %v2013_v51, %v6878_v19  ;;  %v2018_v15 = vadd.f32 0.5, %v2017_v59  ;;  %v7049_v19 = vld [vmem:[#allocation5 + $0x1c8] sm:$0xff]  ;;  %v7082_v51 = vld [vmem:[#allocation5 + $0x190] sm:$0xff]  ;;  %9957 = vst [vmem:[#allocation129_spill] sm:$0xff] %v7088_v56  ;;  %v7091_v59 = vld [vmem:[#allocation5 + $0x160] sm:$0xff] }
 0x59d   :  { %9955 = vst [vmem:[#allocation66_spill] sm:$0xff] %v7082_v51  ;;  %9958 = vst [vmem:[#allocation128_spill] sm:$0xff] %v7091_v59 }
 0x59e   :  { %v7036_v5 = vadd.f32 %v2020_v43, %v2019_v6  ;;  %v7052_v43 = vld [vmem:[#allocation5 + $0x1d8] sm:$0xff]  ;;  %v7085_v6 = vld [vmem:[#allocation5 + $0x168] sm:$0xff] }
 0x59f   :  { %9956 = vst [vmem:[#allocation124_spill] sm:$0xff] %v7085_v6 }
 0x5a0   :  { %4839 = vtanh.f32 %v7036_v5 }
 0x5ad   :  { %v4840_v16 = vpop.eup %4839 }
 0x5ae   :  { %v7039_v54 = vmul.f32 %v4840_v16, %v2018_v15  ;;  %v7094_v15 = vld [vmem:[#allocation5 + $0x170] sm:$0xff]  ;;  %v7097_v16 = vld [vmem:[#allocation5 + $0x148] sm:$0xff] }
 0x5af   :  { %9959 = vst [vmem:[#allocation130_spill] sm:$0xff] %v7094_v15  ;;  %9960 = vst [vmem:[#allocation57_spill] sm:$0xff] %v7097_v16 }
 0x5b0   :  { %2089 = vmatmul.mubr.f32.vlgmr.msra.gmra.mxu0 %v7039_v54  ;;  %2160 = vmatmul.mubr.f32.vlgmr.msra.gmra.mxu1 %v7039_v54 }
 0x5b1   :  { %2167 = vmatpush1.msra.mxu0 %v7043_v55  ;;  %2238 = vmatpush1.msra.mxu1 %v7046_v44 }
 0x5b2   :  { %2168 = vmatprep.subr.mxu0 %v7049_v19  ;;  %2239 = vmatprep.subr.mxu1 %v7052_v43 }
 0x5b3   :  { %2169 = vmatpush1.msra.mxu0 %v7055_v18  ;;  %2240 = vmatpush1.msra.mxu1 %v7058_v48 }
 0x5b4   :  { %2170 = vmatprep.subr.mxu0 %v7061_v1  ;;  %2241 = vmatprep.subr.mxu1 %v7064_v60 }
 0x5b5   :  { %2171 = vmatpush1.msra.mxu0 %v7067_v9  ;;  %2242 = vmatpush1.msra.mxu1 %v7070_v12 }
 0x5b6   :  { %2172 = vmatprep.subr.mxu0 %v7073_v20  ;;  %2243 = vmatprep.subr.mxu1 %v7076_v53 }
 0x5b7   :  { %2173 = vmatpush1.msra.mxu0 %v7079_v49  ;;  %2244 = vmatpush1.msra.mxu1 %v7082_v51  ;;  %v7100_v51 = vld [vmem:[#allocation5 + $0x158] sm:$0xff] }
 0x5b8   :  { %2174 = vmatprep.subr.mxu0 %v7085_v6  ;;  %2245 = vmatprep.subr.mxu1 %v7088_v56  ;;  %9961 = vst [vmem:[#allocation58_spill] sm:$0xff] %v7100_v51  ;;  %v7103_v6 = vld [vmem:[#allocation5 + $0x140] sm:$0xff]  ;;  %v7106_v56 = vld [vmem:[#allocation5 + $0x150] sm:$0xff] }
 0x5b9   :  { %2175 = vmatpush1.msra.mxu0 %v7091_v59  ;;  %2246 = vmatpush1.msra.mxu1 %v7094_v15  ;;  %9962 = vst [vmem:[#allocation59_spill] sm:$0xff] %v7103_v6  ;;  %9963 = vst [vmem:[#allocation60_spill] sm:$0xff] %v7106_v56  ;;  %v7109_v59 = vld [vmem:[#allocation5 + $0x128] sm:$0xff]  ;;  %v7112_v15 = vld [vmem:[#allocation5 + $0x138] sm:$0xff] }
 0x5ba   :  { %2176 = vmatprep.subr.mxu0 %v7097_v16  ;;  %2247 = vmatprep.subr.mxu1 %v7100_v51  ;;  %9964 = vst [vmem:[#allocation62_spill] sm:$0xff] %v7109_v59  ;;  %9965 = vst [vmem:[#allocation63_spill] sm:$0xff] %v7112_v15  ;;  %v7115_v16 = vld [vmem:[#allocation5 + $0x120] sm:$0xff]  ;;  %v7118_v51 = vld [vmem:[#allocation5 + $0x130] sm:$0xff] }
 0x5bb   :  { %2177 = vmatpush1.msra.mxu0 %v7103_v6  ;;  %2248 = vmatpush1.msra.mxu1 %v7106_v56  ;;  %9966 = vst [vmem:[#allocation64_spill] sm:$0xff] %v7115_v16  ;;  %9967 = vst [vmem:[#allocation65_spill] sm:$0xff] %v7118_v51  ;;  %v7121_v6 = vld [vmem:[#allocation5 + $0x108] sm:$0xff]  ;;  %v7124_v56 = vld [vmem:[#allocation5 + $0x118] sm:$0xff] }
 0x5bc   :  { %2178 = vmatprep.subr.mxu0 %v7109_v59  ;;  %2249 = vmatprep.subr.mxu1 %v7112_v15  ;;  %9968 = vst [vmem:[#allocation67_spill] sm:$0xff] %v7121_v6  ;;  %9969 = vst [vmem:[#allocation68_spill] sm:$0xff] %v7124_v56  ;;  %v7127_v59 = vld [vmem:[#allocation5 + $0x100] sm:$0xff]  ;;  %v7130_v15 = vld [vmem:[#allocation5 + $0x110] sm:$0xff] }
 0x5bd   :  { %2179 = vmatpush1.msra.mxu0 %v7115_v16  ;;  %2250 = vmatpush1.msra.mxu1 %v7118_v51  ;;  %9970 = vst [vmem:[#allocation69_spill] sm:$0xff] %v7127_v59  ;;  %9971 = vst [vmem:[#allocation70_spill] sm:$0xff] %v7130_v15  ;;  %v7133_v16 = vld [vmem:[#allocation5 + $0xe8] sm:$0xff]  ;;  %v7136_v51 = vld [vmem:[#allocation5 + $0xf8] sm:$0xff] }
 0x5be   :  { %2180 = vmatprep.subr.mxu0 %v7121_v6  ;;  %2251 = vmatprep.subr.mxu1 %v7124_v56  ;;  %9972 = vst [vmem:[#allocation71_spill] sm:$0xff] %v7133_v16  ;;  %9973 = vst [vmem:[#allocation72_spill] sm:$0xff] %v7136_v51  ;;  %v7139_v6 = vld [vmem:[#allocation5 + $0xe0] sm:$0xff]  ;;  %v7142_v56 = vld [vmem:[#allocation5 + $0xf0] sm:$0xff] }
 0x5bf   :  { %2181 = vmatpush1.msra.mxu0 %v7127_v59  ;;  %2252 = vmatpush1.msra.mxu1 %v7130_v15  ;;  %9974 = vst [vmem:[#allocation73_spill] sm:$0xff] %v7139_v6  ;;  %9975 = vst [vmem:[#allocation74_spill] sm:$0xff] %v7142_v56  ;;  %v7145_v59 = vld [vmem:[#allocation5 + $0xc8] sm:$0xff]  ;;  %v7148_v15 = vld [vmem:[#allocation5 + $0xd8] sm:$0xff] }
 0x5c0   :  { %2182 = vmatprep.subr.mxu0 %v7133_v16  ;;  %2253 = vmatprep.subr.mxu1 %v7136_v51  ;;  %9976 = vst [vmem:[#allocation75_spill] sm:$0xff] %v7145_v59  ;;  %9977 = vst [vmem:[#allocation76_spill] sm:$0xff] %v7148_v15  ;;  %v7151_v16 = vld [vmem:[#allocation5 + $0xc0] sm:$0xff]  ;;  %v7154_v51 = vld [vmem:[#allocation5 + $0xd0] sm:$0xff] }
 0x5c1   :  { %2183 = vmatpush1.msra.mxu0 %v7139_v6  ;;  %2254 = vmatpush1.msra.mxu1 %v7142_v56  ;;  %9978 = vst [vmem:[#allocation77_spill] sm:$0xff] %v7151_v16  ;;  %9979 = vst [vmem:[#allocation78_spill] sm:$0xff] %v7154_v51  ;;  %v7157_v6 = vld [vmem:[#allocation5 + $0xa8] sm:$0xff]  ;;  %v7160_v56 = vld [vmem:[#allocation5 + $0xb8] sm:$0xff] }
 0x5c2   :  { %2184 = vmatprep.subr.mxu0 %v7145_v59  ;;  %2255 = vmatprep.subr.mxu1 %v7148_v15  ;;  %9980 = vst [vmem:[#allocation79_spill] sm:$0xff] %v7157_v6  ;;  %9981 = vst [vmem:[#allocation80_spill] sm:$0xff] %v7160_v56  ;;  %v7163_v59 = vld [vmem:[#allocation5 + $0xa0] sm:$0xff]  ;;  %v7166_v15 = vld [vmem:[#allocation5 + $0xb0] sm:$0xff] }
 0x5c3   :  { %2185 = vmatpush1.msra.mxu0 %v7151_v16  ;;  %2256 = vmatpush1.msra.mxu1 %v7154_v51  ;;  %9982 = vst [vmem:[#allocation81_spill] sm:$0xff] %v7163_v59  ;;  %9983 = vst [vmem:[#allocation82_spill] sm:$0xff] %v7166_v15  ;;  %v7169_v16 = vld [vmem:[#allocation5 + $0x88] sm:$0xff]  ;;  %v7172_v51 = vld [vmem:[#allocation5 + $0x98] sm:$0xff] }
 0x5c4   :  { %2186 = vmatprep.subr.mxu0 %v7157_v6  ;;  %2257 = vmatprep.subr.mxu1 %v7160_v56  ;;  %9984 = vst [vmem:[#allocation83_spill] sm:$0xff] %v7169_v16  ;;  %9985 = vst [vmem:[#allocation88_spill] sm:$0xff] %v7172_v51  ;;  %v7175_v6 = vld [vmem:[#allocation5 + $0x80] sm:$0xff]  ;;  %v7178_v56 = vld [vmem:[#allocation5 + $0x90] sm:$0xff] }
 0x5c5   :  { %2187 = vmatpush1.msra.mxu0 %v7163_v59  ;;  %2258 = vmatpush1.msra.mxu1 %v7166_v15  ;;  %9986 = vst [vmem:[#allocation89_spill] sm:$0xff] %v7175_v6  ;;  %9987 = vst [vmem:[#allocation90_spill] sm:$0xff] %v7178_v56  ;;  %v7181_v59 = vld [vmem:[#allocation5 + $0x68] sm:$0xff]  ;;  %v7184_v15 = vld [vmem:[#allocation5 + $0x78] sm:$0xff] }
 0x5c6   :  { %2188 = vmatprep.subr.mxu0 %v7169_v16  ;;  %2259 = vmatprep.subr.mxu1 %v7172_v51  ;;  %9988 = vst [vmem:[#allocation91_spill] sm:$0xff] %v7181_v59  ;;  %9989 = vst [vmem:[#allocation92_spill] sm:$0xff] %v7184_v15  ;;  %v7187_v16 = vld [vmem:[#allocation5 + $0x60] sm:$0xff]  ;;  %v7190_v51 = vld [vmem:[#allocation5 + $0x70] sm:$0xff] }
 0x5c7   :  { %2189 = vmatpush1.msra.mxu0 %v7175_v6  ;;  %2260 = vmatpush1.msra.mxu1 %v7178_v56  ;;  %9990 = vst [vmem:[#allocation93_spill] sm:$0xff] %v7187_v16  ;;  %9991 = vst [vmem:[#allocation94_spill] sm:$0xff] %v7190_v51  ;;  %v7193_v6 = vld [vmem:[#allocation5 + $0x48] sm:$0xff]  ;;  %v7196_v56 = vld [vmem:[#allocation5 + $0x58] sm:$0xff] }
 0x5c8   :  { %2190 = vmatprep.subr.mxu0 %v7181_v59  ;;  %2261 = vmatprep.subr.mxu1 %v7184_v15  ;;  %9992 = vst [vmem:[#allocation95_spill] sm:$0xff] %v7193_v6  ;;  %9993 = vst [vmem:[#allocation96_spill] sm:$0xff] %v7196_v56  ;;  %v7199_v59 = vld [vmem:[#allocation5 + $0x40] sm:$0xff]  ;;  %v7202_v15 = vld [vmem:[#allocation5 + $0x50] sm:$0xff] }
 0x5c9   :  { %2191 = vmatpush1.msra.mxu0 %v7187_v16  ;;  %2262 = vmatpush1.msra.mxu1 %v7190_v51  ;;  %9994 = vst [vmem:[#allocation97_spill] sm:$0xff] %v7199_v59  ;;  %9995 = vst [vmem:[#allocation98_spill] sm:$0xff] %v7202_v15  ;;  %v7205_v16 = vld [vmem:[#allocation5 + $0x28] sm:$0xff]  ;;  %v7208_v51 = vld [vmem:[#allocation5 + $0x38] sm:$0xff] }
 0x5ca   :  { %2192 = vmatprep.subr.mxu0 %v7193_v6  ;;  %2263 = vmatprep.subr.mxu1 %v7196_v56  ;;  %9996 = vst [vmem:[#allocation99_spill] sm:$0xff] %v7205_v16  ;;  %9997 = vst [vmem:[#allocation100_spill] sm:$0xff] %v7208_v51  ;;  %v7211_v6 = vld [vmem:[#allocation5 + $0x20] sm:$0xff]  ;;  %v7214_v56 = vld [vmem:[#allocation5 + $0x30] sm:$0xff] }
 0x5cb   :  { %2193 = vmatpush1.msra.mxu0 %v7199_v59  ;;  %2264 = vmatpush1.msra.mxu1 %v7202_v15  ;;  %9998 = vst [vmem:[#allocation118_spill] sm:$0xff] %v7211_v6  ;;  %9999 = vst [vmem:[#allocation120_spill] sm:$0xff] %v7214_v56  ;;  %v7217_v59 = vld [vmem:[#allocation5 + $0x8] sm:$0xff]  ;;  %v7220_v15 = vld [vmem:[#allocation5 + $0x18] sm:$0xff] }
 0x5cc   :  { %2194 = vmatprep.subr.mxu0 %v7205_v16  ;;  %2265 = vmatprep.subr.mxu1 %v7208_v51  ;;  %10000 = vst [vmem:[#allocation119_spill] sm:$0xff] %v7217_v59  ;;  %10001 = vst [vmem:[#allocation122_spill] sm:$0xff] %v7220_v15  ;;  %v7223_v16 = vld [vmem:[#allocation5] sm:$0xff]  ;;  %v7227_v51 = vld [vmem:[#allocation5 + $0x10] sm:$0xff] }
 0x5cd   :  { %2195 = vmatpush1.msra.mxu0 %v7211_v6  ;;  %2266 = vmatpush1.msra.mxu1 %v7214_v56  ;;  %10002 = vst [vmem:[#allocation101_spill] sm:$0xff] %v7223_v16  ;;  %10003 = vst [vmem:[#allocation102_spill] sm:$0xff] %v7227_v51  ;;  %v7242_v56 = vld [vmem:[#allocation8 + $0x1f0] sm:$0xff] }
 0x5ce   :  { %2196 = vmatprep.subr.mxu0 %v7217_v59  ;;  %2267 = vmatprep.subr.mxu1 %v7220_v15  ;;  %v7233_v59 = vld [vmem:[#allocation8 + $0x1e8] sm:$0xff]  ;;  %v7236_v15 = vld [vmem:[#allocation8 + $0x1f8] sm:$0xff]  ;;  %10007 = vst [vmem:[#allocation106_spill] sm:$0xff] %v7242_v56 }
 0x5cf   :  { %2197 = vmatpush1.msra.mxu0 %v7223_v16  ;;  %2230 = vmatprep.mubr.f32.mxu0 %v9879_v17  ;;  %10004 = vst [vmem:[#allocation103_spill] sm:$0xff] %v7233_v59  ;;  %10005 = vst [vmem:[#allocation104_spill] sm:$0xff] %v7236_v15  ;;  %v7239_v16 = vld [vmem:[#allocation8 + $0x1e0] sm:$0xff] }
 0x5d0   :  { %2268 = vmatpush1.msra.mxu1 %v7227_v51  ;;  %2301 = vmatprep.mubr.f32.mxu1 %v9879_v17  ;;  %10006 = vst [vmem:[#allocation105_spill] sm:$0xff] %v7239_v16  ;;  %v7245_v51 = vld [vmem:[#allocation8 + $0x1c8] sm:$0xff] }
 0x5d1   :  { %2231 = vmatmul.mubr.f32.vlgmr.msra.gmra.mxu0 %v7039_v54  ;;  %2302 = vmatmul.mubr.f32.vlgmr.msra.gmra.mxu1 %v7039_v54  ;;  %10008 = vst [vmem:[#allocation107_spill] sm:$0xff] %v7245_v51  ;;  %v7248_v54 = vld [vmem:[#allocation8 + $0x1d8] sm:$0xff] }
 0x5d2   :  { %2330 = vmatprep.subr.mxu0 %v7233_v59  ;;  %2401 = vmatprep.subr.mxu1 %v7236_v15  ;;  %10009 = vst [vmem:[#allocation108_spill] sm:$0xff] %v7248_v54 }
 0x5d3   :  { %2331 = vmatpush1.msra.mxu0 %v7239_v16  ;;  %2402 = vmatpush1.msra.mxu1 %v7242_v56 }
 0x5d4   :  { %2332 = vmatprep.subr.mxu0 %v7245_v51  ;;  %2403 = vmatprep.subr.mxu1 %v7248_v54 }
 0x5d5   :  { %2333 = vmatpush1.msra.mxu0 %v9887_v21  ;;  %2404 = vmatpush1.msra.mxu1 %v9888_v22  ;;  %v10010_v21 = vld [vmem:[#allocation32_spill] sm:$0xff]  ;;  %v10011_v22 = vld [vmem:[#allocation33_spill] sm:$0xff] }
 0x5d6   :  { %2334 = vmatprep.subr.mxu0 %v9889_v23  ;;  %2405 = vmatprep.subr.mxu1 %v9890_v24  ;;  %v10012_v23 = vld [vmem:[#allocation34_spill] sm:$0xff]  ;;  %v10013_v24 = vld [vmem:[#allocation35_spill] sm:$0xff] }
 0x5d7   :  { %2335 = vmatpush1.msra.mxu0 %v9891_v25  ;;  %2406 = vmatpush1.msra.mxu1 %v9892_v26  ;;  %v10014_v25 = vld [vmem:[#allocation36_spill] sm:$0xff]  ;;  %v10015_v26 = vld [vmem:[#allocation37_spill] sm:$0xff] }
 0x5d8   :  { %2336 = vmatprep.subr.mxu0 %v9893_v27  ;;  %2407 = vmatprep.subr.mxu1 %v9894_v28  ;;  %v10016_v27 = vld [vmem:[#allocation38_spill] sm:$0xff]  ;;  %v10017_v28 = vld [vmem:[#allocation39_spill] sm:$0xff] }
 0x5d9   :  { %2337 = vmatpush1.msra.mxu0 %v9895_v29  ;;  %2408 = vmatpush1.msra.mxu1 %v9896_v30  ;;  %v10018_v29 = vld [vmem:[#allocation40_spill] sm:$0xff]  ;;  %v10019_v30 = vld [vmem:[#allocation41_spill] sm:$0xff] }
 0x5da   :  { %2338 = vmatprep.subr.mxu0 %v9897_v31  ;;  %2409 = vmatprep.subr.mxu1 %v9898_v32  ;;  %v10020_v31 = vld [vmem:[#allocation42_spill] sm:$0xff]  ;;  %v10021_v32 = vld [vmem:[#allocation43_spill] sm:$0xff] }
 0x5db   :  { %2339 = vmatpush1.msra.mxu0 %v9899_v33  ;;  %2410 = vmatpush1.msra.mxu1 %v9900_v34  ;;  %v10022_v33 = vld [vmem:[#allocation44_spill] sm:$0xff]  ;;  %v10023_v34 = vld [vmem:[#allocation45_spill] sm:$0xff] }
 0x5dc   :  { %2340 = vmatprep.subr.mxu0 %v9901_v35  ;;  %2411 = vmatprep.subr.mxu1 %v9902_v36  ;;  %v10024_v35 = vld [vmem:[#allocation46_spill] sm:$0xff]  ;;  %v10025_v36 = vld [vmem:[#allocation47_spill] sm:$0xff] }
 0x5dd   :  { %2341 = vmatpush1.msra.mxu0 %v9903_v37  ;;  %2412 = vmatpush1.msra.mxu1 %v9904_v38  ;;  %v10026_v37 = vld [vmem:[#allocation52_spill] sm:$0xff]  ;;  %v10027_v38 = vld [vmem:[#allocation53_spill] sm:$0xff] }
 0x5de   :  { %2342 = vmatprep.subr.mxu0 %v9905_v39  ;;  %2413 = vmatprep.subr.mxu1 %v9906_v61 }
 0x5df   :  { %2343 = vmatpush1.msra.mxu0 %v9907_v7  ;;  %2414 = vmatpush1.msra.mxu1 %v9908_v47 }
 0x5e0   :  { %2344 = vmatprep.subr.mxu0 %v9909_v10  ;;  %2415 = vmatprep.subr.mxu1 %v9910_v3  ;;  %v10032_v3 = vld [vmem:[#allocation132_spill] sm:$0xff] }
 0x5e1   :  { %2345 = vmatpush1.msra.mxu0 %v9911_v11  ;;  %2416 = vmatpush1.msra.mxu1 %v9912_v4 }
 0x5e2   :  { %2346 = vmatprep.subr.mxu0 %v9913_v13  ;;  %2417 = vmatprep.subr.mxu1 %v9914_v14 }
 0x5e3   :  { %2347 = vmatpush1.msra.mxu0 %v9915_v63  ;;  %2418 = vmatpush1.msra.mxu1 %v9916_v8  ;;  %v10033_v63 = vld [vmem:[#allocation136_spill] sm:$0xff] }
 0x5e4   :  { %2348 = vmatprep.subr.mxu0 %v9917_v45  ;;  %2419 = vmatprep.subr.mxu1 %v9918_v2  ;;  %v10034_v45 = vld [vmem:[#allocation135_spill] sm:$0xff] }
 0x5e5   :  { %2349 = vmatpush1.msra.mxu0 %v9919_v42  ;;  %2420 = vmatpush1.msra.mxu1 %v9920_v50 }
 0x5e6   :  { %2350 = vmatprep.subr.mxu0 %v9921_v62  ;;  %2421 = vmatprep.subr.mxu1 %v9922_v58  ;;  %v10035_v62 = vld [vmem:[#allocation137_spill] sm:$0xff] }
 0x5e7   :  { %2351 = vmatpush1.msra.mxu0 %v9923_v0  ;;  %2422 = vmatpush1.msra.mxu1 %v9924_v52 }
 0x5e8   :  { %2352 = vmatprep.subr.mxu0 %v9925_v57  ;;  %2423 = vmatprep.subr.mxu1 %v9926_v46 }
 0x5e9   :  { %2353 = vmatpush1.msra.mxu0 %v9927_v40  ;;  %2424 = vmatpush1.msra.mxu1 %v9928_v41 }
 0x5ea   :  { %2354 = vmatprep.subr.mxu0 %v10010_v21  ;;  %2425 = vmatprep.subr.mxu1 %v10011_v22 }
 0x5eb   :  { %2355 = vmatpush1.msra.mxu0 %v10012_v23  ;;  %2426 = vmatpush1.msra.mxu1 %v10013_v24 }
 0x5ec   :  { %2356 = vmatprep.subr.mxu0 %v10014_v25  ;;  %2427 = vmatprep.subr.mxu1 %v10015_v26 }
 0x5ed   :  { %2357 = vmatpush1.msra.mxu0 %v10016_v27  ;;  %2428 = vmatpush1.msra.mxu1 %v10017_v28 }
 0x5ee   :  { %2358 = vmatprep.subr.mxu0 %v10018_v29  ;;  %2429 = vmatprep.subr.mxu1 %v10019_v30 }
 0x5ef   :  { %2359 = vmatpush1.msra.mxu0 %v10020_v31  ;;  %2430 = vmatpush1.msra.mxu1 %v10021_v32  ;;  %v10037_v31 = vld [vmem:[#allocation124_spill] sm:$0xff]  ;;  %v10038_v32 = vld [vmem:[#allocation129_spill] sm:$0xff] }
 0x5f0   :  { %2360 = vmatprep.subr.mxu0 %v10022_v33  ;;  %2431 = vmatprep.subr.mxu1 %v10023_v34  ;;  %v10039_v33 = vld [vmem:[#allocation128_spill] sm:$0xff]  ;;  %v10040_v34 = vld [vmem:[#allocation130_spill] sm:$0xff] }
 0x5f1   :  { %2361 = vmatpush1.msra.mxu0 %v10024_v35  ;;  %2432 = vmatpush1.msra.mxu1 %v10025_v36  ;;  %v10041_v35 = vld [vmem:[#allocation57_spill] sm:$0xff]  ;;  %v10042_v36 = vld [vmem:[#allocation58_spill] sm:$0xff] }
 0x5f2   :  { %2394 = vmatprep.mubr.f32.mxu0 %v9879_v17  ;;  %2465 = vmatprep.mubr.f32.mxu1 %v9879_v17 }
 0x5f3   :  { %2472 = vmatprep.subr.mxu0 %v10026_v37  ;;  %2543 = vmatprep.subr.mxu1 %v10027_v38 }
 0x670   :  { %v7313_v39 = vpop.f32.mrf.mxu0  ;;  %v7315_v61 = vpop.f32.mrf.mxu1 }
 0x671   :  { %10028 = vst [vmem:[#allocation109_spill] sm:$0xff] %v7313_v39  ;;  %10029 = vst [vmem:[#allocation110_spill] sm:$0xff] %v7315_v61  ;;  %v10072_v61 = vld [vmem:[#allocation94_spill] sm:$0xff]  ;;  %v10074_v39 = vld [vmem:[#allocation96_spill] sm:$0xff] }
 0x672   :  { %v7317_v7 = vpop.f32.mrf.mxu0  ;;  %v7319_v47 = vpop.f32.mrf.mxu1 }
 0x673   :  { %10030 = vst [vmem:[#allocation111_spill] sm:$0xff] %v7317_v7  ;;  %10031 = vst [vmem:[#allocation112_spill] sm:$0xff] %v7319_v47  ;;  %v10071_v47 = vld [vmem:[#allocation93_spill] sm:$0xff]  ;;  %v10073_v7 = vld [vmem:[#allocation95_spill] sm:$0xff] }
 0x691   :  { %v2232_v10 = vpop.f32.mrf.mxu0  ;;  %v2303_v4 = vpop.f32.mrf.mxu1 }
 0x692   :  { %v2308_v11 = vadd.f32 %v2232_v10, %v10032_v3  ;;  %v2310_v2 = vadd.f32 %v2303_v4, %v10034_v45  ;;  %v10043_v10 = vld [vmem:[#allocation59_spill] sm:$0xff]  ;;  %v10044_v3 = vld [vmem:[#allocation60_spill] sm:$0xff]  ;;  %v10051_v45 = vld [vmem:[#allocation69_spill] sm:$0xff] }
 0x693   :  { %v2234_v13 = vpop.f32.mrf.mxu0  ;;  %v2305_v50 = vpop.f32.mrf.mxu1  ;;  %v10046_v4 = vld [vmem:[#allocation63_spill] sm:$0xff] }
 0x694   :  { %v2312_v14 = vmul.f32 0.5, %v2308_v11  ;;  %v2309_v8 = vadd.f32 %v2234_v13, %v10033_v63  ;;  %v2311_v58 = vadd.f32 %v2305_v50, %v10035_v62  ;;  %v10045_v11 = vld [vmem:[#allocation62_spill] sm:$0xff]  ;;  %v10047_v13 = vld [vmem:[#allocation64_spill] sm:$0xff]  ;;  %v10049_v63 = vld [vmem:[#allocation67_spill] sm:$0xff] }
 0x695   :  { %v10054_v50 = vld [vmem:[#allocation72_spill] sm:$0xff]  ;;  %v10055_v62 = vld [vmem:[#allocation73_spill] sm:$0xff] }
 0x696   :  { %4841 = vtanh.f32 %v2312_v14  ;;  %v2316_v42 = vmul.f32 0.5, %v2309_v8  ;;  %v2321_v0 = vmul.f32 0.5, %v2311_v58  ;;  %v10048_v14 = vld [vmem:[#allocation65_spill] sm:$0xff]  ;;  %v10050_v8 = vld [vmem:[#allocation68_spill] sm:$0xff]  ;;  %v10056_v58 = vld [vmem:[#allocation74_spill] sm:$0xff] }
 0x698   :  { %4843 = vtanh.f32 %v2316_v42  ;;  %v10053_v42 = vld [vmem:[#allocation71_spill] sm:$0xff] }
 0x699   :  { %4845 = vtanh.f32 %v2310_v2  ;;  %v10052_v2 = vld [vmem:[#allocation70_spill] sm:$0xff] }
 0x69a   :  { %4847 = vtanh.f32 %v2321_v0  ;;  %v10057_v0 = vld [vmem:[#allocation75_spill] sm:$0xff] }
 0x6a3   :  { %v4842_v52 = vpop.eup %4841 }
 0x6a4   :  { %v2314_v57 = vmul.f32 0.5, %v4842_v52  ;;  %v10058_v52 = vld [vmem:[#allocation76_spill] sm:$0xff] }
 0x6a5   :  { %v4844_v46 = vpop.eup %4843 }
 0x6a6   :  { %v2315_v40 = vadd.f32 0.5, %v2314_v57  ;;  %v2318_v41 = vmul.f32 0.5, %v4844_v46  ;;  %v4846_v21 = vpop.eup %4845  ;;  %v10059_v57 = vld [vmem:[#allocation77_spill] sm:$0xff]  ;;  %v10060_v46 = vld [vmem:[#allocation78_spill] sm:$0xff] }
 0x6a7   :  { %v4848_v26 = vpop.eup %4847 }
 0x6a8   :  { %v2319_v22 = vadd.f32 0.5, %v2318_v41  ;;  %v2326_v23 = vmul.f32 %v4846_v21, %v2315_v40  ;;  %v2323_v27 = vmul.f32 0.5, %v4848_v26  ;;  %v10061_v40 = vld [vmem:[#allocation79_spill] sm:$0xff]  ;;  %v10062_v41 = vld [vmem:[#allocation80_spill] sm:$0xff]  ;;  %v10063_v21 = vld [vmem:[#allocation81_spill] sm:$0xff] }
 0x6a9   :  { %v10067_v26 = vld [vmem:[#allocation89_spill] sm:$0xff] }
 0x6aa   :  { %v2325_v24 = vmul.f32 %v2319_v22, %v7036_v5  ;;  %v2324_v28 = vadd.f32 0.5, %v2323_v27  ;;  %v10036_v5 = vld [vmem:[#allocation66_spill] sm:$0xff] }
 0x6ab   :  { %v10064_v22 = vld [vmem:[#allocation82_spill] sm:$0xff] }
 0x6ac   :  { %v7326_v25 = vadd.f32 %v2326_v23, %v2325_v24  ;;  %v10065_v23 = vld [vmem:[#allocation83_spill] sm:$0xff]  ;;  %v10066_v24 = vld [vmem:[#allocation88_spill] sm:$0xff]  ;;  %v10068_v27 = vld [vmem:[#allocation90_spill] sm:$0xff] }
 0x6ae   :  { %4849 = vtanh.f32 %v7326_v25 }
 0x6bb   :  { %v4850_v29 = vpop.eup %4849 }
 0x6bc   :  { %v7329_v30 = vmul.f32 %v4850_v29, %v2324_v28  ;;  %v10069_v28 = vld [vmem:[#allocation91_spill] sm:$0xff]  ;;  %v10070_v29 = vld [vmem:[#allocation92_spill] sm:$0xff] }
 0x6be   :  { %2395 = vmatmul.mubr.f32.vlgmr.msra.gmra.mxu0 %v7329_v30  ;;  %2466 = vmatmul.mubr.f32.vlgmr.msra.gmra.mxu1 %v7329_v30 }
 0x6bf   :  { %2473 = vmatpush1.msra.mxu0 %v7043_v55  ;;  %2544 = vmatpush1.msra.mxu1 %v7046_v44 }
 0x6c0   :  { %2474 = vmatprep.subr.mxu0 %v7049_v19  ;;  %2545 = vmatprep.subr.mxu1 %v7052_v43 }
 0x6c1   :  { %2475 = vmatpush1.msra.mxu0 %v7055_v18  ;;  %2546 = vmatpush1.msra.mxu1 %v7058_v48 }
 0x6c2   :  { %2476 = vmatprep.subr.mxu0 %v7061_v1  ;;  %2547 = vmatprep.subr.mxu1 %v7064_v60 }
 0x6c3   :  { %2477 = vmatpush1.msra.mxu0 %v7067_v9  ;;  %2548 = vmatpush1.msra.mxu1 %v7070_v12 }
 0x6c4   :  { %2478 = vmatprep.subr.mxu0 %v7073_v20  ;;  %2549 = vmatprep.subr.mxu1 %v7076_v53 }
 0x6c5   :  { %2479 = vmatpush1.msra.mxu0 %v7079_v49  ;;  %2550 = vmatpush1.msra.mxu1 %v10036_v5 }
 0x6c6   :  { %2480 = vmatprep.subr.mxu0 %v10037_v31  ;;  %2551 = vmatprep.subr.mxu1 %v10038_v32 }
 0x6c7   :  { %2481 = vmatpush1.msra.mxu0 %v10039_v33  ;;  %2552 = vmatpush1.msra.mxu1 %v10040_v34 }
 0x6c8   :  { %2482 = vmatprep.subr.mxu0 %v10041_v35  ;;  %2553 = vmatprep.subr.mxu1 %v10042_v36 }
 0x6c9   :  { %2483 = vmatpush1.msra.mxu0 %v10043_v10  ;;  %2554 = vmatpush1.msra.mxu1 %v10044_v3 }
 0x6ca   :  { %2484 = vmatprep.subr.mxu0 %v10045_v11  ;;  %2555 = vmatprep.subr.mxu1 %v10046_v4 }
 0x6cb   :  { %2485 = vmatpush1.msra.mxu0 %v10047_v13  ;;  %2556 = vmatpush1.msra.mxu1 %v10048_v14 }
 0x6cc   :  { %2486 = vmatprep.subr.mxu0 %v10049_v63  ;;  %2557 = vmatprep.subr.mxu1 %v10050_v8 }
 0x6cd   :  { %2487 = vmatpush1.msra.mxu0 %v10051_v45  ;;  %2558 = vmatpush1.msra.mxu1 %v10052_v2 }
 0x6ce   :  { %2488 = vmatprep.subr.mxu0 %v10053_v42  ;;  %2559 = vmatprep.subr.mxu1 %v10054_v50 }
 0x6cf   :  { %2489 = vmatpush1.msra.mxu0 %v10055_v62  ;;  %2560 = vmatpush1.msra.mxu1 %v10056_v58 }
 0x6d0   :  { %2490 = vmatprep.subr.mxu0 %v10057_v0  ;;  %2561 = vmatprep.subr.mxu1 %v10058_v52 }
 0x6d1   :  { %2491 = vmatpush1.msra.mxu0 %v10059_v57  ;;  %2562 = vmatpush1.msra.mxu1 %v10060_v46 }
 0x6d2   :  { %2492 = vmatprep.subr.mxu0 %v10061_v40  ;;  %2563 = vmatprep.subr.mxu1 %v10062_v41 }
 0x6d3   :  { %2493 = vmatpush1.msra.mxu0 %v10063_v21  ;;  %2564 = vmatpush1.msra.mxu1 %v10064_v22  ;;  %v10075_v22 = vld [vmem:[#allocation97_spill] sm:$0xff] }
 0x6d4   :  { %2494 = vmatprep.subr.mxu0 %v10065_v23  ;;  %2565 = vmatprep.subr.mxu1 %v10066_v24  ;;  %v10076_v23 = vld [vmem:[#allocation98_spill] sm:$0xff]  ;;  %v10077_v24 = vld [vmem:[#allocation99_spill] sm:$0xff] }
 0x6d5   :  { %2495 = vmatpush1.msra.mxu0 %v10067_v26  ;;  %2566 = vmatpush1.msra.mxu1 %v10068_v27  ;;  %v10078_v26 = vld [vmem:[#allocation100_spill] sm:$0xff] }
 0x6d6   :  { %2496 = vmatprep.subr.mxu0 %v10069_v28  ;;  %2567 = vmatprep.subr.mxu1 %v10070_v29  ;;  %v10079_v28 = vld [vmem:[#allocation120_spill] sm:$0xff]  ;;  %v10080_v29 = vld [vmem:[#allocation119_spill] sm:$0xff] }
 0x6d7   :  { %2497 = vmatpush1.msra.mxu0 %v10071_v47  ;;  %2568 = vmatpush1.msra.mxu1 %v10072_v61  ;;  %v10081_v47 = vld [vmem:[#allocation122_spill] sm:$0xff]  ;;  %v10082_v61 = vld [vmem:[#allocation101_spill] sm:$0xff] }
 0x6d8   :  { %2498 = vmatprep.subr.mxu0 %v10073_v7  ;;  %2569 = vmatprep.subr.mxu1 %v10074_v39  ;;  %v10083_v39 = vld [vmem:[#allocation102_spill] sm:$0xff] }
 0x6d9   :  { %2499 = vmatpush1.msra.mxu0 %v10075_v22  ;;  %2570 = vmatpush1.msra.mxu1 %v10076_v23 }
 0x6da   :  { %2500 = vmatprep.subr.mxu0 %v10077_v24  ;;  %2571 = vmatprep.subr.mxu1 %v10078_v26 }
 0x6db   :  { %2501 = vmatpush1.msra.mxu0 %v7211_v6  ;;  %2572 = vmatpush1.msra.mxu1 %v10079_v28 }
 0x6dc   :  { %2502 = vmatprep.subr.mxu0 %v10080_v29  ;;  %2573 = vmatprep.subr.mxu1 %v10081_v47  ;;  %v10147_v29 = vld [vmem:[#allocation140_spill] sm:$0xff] }
 0x6dd   :  { %2503 = vmatpush1.msra.mxu0 %v10082_v61  ;;  %2536 = vmatprep.mubr.f32.mxu0 %v9879_v17  ;;  %v7405_v61 = vld [vmem:[#allocation8 + $0x1c0] sm:$0xff] }
 0x6de   :  { %2574 = vmatpush1.msra.mxu1 %v10083_v39  ;;  %2607 = vmatprep.mubr.f32.mxu1 %v9879_v17  ;;  %10084 = vst [vmem:[#allocation113_spill] sm:$0xff] %v7405_v61  ;;  %v7408_v39 = vld [vmem:[#allocation8 + $0x1d0] sm:$0xff] }
 0x6df   :  { %2537 = vmatmul.mubr.f32.vlgmr.msra.gmra.mxu0 %v7329_v30  ;;  %2608 = vmatmul.mubr.f32.vlgmr.msra.gmra.mxu1 %v7329_v30  ;;  %10085 = vst [vmem:[#allocation114_spill] sm:$0xff] %v7408_v39  ;;  %v7411_v30 = vld [vmem:[#allocation8 + $0x1a8] sm:$0xff] }
 0x6e0   :  { %2636 = vmatprep.subr.mxu0 %v7233_v59  ;;  %2707 = vmatprep.subr.mxu1 %v7236_v15  ;;  %10086 = vst [vmem:[#allocation115_spill] sm:$0xff] %v7411_v30  ;;  %v7414_v15 = vld [vmem:[#allocation8 + $0x1b8] sm:$0xff] }
 0x6e1   :  { %2637 = vmatpush1.msra.mxu0 %v7239_v16  ;;  %2708 = vmatpush1.msra.mxu1 %v7242_v56  ;;  %10087 = vst [vmem:[#allocation116_spill] sm:$0xff] %v7414_v15  ;;  %v7417_v56 = vld [vmem:[#allocation8 + $0x1a0] sm:$0xff] }
 0x6e2   :  { %2638 = vmatprep.subr.mxu0 %v7245_v51  ;;  %2709 = vmatprep.subr.mxu1 %v7248_v54  ;;  %10088 = vst [vmem:[#allocation23_spill] sm:$0xff] %v7417_v56  ;;  %v7420_v54 = vld [vmem:[#allocation8 + $0x1b0] sm:$0xff]  ;;  %v10146_v51 = vld [vmem:[#allocation138_spill] sm:$0xff] }
 0x6e3   :  { %2639 = vmatpush1.msra.mxu0 %v7405_v61  ;;  %2710 = vmatpush1.msra.mxu1 %v7408_v39  ;;  %10089 = vst [vmem:[#allocation24_spill] sm:$0xff] %v7420_v54  ;;  %v7423_v61 = vld [vmem:[#allocation8 + $0x188] sm:$0xff]  ;;  %v7426_v39 = vld [vmem:[#allocation8 + $0x198] sm:$0xff] }
 0x6e4   :  { %2640 = vmatprep.subr.mxu0 %v7411_v30  ;;  %2711 = vmatprep.subr.mxu1 %v7414_v15  ;;  %10090 = vst [vmem:[#allocation121_spill] sm:$0xff] %v7423_v61  ;;  %10091 = vst [vmem:[#allocation125_spill] sm:$0xff] %v7426_v39  ;;  %v7429_v30 = vld [vmem:[#allocation8 + $0x180] sm:$0xff]  ;;  %v7432_v15 = vld [vmem:[#allocation8 + $0x190] sm:$0xff] }
 0x6e5   :  { %2641 = vmatpush1.msra.mxu0 %v7417_v56  ;;  %2712 = vmatpush1.msra.mxu1 %v7420_v54  ;;  %10092 = vst [vmem:[#allocation123_spill] sm:$0xff] %v7429_v30  ;;  %10093 = vst [vmem:[#allocation126_spill] sm:$0xff] %v7432_v15  ;;  %v7435_v56 = vld [vmem:[#allocation8 + $0x168] sm:$0xff]  ;;  %v7438_v54 = vld [vmem:[#allocation8 + $0x178] sm:$0xff] }
 0x6e6   :  { %2642 = vmatprep.subr.mxu0 %v7423_v61  ;;  %2713 = vmatprep.subr.mxu1 %v7426_v39  ;;  %10094 = vst [vmem:[#allocation29_spill] sm:$0xff] %v7435_v56  ;;  %10095 = vst [vmem:[#allocation30_spill] sm:$0xff] %v7438_v54  ;;  %v7441_v61 = vld [vmem:[#allocation8 + $0x160] sm:$0xff]  ;;  %v7444_v39 = vld [vmem:[#allocation8 + $0x170] sm:$0xff] }
 0x6e7   :  { %2643 = vmatpush1.msra.mxu0 %v7429_v30  ;;  %2714 = vmatpush1.msra.mxu1 %v7432_v15  ;;  %10096 = vst [vmem:[#allocation31_spill] sm:$0xff] %v7441_v61  ;;  %10097 = vst [vmem:[#allocation127_spill] sm:$0xff] %v7444_v39  ;;  %v7447_v30 = vld [vmem:[#allocation8 + $0x148] sm:$0xff]  ;;  %v7450_v15 = vld [vmem:[#allocation8 + $0x158] sm:$0xff] }
 0x6e8   :  { %2644 = vmatprep.subr.mxu0 %v7435_v56  ;;  %2715 = vmatprep.subr.mxu1 %v7438_v54  ;;  %10098 = vst [vmem:[#allocation133_spill] sm:$0xff] %v7447_v30  ;;  %10099 = vst [vmem:[#allocation131_spill] sm:$0xff] %v7450_v15  ;;  %v7453_v56 = vld [vmem:[#allocation8 + $0x140] sm:$0xff]  ;;  %v7456_v54 = vld [vmem:[#allocation8 + $0x150] sm:$0xff] }
 0x6e9   :  { %2645 = vmatpush1.msra.mxu0 %v7441_v61  ;;  %2716 = vmatpush1.msra.mxu1 %v7444_v39  ;;  %10100 = vst [vmem:[#allocation134_spill] sm:$0xff] %v7453_v56  ;;  %10101 = vst [vmem:[#allocation32_spill] sm:$0xff] %v7456_v54  ;;  %v7459_v61 = vld [vmem:[#allocation8 + $0x128] sm:$0xff]  ;;  %v7462_v39 = vld [vmem:[#allocation8 + $0x138] sm:$0xff] }
 0x6ea   :  { %2646 = vmatprep.subr.mxu0 %v7447_v30  ;;  %2717 = vmatprep.subr.mxu1 %v7450_v15  ;;  %10102 = vst [vmem:[#allocation33_spill] sm:$0xff] %v7459_v61  ;;  %10103 = vst [vmem:[#allocation34_spill] sm:$0xff] %v7462_v39  ;;  %v7465_v30 = vld [vmem:[#allocation8 + $0x120] sm:$0xff]  ;;  %v7468_v15 = vld [vmem:[#allocation8 + $0x130] sm:$0xff] }
 0x6eb   :  { %2647 = vmatpush1.msra.mxu0 %v7453_v56  ;;  %2718 = vmatpush1.msra.mxu1 %v7456_v54  ;;  %10104 = vst [vmem:[#allocation35_spill] sm:$0xff] %v7465_v30  ;;  %10105 = vst [vmem:[#allocation36_spill] sm:$0xff] %v7468_v15  ;;  %v7471_v56 = vld [vmem:[#allocation8 + $0x108] sm:$0xff]  ;;  %v7474_v54 = vld [vmem:[#allocation8 + $0x118] sm:$0xff] }
 0x6ec   :  { %2648 = vmatprep.subr.mxu0 %v7459_v61  ;;  %2719 = vmatprep.subr.mxu1 %v7462_v39  ;;  %10106 = vst [vmem:[#allocation37_spill] sm:$0xff] %v7471_v56  ;;  %10107 = vst [vmem:[#allocation38_spill] sm:$0xff] %v7474_v54  ;;  %v7477_v61 = vld [vmem:[#allocation8 + $0x100] sm:$0xff]  ;;  %v7480_v39 = vld [vmem:[#allocation8 + $0x110] sm:$0xff] }
 0x6ed   :  { %2649 = vmatpush1.msra.mxu0 %v7465_v30  ;;  %2720 = vmatpush1.msra.mxu1 %v7468_v15  ;;  %10108 = vst [vmem:[#allocation39_spill] sm:$0xff] %v7477_v61  ;;  %10109 = vst [vmem:[#allocation40_spill] sm:$0xff] %v7480_v39  ;;  %v7483_v30 = vld [vmem:[#allocation8 + $0xe8] sm:$0xff]  ;;  %v7486_v15 = vld [vmem:[#allocation8 + $0xf8] sm:$0xff] }
 0x6ee   :  { %2650 = vmatprep.subr.mxu0 %v7471_v56  ;;  %2721 = vmatprep.subr.mxu1 %v7474_v54  ;;  %10110 = vst [vmem:[#allocation41_spill] sm:$0xff] %v7483_v30  ;;  %10111 = vst [vmem:[#allocation42_spill] sm:$0xff] %v7486_v15  ;;  %v7489_v56 = vld [vmem:[#allocation8 + $0xe0] sm:$0xff]  ;;  %v7492_v54 = vld [vmem:[#allocation8 + $0xf0] sm:$0xff] }
 0x6ef   :  { %2651 = vmatpush1.msra.mxu0 %v7477_v61  ;;  %2722 = vmatpush1.msra.mxu1 %v7480_v39  ;;  %10112 = vst [vmem:[#allocation43_spill] sm:$0xff] %v7489_v56  ;;  %10113 = vst [vmem:[#allocation44_spill] sm:$0xff] %v7492_v54  ;;  %v7495_v61 = vld [vmem:[#allocation8 + $0xc8] sm:$0xff]  ;;  %v7498_v39 = vld [vmem:[#allocation8 + $0xd8] sm:$0xff] }
 0x6f0   :  { %2652 = vmatprep.subr.mxu0 %v7483_v30  ;;  %2723 = vmatprep.subr.mxu1 %v7486_v15  ;;  %10114 = vst [vmem:[#allocation45_spill] sm:$0xff] %v7495_v61  ;;  %10115 = vst [vmem:[#allocation46_spill] sm:$0xff] %v7498_v39  ;;  %v7501_v30 = vld [vmem:[#allocation8 + $0xc0] sm:$0xff]  ;;  %v7504_v15 = vld [vmem:[#allocation8 + $0xd0] sm:$0xff] }
 0x6f1   :  { %2653 = vmatpush1.msra.mxu0 %v7489_v56  ;;  %2724 = vmatpush1.msra.mxu1 %v7492_v54  ;;  %10116 = vst [vmem:[#allocation47_spill] sm:$0xff] %v7501_v30  ;;  %10117 = vst [vmem:[#allocation52_spill] sm:$0xff] %v7504_v15  ;;  %v7507_v56 = vld [vmem:[#allocation8 + $0xa8] sm:$0xff]  ;;  %v7510_v54 = vld [vmem:[#allocation8 + $0xb8] sm:$0xff] }
 0x6f2   :  { %2654 = vmatprep.subr.mxu0 %v7495_v61  ;;  %2725 = vmatprep.subr.mxu1 %v7498_v39  ;;  %10118 = vst [vmem:[#allocation53_spill] sm:$0xff] %v7507_v56  ;;  %10119 = vst [vmem:[#allocation132_spill] sm:$0xff] %v7510_v54  ;;  %v7513_v61 = vld [vmem:[#allocation8 + $0xa0] sm:$0xff]  ;;  %v7516_v39 = vld [vmem:[#allocation8 + $0xb0] sm:$0xff] }
 0x6f3   :  { %2655 = vmatpush1.msra.mxu0 %v7501_v30  ;;  %2726 = vmatpush1.msra.mxu1 %v7504_v15  ;;  %10120 = vst [vmem:[#allocation136_spill] sm:$0xff] %v7513_v61  ;;  %10121 = vst [vmem:[#allocation135_spill] sm:$0xff] %v7516_v39  ;;  %v7519_v30 = vld [vmem:[#allocation8 + $0x88] sm:$0xff]  ;;  %v7522_v15 = vld [vmem:[#allocation8 + $0x98] sm:$0xff] }
 0x6f4   :  { %2656 = vmatprep.subr.mxu0 %v7507_v56  ;;  %2727 = vmatprep.subr.mxu1 %v7510_v54  ;;  %10122 = vst [vmem:[#allocation137_spill] sm:$0xff] %v7519_v30  ;;  %10123 = vst [vmem:[#allocation66_spill] sm:$0xff] %v7522_v15  ;;  %v7525_v56 = vld [vmem:[#allocation8 + $0x80] sm:$0xff]  ;;  %v7528_v54 = vld [vmem:[#allocation8 + $0x90] sm:$0xff] }
 0x6f5   :  { %2657 = vmatpush1.msra.mxu0 %v7513_v61  ;;  %2728 = vmatpush1.msra.mxu1 %v7516_v39  ;;  %10124 = vst [vmem:[#allocation124_spill] sm:$0xff] %v7525_v56  ;;  %10125 = vst [vmem:[#allocation129_spill] sm:$0xff] %v7528_v54  ;;  %v7531_v61 = vld [vmem:[#allocation8 + $0x68] sm:$0xff]  ;;  %v7534_v39 = vld [vmem:[#allocation8 + $0x78] sm:$0xff] }
 0x6f6   :  { %2658 = vmatprep.subr.mxu0 %v7519_v30  ;;  %2729 = vmatprep.subr.mxu1 %v7522_v15  ;;  %10126 = vst [vmem:[#allocation128_spill] sm:$0xff] %v7531_v61  ;;  %10127 = vst [vmem:[#allocation130_spill] sm:$0xff] %v7534_v39  ;;  %v7537_v30 = vld [vmem:[#allocation8 + $0x60] sm:$0xff]  ;;  %v7540_v15 = vld [vmem:[#allocation8 + $0x70] sm:$0xff] }
 0x6f7   :  { %2659 = vmatpush1.msra.mxu0 %v7525_v56  ;;  %2730 = vmatpush1.msra.mxu1 %v7528_v54  ;;  %10128 = vst [vmem:[#allocation57_spill] sm:$0xff] %v7537_v30  ;;  %10129 = vst [vmem:[#allocation58_spill] sm:$0xff] %v7540_v15  ;;  %v7543_v56 = vld [vmem:[#allocation8 + $0x48] sm:$0xff]  ;;  %v7546_v54 = vld [vmem:[#allocation8 + $0x58] sm:$0xff] }
 0x6f8   :  { %2660 = vmatprep.subr.mxu0 %v7531_v61  ;;  %2731 = vmatprep.subr.mxu1 %v7534_v39  ;;  %10130 = vst [vmem:[#allocation59_spill] sm:$0xff] %v7543_v56  ;;  %10131 = vst [vmem:[#allocation60_spill] sm:$0xff] %v7546_v54  ;;  %v7549_v61 = vld [vmem:[#allocation8 + $0x40] sm:$0xff]  ;;  %v7552_v39 = vld [vmem:[#allocation8 + $0x50] sm:$0xff] }
 0x6f9   :  { %2661 = vmatpush1.msra.mxu0 %v7537_v30  ;;  %2732 = vmatpush1.msra.mxu1 %v7540_v15  ;;  %10132 = vst [vmem:[#allocation62_spill] sm:$0xff] %v7549_v61  ;;  %10133 = vst [vmem:[#allocation63_spill] sm:$0xff] %v7552_v39  ;;  %v7555_v30 = vld [vmem:[#allocation8 + $0x28] sm:$0xff]  ;;  %v7558_v15 = vld [vmem:[#allocation8 + $0x38] sm:$0xff] }
 0x6fa   :  { %2662 = vmatprep.subr.mxu0 %v7543_v56  ;;  %2733 = vmatprep.subr.mxu1 %v7546_v54  ;;  %10134 = vst [vmem:[#allocation64_spill] sm:$0xff] %v7555_v30  ;;  %10135 = vst [vmem:[#allocation65_spill] sm:$0xff] %v7558_v15  ;;  %v7561_v56 = vld [vmem:[#allocation8 + $0x20] sm:$0xff]  ;;  %v7564_v54 = vld [vmem:[#allocation8 + $0x30] sm:$0xff] }
 0x6fb   :  { %2663 = vmatpush1.msra.mxu0 %v7549_v61  ;;  %2734 = vmatpush1.msra.mxu1 %v7552_v39  ;;  %10136 = vst [vmem:[#allocation67_spill] sm:$0xff] %v7561_v56  ;;  %10137 = vst [vmem:[#allocation68_spill] sm:$0xff] %v7564_v54  ;;  %v7567_v61 = vld [vmem:[#allocation8 + $0x8] sm:$0xff]  ;;  %v7570_v39 = vld [vmem:[#allocation8 + $0x18] sm:$0xff] }
 0x6fc   :  { %2664 = vmatprep.subr.mxu0 %v7555_v30  ;;  %2735 = vmatprep.subr.mxu1 %v7558_v15  ;;  %10138 = vst [vmem:[#allocation69_spill] sm:$0xff] %v7567_v61  ;;  %10139 = vst [vmem:[#allocation70_spill] sm:$0xff] %v7570_v39  ;;  %v7573_v30 = vld [vmem:[#allocation8] sm:$0xff]  ;;  %v7576_v15 = vld [vmem:[#allocation8 + $0x10] sm:$0xff] }
 0x6fd   :  { %2665 = vmatpush1.msra.mxu0 %v7561_v56  ;;  %2736 = vmatpush1.msra.mxu1 %v7564_v54  ;;  %10140 = vst [vmem:[#allocation71_spill] sm:$0xff] %v7573_v30  ;;  %10141 = vst [vmem:[#allocation72_spill] sm:$0xff] %v7576_v15 }
 0x6fe   :  { %2666 = vmatprep.subr.mxu0 %v7567_v61  ;;  %2737 = vmatprep.subr.mxu1 %v7570_v39 }
 0x6ff   :  { %2667 = vmatpush1.msra.mxu0 %v7573_v30  ;;  %2738 = vmatpush1.msra.mxu1 %v7576_v15 }
 0x700   :  { %2700 = vmatprep.mubr.f32.mxu0 %v9879_v17  ;;  %2771 = vmatprep.mubr.f32.mxu1 %v9879_v17 }
 0x701   :  { %2778 = vmatprep.subr.mxu0 %v10026_v37  ;;  %2849 = vmatprep.subr.mxu1 %v10027_v38  ;;  %v10148_v37 = vld [vmem:[#allocation139_spill] sm:$0xff] }
 0x77e   :  { %v7583_v61 = vpop.f32.mrf.mxu0  ;;  %v7585_v54 = vpop.f32.mrf.mxu1 }
 0x77f   :  { %10142 = vst [vmem:[#allocation73_spill] sm:$0xff] %v7583_v61  ;;  %10143 = vst [vmem:[#allocation74_spill] sm:$0xff] %v7585_v54  ;;  %v10149_v54 = vld [vmem:[#allocation141_spill] sm:$0xff] }
 0x780   :  { %v7587_v39 = vpop.f32.mrf.mxu0  ;;  %v7589_v56 = vpop.f32.mrf.mxu1 }
 0x781   :  { %10144 = vst [vmem:[#allocation75_spill] sm:$0xff] %v7587_v39  ;;  %10145 = vst [vmem:[#allocation76_spill] sm:$0xff] %v7589_v56 }
 0x79f   :  { %v2538_v30 = vpop.f32.mrf.mxu0  ;;  %v2609_v15 = vpop.f32.mrf.mxu1 }
 0x7a0   :  { %v2614_v16 = vadd.f32 %v2538_v30, %v10146_v51  ;;  %v2616_v28 = vadd.f32 %v2609_v15, %v10148_v37  ;;  %v10202_v37 = vld [vmem:[#allocation41_spill] sm:$0xff] }
 0x7a1   :  { %v2540_v59 = vpop.f32.mrf.mxu0  ;;  %v2611_v61 = vpop.f32.mrf.mxu1 }
 0x7a2   :  { %v2618_v47 = vmul.f32 0.5, %v2614_v16  ;;  %v2615_v17 = vadd.f32 %v2540_v59, %v10147_v29  ;;  %v2617_v6 = vadd.f32 %v2611_v61, %v10149_v54  ;;  %v10165_v61 = vld [vmem:[#allocation119_spill] sm:$0xff]  ;;  %v10201_v29 = vld [vmem:[#allocation40_spill] sm:$0xff] }
 0x7a4   :  { %4851 = vtanh.f32 %v2618_v47  ;;  %v2622_v38 = vmul.f32 0.5, %v2615_v17  ;;  %v2627_v39 = vmul.f32 0.5, %v2617_v6 }
 0x7a6   :  { %4853 = vtanh.f32 %v2622_v38  ;;  %v10203_v38 = vld [vmem:[#allocation42_spill] sm:$0xff] }
 0x7a7   :  { %4855 = vtanh.f32 %v2616_v28 }
 0x7a8   :  { %4857 = vtanh.f32 %v2627_v39  ;;  %v10164_v39 = vld [vmem:[#allocation120_spill] sm:$0xff] }
 0x7b1   :  { %v4852_v26 = vpop.eup %4851 }
 0x7b2   :  { %v2620_v56 = vmul.f32 0.5, %v4852_v26  ;;  %v10199_v26 = vld [vmem:[#allocation38_spill] sm:$0xff] }
 0x7b3   :  { %v4854_v24 = vpop.eup %4853 }
 0x7b4   :  { %v2621_v23 = vadd.f32 0.5, %v2620_v56  ;;  %v2624_v51 = vmul.f32 0.5, %v4854_v24  ;;  %v4856_v30 = vpop.eup %4855  ;;  %v10163_v56 = vld [vmem:[#allocation118_spill] sm:$0xff]  ;;  %v10198_v24 = vld [vmem:[#allocation37_spill] sm:$0xff] }
 0x7b5   :  { %v4858_v17 = vpop.eup %4857 }
 0x7b6   :  { %v2625_v16 = vadd.f32 0.5, %v2624_v51  ;;  %v2632_v22 = vmul.f32 %v4856_v30, %v2621_v23  ;;  %v2629_v15 = vmul.f32 0.5, %v4858_v17  ;;  %v10197_v23 = vld [vmem:[#allocation36_spill] sm:$0xff]  ;;  %v10204_v51 = vld [vmem:[#allocation43_spill] sm:$0xff] }
 0x7b7   :  { %v10205_v30 = vld [vmem:[#allocation44_spill] sm:$0xff]  ;;  %v10208_v17 = vld [vmem:[#allocation47_spill] sm:$0xff] }
 0x7b8   :  { %v2631_v59 = vmul.f32 %v2625_v16, %v7326_v25  ;;  %v2630_v28 = vadd.f32 0.5, %v2629_v15  ;;  %v10166_v25 = vld [vmem:[#allocation122_spill] sm:$0xff]  ;;  %v10206_v16 = vld [vmem:[#allocation45_spill] sm:$0xff]  ;;  %v10209_v15 = vld [vmem:[#allocation52_spill] sm:$0xff] }
 0x7ba   :  { %v7596_v47 = vadd.f32 %v2632_v22, %v2631_v59  ;;  %v10196_v22 = vld [vmem:[#allocation35_spill] sm:$0xff]  ;;  %v10207_v59 = vld [vmem:[#allocation46_spill] sm:$0xff] }
 0x7bc   :  { %4859 = vtanh.f32 %v7596_v47 }
 0x7c9   :  { %v4860_v54 = vpop.eup %4859 }
 0x7ca   :  { %v7599_v6 = vmul.f32 %v4860_v54, %v2630_v28  ;;  %v10210_v28 = vld [vmem:[#allocation53_spill] sm:$0xff]  ;;  %v10211_v54 = vld [vmem:[#allocation132_spill] sm:$0xff] }
 0x7cc   :  { %2701 = vmatmul.mubr.f32.vlgmr.msra.gmra.mxu0 %v7599_v6  ;;  %2772 = vmatmul.mubr.f32.vlgmr.msra.gmra.mxu1 %v7599_v6 }
 0x7cd   :  { %2779 = vmatpush1.msra.mxu0 %v7043_v55  ;;  %2850 = vmatpush1.msra.mxu1 %v7046_v44  ;;  %v10150_v55 = vld [vmem:[#allocation82_spill] sm:$0xff]  ;;  %v10151_v44 = vld [vmem:[#allocation83_spill] sm:$0xff] }
 0x7ce   :  { %2780 = vmatprep.subr.mxu0 %v7049_v19  ;;  %2851 = vmatprep.subr.mxu1 %v7052_v43  ;;  %v10152_v19 = vld [vmem:[#allocation88_spill] sm:$0xff]  ;;  %v10153_v43 = vld [vmem:[#allocation89_spill] sm:$0xff] }
 0x7cf   :  { %2781 = vmatpush1.msra.mxu0 %v7055_v18  ;;  %2852 = vmatpush1.msra.mxu1 %v7058_v48  ;;  %v10154_v18 = vld [vmem:[#allocation91_spill] sm:$0xff]  ;;  %v10155_v48 = vld [vmem:[#allocation92_spill] sm:$0xff] }
 0x7d0   :  { %2782 = vmatprep.subr.mxu0 %v7061_v1  ;;  %2853 = vmatprep.subr.mxu1 %v7064_v60  ;;  %v10156_v1 = vld [vmem:[#allocation93_spill] sm:$0xff]  ;;  %v10157_v60 = vld [vmem:[#allocation94_spill] sm:$0xff] }
 0x7d1   :  { %2783 = vmatpush1.msra.mxu0 %v7067_v9  ;;  %2854 = vmatpush1.msra.mxu1 %v7070_v12  ;;  %v10158_v9 = vld [vmem:[#allocation96_spill] sm:$0xff]  ;;  %v10159_v12 = vld [vmem:[#allocation97_spill] sm:$0xff] }
 0x7d2   :  { %2784 = vmatprep.subr.mxu0 %v7073_v20  ;;  %2855 = vmatprep.subr.mxu1 %v7076_v53  ;;  %v10160_v20 = vld [vmem:[#allocation98_spill] sm:$0xff]  ;;  %v10161_v53 = vld [vmem:[#allocation99_spill] sm:$0xff] }
 0x7d3   :  { %2785 = vmatpush1.msra.mxu0 %v7079_v49  ;;  %2856 = vmatpush1.msra.mxu1 %v10036_v5  ;;  %v10162_v49 = vld [vmem:[#allocation100_spill] sm:$0xff]  ;;  %v10167_v5 = vld [vmem:[#allocation101_spill] sm:$0xff] }
 0x7d4   :  { %2786 = vmatprep.subr.mxu0 %v10037_v31  ;;  %2857 = vmatprep.subr.mxu1 %v10038_v32  ;;  %v10169_v31 = vld [vmem:[#allocation102_spill] sm:$0xff]  ;;  %v10170_v32 = vld [vmem:[#allocation103_spill] sm:$0xff] }
 0x7d5   :  { %2787 = vmatpush1.msra.mxu0 %v10039_v33  ;;  %2858 = vmatpush1.msra.mxu1 %v10040_v34  ;;  %v10171_v33 = vld [vmem:[#allocation104_spill] sm:$0xff]  ;;  %v10172_v34 = vld [vmem:[#allocation105_spill] sm:$0xff] }
 0x7d6   :  { %2788 = vmatprep.subr.mxu0 %v10041_v35  ;;  %2859 = vmatprep.subr.mxu1 %v10042_v36  ;;  %v10173_v35 = vld [vmem:[#allocation106_spill] sm:$0xff]  ;;  %v10174_v36 = vld [vmem:[#allocation107_spill] sm:$0xff] }
 0x7d7   :  { %2789 = vmatpush1.msra.mxu0 %v10043_v10  ;;  %2860 = vmatpush1.msra.mxu1 %v10044_v3  ;;  %v10175_v10 = vld [vmem:[#allocation108_spill] sm:$0xff]  ;;  %v10176_v3 = vld [vmem:[#allocation113_spill] sm:$0xff] }
 0x7d8   :  { %2790 = vmatprep.subr.mxu0 %v10045_v11  ;;  %2861 = vmatprep.subr.mxu1 %v10046_v4  ;;  %v10177_v11 = vld [vmem:[#allocation114_spill] sm:$0xff]  ;;  %v10178_v4 = vld [vmem:[#allocation115_spill] sm:$0xff] }
 0x7d9   :  { %2791 = vmatpush1.msra.mxu0 %v10047_v13  ;;  %2862 = vmatpush1.msra.mxu1 %v10048_v14  ;;  %v10179_v13 = vld [vmem:[#allocation116_spill] sm:$0xff]  ;;  %v10180_v14 = vld [vmem:[#allocation23_spill] sm:$0xff] }
 0x7da   :  { %2792 = vmatprep.subr.mxu0 %v10049_v63  ;;  %2863 = vmatprep.subr.mxu1 %v10050_v8  ;;  %v10181_v63 = vld [vmem:[#allocation24_spill] sm:$0xff]  ;;  %v10182_v8 = vld [vmem:[#allocation121_spill] sm:$0xff] }
 0x7db   :  { %2793 = vmatpush1.msra.mxu0 %v10051_v45  ;;  %2864 = vmatpush1.msra.mxu1 %v10052_v2  ;;  %v10183_v45 = vld [vmem:[#allocation125_spill] sm:$0xff]  ;;  %v10184_v2 = vld [vmem:[#allocation123_spill] sm:$0xff] }
 0x7dc   :  { %2794 = vmatprep.subr.mxu0 %v10053_v42  ;;  %2865 = vmatprep.subr.mxu1 %v10054_v50  ;;  %v10185_v42 = vld [vmem:[#allocation126_spill] sm:$0xff]  ;;  %v10186_v50 = vld [vmem:[#allocation29_spill] sm:$0xff] }
 0x7dd   :  { %2795 = vmatpush1.msra.mxu0 %v10055_v62  ;;  %2866 = vmatpush1.msra.mxu1 %v10056_v58  ;;  %v10187_v62 = vld [vmem:[#allocation30_spill] sm:$0xff]  ;;  %v10188_v58 = vld [vmem:[#allocation31_spill] sm:$0xff] }
 0x7de   :  { %2796 = vmatprep.subr.mxu0 %v10057_v0  ;;  %2867 = vmatprep.subr.mxu1 %v10058_v52  ;;  %v10189_v0 = vld [vmem:[#allocation127_spill] sm:$0xff]  ;;  %v10190_v52 = vld [vmem:[#allocation133_spill] sm:$0xff] }
 0x7df   :  { %2797 = vmatpush1.msra.mxu0 %v10059_v57  ;;  %2868 = vmatpush1.msra.mxu1 %v10060_v46  ;;  %v10191_v57 = vld [vmem:[#allocation131_spill] sm:$0xff]  ;;  %v10192_v46 = vld [vmem:[#allocation134_spill] sm:$0xff] }
 0x7e0   :  { %2798 = vmatprep.subr.mxu0 %v10061_v40  ;;  %2869 = vmatprep.subr.mxu1 %v10062_v41  ;;  %v10193_v40 = vld [vmem:[#allocation32_spill] sm:$0xff]  ;;  %v10194_v41 = vld [vmem:[#allocation33_spill] sm:$0xff] }
 0x7e1   :  { %2799 = vmatpush1.msra.mxu0 %v10063_v21  ;;  %2870 = vmatpush1.msra.mxu1 %v10150_v55  ;;  %v10195_v21 = vld [vmem:[#allocation34_spill] sm:$0xff]  ;;  %v10213_v55 = vld [vmem:[#allocation135_spill] sm:$0xff] }
 0x7e2   :  { %2800 = vmatprep.subr.mxu0 %v10151_v44  ;;  %2871 = vmatprep.subr.mxu1 %v10152_v19  ;;  %v10214_v44 = vld [vmem:[#allocation137_spill] sm:$0xff]  ;;  %v10215_v19 = vld [vmem:[#allocation66_spill] sm:$0xff] }
 0x7e3   :  { %2801 = vmatpush1.msra.mxu0 %v10153_v43  ;;  %2872 = vmatpush1.msra.mxu1 %v10068_v27  ;;  %v10200_v27 = vld [vmem:[#allocation39_spill] sm:$0xff]  ;;  %v10216_v43 = vld [vmem:[#allocation124_spill] sm:$0xff] }
 0x7e4   :  { %2802 = vmatprep.subr.mxu0 %v10154_v18  ;;  %2873 = vmatprep.subr.mxu1 %v10155_v48  ;;  %v10217_v18 = vld [vmem:[#allocation129_spill] sm:$0xff]  ;;  %v10218_v48 = vld [vmem:[#allocation128_spill] sm:$0xff] }
 0x7e5   :  { %2803 = vmatpush1.msra.mxu0 %v10156_v1  ;;  %2874 = vmatpush1.msra.mxu1 %v10157_v60  ;;  %v10219_v1 = vld [vmem:[#allocation130_spill] sm:$0xff]  ;;  %v10220_v60 = vld [vmem:[#allocation57_spill] sm:$0xff] }
 0x7e6   :  { %2804 = vmatprep.subr.mxu0 %v10073_v7  ;;  %2875 = vmatprep.subr.mxu1 %v10158_v9  ;;  %v10168_v7 = vmov 0.0   ;;  %v10221_v9 = vld [vmem:[#allocation58_spill] sm:$0xff] }
 0x7e7   :  { %2805 = vmatpush1.msra.mxu0 %v10159_v12  ;;  %2876 = vmatpush1.msra.mxu1 %v10160_v20  ;;  %v10222_v12 = vld [vmem:[#allocation59_spill] sm:$0xff]  ;;  %v10223_v20 = vld [vmem:[#allocation60_spill] sm:$0xff] }
 0x7e8   :  { %2806 = vmatprep.subr.mxu0 %v10161_v53  ;;  %2877 = vmatprep.subr.mxu1 %v10162_v49  ;;  %v10224_v53 = vld [vmem:[#allocation62_spill] sm:$0xff]  ;;  %v10225_v49 = vld [vmem:[#allocation63_spill] sm:$0xff] }
 0x7e9   :  { %2807 = vmatpush1.msra.mxu0 %v10163_v56  ;;  %2878 = vmatpush1.msra.mxu1 %v10164_v39  ;;  %v10226_v56 = vld [vmem:[#allocation64_spill] sm:$0xff]  ;;  %v10227_v39 = vld [vmem:[#allocation65_spill] sm:$0xff] }
 0x7ea   :  { %2808 = vmatprep.subr.mxu0 %v10165_v61  ;;  %2879 = vmatprep.subr.mxu1 %v10166_v25  ;;  %v10228_v61 = vld [vmem:[#allocation67_spill] sm:$0xff]  ;;  %v10229_v25 = vld [vmem:[#allocation68_spill] sm:$0xff] }
 0x7eb   :  { %2809 = vmatpush1.msra.mxu0 %v10167_v5  ;;  %2842 = vmatprep.mubr.f32.mxu0 %v10168_v7  ;;  %v10230_v5 = vld [vmem:[#allocation69_spill] sm:$0xff] }
 0x7ec   :  { %2880 = vmatpush1.msra.mxu1 %v10169_v31  ;;  %2913 = vmatprep.mubr.f32.mxu1 %v10168_v7  ;;  %v10231_v31 = vld [vmem:[#allocation70_spill] sm:$0xff] }
 0x7ed   :  { %2843 = vmatmul.mubr.f32.vlgmr.msra.gmra.mxu0 %v7599_v6  ;;  %2914 = vmatmul.mubr.f32.vlgmr.msra.gmra.mxu1 %v7599_v6  ;;  %v10212_v6 = vld [vmem:[#allocation136_spill] sm:$0xff] }
 0x7ee   :  { %2942 = vmatprep.subr.mxu0 %v10170_v32  ;;  %3013 = vmatprep.subr.mxu1 %v10171_v33  ;;  %v10232_v32 = vld [vmem:[#allocation71_spill] sm:$0xff]  ;;  %v10233_v33 = vld [vmem:[#allocation72_spill] sm:$0xff] }
 0x7ef   :  { %2943 = vmatpush1.msra.mxu0 %v10172_v34  ;;  %3014 = vmatpush1.msra.mxu1 %v10173_v35  ;;  %v7735_v34 = vld [vmem:[#allocation10 + $0x1e8] sm:$0xff]  ;;  %v7737_v35 = vld [vmem:[#allocation10 + $0x1f8] sm:$0xff] }
 0x7f0   :  { %2944 = vmatprep.subr.mxu0 %v10174_v36  ;;  %3015 = vmatprep.subr.mxu1 %v10175_v10  ;;  %10234 = vst [vmem:[#allocation77_spill] sm:$0xff] %v7735_v34  ;;  %10235 = vst [vmem:[#allocation78_spill] sm:$0xff] %v7737_v35 }
 0x7f1   :  { %2945 = vmatpush1.msra.mxu0 %v10176_v3  ;;  %3016 = vmatpush1.msra.mxu1 %v10177_v11 }
 0x7f2   :  { %2946 = vmatprep.subr.mxu0 %v10178_v4  ;;  %3017 = vmatprep.subr.mxu1 %v10179_v13  ;;  %v10240_v13 = vld [vmem:[#allocation142_spill] sm:$0xff] }
 0x7f3   :  { %2947 = vmatpush1.msra.mxu0 %v10180_v14  ;;  %3018 = vmatpush1.msra.mxu1 %v10181_v63 }
 0x7f4   :  { %2948 = vmatprep.subr.mxu0 %v10182_v8  ;;  %3019 = vmatprep.subr.mxu1 %v10183_v45 }
 0x7f5   :  { %2949 = vmatpush1.msra.mxu0 %v10184_v2  ;;  %3020 = vmatpush1.msra.mxu1 %v10185_v42  ;;  %v10241_v2 = vld [vmem:[#allocation144_spill] sm:$0xff] }
 0x7f6   :  { %2950 = vmatprep.subr.mxu0 %v10186_v50  ;;  %3021 = vmatprep.subr.mxu1 %v10187_v62  ;;  %v10242_v50 = vld [vmem:[#allocation143_spill] sm:$0xff] }
 0x7f7   :  { %2951 = vmatpush1.msra.mxu0 %v10188_v58  ;;  %3022 = vmatpush1.msra.mxu1 %v10189_v0 }
 0x7f8   :  { %2952 = vmatprep.subr.mxu0 %v10190_v52  ;;  %3023 = vmatprep.subr.mxu1 %v10191_v57  ;;  %v10243_v52 = vld [vmem:[#allocation145_spill] sm:$0xff] }
 0x7f9   :  { %2953 = vmatpush1.msra.mxu0 %v10192_v46  ;;  %3024 = vmatpush1.msra.mxu1 %v10193_v40 }
 0x7fa   :  { %2954 = vmatprep.subr.mxu0 %v10194_v41  ;;  %3025 = vmatprep.subr.mxu1 %v10195_v21 }
 0x7fb   :  { %2955 = vmatpush1.msra.mxu0 %v10196_v22  ;;  %3026 = vmatpush1.msra.mxu1 %v10197_v23 }
 0x7fc   :  { %2956 = vmatprep.subr.mxu0 %v10198_v24  ;;  %3027 = vmatprep.subr.mxu1 %v10199_v26 }
 0x7fd   :  { %2957 = vmatpush1.msra.mxu0 %v10200_v27  ;;  %3028 = vmatpush1.msra.mxu1 %v10201_v29 }
 0x7fe   :  { %2958 = vmatprep.subr.mxu0 %v10202_v37  ;;  %3029 = vmatprep.subr.mxu1 %v10203_v38 }
 0x7ff   :  { %2959 = vmatpush1.msra.mxu0 %v10204_v51  ;;  %3030 = vmatpush1.msra.mxu1 %v10205_v30 }
 0x800   :  { %2960 = vmatprep.subr.mxu0 %v10206_v16  ;;  %3031 = vmatprep.subr.mxu1 %v10207_v59 }
 0x801   :  { %2961 = vmatpush1.msra.mxu0 %v10208_v17  ;;  %3032 = vmatpush1.msra.mxu1 %v10209_v15  ;;  %v7754_v17 = vld [vmem:[#allocation10 + $0x1e0] sm:$0xff]  ;;  %v7756_v15 = vld [vmem:[#allocation10 + $0x1f0] sm:$0xff] }
 0x802   :  { %2962 = vmatprep.subr.mxu0 %v10210_v28  ;;  %3033 = vmatprep.subr.mxu1 %v10211_v54  ;;  %v7758_v28 = vld [vmem:[#allocation10 + $0x1c8] sm:$0xff]  ;;  %v7760_v54 = vld [vmem:[#allocation10 + $0x1d8] sm:$0xff] }
 0x803   :  { %2963 = vmatpush1.msra.mxu0 %v10212_v6  ;;  %3034 = vmatpush1.msra.mxu1 %v10213_v55  ;;  %v7762_v6 = vld [vmem:[#allocation10 + $0x1c0] sm:$0xff]  ;;  %v7768_v55 = vld [vmem:[#allocation10 + $0x1a8] sm:$0xff] }
 0x804   :  { %2964 = vmatprep.subr.mxu0 %v10214_v44  ;;  %3035 = vmatprep.subr.mxu1 %v10215_v19  ;;  %v7770_v44 = vld [vmem:[#allocation10 + $0x1b8] sm:$0xff]  ;;  %v7774_v19 = vld [vmem:[#allocation10 + $0x1a0] sm:$0xff] }
 0x805   :  { %2965 = vmatpush1.msra.mxu0 %v10216_v43  ;;  %3036 = vmatpush1.msra.mxu1 %v10217_v18  ;;  %v7776_v43 = vld [vmem:[#allocation10 + $0x1b0] sm:$0xff]  ;;  %v7780_v18 = vld [vmem:[#allocation10 + $0x188] sm:$0xff] }
 0x806   :  { %2966 = vmatprep.subr.mxu0 %v10218_v48  ;;  %3037 = vmatprep.subr.mxu1 %v10219_v1  ;;  %v7782_v48 = vld [vmem:[#allocation10 + $0x198] sm:$0xff]  ;;  %v7786_v1 = vld [vmem:[#allocation10 + $0x180] sm:$0xff] }
 0x807   :  { %2967 = vmatpush1.msra.mxu0 %v10220_v60  ;;  %3038 = vmatpush1.msra.mxu1 %v10221_v9  ;;  %v7788_v60 = vld [vmem:[#allocation10 + $0x190] sm:$0xff]  ;;  %v7792_v9 = vld [vmem:[#allocation10 + $0x168] sm:$0xff] }
 0x808   :  { %2968 = vmatprep.subr.mxu0 %v10222_v12  ;;  %3039 = vmatprep.subr.mxu1 %v10223_v20  ;;  %v7794_v12 = vld [vmem:[#allocation10 + $0x178] sm:$0xff]  ;;  %v7798_v20 = vld [vmem:[#allocation10 + $0x160] sm:$0xff] }
 0x809   :  { %2969 = vmatpush1.msra.mxu0 %v10224_v53  ;;  %3040 = vmatpush1.msra.mxu1 %v10225_v49  ;;  %v7800_v53 = vld [vmem:[#allocation10 + $0x170] sm:$0xff]  ;;  %v7804_v49 = vld [vmem:[#allocation10 + $0x148] sm:$0xff] }
 0x80a   :  { %2970 = vmatprep.subr.mxu0 %v10226_v56  ;;  %3041 = vmatprep.subr.mxu1 %v10227_v39  ;;  %v7806_v56 = vld [vmem:[#allocation10 + $0x158] sm:$0xff]  ;;  %v7810_v39 = vld [vmem:[#allocation10 + $0x140] sm:$0xff] }
 0x80b   :  { %2971 = vmatpush1.msra.mxu0 %v10228_v61  ;;  %3042 = vmatpush1.msra.mxu1 %v10229_v25  ;;  %v7812_v61 = vld [vmem:[#allocation10 + $0x150] sm:$0xff]  ;;  %v7816_v25 = vld [vmem:[#allocation10 + $0x128] sm:$0xff] }
 0x80c   :  { %2972 = vmatprep.subr.mxu0 %v10230_v5  ;;  %3043 = vmatprep.subr.mxu1 %v10231_v31  ;;  %v7818_v5 = vld [vmem:[#allocation10 + $0x138] sm:$0xff]  ;;  %v7822_v31 = vld [vmem:[#allocation10 + $0x120] sm:$0xff] }
 0x80d   :  { %2973 = vmatpush1.msra.mxu0 %v10232_v32  ;;  %3044 = vmatpush1.msra.mxu1 %v10233_v33  ;;  %v7824_v32 = vld [vmem:[#allocation10 + $0x130] sm:$0xff]  ;;  %v7828_v33 = vld [vmem:[#allocation10 + $0x108] sm:$0xff] }
 0x80e   :  { %3006 = vmatprep.mubr.f32.mxu0 %v10168_v7  ;;  %3077 = vmatprep.mubr.f32.mxu1 %v10168_v7 }
 0x80f   :  { %3148 = vmatprep.subr.mxu0 %v7735_v34  ;;  %3219 = vmatprep.subr.mxu1 %v7737_v35 }
 0x88c   :  { %v7741_v36 = vpop.f32.mrf.mxu0  ;;  %v7743_v10 = vpop.f32.mrf.mxu1 }
 0x88d   :  { %10236 = vst [vmem:[#allocation79_spill] sm:$0xff] %v7741_v36  ;;  %10237 = vst [vmem:[#allocation80_spill] sm:$0xff] %v7743_v10  ;;  %v7924_v10 = vld [vmem:[#allocation10 + $0x8] sm:$0xff]  ;;  %v7930_v36 = vld [vmem:[#allocation10] sm:$0xff] }
 0x88e   :  { %v7745_v3 = vpop.f32.mrf.mxu0  ;;  %v7747_v11 = vpop.f32.mrf.mxu1  ;;  %10262 = vst [vmem:[#allocation118_spill] sm:$0xff] %v7924_v10  ;;  %10264 = vst [vmem:[#allocation119_spill] sm:$0xff] %v7930_v36 }
 0x88f   :  { %10238 = vst [vmem:[#allocation81_spill] sm:$0xff] %v7745_v3  ;;  %10239 = vst [vmem:[#allocation90_spill] sm:$0xff] %v7747_v11  ;;  %v7920_v11 = vld [vmem:[#allocation10 + $0x30] sm:$0xff]  ;;  %v7926_v3 = vld [vmem:[#allocation10 + $0x18] sm:$0xff] }
 0x890   :  { %10261 = vst [vmem:[#allocation100_spill] sm:$0xff] %v7920_v11  ;;  %10263 = vst [vmem:[#allocation120_spill] sm:$0xff] %v7926_v3 }
 0x8ad   :  { %v2844_v4 = vpop.f32.mrf.mxu0  ;;  %v2915_v63 = vpop.f32.mrf.mxu1 }
 0x8ae   :  { %v2920_v14 = vadd.f32 %v2844_v4, %v10240_v13  ;;  %v2922_v62 = vadd.f32 %v2915_v63, %v10242_v50  ;;  %v7830_v4 = vld [vmem:[#allocation10 + $0x118] sm:$0xff]  ;;  %v7834_v13 = vld [vmem:[#allocation10 + $0x100] sm:$0xff]  ;;  %v7840_v63 = vld [vmem:[#allocation10 + $0xe8] sm:$0xff] }
 0x8af   :  { %v2846_v8 = vpop.f32.mrf.mxu0  ;;  %v2917_v0 = vpop.f32.mrf.mxu1  ;;  %v7854_v50 = vld [vmem:[#allocation10 + $0xd8] sm:$0xff] }
 0x8b0   :  { %v2924_v45 = vmul.f32 0.5, %v2920_v14  ;;  %v2921_v42 = vadd.f32 %v2846_v8, %v10241_v2  ;;  %v2923_v57 = vadd.f32 %v2917_v0, %v10243_v52  ;;  %v7836_v14 = vld [vmem:[#allocation10 + $0x110] sm:$0xff]  ;;  %v7842_v8 = vld [vmem:[#allocation10 + $0xf8] sm:$0xff]  ;;  %v7864_v0 = vld [vmem:[#allocation10 + $0xa8] sm:$0xff] }
 0x8b1   :  { %v7848_v2 = vld [vmem:[#allocation10 + $0xf0] sm:$0xff]  ;;  %v7866_v52 = vld [vmem:[#allocation10 + $0xb8] sm:$0xff] }
 0x8b2   :  { %4861 = vtanh.f32 %v2924_v45  ;;  %v2928_v58 = vmul.f32 0.5, %v2921_v42  ;;  %v2933_v46 = vmul.f32 0.5, %v2923_v57  ;;  %v7846_v45 = vld [vmem:[#allocation10 + $0xe0] sm:$0xff]  ;;  %v7852_v42 = vld [vmem:[#allocation10 + $0xc8] sm:$0xff] }
 0x8b3   :  { %v7870_v57 = vld [vmem:[#allocation10 + $0xa0] sm:$0xff] }
 0x8b4   :  { %4863 = vtanh.f32 %v2928_v58  ;;  %v7860_v58 = vld [vmem:[#allocation10 + $0xd0] sm:$0xff]  ;;  %10244 = vst [vmem:[#allocation95_spill] sm:$0xff] %v7870_v57 }
 0x8b5   :  { %4865 = vtanh.f32 %v2922_v62  ;;  %v7858_v62 = vld [vmem:[#allocation10 + $0xc0] sm:$0xff] }
 0x8b6   :  { %4867 = vtanh.f32 %v2933_v46  ;;  %v7872_v46 = vld [vmem:[#allocation10 + $0xb0] sm:$0xff] }
 0x8b7   :  { %10245 = vst [vmem:[#allocation138_spill] sm:$0xff] %v7872_v46 }
 0x8bf   :  { %v4862_v40 = vpop.eup %4861 }
 0x8c0   :  { %v2926_v41 = vmul.f32 0.5, %v4862_v40  ;;  %v7876_v40 = vld [vmem:[#allocation10 + $0x88] sm:$0xff] }
 0x8c1   :  { %v4864_v21 = vpop.eup %4863  ;;  %10246 = vst [vmem:[#allocation140_spill] sm:$0xff] %v7876_v40 }
 0x8c2   :  { %v2927_v22 = vadd.f32 0.5, %v2926_v41  ;;  %v2930_v23 = vmul.f32 0.5, %v4864_v21  ;;  %v4866_v24 = vpop.eup %4865  ;;  %v7878_v41 = vld [vmem:[#allocation10 + $0x98] sm:$0xff]  ;;  %v7882_v21 = vld [vmem:[#allocation10 + $0x80] sm:$0xff] }
 0x8c3   :  { %v4868_v38 = vpop.eup %4867  ;;  %10247 = vst [vmem:[#allocation139_spill] sm:$0xff] %v7878_v41  ;;  %10248 = vst [vmem:[#allocation141_spill] sm:$0xff] %v7882_v21 }
 0x8c4   :  { %v2931_v26 = vadd.f32 0.5, %v2930_v23  ;;  %v2938_v27 = vmul.f32 %v4866_v24, %v2927_v22  ;;  %v2935_v51 = vmul.f32 0.5, %v4868_v38  ;;  %v7884_v22 = vld [vmem:[#allocation10 + $0x90] sm:$0xff]  ;;  %v7888_v23 = vld [vmem:[#allocation10 + $0x68] sm:$0xff]  ;;  %v7890_v24 = vld [vmem:[#allocation10 + $0x78] sm:$0xff] }
 0x8c5   :  { %10249 = vst [vmem:[#allocation82_spill] sm:$0xff] %v7884_v22  ;;  %10250 = vst [vmem:[#allocation83_spill] sm:$0xff] %v7888_v23  ;;  %v7906_v38 = vld [vmem:[#allocation10 + $0x40] sm:$0xff] }
 0x8c6   :  { %v2937_v29 = vmul.f32 %v2931_v26, %v7596_v47  ;;  %v2936_v30 = vadd.f32 0.5, %v2935_v51  ;;  %v7764_v47 = vld [vmem:[#allocation10 + $0x1d0] sm:$0xff]  ;;  %10251 = vst [vmem:[#allocation88_spill] sm:$0xff] %v7890_v24  ;;  %v7894_v26 = vld [vmem:[#allocation10 + $0x60] sm:$0xff]  ;;  %10256 = vst [vmem:[#allocation94_spill] sm:$0xff] %v7906_v38 }
 0x8c7   :  { %10252 = vst [vmem:[#allocation89_spill] sm:$0xff] %v7894_v26  ;;  %v7908_v51 = vld [vmem:[#allocation10 + $0x50] sm:$0xff] }
 0x8c8   :  { %v2939_v37 = vadd.f32 %v2938_v27, %v2937_v29  ;;  %v7896_v27 = vld [vmem:[#allocation10 + $0x70] sm:$0xff]  ;;  %v7900_v29 = vld [vmem:[#allocation10 + $0x48] sm:$0xff]  ;;  %10257 = vst [vmem:[#allocation96_spill] sm:$0xff] %v7908_v51 }
 0x8c9   :  { %10253 = vst [vmem:[#allocation91_spill] sm:$0xff] %v7896_v27  ;;  %10254 = vst [vmem:[#allocation92_spill] sm:$0xff] %v7900_v29 }
 0x8ca   :  { %4869 = vtanh.f32 %v2939_v37  ;;  %v7902_v37 = vld [vmem:[#allocation10 + $0x58] sm:$0xff] }
 0x8cb   :  { %10255 = vst [vmem:[#allocation93_spill] sm:$0xff] %v7902_v37 }
 0x8d7   :  { %v4870_v16 = vpop.eup %4869 }
 0x8d8   :  { %v2941_v59 = vmul.f32 %v4870_v16, %v2936_v30  ;;  %v7912_v30 = vld [vmem:[#allocation10 + $0x28] sm:$0xff]  ;;  %v7914_v16 = vld [vmem:[#allocation10 + $0x38] sm:$0xff] }
 0x8d9   :  { %10258 = vst [vmem:[#allocation97_spill] sm:$0xff] %v7912_v30  ;;  %10259 = vst [vmem:[#allocation98_spill] sm:$0xff] %v7914_v16 }
 0x8da   :  { %3007 = vmatmul.mubr.f32.vlgmr.msra.gmra.mxu0 %v2941_v59  ;;  %3078 = vmatmul.mubr.f32.vlgmr.msra.gmra.mxu1 %v2941_v59  ;;  %v7918_v59 = vld [vmem:[#allocation10 + $0x20] sm:$0xff] }
 0x8db   :  { %3149 = vmatpush1.msra.mxu0 %v7754_v17  ;;  %3220 = vmatpush1.msra.mxu1 %v7756_v15  ;;  %10260 = vst [vmem:[#allocation99_spill] sm:$0xff] %v7918_v59 }
 0x8dc   :  { %3150 = vmatprep.subr.mxu0 %v7758_v28  ;;  %3221 = vmatprep.subr.mxu1 %v7760_v54 }
 0x8dd   :  { %3151 = vmatpush1.msra.mxu0 %v7762_v6  ;;  %3222 = vmatpush1.msra.mxu1 %v7764_v47 }
 0x8de   :  { %3152 = vmatprep.subr.mxu0 %v7768_v55  ;;  %3223 = vmatprep.subr.mxu1 %v7770_v44 }
 0x8df   :  { %3153 = vmatpush1.msra.mxu0 %v7774_v19  ;;  %3224 = vmatpush1.msra.mxu1 %v7776_v43 }
 0x8e0   :  { %3154 = vmatprep.subr.mxu0 %v7780_v18  ;;  %3225 = vmatprep.subr.mxu1 %v7782_v48 }
 0x8e1   :  { %3155 = vmatpush1.msra.mxu0 %v7786_v1  ;;  %3226 = vmatpush1.msra.mxu1 %v7788_v60 }
 0x8e2   :  { %3156 = vmatprep.subr.mxu0 %v7792_v9  ;;  %3227 = vmatprep.subr.mxu1 %v7794_v12 }
 0x8e3   :  { %3157 = vmatpush1.msra.mxu0 %v7798_v20  ;;  %3228 = vmatpush1.msra.mxu1 %v7800_v53 }
 0x8e4   :  { %3158 = vmatprep.subr.mxu0 %v7804_v49  ;;  %3229 = vmatprep.subr.mxu1 %v7806_v56 }
 0x8e5   :  { %3159 = vmatpush1.msra.mxu0 %v7810_v39  ;;  %3230 = vmatpush1.msra.mxu1 %v7812_v61 }
 0x8e6   :  { %3160 = vmatprep.subr.mxu0 %v7816_v25  ;;  %3231 = vmatprep.subr.mxu1 %v7818_v5 }
 0x8e7   :  { %3161 = vmatpush1.msra.mxu0 %v7822_v31  ;;  %3232 = vmatpush1.msra.mxu1 %v7824_v32 }
 0x8e8   :  { %3162 = vmatprep.subr.mxu0 %v7828_v33  ;;  %3233 = vmatprep.subr.mxu1 %v7830_v4 }
 0x8e9   :  { %3163 = vmatpush1.msra.mxu0 %v7834_v13  ;;  %3234 = vmatpush1.msra.mxu1 %v7836_v14 }
 0x8ea   :  { %3164 = vmatprep.subr.mxu0 %v7840_v63  ;;  %3235 = vmatprep.subr.mxu1 %v7842_v8 }
 0x8eb   :  { %3165 = vmatpush1.msra.mxu0 %v7846_v45  ;;  %3236 = vmatpush1.msra.mxu1 %v7848_v2 }
 0x8ec   :  { %3166 = vmatprep.subr.mxu0 %v7852_v42  ;;  %3237 = vmatprep.subr.mxu1 %v7854_v50 }
 0x8ed   :  { %3167 = vmatpush1.msra.mxu0 %v7858_v62  ;;  %3238 = vmatpush1.msra.mxu1 %v7860_v58 }
 0x8ee   :  { %3168 = vmatprep.subr.mxu0 %v7864_v0  ;;  %3239 = vmatprep.subr.mxu1 %v7866_v52 }
 0x8ef   :  { %3169 = vmatpush1.msra.mxu0 %v7870_v57  ;;  %3240 = vmatpush1.msra.mxu1 %v7872_v46 }
 0x8f0   :  { %3170 = vmatprep.subr.mxu0 %v7876_v40  ;;  %3241 = vmatprep.subr.mxu1 %v7878_v41 }
 0x8f1   :  { %3171 = vmatpush1.msra.mxu0 %v7882_v21  ;;  %3242 = vmatpush1.msra.mxu1 %v7884_v22 }
 0x8f2   :  { %3172 = vmatprep.subr.mxu0 %v7888_v23  ;;  %3243 = vmatprep.subr.mxu1 %v7890_v24 }
 0x8f3   :  { %3173 = vmatpush1.msra.mxu0 %v7894_v26  ;;  %3244 = vmatpush1.msra.mxu1 %v7896_v27 }
 0x8f4   :  { %3174 = vmatprep.subr.mxu0 %v7900_v29  ;;  %3245 = vmatprep.subr.mxu1 %v7902_v37  ;;  %v7934_v37 = vld [vmem:[#allocation10 + $0x10] sm:$0xff] }
 0x8f5   :  { %3175 = vmatpush1.msra.mxu0 %v7906_v38  ;;  %3246 = vmatpush1.msra.mxu1 %v7908_v51  ;;  %10265 = vst [vmem:[#allocation122_spill] sm:$0xff] %v7934_v37 }
 0x8f6   :  { %3176 = vmatprep.subr.mxu0 %v7912_v30  ;;  %3247 = vmatprep.subr.mxu1 %v7914_v16 }
 0x8f7   :  { %3177 = vmatpush1.msra.mxu0 %v7918_v59  ;;  %3248 = vmatpush1.msra.mxu1 %v7920_v11 }
 0x8f8   :  { %3178 = vmatprep.subr.mxu0 %v7924_v10  ;;  %3249 = vmatprep.subr.mxu1 %v7926_v3 }
 0x8f9   :  { %3179 = vmatpush1.msra.mxu0 %v7930_v36  ;;  %3212 = vmatprep.mubr.f32.mxu0 %v10168_v7 }
 0x8fa   :  { %3250 = vmatpush1.msra.mxu1 %v7934_v37  ;;  %3283 = vmatprep.mubr.f32.mxu1 %v10168_v7 }
 0x8fb   :  { %3213 = vmatmul.mubr.f32.vlgmr.msra.gmra.mxu0 %v10168_v7  ;;  %3284 = vmatmul.mubr.f32.vlgmr.msra.gmra.mxu1 %v10168_v7 }
 0x8fc   :  { %3312 = vmatprep.subr.mxu0 %v7735_v34  ;;  %3383 = vmatprep.subr.mxu1 %v7737_v35 }
 0x8fd   :  { %3313 = vmatpush1.msra.mxu0 %v7754_v17  ;;  %3384 = vmatpush1.msra.mxu1 %v7756_v15 }
 0x8fe   :  { %3314 = vmatprep.subr.mxu0 %v7758_v28  ;;  %3385 = vmatprep.subr.mxu1 %v7760_v54 }
 0x8ff   :  { %3315 = vmatpush1.msra.mxu0 %v7762_v6  ;;  %3386 = vmatpush1.msra.mxu1 %v7764_v47 }
 0x900   :  { %3316 = vmatprep.subr.mxu0 %v7768_v55  ;;  %3387 = vmatprep.subr.mxu1 %v7770_v44 }
 0x901   :  { %3317 = vmatpush1.msra.mxu0 %v7774_v19  ;;  %3388 = vmatpush1.msra.mxu1 %v7776_v43 }
 0x902   :  { %3318 = vmatprep.subr.mxu0 %v7780_v18  ;;  %3389 = vmatprep.subr.mxu1 %v7782_v48 }
 0x903   :  { %3319 = vmatpush1.msra.mxu0 %v7786_v1  ;;  %3390 = vmatpush1.msra.mxu1 %v7788_v60 }
 0x904   :  { %3320 = vmatprep.subr.mxu0 %v7792_v9  ;;  %3391 = vmatprep.subr.mxu1 %v7794_v12 }
 0x905   :  { %3321 = vmatpush1.msra.mxu0 %v7798_v20  ;;  %3392 = vmatpush1.msra.mxu1 %v7800_v53 }
 0x906   :  { %3322 = vmatprep.subr.mxu0 %v7804_v49  ;;  %3393 = vmatprep.subr.mxu1 %v7806_v56 }
 0x907   :  { %3323 = vmatpush1.msra.mxu0 %v7810_v39  ;;  %3394 = vmatpush1.msra.mxu1 %v7812_v61 }
 0x908   :  { %3324 = vmatprep.subr.mxu0 %v7816_v25  ;;  %3395 = vmatprep.subr.mxu1 %v7818_v5 }
 0x909   :  { %3325 = vmatpush1.msra.mxu0 %v7822_v31  ;;  %3396 = vmatpush1.msra.mxu1 %v7824_v32 }
 0x90a   :  { %3326 = vmatprep.subr.mxu0 %v7828_v33  ;;  %3397 = vmatprep.subr.mxu1 %v7830_v4 }
 0x90b   :  { %3327 = vmatpush1.msra.mxu0 %v7834_v13  ;;  %3398 = vmatpush1.msra.mxu1 %v7836_v14 }
 0x90c   :  { %3328 = vmatprep.subr.mxu0 %v7840_v63  ;;  %3399 = vmatprep.subr.mxu1 %v7842_v8 }
 0x90d   :  { %3329 = vmatpush1.msra.mxu0 %v7846_v45  ;;  %3400 = vmatpush1.msra.mxu1 %v7848_v2 }
 0x90e   :  { %3330 = vmatprep.subr.mxu0 %v7852_v42  ;;  %3401 = vmatprep.subr.mxu1 %v7854_v50 }
 0x90f   :  { %3331 = vmatpush1.msra.mxu0 %v7858_v62  ;;  %3402 = vmatpush1.msra.mxu1 %v7860_v58 }
 0x910   :  { %3332 = vmatprep.subr.mxu0 %v7864_v0  ;;  %3403 = vmatprep.subr.mxu1 %v7866_v52 }
 0x911   :  { %3333 = vmatpush1.msra.mxu0 %v7870_v57  ;;  %3404 = vmatpush1.msra.mxu1 %v7872_v46  ;;  %v10266_v57 = vld [vmem:[#allocation93_spill] sm:$0xff] }
 0x912   :  { %3334 = vmatprep.subr.mxu0 %v7876_v40  ;;  %3405 = vmatprep.subr.mxu1 %v7878_v41 }
 0x913   :  { %3335 = vmatpush1.msra.mxu0 %v7882_v21  ;;  %3406 = vmatpush1.msra.mxu1 %v7884_v22 }
 0x914   :  { %3336 = vmatprep.subr.mxu0 %v7888_v23  ;;  %3407 = vmatprep.subr.mxu1 %v7890_v24 }
 0x915   :  { %3337 = vmatpush1.msra.mxu0 %v7894_v26  ;;  %3408 = vmatpush1.msra.mxu1 %v7896_v27 }
 0x916   :  { %3338 = vmatprep.subr.mxu0 %v7900_v29  ;;  %3409 = vmatprep.subr.mxu1 %v10266_v57 }
 0x917   :  { %3339 = vmatpush1.msra.mxu0 %v7906_v38  ;;  %3410 = vmatpush1.msra.mxu1 %v7908_v51 }
 0x918   :  { %3340 = vmatprep.subr.mxu0 %v7912_v30  ;;  %3411 = vmatprep.subr.mxu1 %v7914_v16  ;;  %v614_v16 = vld [vmem:[#allocation11] sm:$0xf] }
 0x919   :  { %3341 = vmatpush1.msra.mxu0 %v7918_v59  ;;  %3412 = vmatpush1.msra.mxu1 %v7920_v11  ;;  %v10268_v11 = vld [vmem:[#allocation117_spill] sm:$0xff] }
 0x91a   :  { %3342 = vmatprep.subr.mxu0 %v7924_v10  ;;  %3413 = vmatprep.subr.mxu1 %v7926_v3  ;;  %v10269_v30 = vsub.s32 0, %v10268_v11  ;;  %v10280_v21 = vsub.s32 3, %v10268_v11 }
 0x91b   :  { %3343 = vmatpush1.msra.mxu0 %v7930_v36  ;;  %3376 = vmatprep.mubr.f32.mxu0 %v10168_v7  ;;  %v10272_v36 = vsub.s32 1, %v10268_v11 }
 0x91c   :  { %3414 = vmatpush1.msra.mxu1 %v7934_v37  ;;  %3447 = vmatprep.mubr.f32.mxu1 %v10168_v7  ;;  %v8016_v10 = vrot.slane %v614_v16, %v10269_v30  ;;  %v10275_v7 = vsub.s32 2, %v10268_v11  ;;  %v10278_v30 = vld [vmem:[#allocation27_spill] sm:$0xff] }
 0x91d   :  { %3476 = vmatprep.subr.mxu0 %v7735_v34  ;;  %3547 = vmatprep.subr.mxu1 %v7737_v35  ;;  %v8022_v51 = vrot.slane %v614_v16, %v10272_v36  ;;  %v10276_v35 = vld [vmem:[#allocation25_spill] sm:$0xff]  ;;  %v10279_v36 = vld [vmem:[#allocation26_spill] sm:$0xff] }
 0x91e   :  { %10270 = vst [vmem:[#allocation102_spill] sm:$0xff] %v8016_v10  ;;  %v8028_v34 = vrot.slane %v614_v16, %v10275_v7  ;;  %v867_v38 = vadd.f32 %v10276_v35, %v8016_v10  ;;  %v8040_v35 = vrot.slane %v614_v16, %v10280_v21 }
 0x91f   :  { %10273 = vst [vmem:[#allocation104_spill] sm:$0xff] %v8022_v51  ;;  %v869_v29 = vadd.f32 %v10278_v30, %v8022_v51  ;;  %v10281_v30 = vld [vmem:[#allocation28_spill] sm:$0xff] }
 0x920   :  { %v938_v24 = vadd.f32 %v10279_v36, %v8028_v34 }
 0x99a   :  { %v8012_v59 = vpop.f32.mrf.mxu0  ;;  %v8018_v3 = vpop.f32.mrf.mxu1 }
 0x99b   :  { %10267 = vst [vmem:[#allocation101_spill] sm:$0xff] %v8012_v59  ;;  %10271 = vst [vmem:[#allocation103_spill] sm:$0xff] %v8018_v3 }
 0x99c   :  { %v8024_v37 = vpop.f32.mrf.mxu0  ;;  %v8032_v59 = vpop.f32.mrf.mxu1 }
 0x99d   :  { %10274 = vst [vmem:[#allocation105_spill] sm:$0xff] %v8024_v37  ;;  %10277 = vst [vmem:[#allocation106_spill] sm:$0xff] %v8032_v59 }
 0x9bb   :  { %v3214_v57 = vpop.f32.mrf.mxu0  ;;  %v3285_v27 = vpop.f32.mrf.mxu1 }
 0x9bc   :  { %v3290_v3 = vadd.f32 %v3214_v57, %v867_v38  ;;  %v3292_v7 = vadd.f32 %v3285_v27, %v938_v24  ;;  %v940_v57 = vadd.f32 %v10281_v30, %v8040_v35  ;;  %v10286_v30 = vld [vmem:[#allocation83_spill] sm:$0xff] }
 0x9bd   :  { %v3216_v26 = vpop.f32.mrf.mxu0  ;;  %v3287_v59 = vpop.f32.mrf.mxu1 }
 0x9be   :  { %v3294_v37 = vmul.f32 0.5, %v3290_v3  ;;  %v3291_v23 = vadd.f32 %v3216_v26, %v869_v29  ;;  %v3293_v38 = vadd.f32 %v3287_v59, %v940_v57  ;;  %v10287_v57 = vld [vmem:[#allocation88_spill] sm:$0xff] }
 0x9c0   :  { %4871 = vtanh.f32 %v3294_v37  ;;  %v3298_v22 = vmul.f32 0.5, %v3291_v23  ;;  %v3303_v51 = vmul.f32 0.5, %v3293_v38  ;;  %v10288_v38 = vld [vmem:[#allocation89_spill] sm:$0xff] }
 0x9c2   :  { %4873 = vtanh.f32 %v3298_v22 }
 0x9c3   :  { %4875 = vtanh.f32 %v3292_v7  ;;  %v10285_v7 = vld [vmem:[#allocation82_spill] sm:$0xff] }
 0x9c4   :  { %4877 = vtanh.f32 %v3303_v51  ;;  %v10284_v51 = vld [vmem:[#allocation141_spill] sm:$0xff] }
 0x9cd   :  { %v4872_v10 = vpop.eup %4871 }
 0x9ce   :  { %v3296_v41 = vmul.f32 0.5, %v4872_v10  ;;  %v10282_v10 = vld [vmem:[#allocation95_spill] sm:$0xff] }
 0x9cf   :  { %v4874_v36 = vpop.eup %4873 }
 0x9d0   :  { %v3297_v3 = vadd.f32 0.5, %v3296_v41  ;;  %v3300_v26 = vmul.f32 0.5, %v4874_v36  ;;  %v4876_v24 = vpop.eup %4875  ;;  %v10283_v41 = vld [vmem:[#allocation139_spill] sm:$0xff] }
 0x9d1   :  { %v4878_v22 = vpop.eup %4877  ;;  %v10289_v36 = vld [vmem:[#allocation91_spill] sm:$0xff] }
 0x9d2   :  { %v3301_v23 = vadd.f32 0.5, %v3300_v26  ;;  %v3308_v27 = vmul.f32 %v4876_v24, %v3297_v3  ;;  %v3305_v29 = vmul.f32 0.5, %v4878_v22  ;;  %v10290_v3 = vld [vmem:[#allocation92_spill] sm:$0xff]  ;;  %v10291_v26 = vld [vmem:[#allocation93_spill] sm:$0xff]  ;;  %v10292_v24 = vld [vmem:[#allocation94_spill] sm:$0xff] }
 0x9d3   :  { %v10296_v22 = vld [vmem:[#allocation99_spill] sm:$0xff] }
 0x9d4   :  { %v3307_v11 = vmul.f32 0.0, %v3301_v23  ;;  %v3306_v37 = vadd.f32 0.5, %v3305_v29  ;;  %v10293_v23 = vld [vmem:[#allocation96_spill] sm:$0xff] }
 0x9d5   :  { %v10297_v29 = vld [vmem:[#allocation100_spill] sm:$0xff] }
 0x9d6   :  { %v8044_v21 = vadd.f32 %v3308_v27, %v3307_v11  ;;  %v10294_v27 = vld [vmem:[#allocation97_spill] sm:$0xff]  ;;  %v10295_v11 = vld [vmem:[#allocation98_spill] sm:$0xff] }
 0x9d8   :  { %4879 = vtanh.f32 %v8044_v21 }
 0x9e5   :  { %v4880_v16 = vpop.eup %4879 }
 0x9e6   :  { %v3311_v59 = vmul.f32 %v4880_v16, %v3306_v37  ;;  %v10298_v37 = vld [vmem:[#allocation118_spill] sm:$0xff]  ;;  %v10299_v16 = vld [vmem:[#allocation120_spill] sm:$0xff] }
 0x9e8   :  { %3377 = vmatmul.mubr.f32.vlgmr.msra.gmra.mxu0 %v3311_v59  ;;  %3448 = vmatmul.mubr.f32.vlgmr.msra.gmra.mxu1 %v3311_v59  ;;  %v10300_v59 = vld [vmem:[#allocation119_spill] sm:$0xff] }
 0x9e9   :  { %3477 = vmatpush1.msra.mxu0 %v7754_v17  ;;  %3548 = vmatpush1.msra.mxu1 %v7756_v15 }
 0x9ea   :  { %3478 = vmatprep.subr.mxu0 %v7758_v28  ;;  %3549 = vmatprep.subr.mxu1 %v7760_v54 }
 0x9eb   :  { %3479 = vmatpush1.msra.mxu0 %v7762_v6  ;;  %3550 = vmatpush1.msra.mxu1 %v7764_v47 }
 0x9ec   :  { %3480 = vmatprep.subr.mxu0 %v7768_v55  ;;  %3551 = vmatprep.subr.mxu1 %v7770_v44 }
 0x9ed   :  { %3481 = vmatpush1.msra.mxu0 %v7774_v19  ;;  %3552 = vmatpush1.msra.mxu1 %v7776_v43 }
 0x9ee   :  { %3482 = vmatprep.subr.mxu0 %v7780_v18  ;;  %3553 = vmatprep.subr.mxu1 %v7782_v48 }
 0x9ef   :  { %3483 = vmatpush1.msra.mxu0 %v7786_v1  ;;  %3554 = vmatpush1.msra.mxu1 %v7788_v60 }
 0x9f0   :  { %3484 = vmatprep.subr.mxu0 %v7792_v9  ;;  %3555 = vmatprep.subr.mxu1 %v7794_v12 }
 0x9f1   :  { %3485 = vmatpush1.msra.mxu0 %v7798_v20  ;;  %3556 = vmatpush1.msra.mxu1 %v7800_v53 }
 0x9f2   :  { %3486 = vmatprep.subr.mxu0 %v7804_v49  ;;  %3557 = vmatprep.subr.mxu1 %v7806_v56 }
 0x9f3   :  { %3487 = vmatpush1.msra.mxu0 %v7810_v39  ;;  %3558 = vmatpush1.msra.mxu1 %v7812_v61 }
 0x9f4   :  { %3488 = vmatprep.subr.mxu0 %v7816_v25  ;;  %3559 = vmatprep.subr.mxu1 %v7818_v5 }
 0x9f5   :  { %3489 = vmatpush1.msra.mxu0 %v7822_v31  ;;  %3560 = vmatpush1.msra.mxu1 %v7824_v32 }
 0x9f6   :  { %3490 = vmatprep.subr.mxu0 %v7828_v33  ;;  %3561 = vmatprep.subr.mxu1 %v7830_v4 }
 0x9f7   :  { %3491 = vmatpush1.msra.mxu0 %v7834_v13  ;;  %3562 = vmatpush1.msra.mxu1 %v7836_v14 }
 0x9f8   :  { %3492 = vmatprep.subr.mxu0 %v7840_v63  ;;  %3563 = vmatprep.subr.mxu1 %v7842_v8 }
 0x9f9   :  { %3493 = vmatpush1.msra.mxu0 %v7846_v45  ;;  %3564 = vmatpush1.msra.mxu1 %v7848_v2 }
 0x9fa   :  { %3494 = vmatprep.subr.mxu0 %v7852_v42  ;;  %3565 = vmatprep.subr.mxu1 %v7854_v50 }
 0x9fb   :  { %3495 = vmatpush1.msra.mxu0 %v7858_v62  ;;  %3566 = vmatpush1.msra.mxu1 %v7860_v58 }
 0x9fc   :  { %3496 = vmatprep.subr.mxu0 %v7864_v0  ;;  %3567 = vmatprep.subr.mxu1 %v7866_v52 }
 0x9fd   :  { %3497 = vmatpush1.msra.mxu0 %v10282_v10  ;;  %3568 = vmatpush1.msra.mxu1 %v7872_v46 }
 0x9fe   :  { %3498 = vmatprep.subr.mxu0 %v7876_v40  ;;  %3569 = vmatprep.subr.mxu1 %v10283_v41 }
 0x9ff   :  { %3499 = vmatpush1.msra.mxu0 %v10284_v51  ;;  %3570 = vmatpush1.msra.mxu1 %v10285_v7 }
 0xa00   :  { %3500 = vmatprep.subr.mxu0 %v10286_v30  ;;  %3571 = vmatprep.subr.mxu1 %v10287_v57  ;;  %v10309_v30 = vld [vmem:[#allocation85_spill] sm:$0xff] }
 0xa01   :  { %3501 = vmatpush1.msra.mxu0 %v10288_v38  ;;  %3572 = vmatpush1.msra.mxu1 %v10289_v36  ;;  %v10307_v36 = vld [vmem:[#allocation104_spill] sm:$0xff]  ;;  %v1244_v7 = vadd.f32 %v10309_v30, %v8028_v34 }
 0xa02   :  { %3502 = vmatprep.subr.mxu0 %v10290_v3  ;;  %3573 = vmatprep.subr.mxu1 %v10291_v26  ;;  %v10301_v3 = vmov 0.0   ;;  %v10302_v26 = vld [vmem:[#allocation122_spill] sm:$0xff] }
 0xa03   :  { %3503 = vmatpush1.msra.mxu0 %v10292_v24  ;;  %3574 = vmatpush1.msra.mxu1 %v10293_v23  ;;  %v10303_v23 = vld [vmem:[#allocation77_spill] sm:$0xff] }
 0xa04   :  { %3504 = vmatprep.subr.mxu0 %v10294_v27  ;;  %3575 = vmatprep.subr.mxu1 %v10295_v11  ;;  %v10304_v27 = vld [vmem:[#allocation78_spill] sm:$0xff] }
 0xa05   :  { %3505 = vmatpush1.msra.mxu0 %v10296_v22  ;;  %3576 = vmatpush1.msra.mxu1 %v10297_v29  ;;  %v10305_v11 = vld [vmem:[#allocation102_spill] sm:$0xff]  ;;  %v10306_v22 = vld [vmem:[#allocation84_spill] sm:$0xff] }
 0xa06   :  { %3506 = vmatprep.subr.mxu0 %v10298_v37  ;;  %3577 = vmatprep.subr.mxu1 %v10299_v16  ;;  %v1173_v24 = vadd.f32 %v10306_v22, %v10305_v11  ;;  %v10308_v37 = vld [vmem:[#allocation86_spill] sm:$0xff]  ;;  %v10310_v22 = vld [vmem:[#allocation87_spill] sm:$0xff] }
 0xa07   :  { %3507 = vmatpush1.msra.mxu0 %v10300_v59  ;;  %3540 = vmatprep.mubr.f32.mxu0 %v10301_v3  ;;  %v1175_v38 = vadd.f32 %v10308_v37, %v10307_v36  ;;  %v1246_v11 = vadd.f32 %v10310_v22, %v8040_v35  ;;  %v10318_v22 = vld [vmem:[#allocation89_spill] sm:$0xff] }
 0xa08   :  { %3578 = vmatpush1.msra.mxu1 %v10302_v26  ;;  %3611 = vmatprep.mubr.f32.mxu1 %v10301_v3 }
 0xa09   :  { %3640 = vmatprep.subr.mxu0 %v10303_v23  ;;  %3711 = vmatprep.subr.mxu1 %v10304_v27 }
 0xaa8   :  { %v3378_v29 = vpop.f32.mrf.mxu0  ;;  %v3449_v57 = vpop.f32.mrf.mxu1 }
 0xaa9   :  { %v3454_v16 = vadd.f32 %v3378_v29, %v1173_v24  ;;  %v3456_v3 = vadd.f32 %v3449_v57, %v1244_v7 }
 0xaaa   :  { %v3380_v59 = vpop.f32.mrf.mxu0  ;;  %v3451_v27 = vpop.f32.mrf.mxu1 }
 0xaab   :  { %v3458_v26 = vmul.f32 0.5, %v3454_v16  ;;  %v3455_v51 = vadd.f32 %v3380_v59, %v1175_v38  ;;  %v3457_v41 = vadd.f32 %v3451_v27, %v1246_v11  ;;  %v10315_v27 = vld [vmem:[#allocation82_spill] sm:$0xff]  ;;  %v10316_v11 = vld [vmem:[#allocation83_spill] sm:$0xff]  ;;  %v10317_v59 = vld [vmem:[#allocation88_spill] sm:$0xff] }
 0xaad   :  { %4881 = vtanh.f32 %v3458_v26  ;;  %v3462_v23 = vmul.f32 0.5, %v3455_v51  ;;  %v3467_v40 = vmul.f32 0.5, %v3457_v41 }
 0xaaf   :  { %4883 = vtanh.f32 %v3462_v23 }
 0xab0   :  { %4885 = vtanh.f32 %v3456_v3 }
 0xab1   :  { %4887 = vtanh.f32 %v3467_v40  ;;  %v10312_v40 = vld [vmem:[#allocation140_spill] sm:$0xff] }
 0xaba   :  { %v4882_v37 = vpop.eup %4881 }
 0xabb   :  { %v3460_v24 = vmul.f32 0.5, %v4882_v37  ;;  %v10319_v37 = vld [vmem:[#allocation91_spill] sm:$0xff] }
 0xabc   :  { %v4884_v29 = vpop.eup %4883 }
 0xabd   :  { %v3461_v36 = vadd.f32 0.5, %v3460_v24  ;;  %v3464_v46 = vmul.f32 0.5, %v4884_v29  ;;  %v4886_v30 = vpop.eup %4885  ;;  %v10320_v24 = vld [vmem:[#allocation92_spill] sm:$0xff]  ;;  %v10321_v29 = vld [vmem:[#allocation93_spill] sm:$0xff] }
 0xabe   :  { %v4888_v57 = vpop.eup %4887 }
 0xabf   :  { %v3465_v16 = vadd.f32 0.5, %v3464_v46  ;;  %v3472_v38 = vmul.f32 %v4886_v30, %v3461_v36  ;;  %v3469_v3 = vmul.f32 0.5, %v4888_v57  ;;  %v10311_v46 = vld [vmem:[#allocation138_spill] sm:$0xff]  ;;  %v10314_v36 = vld [vmem:[#allocation141_spill] sm:$0xff]  ;;  %v10326_v57 = vld [vmem:[#allocation99_spill] sm:$0xff] }
 0xac0   :  { %v10322_v30 = vld [vmem:[#allocation94_spill] sm:$0xff] }
 0xac1   :  { %v3471_v7 = vmul.f32 %v3465_v16, %v8044_v21  ;;  %v3470_v26 = vadd.f32 0.5, %v3469_v3  ;;  %v10313_v21 = vld [vmem:[#allocation139_spill] sm:$0xff]  ;;  %v10323_v16 = vld [vmem:[#allocation96_spill] sm:$0xff] }
 0xac2   :  { %v10327_v3 = vld [vmem:[#allocation100_spill] sm:$0xff] }
 0xac3   :  { %v8122_v51 = vadd.f32 %v3472_v38, %v3471_v7  ;;  %v10324_v38 = vld [vmem:[#allocation97_spill] sm:$0xff]  ;;  %v10325_v7 = vld [vmem:[#allocation98_spill] sm:$0xff] }
 0xac5   :  { %4889 = vtanh.f32 %v8122_v51 }
 0xad2   :  { %v4890_v23 = vpop.eup %4889 }
 0xad3   :  { %v3475_v41 = vmul.f32 %v4890_v23, %v3470_v26  ;;  %v10328_v26 = vld [vmem:[#allocation118_spill] sm:$0xff]  ;;  %v10329_v23 = vld [vmem:[#allocation120_spill] sm:$0xff] }
 0xad5   :  { %3541 = vmatmul.mubr.f32.vlgmr.msra.gmra.mxu0 %v3475_v41  ;;  %3612 = vmatmul.mubr.f32.vlgmr.msra.gmra.mxu1 %v3475_v41  ;;  %v10330_v41 = vld [vmem:[#allocation119_spill] sm:$0xff] }
 0xad6   :  { %3641 = vmatpush1.msra.mxu0 %v7754_v17  ;;  %3712 = vmatpush1.msra.mxu1 %v7756_v15 }
 0xad7   :  { %3642 = vmatprep.subr.mxu0 %v7758_v28  ;;  %3713 = vmatprep.subr.mxu1 %v7760_v54 }
 0xad8   :  { %3643 = vmatpush1.msra.mxu0 %v7762_v6  ;;  %3714 = vmatpush1.msra.mxu1 %v7764_v47 }
 0xad9   :  { %3644 = vmatprep.subr.mxu0 %v7768_v55  ;;  %3715 = vmatprep.subr.mxu1 %v7770_v44 }
 0xada   :  { %3645 = vmatpush1.msra.mxu0 %v7774_v19  ;;  %3716 = vmatpush1.msra.mxu1 %v7776_v43 }
 0xadb   :  { %3646 = vmatprep.subr.mxu0 %v7780_v18  ;;  %3717 = vmatprep.subr.mxu1 %v7782_v48 }
 0xadc   :  { %3647 = vmatpush1.msra.mxu0 %v7786_v1  ;;  %3718 = vmatpush1.msra.mxu1 %v7788_v60 }
 0xadd   :  { %3648 = vmatprep.subr.mxu0 %v7792_v9  ;;  %3719 = vmatprep.subr.mxu1 %v7794_v12 }
 0xade   :  { %3649 = vmatpush1.msra.mxu0 %v7798_v20  ;;  %3720 = vmatpush1.msra.mxu1 %v7800_v53 }
 0xadf   :  { %3650 = vmatprep.subr.mxu0 %v7804_v49  ;;  %3721 = vmatprep.subr.mxu1 %v7806_v56 }
 0xae0   :  { %3651 = vmatpush1.msra.mxu0 %v7810_v39  ;;  %3722 = vmatpush1.msra.mxu1 %v7812_v61 }
 0xae1   :  { %3652 = vmatprep.subr.mxu0 %v7816_v25  ;;  %3723 = vmatprep.subr.mxu1 %v7818_v5 }
 0xae2   :  { %3653 = vmatpush1.msra.mxu0 %v7822_v31  ;;  %3724 = vmatpush1.msra.mxu1 %v7824_v32 }
 0xae3   :  { %3654 = vmatprep.subr.mxu0 %v7828_v33  ;;  %3725 = vmatprep.subr.mxu1 %v7830_v4 }
 0xae4   :  { %3655 = vmatpush1.msra.mxu0 %v7834_v13  ;;  %3726 = vmatpush1.msra.mxu1 %v7836_v14 }
 0xae5   :  { %3656 = vmatprep.subr.mxu0 %v7840_v63  ;;  %3727 = vmatprep.subr.mxu1 %v7842_v8 }
 0xae6   :  { %3657 = vmatpush1.msra.mxu0 %v7846_v45  ;;  %3728 = vmatpush1.msra.mxu1 %v7848_v2 }
 0xae7   :  { %3658 = vmatprep.subr.mxu0 %v7852_v42  ;;  %3729 = vmatprep.subr.mxu1 %v7854_v50 }
 0xae8   :  { %3659 = vmatpush1.msra.mxu0 %v7858_v62  ;;  %3730 = vmatpush1.msra.mxu1 %v7860_v58 }
 0xae9   :  { %3660 = vmatprep.subr.mxu0 %v7864_v0  ;;  %3731 = vmatprep.subr.mxu1 %v7866_v52 }
 0xaea   :  { %3661 = vmatpush1.msra.mxu0 %v10282_v10  ;;  %3732 = vmatpush1.msra.mxu1 %v10311_v46 }
 0xaeb   :  { %3662 = vmatprep.subr.mxu0 %v10312_v40  ;;  %3733 = vmatprep.subr.mxu1 %v10313_v21 }
 0xaec   :  { %3663 = vmatpush1.msra.mxu0 %v10314_v36  ;;  %3734 = vmatpush1.msra.mxu1 %v10315_v27 }
 0xaed   :  { %3664 = vmatprep.subr.mxu0 %v10316_v11  ;;  %3735 = vmatprep.subr.mxu1 %v10317_v59  ;;  %v10339_v11 = vld [vmem:[#allocation49_spill] sm:$0xff] }
 0xaee   :  { %3665 = vmatpush1.msra.mxu0 %v10318_v22  ;;  %3736 = vmatpush1.msra.mxu1 %v10319_v37  ;;  %v10337_v37 = vld [vmem:[#allocation104_spill] sm:$0xff]  ;;  %v1550_v27 = vadd.f32 %v10339_v11, %v8028_v34 }
 0xaef   :  { %3666 = vmatprep.subr.mxu0 %v10320_v24  ;;  %3737 = vmatprep.subr.mxu1 %v10321_v29  ;;  %v10331_v24 = vmov 0.0   ;;  %v10332_v29 = vld [vmem:[#allocation122_spill] sm:$0xff] }
 0xaf0   :  { %3667 = vmatpush1.msra.mxu0 %v10322_v30  ;;  %3738 = vmatpush1.msra.mxu1 %v10323_v16  ;;  %v10333_v16 = vld [vmem:[#allocation77_spill] sm:$0xff] }
 0xaf1   :  { %3668 = vmatprep.subr.mxu0 %v10324_v38  ;;  %3739 = vmatprep.subr.mxu1 %v10325_v7  ;;  %v10334_v38 = vld [vmem:[#allocation78_spill] sm:$0xff] }
 0xaf2   :  { %3669 = vmatpush1.msra.mxu0 %v10326_v57  ;;  %3740 = vmatpush1.msra.mxu1 %v10327_v3  ;;  %v10335_v7 = vld [vmem:[#allocation102_spill] sm:$0xff]  ;;  %v10336_v57 = vld [vmem:[#allocation48_spill] sm:$0xff] }
 0xaf3   :  { %3670 = vmatprep.subr.mxu0 %v10328_v26  ;;  %3741 = vmatprep.subr.mxu1 %v10329_v23  ;;  %v1479_v30 = vadd.f32 %v10336_v57, %v10335_v7  ;;  %v10338_v26 = vld [vmem:[#allocation50_spill] sm:$0xff]  ;;  %v10340_v57 = vld [vmem:[#allocation51_spill] sm:$0xff] }
 0xaf4   :  { %3671 = vmatpush1.msra.mxu0 %v10330_v41  ;;  %3704 = vmatprep.mubr.f32.mxu0 %v10331_v24  ;;  %v1481_v22 = vadd.f32 %v10338_v26, %v10337_v37  ;;  %v1552_v7 = vadd.f32 %v10340_v57, %v8040_v35 }
 0xaf5   :  { %3742 = vmatpush1.msra.mxu1 %v10332_v29  ;;  %3775 = vmatprep.mubr.f32.mxu1 %v10331_v24 }
 0xaf6   :  { %3804 = vmatprep.subr.mxu0 %v10333_v16  ;;  %3875 = vmatprep.subr.mxu1 %v10334_v38 }
 0xb95   :  { %v3542_v3 = vpop.f32.mrf.mxu0  ;;  %v3613_v59 = vpop.f32.mrf.mxu1 }
 0xb96   :  { %v3618_v23 = vadd.f32 %v3542_v3, %v1479_v30  ;;  %v3620_v24 = vadd.f32 %v3613_v59, %v1550_v27 }
 0xb97   :  { %v3544_v41 = vpop.f32.mrf.mxu0  ;;  %v3615_v38 = vpop.f32.mrf.mxu1 }
 0xb98   :  { %v3622_v29 = vmul.f32 0.5, %v3618_v23  ;;  %v3619_v36 = vadd.f32 %v3544_v41, %v1481_v22  ;;  %v3621_v21 = vadd.f32 %v3615_v38, %v1552_v7 }
 0xb9a   :  { %4891 = vtanh.f32 %v3622_v29  ;;  %v3626_v16 = vmul.f32 0.5, %v3619_v36  ;;  %v3631_v40 = vmul.f32 0.5, %v3621_v21 }
 0xb9c   :  { %4893 = vtanh.f32 %v3626_v16 }
 0xb9d   :  { %4895 = vtanh.f32 %v3620_v24 }
 0xb9e   :  { %4897 = vtanh.f32 %v3631_v40 }
 0xba7   :  { %v4892_v26 = vpop.eup %4891 }
 0xba8   :  { %v3624_v30 = vmul.f32 0.5, %v4892_v26 }
 0xba9   :  { %v4894_v3 = vpop.eup %4893 }
 0xbaa   :  { %v3625_v37 = vadd.f32 0.5, %v3624_v30  ;;  %v3628_v46 = vmul.f32 0.5, %v4894_v3  ;;  %v4896_v11 = vpop.eup %4895 }
 0xbab   :  { %v4898_v59 = vpop.eup %4897 }
 0xbac   :  { %v3629_v23 = vadd.f32 0.5, %v3628_v46  ;;  %v3636_v22 = vmul.f32 %v4896_v11, %v3625_v37  ;;  %v3633_v24 = vmul.f32 0.5, %v4898_v59 }
 0xbae   :  { %v3635_v27 = vmul.f32 %v3629_v23, %v8122_v51  ;;  %v3634_v29 = vadd.f32 0.5, %v3633_v24  ;;  %v10368_v51 = vld [vmem:[#allocation61_spill] sm:$0xff] }
 0xbaf   :  { %v1858_v46 = vadd.f32 %v10368_v51, %v8040_v35  ;;  %v8345_v51 = vld [vmem:[#allocation10 + $0x140] sm:$0xff] }
 0xbb0   :  { %v8200_v36 = vadd.f32 %v3636_v22, %v3635_v27 }
 0xbb2   :  { %4899 = vtanh.f32 %v8200_v36 }
 0xbbf   :  { %v4900_v7 = vpop.eup %4899 }
 0xbc0   :  { %v3639_v21 = vmul.f32 %v4900_v7, %v3634_v29 }
 0xbc2   :  { %3705 = vmatmul.mubr.f32.vlgmr.msra.gmra.mxu0 %v3639_v21  ;;  %3776 = vmatmul.mubr.f32.vlgmr.msra.gmra.mxu1 %v3639_v21  ;;  %v8285_v21 = vld [vmem:[#allocation10 + $0x1e0] sm:$0xff] }
 0xbc3   :  { %3805 = vmatpush1.msra.mxu0 %v7754_v17  ;;  %3876 = vmatpush1.msra.mxu1 %v7756_v15  ;;  %v10341_v17 = vld [vmem:[#allocation138_spill] sm:$0xff]  ;;  %v10342_v15 = vld [vmem:[#allocation140_spill] sm:$0xff] }
 0xbc4   :  { %3806 = vmatprep.subr.mxu0 %v7758_v28  ;;  %3877 = vmatprep.subr.mxu1 %v7760_v54  ;;  %v10343_v28 = vld [vmem:[#allocation139_spill] sm:$0xff]  ;;  %v10344_v54 = vld [vmem:[#allocation141_spill] sm:$0xff] }
 0xbc5   :  { %3807 = vmatpush1.msra.mxu0 %v7762_v6  ;;  %3878 = vmatpush1.msra.mxu1 %v7764_v47  ;;  %v10345_v6 = vld [vmem:[#allocation82_spill] sm:$0xff]  ;;  %v10346_v47 = vld [vmem:[#allocation83_spill] sm:$0xff] }
 0xbc6   :  { %3808 = vmatprep.subr.mxu0 %v7768_v55  ;;  %3879 = vmatprep.subr.mxu1 %v7770_v44  ;;  %v10347_v55 = vld [vmem:[#allocation88_spill] sm:$0xff]  ;;  %v10348_v44 = vld [vmem:[#allocation89_spill] sm:$0xff] }
 0xbc7   :  { %3809 = vmatpush1.msra.mxu0 %v7774_v19  ;;  %3880 = vmatpush1.msra.mxu1 %v7776_v43  ;;  %v10349_v19 = vld [vmem:[#allocation91_spill] sm:$0xff]  ;;  %v10350_v43 = vld [vmem:[#allocation92_spill] sm:$0xff] }
 0xbc8   :  { %3810 = vmatprep.subr.mxu0 %v7780_v18  ;;  %3881 = vmatprep.subr.mxu1 %v7782_v48  ;;  %v10351_v18 = vld [vmem:[#allocation93_spill] sm:$0xff]  ;;  %v10352_v48 = vld [vmem:[#allocation94_spill] sm:$0xff] }
 0xbc9   :  { %3811 = vmatpush1.msra.mxu0 %v7786_v1  ;;  %3882 = vmatpush1.msra.mxu1 %v7788_v60  ;;  %v10353_v1 = vld [vmem:[#allocation96_spill] sm:$0xff]  ;;  %v10354_v60 = vld [vmem:[#allocation97_spill] sm:$0xff] }
 0xbca   :  { %3812 = vmatprep.subr.mxu0 %v7792_v9  ;;  %3883 = vmatprep.subr.mxu1 %v7794_v12  ;;  %v10355_v9 = vld [vmem:[#allocation98_spill] sm:$0xff]  ;;  %v10356_v12 = vld [vmem:[#allocation99_spill] sm:$0xff] }
 0xbcb   :  { %3813 = vmatpush1.msra.mxu0 %v7798_v20  ;;  %3884 = vmatpush1.msra.mxu1 %v7800_v53  ;;  %v10357_v20 = vld [vmem:[#allocation100_spill] sm:$0xff]  ;;  %v10358_v53 = vld [vmem:[#allocation118_spill] sm:$0xff] }
 0xbcc   :  { %3814 = vmatprep.subr.mxu0 %v7804_v49  ;;  %3885 = vmatprep.subr.mxu1 %v7806_v56  ;;  %v10359_v49 = vld [vmem:[#allocation120_spill] sm:$0xff]  ;;  %v10360_v56 = vld [vmem:[#allocation119_spill] sm:$0xff] }
 0xbcd   :  { %3815 = vmatpush1.msra.mxu0 %v7810_v39  ;;  %3886 = vmatpush1.msra.mxu1 %v7812_v61  ;;  %v10361_v39 = vmov 0.0   ;;  %v10362_v61 = vld [vmem:[#allocation122_spill] sm:$0xff] }
 0xbce   :  { %3816 = vmatprep.subr.mxu0 %v7816_v25  ;;  %3887 = vmatprep.subr.mxu1 %v7818_v5  ;;  %v8267_v25 = vld [vmem:[#allocation10 + $0x1e8] sm:$0xff]  ;;  %v8270_v5 = vld [vmem:[#allocation10 + $0x1f8] sm:$0xff] }
 0xbcf   :  { %3817 = vmatpush1.msra.mxu0 %v7822_v31  ;;  %3888 = vmatpush1.msra.mxu1 %v7824_v32  ;;  %v10363_v31 = vld [vmem:[#allocation102_spill] sm:$0xff] }
 0xbd0   :  { %3818 = vmatprep.subr.mxu0 %v7828_v33  ;;  %3889 = vmatprep.subr.mxu1 %v7830_v4  ;;  %v10364_v32 = vld [vmem:[#allocation54_spill] sm:$0xff] }
 0xbd1   :  { %3819 = vmatpush1.msra.mxu0 %v7834_v13  ;;  %3890 = vmatpush1.msra.mxu1 %v7836_v14  ;;  %v1785_v33 = vadd.f32 %v10364_v32, %v10363_v31  ;;  %v10365_v13 = vld [vmem:[#allocation104_spill] sm:$0xff] }
 0xbd2   :  { %3820 = vmatprep.subr.mxu0 %v7840_v63  ;;  %3891 = vmatprep.subr.mxu1 %v7842_v8  ;;  %v10366_v14 = vld [vmem:[#allocation56_spill] sm:$0xff] }
 0xbd3   :  { %3821 = vmatpush1.msra.mxu0 %v7846_v45  ;;  %3892 = vmatpush1.msra.mxu1 %v7848_v2  ;;  %v1787_v63 = vadd.f32 %v10366_v14, %v10365_v13  ;;  %v8300_v32 = vld [vmem:[#allocation10 + $0x1d0] sm:$0xff]  ;;  %v8309_v14 = vld [vmem:[#allocation10 + $0x1a0] sm:$0xff] }
 0xbd4   :  { %3822 = vmatprep.subr.mxu0 %v7852_v42  ;;  %3893 = vmatprep.subr.mxu1 %v7854_v50  ;;  %v10367_v42 = vld [vmem:[#allocation55_spill] sm:$0xff] }
 0xbd5   :  { %3823 = vmatpush1.msra.mxu0 %v7858_v62  ;;  %3894 = vmatpush1.msra.mxu1 %v7860_v58  ;;  %v1856_v50 = vadd.f32 %v10367_v42, %v8028_v34  ;;  %v8324_v42 = vld [vmem:[#allocation10 + $0x190] sm:$0xff] }
 0xbd6   :  { %3824 = vmatprep.subr.mxu0 %v7864_v0  ;;  %3895 = vmatprep.subr.mxu1 %v7866_v52 }
 0xbd7   :  { %3825 = vmatpush1.msra.mxu0 %v10282_v10  ;;  %3896 = vmatpush1.msra.mxu1 %v10341_v17  ;;  %v8288_v17 = vld [vmem:[#allocation10 + $0x1f0] sm:$0xff] }
 0xbd8   :  { %3826 = vmatprep.subr.mxu0 %v10342_v15  ;;  %3897 = vmatprep.subr.mxu1 %v10343_v28  ;;  %v8294_v15 = vld [vmem:[#allocation10 + $0x1d8] sm:$0xff]  ;;  %v8297_v28 = vld [vmem:[#allocation10 + $0x1c0] sm:$0xff] }
 0xbd9   :  { %3827 = vmatpush1.msra.mxu0 %v10344_v54  ;;  %3898 = vmatpush1.msra.mxu1 %v10345_v6 }
 0xbda   :  { %3828 = vmatprep.subr.mxu0 %v10346_v47  ;;  %3899 = vmatprep.subr.mxu1 %v10347_v55 }
 0xbdb   :  { %3829 = vmatpush1.msra.mxu0 %v10348_v44  ;;  %3900 = vmatpush1.msra.mxu1 %v10349_v19 }
 0xbdc   :  { %3830 = vmatprep.subr.mxu0 %v10350_v43  ;;  %3901 = vmatprep.subr.mxu1 %v10351_v18 }
 0xbdd   :  { %3831 = vmatpush1.msra.mxu0 %v10352_v48  ;;  %3902 = vmatpush1.msra.mxu1 %v10353_v1 }
 0xbde   :  { %3832 = vmatprep.subr.mxu0 %v10354_v60  ;;  %3903 = vmatprep.subr.mxu1 %v10355_v9 }
 0xbdf   :  { %3833 = vmatpush1.msra.mxu0 %v10356_v12  ;;  %3904 = vmatpush1.msra.mxu1 %v10357_v20 }
 0xbe0   :  { %3834 = vmatprep.subr.mxu0 %v10358_v53  ;;  %3905 = vmatprep.subr.mxu1 %v10359_v49 }
 0xbe1   :  { %3835 = vmatpush1.msra.mxu0 %v10360_v56  ;;  %3868 = vmatprep.mubr.f32.mxu0 %v10361_v39 }
 0xbe2   :  { %3906 = vmatpush1.msra.mxu1 %v10362_v61  ;;  %3939 = vmatprep.mubr.f32.mxu1 %v10361_v39 }
 0xbe3   :  { %3968 = vmatprep.subr.mxu0 %v8267_v25  ;;  %4039 = vmatprep.subr.mxu1 %v8270_v5 }
 0xc82   :  { %v3706_v4 = vpop.f32.mrf.mxu0  ;;  %v3777_v45 = vpop.f32.mrf.mxu1 }
 0xc83   :  { %v3782_v8 = vadd.f32 %v3706_v4, %v1785_v33  ;;  %v3784_v0 = vadd.f32 %v3777_v45, %v1856_v50  ;;  %v8303_v33 = vld [vmem:[#allocation10 + $0x1a8] sm:$0xff]  ;;  %v8306_v4 = vld [vmem:[#allocation10 + $0x1b8] sm:$0xff] }
 0xc84   :  { %v3708_v2 = vpop.f32.mrf.mxu0  ;;  %v3779_v10 = vpop.f32.mrf.mxu1  ;;  %v8318_v45 = vld [vmem:[#allocation10 + $0x198] sm:$0xff]  ;;  %v8327_v50 = vld [vmem:[#allocation10 + $0x168] sm:$0xff] }
 0xc85   :  { %v3786_v62 = vmul.f32 0.5, %v3782_v8  ;;  %v3783_v58 = vadd.f32 %v3708_v2, %v1787_v63  ;;  %v3785_v40 = vadd.f32 %v3779_v10, %v1858_v46  ;;  %v8312_v63 = vld [vmem:[#allocation10 + $0x1b0] sm:$0xff]  ;;  %v8315_v8 = vld [vmem:[#allocation10 + $0x188] sm:$0xff]  ;;  %v8321_v2 = vld [vmem:[#allocation10 + $0x180] sm:$0xff] }
 0xc86   :  { %v8342_v10 = vld [vmem:[#allocation10 + $0x158] sm:$0xff]  ;;  %v8348_v46 = vld [vmem:[#allocation10 + $0x150] sm:$0xff] }
 0xc87   :  { %4901 = vtanh.f32 %v3786_v62  ;;  %v3790_v52 = vmul.f32 0.5, %v3783_v58  ;;  %v3795_v37 = vmul.f32 0.5, %v3785_v40  ;;  %v8330_v62 = vld [vmem:[#allocation10 + $0x178] sm:$0xff]  ;;  %v8333_v58 = vld [vmem:[#allocation10 + $0x160] sm:$0xff]  ;;  %v8351_v40 = vld [vmem:[#allocation10 + $0x128] sm:$0xff] }
 0xc89   :  { %4903 = vtanh.f32 %v3790_v52  ;;  %v8339_v52 = vld [vmem:[#allocation10 + $0x148] sm:$0xff] }
 0xc8a   :  { %4905 = vtanh.f32 %v3784_v0  ;;  %v8336_v0 = vld [vmem:[#allocation10 + $0x170] sm:$0xff] }
 0xc8b   :  { %4907 = vtanh.f32 %v3795_v37  ;;  %v8354_v37 = vld [vmem:[#allocation10 + $0x138] sm:$0xff] }
 0xc94   :  { %v4902_v41 = vpop.eup %4901 }
 0xc95   :  { %v3788_v16 = vmul.f32 0.5, %v4902_v41  ;;  %v8357_v41 = vld [vmem:[#allocation10 + $0x120] sm:$0xff] }
 0xc96   :  { %v4904_v38 = vpop.eup %4903 }
 0xc97   :  { %v3789_v57 = vadd.f32 0.5, %v3788_v16  ;;  %v3792_v26 = vmul.f32 0.5, %v4904_v38  ;;  %v4906_v30 = vpop.eup %4905  ;;  %v8360_v16 = vld [vmem:[#allocation10 + $0x130] sm:$0xff]  ;;  %v8363_v38 = vld [vmem:[#allocation10 + $0x108] sm:$0xff] }
 0xc98   :  { %v4908_v27 = vpop.eup %4907 }
 0xc99   :  { %v3793_v3 = vadd.f32 0.5, %v3792_v26  ;;  %v3800_v11 = vmul.f32 %v4906_v30, %v3789_v57  ;;  %v3797_v59 = vmul.f32 0.5, %v4908_v27  ;;  %v8366_v57 = vld [vmem:[#allocation10 + $0x118] sm:$0xff]  ;;  %v8369_v26 = vld [vmem:[#allocation10 + $0x100] sm:$0xff]  ;;  %v8372_v30 = vld [vmem:[#allocation10 + $0x110] sm:$0xff] }
 0xc9a   :  { %v8384_v27 = vld [vmem:[#allocation10 + $0xf0] sm:$0xff] }
 0xc9b   :  { %v3799_v23 = vmul.f32 %v3793_v3, %v8200_v36  ;;  %v3798_v24 = vadd.f32 0.5, %v3797_v59  ;;  %v8291_v36 = vld [vmem:[#allocation10 + $0x1c8] sm:$0xff]  ;;  %10370 = vst [vmem:[#allocation108_spill] sm:$0xff] %v8384_v27 }
 0xc9c   :  { %v8375_v3 = vld [vmem:[#allocation10 + $0xe8] sm:$0xff] }
 0xc9d   :  { %v8282_v22 = vadd.f32 %v3800_v11, %v3799_v23  ;;  %v8378_v11 = vld [vmem:[#allocation10 + $0xf8] sm:$0xff]  ;;  %v8381_v23 = vld [vmem:[#allocation10 + $0xe0] sm:$0xff]  ;;  %v8387_v59 = vld [vmem:[#allocation10 + $0xc8] sm:$0xff] }
 0xc9e   :  { %10369 = vst [vmem:[#allocation107_spill] sm:$0xff] %v8381_v23  ;;  %10371 = vst [vmem:[#allocation113_spill] sm:$0xff] %v8387_v59 }
 0xc9f   :  { %4909 = vtanh.f32 %v8282_v22 }
 0xcac   :  { %v4910_v29 = vpop.eup %4909 }
 0xcad   :  { %v3803_v7 = vmul.f32 %v4910_v29, %v3798_v24  ;;  %v8390_v24 = vld [vmem:[#allocation10 + $0xd8] sm:$0xff]  ;;  %v8393_v29 = vld [vmem:[#allocation10 + $0xc0] sm:$0xff] }
 0xcae   :  { %10372 = vst [vmem:[#allocation114_spill] sm:$0xff] %v8390_v24  ;;  %10373 = vst [vmem:[#allocation115_spill] sm:$0xff] %v8393_v29 }
 0xcaf   :  { %3869 = vmatmul.mubr.f32.vlgmr.msra.gmra.mxu0 %v3803_v7  ;;  %3940 = vmatmul.mubr.f32.vlgmr.msra.gmra.mxu1 %v3803_v7  ;;  %v8396_v7 = vld [vmem:[#allocation10 + $0xd0] sm:$0xff] }
 0xcb0   :  { %3969 = vmatpush1.msra.mxu0 %v8285_v21  ;;  %4040 = vmatpush1.msra.mxu1 %v8288_v17  ;;  %10374 = vst [vmem:[#allocation116_spill] sm:$0xff] %v8396_v7 }
 0xcb1   :  { %3970 = vmatprep.subr.mxu0 %v8291_v36  ;;  %4041 = vmatprep.subr.mxu1 %v8294_v15 }
 0xcb2   :  { %3971 = vmatpush1.msra.mxu0 %v8297_v28  ;;  %4042 = vmatpush1.msra.mxu1 %v8300_v32 }
 0xcb3   :  { %3972 = vmatprep.subr.mxu0 %v8303_v33  ;;  %4043 = vmatprep.subr.mxu1 %v8306_v4 }
 0xcb4   :  { %3973 = vmatpush1.msra.mxu0 %v8309_v14  ;;  %4044 = vmatpush1.msra.mxu1 %v8312_v63 }
 0xcb5   :  { %3974 = vmatprep.subr.mxu0 %v8315_v8  ;;  %4045 = vmatprep.subr.mxu1 %v8318_v45 }
 0xcb6   :  { %3975 = vmatpush1.msra.mxu0 %v8321_v2  ;;  %4046 = vmatpush1.msra.mxu1 %v8324_v42 }
 0xcb7   :  { %3976 = vmatprep.subr.mxu0 %v8327_v50  ;;  %4047 = vmatprep.subr.mxu1 %v8330_v62 }
 0xcb8   :  { %3977 = vmatpush1.msra.mxu0 %v8333_v58  ;;  %4048 = vmatpush1.msra.mxu1 %v8336_v0 }
 0xcb9   :  { %3978 = vmatprep.subr.mxu0 %v8339_v52  ;;  %4049 = vmatprep.subr.mxu1 %v8342_v10 }
 0xcba   :  { %3979 = vmatpush1.msra.mxu0 %v8345_v51  ;;  %4050 = vmatpush1.msra.mxu1 %v8348_v46 }
 0xcbb   :  { %3980 = vmatprep.subr.mxu0 %v8351_v40  ;;  %4051 = vmatprep.subr.mxu1 %v8354_v37 }
 0xcbc   :  { %3981 = vmatpush1.msra.mxu0 %v8357_v41  ;;  %4052 = vmatpush1.msra.mxu1 %v8360_v16 }
 0xcbd   :  { %3982 = vmatprep.subr.mxu0 %v8363_v38  ;;  %4053 = vmatprep.subr.mxu1 %v8366_v57 }
 0xcbe   :  { %3983 = vmatpush1.msra.mxu0 %v8369_v26  ;;  %4054 = vmatpush1.msra.mxu1 %v8372_v30 }
 0xcbf   :  { %3984 = vmatprep.subr.mxu0 %v8375_v3  ;;  %4055 = vmatprep.subr.mxu1 %v8378_v11 }
 0xcc0   :  { %3985 = vmatpush1.msra.mxu0 %v8381_v23  ;;  %4056 = vmatpush1.msra.mxu1 %v8384_v27  ;;  %v8399_v23 = vld [vmem:[#allocation10 + $0xa8] sm:$0xff]  ;;  %v8402_v27 = vld [vmem:[#allocation10 + $0xb8] sm:$0xff] }
 0xcc1   :  { %3986 = vmatprep.subr.mxu0 %v8387_v59  ;;  %4057 = vmatprep.subr.mxu1 %v8390_v24  ;;  %v8405_v59 = vld [vmem:[#allocation10 + $0xa0] sm:$0xff]  ;;  %v8408_v24 = vld [vmem:[#allocation10 + $0xb0] sm:$0xff] }
 0xcc2   :  { %3987 = vmatpush1.msra.mxu0 %v8393_v29  ;;  %4058 = vmatpush1.msra.mxu1 %v8396_v7  ;;  %10375 = vst [vmem:[#allocation23_spill] sm:$0xff] %v8408_v24  ;;  %v8411_v29 = vld [vmem:[#allocation10 + $0x88] sm:$0xff]  ;;  %v8414_v7 = vld [vmem:[#allocation10 + $0x98] sm:$0xff] }
 0xcc3   :  { %3988 = vmatprep.subr.mxu0 %v8399_v23  ;;  %4059 = vmatprep.subr.mxu1 %v8402_v27  ;;  %10376 = vst [vmem:[#allocation24_spill] sm:$0xff] %v8411_v29  ;;  %10377 = vst [vmem:[#allocation121_spill] sm:$0xff] %v8414_v7 }
 0xcc4   :  { %3989 = vmatpush1.msra.mxu0 %v8405_v59  ;;  %4060 = vmatpush1.msra.mxu1 %v8408_v24 }
 0xcc5   :  { %3990 = vmatprep.subr.mxu0 %v8411_v29  ;;  %4061 = vmatprep.subr.mxu1 %v8414_v7 }
 0xcc6   :  { %3991 = vmatpush1.msra.mxu0 %v10344_v54  ;;  %4062 = vmatpush1.msra.mxu1 %v10345_v6  ;;  %v10378_v54 = vld [vmem:[#allocation109_spill] sm:$0xff] }
 0xcc7   :  { %3992 = vmatprep.subr.mxu0 %v10346_v47  ;;  %4063 = vmatprep.subr.mxu1 %v10347_v55  ;;  %v2091_v6 = vadd.f32 %v10378_v54, %v10363_v31  ;;  %v10379_v55 = vld [vmem:[#allocation111_spill] sm:$0xff] }
 0xcc8   :  { %3993 = vmatpush1.msra.mxu0 %v10348_v44  ;;  %4064 = vmatpush1.msra.mxu1 %v10349_v19  ;;  %v2093_v44 = vadd.f32 %v10379_v55, %v10365_v13 }
 0xcc9   :  { %3994 = vmatprep.subr.mxu0 %v10350_v43  ;;  %4065 = vmatprep.subr.mxu1 %v10351_v18 }
 0xcca   :  { %3995 = vmatpush1.msra.mxu0 %v10352_v48  ;;  %4066 = vmatpush1.msra.mxu1 %v10353_v1  ;;  %v10380_v48 = vld [vmem:[#allocation110_spill] sm:$0xff] }
 0xccb   :  { %3996 = vmatprep.subr.mxu0 %v10354_v60  ;;  %4067 = vmatprep.subr.mxu1 %v10355_v9  ;;  %v2162_v1 = vadd.f32 %v10380_v48, %v8028_v34 }
 0xccc   :  { %3997 = vmatpush1.msra.mxu0 %v10356_v12  ;;  %4068 = vmatpush1.msra.mxu1 %v10357_v20 }
 0xccd   :  { %3998 = vmatprep.subr.mxu0 %v10358_v53  ;;  %4069 = vmatprep.subr.mxu1 %v10359_v49  ;;  %v10381_v49 = vld [vmem:[#allocation112_spill] sm:$0xff] }
 0xcce   :  { %3999 = vmatpush1.msra.mxu0 %v10360_v56  ;;  %4032 = vmatprep.mubr.f32.mxu0 %v10361_v39  ;;  %v2164_v56 = vadd.f32 %v10381_v49, %v8040_v35  ;;  %v10386_v49 = vld [vmem:[#allocation115_spill] sm:$0xff] }
 0xccf   :  { %4070 = vmatpush1.msra.mxu1 %v10362_v61  ;;  %4103 = vmatprep.mubr.f32.mxu1 %v10361_v39 }
 0xcd0   :  { %4132 = vmatprep.subr.mxu0 %v8267_v25  ;;  %4203 = vmatprep.subr.mxu1 %v8270_v5 }
 0xd6f   :  { %v3870_v47 = vpop.f32.mrf.mxu0  ;;  %v3941_v43 = vpop.f32.mrf.mxu1 }
 0xd70   :  { %v3946_v19 = vadd.f32 %v3870_v47, %v2091_v6  ;;  %v3948_v12 = vadd.f32 %v3941_v43, %v2162_v1 }
 0xd71   :  { %v3872_v18 = vpop.f32.mrf.mxu0  ;;  %v3943_v53 = vpop.f32.mrf.mxu1 }
 0xd72   :  { %v3950_v60 = vmul.f32 0.5, %v3946_v19  ;;  %v3947_v9 = vadd.f32 %v3872_v18, %v2093_v44  ;;  %v3949_v61 = vadd.f32 %v3943_v53, %v2164_v56  ;;  %v10385_v53 = vld [vmem:[#allocation114_spill] sm:$0xff]  ;;  %v10387_v56 = vld [vmem:[#allocation116_spill] sm:$0xff] }
 0xd74   :  { %4911 = vtanh.f32 %v3950_v60  ;;  %v3954_v20 = vmul.f32 0.5, %v3947_v9  ;;  %v3959_v54 = vmul.f32 0.5, %v3949_v61  ;;  %v8495_v61 = vld [vmem:[#allocation10 + $0x80] sm:$0xff] }
 0xd75   :  { %10388 = vst [vmem:[#allocation125_spill] sm:$0xff] %v8495_v61 }
 0xd76   :  { %4913 = vtanh.f32 %v3954_v20 }
 0xd77   :  { %4915 = vtanh.f32 %v3948_v12 }
 0xd78   :  { %4917 = vtanh.f32 %v3959_v54  ;;  %v8498_v54 = vld [vmem:[#allocation10 + $0x90] sm:$0xff] }
 0xd79   :  { %10389 = vst [vmem:[#allocation123_spill] sm:$0xff] %v8498_v54 }
 0xd81   :  { %v4912_v55 = vpop.eup %4911 }
 0xd82   :  { %v3952_v6 = vmul.f32 0.5, %v4912_v55  ;;  %v8501_v55 = vld [vmem:[#allocation10 + $0x68] sm:$0xff] }
 0xd83   :  { %v4914_v47 = vpop.eup %4913  ;;  %10390 = vst [vmem:[#allocation126_spill] sm:$0xff] %v8501_v55 }
 0xd84   :  { %v3953_v13 = vadd.f32 0.5, %v3952_v6  ;;  %v3956_v31 = vmul.f32 0.5, %v4914_v47  ;;  %v4916_v48 = vpop.eup %4915  ;;  %v8504_v6 = vld [vmem:[#allocation10 + $0x78] sm:$0xff]  ;;  %v8507_v47 = vld [vmem:[#allocation10 + $0x60] sm:$0xff] }
 0xd85   :  { %v4918_v1 = vpop.eup %4917  ;;  %10391 = vst [vmem:[#allocation29_spill] sm:$0xff] %v8504_v6  ;;  %10392 = vst [vmem:[#allocation30_spill] sm:$0xff] %v8507_v47 }
 0xd86   :  { %v3957_v19 = vadd.f32 0.5, %v3956_v31  ;;  %v3964_v44 = vmul.f32 %v4916_v48, %v3953_v13  ;;  %v3961_v60 = vmul.f32 0.5, %v4918_v1  ;;  %v10382_v31 = vld [vmem:[#allocation107_spill] sm:$0xff]  ;;  %v10383_v13 = vld [vmem:[#allocation108_spill] sm:$0xff] }
 0xd87   :  { %v8510_v48 = vld [vmem:[#allocation10 + $0x70] sm:$0xff] }
 0xd88   :  { %v3963_v43 = vmul.f32 %v3957_v19, %v8282_v22  ;;  %v3962_v9 = vadd.f32 0.5, %v3961_v60  ;;  %v10384_v22 = vld [vmem:[#allocation113_spill] sm:$0xff]  ;;  %10393 = vst [vmem:[#allocation31_spill] sm:$0xff] %v8510_v48  ;;  %v8513_v19 = vld [vmem:[#allocation10 + $0x48] sm:$0xff]  ;;  %v8522_v1 = vld [vmem:[#allocation10 + $0x50] sm:$0xff] }
 0xd89   :  { %10394 = vst [vmem:[#allocation127_spill] sm:$0xff] %v8513_v19  ;;  %10397 = vst [vmem:[#allocation134_spill] sm:$0xff] %v8522_v1  ;;  %v8525_v60 = vld [vmem:[#allocation10 + $0x28] sm:$0xff] }
 0xd8a   :  { %v8448_v18 = vadd.f32 %v3964_v44, %v3963_v43  ;;  %v8516_v44 = vld [vmem:[#allocation10 + $0x58] sm:$0xff]  ;;  %v8519_v43 = vld [vmem:[#allocation10 + $0x40] sm:$0xff]  ;;  %10398 = vst [vmem:[#allocation32_spill] sm:$0xff] %v8525_v60 }
 0xd8b   :  { %10395 = vst [vmem:[#allocation133_spill] sm:$0xff] %v8516_v44  ;;  %10396 = vst [vmem:[#allocation131_spill] sm:$0xff] %v8519_v43 }
 0xd8c   :  { %4919 = vtanh.f32 %v8448_v18 }
 0xd99   :  { %v4920_v12 = vpop.eup %4919 }
 0xd9a   :  { %v3967_v20 = vmul.f32 %v4920_v12, %v3962_v9  ;;  %v8528_v9 = vld [vmem:[#allocation10 + $0x38] sm:$0xff]  ;;  %v8531_v12 = vld [vmem:[#allocation10 + $0x20] sm:$0xff] }
 0xd9b   :  { %10399 = vst [vmem:[#allocation33_spill] sm:$0xff] %v8528_v9  ;;  %10400 = vst [vmem:[#allocation34_spill] sm:$0xff] %v8531_v12 }
 0xd9c   :  { %4033 = vmatmul.mubr.f32.vlgmr.msra.gmra.mxu0 %v3967_v20  ;;  %4104 = vmatmul.mubr.f32.vlgmr.msra.gmra.mxu1 %v3967_v20  ;;  %v8534_v20 = vld [vmem:[#allocation10 + $0x30] sm:$0xff] }
 0xd9d   :  { %4133 = vmatpush1.msra.mxu0 %v8285_v21  ;;  %4204 = vmatpush1.msra.mxu1 %v8288_v17  ;;  %10401 = vst [vmem:[#allocation35_spill] sm:$0xff] %v8534_v20 }
 0xd9e   :  { %4134 = vmatprep.subr.mxu0 %v8291_v36  ;;  %4205 = vmatprep.subr.mxu1 %v8294_v15 }
 0xd9f   :  { %4135 = vmatpush1.msra.mxu0 %v8297_v28  ;;  %4206 = vmatpush1.msra.mxu1 %v8300_v32 }
 0xda0   :  { %4136 = vmatprep.subr.mxu0 %v8303_v33  ;;  %4207 = vmatprep.subr.mxu1 %v8306_v4 }
 0xda1   :  { %4137 = vmatpush1.msra.mxu0 %v8309_v14  ;;  %4208 = vmatpush1.msra.mxu1 %v8312_v63 }
 0xda2   :  { %4138 = vmatprep.subr.mxu0 %v8315_v8  ;;  %4209 = vmatprep.subr.mxu1 %v8318_v45 }
 0xda3   :  { %4139 = vmatpush1.msra.mxu0 %v8321_v2  ;;  %4210 = vmatpush1.msra.mxu1 %v8324_v42 }
 0xda4   :  { %4140 = vmatprep.subr.mxu0 %v8327_v50  ;;  %4211 = vmatprep.subr.mxu1 %v8330_v62 }
 0xda5   :  { %4141 = vmatpush1.msra.mxu0 %v8333_v58  ;;  %4212 = vmatpush1.msra.mxu1 %v8336_v0 }
 0xda6   :  { %4142 = vmatprep.subr.mxu0 %v8339_v52  ;;  %4213 = vmatprep.subr.mxu1 %v8342_v10 }
 0xda7   :  { %4143 = vmatpush1.msra.mxu0 %v8345_v51  ;;  %4214 = vmatpush1.msra.mxu1 %v8348_v46 }
 0xda8   :  { %4144 = vmatprep.subr.mxu0 %v8351_v40  ;;  %4215 = vmatprep.subr.mxu1 %v8354_v37 }
 0xda9   :  { %4145 = vmatpush1.msra.mxu0 %v8357_v41  ;;  %4216 = vmatpush1.msra.mxu1 %v8360_v16 }
 0xdaa   :  { %4146 = vmatprep.subr.mxu0 %v8363_v38  ;;  %4217 = vmatprep.subr.mxu1 %v8366_v57 }
 0xdab   :  { %4147 = vmatpush1.msra.mxu0 %v8369_v26  ;;  %4218 = vmatpush1.msra.mxu1 %v8372_v30 }
 0xdac   :  { %4148 = vmatprep.subr.mxu0 %v8375_v3  ;;  %4219 = vmatprep.subr.mxu1 %v8378_v11 }
 0xdad   :  { %4149 = vmatpush1.msra.mxu0 %v10382_v31  ;;  %4220 = vmatpush1.msra.mxu1 %v10383_v13 }
 0xdae   :  { %4150 = vmatprep.subr.mxu0 %v10384_v22  ;;  %4221 = vmatprep.subr.mxu1 %v10385_v53 }
 0xdaf   :  { %4151 = vmatpush1.msra.mxu0 %v10386_v49  ;;  %4222 = vmatpush1.msra.mxu1 %v10387_v56 }
 0xdb0   :  { %4152 = vmatprep.subr.mxu0 %v8399_v23  ;;  %4223 = vmatprep.subr.mxu1 %v8402_v27 }
 0xdb1   :  { %4153 = vmatpush1.msra.mxu0 %v8405_v59  ;;  %4224 = vmatpush1.msra.mxu1 %v8408_v24 }
 0xdb2   :  { %4154 = vmatprep.subr.mxu0 %v8411_v29  ;;  %4225 = vmatprep.subr.mxu1 %v8414_v7 }
 0xdb3   :  { %4155 = vmatpush1.msra.mxu0 %v8495_v61  ;;  %4226 = vmatpush1.msra.mxu1 %v8498_v54 }
 0xdb4   :  { %4156 = vmatprep.subr.mxu0 %v8501_v55  ;;  %4227 = vmatprep.subr.mxu1 %v8504_v6  ;;  %v10410_v55 = vld [vmem:[#allocation74_spill] sm:$0xff] }
 0xdb5   :  { %4157 = vmatpush1.msra.mxu0 %v8507_v47  ;;  %4228 = vmatpush1.msra.mxu1 %v8510_v48  ;;  %v2468_v54 = vadd.f32 %v10410_v55, %v8028_v34 }
 0xdb6   :  { %4158 = vmatprep.subr.mxu0 %v8513_v19  ;;  %4229 = vmatprep.subr.mxu1 %v8516_v44  ;;  %v10408_v44 = vld [vmem:[#allocation104_spill] sm:$0xff]  ;;  %v10409_v19 = vld [vmem:[#allocation75_spill] sm:$0xff] }
 0xdb7   :  { %4159 = vmatpush1.msra.mxu0 %v8519_v43  ;;  %4230 = vmatpush1.msra.mxu1 %v8522_v1  ;;  %v8537_v43 = vld [vmem:[#allocation10 + $0x8] sm:$0xff]  ;;  %v8540_v1 = vld [vmem:[#allocation10 + $0x18] sm:$0xff]  ;;  %v2399_v48 = vadd.f32 %v10409_v19, %v10408_v44 }
 0xdb8   :  { %4160 = vmatprep.subr.mxu0 %v8525_v60  ;;  %4231 = vmatprep.subr.mxu1 %v8528_v9  ;;  %10402 = vst [vmem:[#allocation36_spill] sm:$0xff] %v8537_v43  ;;  %10403 = vst [vmem:[#allocation37_spill] sm:$0xff] %v8540_v1  ;;  %v8543_v60 = vld [vmem:[#allocation10] sm:$0xff]  ;;  %v8547_v9 = vld [vmem:[#allocation10 + $0x10] sm:$0xff] }
 0xdb9   :  { %4161 = vmatpush1.msra.mxu0 %v8531_v12  ;;  %4232 = vmatpush1.msra.mxu1 %v8534_v20  ;;  %10404 = vst [vmem:[#allocation38_spill] sm:$0xff] %v8543_v60  ;;  %10405 = vst [vmem:[#allocation39_spill] sm:$0xff] %v8547_v9  ;;  %v10407_v20 = vld [vmem:[#allocation73_spill] sm:$0xff] }
 0xdba   :  { %4162 = vmatprep.subr.mxu0 %v8537_v43  ;;  %4233 = vmatprep.subr.mxu1 %v8540_v1  ;;  %v10406_v43 = vld [vmem:[#allocation102_spill] sm:$0xff] }
 0xdbb   :  { %4163 = vmatpush1.msra.mxu0 %v8543_v60  ;;  %4196 = vmatprep.mubr.f32.mxu0 %v10361_v39  ;;  %v2397_v12 = vadd.f32 %v10407_v20, %v10406_v43  ;;  %v10411_v20 = vld [vmem:[#allocation76_spill] sm:$0xff] }
 0xdbc   :  { %4234 = vmatpush1.msra.mxu1 %v8547_v9  ;;  %4267 = vmatprep.mubr.f32.mxu1 %v10361_v39  ;;  %v2470_v43 = vadd.f32 %v10411_v20, %v8040_v35 }
 0xdbd   :  { %4296 = vmatprep.subr.mxu0 %v8267_v25  ;;  %4367 = vmatprep.subr.mxu1 %v8270_v5 }
 0xe5c   :  { %v4034_v1 = vpop.f32.mrf.mxu0  ;;  %v4105_v47 = vpop.f32.mrf.mxu1 }
 0xe5d   :  { %v4110_v60 = vadd.f32 %v4034_v1, %v2397_v12  ;;  %v4112_v39 = vadd.f32 %v4105_v47, %v2468_v54 }
 0xe5e   :  { %v4036_v6 = vpop.f32.mrf.mxu0  ;;  %v4107_v5 = vpop.f32.mrf.mxu1 }
 0xe5f   :  { %v4114_v9 = vmul.f32 0.5, %v4110_v60  ;;  %v4111_v61 = vadd.f32 %v4036_v6, %v2399_v48  ;;  %v4113_v7 = vadd.f32 %v4107_v5, %v2470_v43 }
 0xe61   :  { %4921 = vtanh.f32 %v4114_v9  ;;  %v4118_v25 = vmul.f32 0.5, %v4111_v61  ;;  %v4123_v29 = vmul.f32 0.5, %v4113_v7 }
 0xe63   :  { %4923 = vtanh.f32 %v4118_v25 }
 0xe64   :  { %4925 = vtanh.f32 %v4112_v39 }
 0xe65   :  { %4927 = vtanh.f32 %v4123_v29 }
 0xe6e   :  { %v4922_v19 = vpop.eup %4921 }
 0xe6f   :  { %v4116_v1 = vmul.f32 0.5, %v4922_v19 }
 0xe70   :  { %v4924_v12 = vpop.eup %4923 }
 0xe71   :  { %v4117_v44 = vadd.f32 0.5, %v4116_v1  ;;  %v4120_v24 = vmul.f32 0.5, %v4924_v12  ;;  %v4926_v55 = vpop.eup %4925 }
 0xe72   :  { %v4928_v39 = vpop.eup %4927 }
 0xe73   :  { %v4121_v60 = vadd.f32 0.5, %v4120_v24  ;;  %v4128_v6 = vmul.f32 %v4926_v55, %v4117_v44  ;;  %v4125_v47 = vmul.f32 0.5, %v4928_v39 }
 0xe75   :  { %v4127_v54 = vmul.f32 %v4121_v60, %v8448_v18  ;;  %v4126_v48 = vadd.f32 0.5, %v4125_v47 }
 0xe77   :  { %v8562_v61 = vadd.f32 %v4128_v6, %v4127_v54 }
 0xe79   :  { %4929 = vtanh.f32 %v8562_v61 }
 0xe86   :  { %v4930_v43 = vpop.eup %4929 }
 0xe87   :  { %v4131_v7 = vmul.f32 %v4930_v43, %v4126_v48  ;;  %v4475_v48 = vld [vmem:[%s8790_s7 + $0x78] sm:$0xff]  ;;  %v4473_v43 = vld [vmem:[%s8790_s7 + $0x68] sm:$0xff] }
 0xe89   :  { %4197 = vmatmul.mubr.f32.vlgmr.msra.gmra.mxu0 %v4131_v7  ;;  %4268 = vmatmul.mubr.f32.vlgmr.msra.gmra.mxu1 %v4131_v7  ;;  %v4472_v7 = vld [vmem:[%s8790_s7 + $0x60] sm:$0xff] }
 0xe8a   :  { %4297 = vmatpush1.msra.mxu0 %v8285_v21  ;;  %4368 = vmatpush1.msra.mxu1 %v8288_v17  ;;  %v10412_v21 = vld [vmem:[#allocation23_spill] sm:$0xff]  ;;  %v10413_v17 = vld [vmem:[#allocation24_spill] sm:$0xff] }
 0xe8b   :  { %4298 = vmatprep.subr.mxu0 %v8291_v36  ;;  %4369 = vmatprep.subr.mxu1 %v8294_v15  ;;  %v10414_v36 = vld [vmem:[#allocation121_spill] sm:$0xff] }
 0xe8c   :  { %4299 = vmatpush1.msra.mxu0 %v8297_v28  ;;  %4370 = vmatpush1.msra.mxu1 %v8300_v32  ;;  %v10415_v15 = vld [vmem:[#allocation125_spill] sm:$0xff]  ;;  %v10416_v28 = vld [vmem:[#allocation123_spill] sm:$0xff]  ;;  %v10417_v32 = vld [vmem:[#allocation126_spill] sm:$0xff] }
 0xe8d   :  { %4300 = vmatprep.subr.mxu0 %v8303_v33  ;;  %4371 = vmatprep.subr.mxu1 %v8306_v4  ;;  %v10418_v33 = vld [vmem:[#allocation29_spill] sm:$0xff]  ;;  %v10419_v4 = vld [vmem:[#allocation30_spill] sm:$0xff] }
 0xe8e   :  { %4301 = vmatpush1.msra.mxu0 %v8309_v14  ;;  %4372 = vmatpush1.msra.mxu1 %v8312_v63  ;;  %v10420_v14 = vld [vmem:[#allocation31_spill] sm:$0xff] }
 0xe8f   :  { %4302 = vmatprep.subr.mxu0 %v8315_v8  ;;  %4373 = vmatprep.subr.mxu1 %v8318_v45  ;;  %v10421_v63 = vld [vmem:[#allocation127_spill] sm:$0xff]  ;;  %v10422_v8 = vld [vmem:[#allocation133_spill] sm:$0xff] }
 0xe90   :  { %4303 = vmatpush1.msra.mxu0 %v8321_v2  ;;  %4374 = vmatpush1.msra.mxu1 %v8324_v42  ;;  %v10423_v45 = vld [vmem:[#allocation131_spill] sm:$0xff]  ;;  %v10424_v2 = vld [vmem:[#allocation134_spill] sm:$0xff]  ;;  %v10425_v42 = vld [vmem:[#allocation32_spill] sm:$0xff] }
 0xe91   :  { %4304 = vmatprep.subr.mxu0 %v8327_v50  ;;  %4375 = vmatprep.subr.mxu1 %v8330_v62  ;;  %v10426_v50 = vld [vmem:[#allocation33_spill] sm:$0xff]  ;;  %v10427_v62 = vld [vmem:[#allocation34_spill] sm:$0xff] }
 0xe92   :  { %4305 = vmatpush1.msra.mxu0 %v8333_v58  ;;  %4376 = vmatpush1.msra.mxu1 %v8336_v0  ;;  %v10428_v58 = vld [vmem:[#allocation35_spill] sm:$0xff]  ;;  %v10429_v0 = vld [vmem:[#allocation36_spill] sm:$0xff] }
 0xe93   :  { %4306 = vmatprep.subr.mxu0 %v8339_v52  ;;  %4377 = vmatprep.subr.mxu1 %v8342_v10  ;;  %v10430_v52 = vld [vmem:[#allocation37_spill] sm:$0xff]  ;;  %v10431_v10 = vld [vmem:[#allocation38_spill] sm:$0xff] }
 0xe94   :  { %4307 = vmatpush1.msra.mxu0 %v8345_v51  ;;  %4378 = vmatpush1.msra.mxu1 %v8348_v46  ;;  %v10432_v51 = vmov 0.0   ;;  %v10433_v46 = vld [vmem:[#allocation39_spill] sm:$0xff] }
 0xe95   :  { %4308 = vmatprep.subr.mxu0 %v8351_v40  ;;  %4379 = vmatprep.subr.mxu1 %v8354_v37  ;;  %v10434_v40 = vld [vmem:[#allocation102_spill] sm:$0xff]  ;;  %v10435_v37 = vld [vmem:[#allocation79_spill] sm:$0xff] }
 0xe96   :  { %4309 = vmatpush1.msra.mxu0 %v8357_v41  ;;  %4380 = vmatpush1.msra.mxu1 %v8360_v16  ;;  %v2703_v41 = vadd.f32 %v10435_v37, %v10434_v40  ;;  %v4560_v37 = vld [vmem:[%s8792_s9 + $0x30] sm:$0xff] }
 0xe97   :  { %4310 = vmatprep.subr.mxu0 %v8363_v38  ;;  %4381 = vmatprep.subr.mxu1 %v8366_v57  ;;  %v10436_v38 = vld [vmem:[#allocation104_spill] sm:$0xff]  ;;  %v10437_v57 = vld [vmem:[#allocation81_spill] sm:$0xff] }
 0xe98   :  { %4311 = vmatpush1.msra.mxu0 %v8369_v26  ;;  %4382 = vmatpush1.msra.mxu1 %v8372_v30  ;;  %v2705_v26 = vadd.f32 %v10437_v57, %v10436_v38  ;;  %v4557_v57 = vld [vmem:[%s8792_s9 + $0x18] sm:$0xff] }
 0xe99   :  { %4312 = vmatprep.subr.mxu0 %v8375_v3  ;;  %4383 = vmatprep.subr.mxu1 %v8378_v11 }
 0xe9a   :  { %4313 = vmatpush1.msra.mxu0 %v10382_v31  ;;  %4384 = vmatpush1.msra.mxu1 %v10383_v13  ;;  %v10439_v13 = vld [vmem:[#allocation90_spill] sm:$0xff] }
 0xe9b   :  { %4314 = vmatprep.subr.mxu0 %v10384_v22  ;;  %4385 = vmatprep.subr.mxu1 %v10385_v53  ;;  %v2776_v22 = vadd.f32 %v10439_v13, %v8040_v35 }
 0xe9c   :  { %4315 = vmatpush1.msra.mxu0 %v10386_v49  ;;  %4386 = vmatpush1.msra.mxu1 %v10387_v56 }
 0xe9d   :  { %4316 = vmatprep.subr.mxu0 %v8399_v23  ;;  %4387 = vmatprep.subr.mxu1 %v8402_v27  ;;  %v10438_v23 = vld [vmem:[#allocation80_spill] sm:$0xff] }
 0xe9e   :  { %4317 = vmatpush1.msra.mxu0 %v8405_v59  ;;  %4388 = vmatpush1.msra.mxu1 %v10412_v21  ;;  %v2774_v27 = vadd.f32 %v10438_v23, %v8028_v34  ;;  %v4471_v21 = vld [vmem:[%s8790_s7 + $0x58] sm:$0xff] }
 0xe9f   :  { %4318 = vmatprep.subr.mxu0 %v10413_v17  ;;  %4389 = vmatprep.subr.mxu1 %v10414_v36  ;;  %v4470_v17 = vld [vmem:[%s8790_s7 + $0x50] sm:$0xff]  ;;  %v4469_v36 = vld [vmem:[%s8790_s7 + $0x48] sm:$0xff] }
 0xea0   :  { %4319 = vmatpush1.msra.mxu0 %v10415_v15  ;;  %4390 = vmatpush1.msra.mxu1 %v10416_v28  ;;  %v4468_v15 = vld [vmem:[%s8790_s7 + $0x40] sm:$0xff]  ;;  %v4467_v28 = vld [vmem:[%s8790_s7 + $0x38] sm:$0xff] }
 0xea1   :  { %4320 = vmatprep.subr.mxu0 %v10417_v32  ;;  %4391 = vmatprep.subr.mxu1 %v10418_v33  ;;  %v4466_v32 = vld [vmem:[%s8790_s7 + $0x30] sm:$0xff]  ;;  %v4465_v33 = vld [vmem:[%s8790_s7 + $0x28] sm:$0xff] }
 0xea2   :  { %4321 = vmatpush1.msra.mxu0 %v10419_v4  ;;  %4392 = vmatpush1.msra.mxu1 %v10420_v14  ;;  %v4464_v4 = vld [vmem:[%s8790_s7 + $0x20] sm:$0xff]  ;;  %v4463_v14 = vld [vmem:[%s8790_s7 + $0x18] sm:$0xff] }
 0xea3   :  { %4322 = vmatprep.subr.mxu0 %v10421_v63  ;;  %4393 = vmatprep.subr.mxu1 %v10422_v8  ;;  %v4462_v63 = vld [vmem:[%s8790_s7 + $0x10] sm:$0xff]  ;;  %v4461_v8 = vld [vmem:[%s8790_s7 + $0x8] sm:$0xff] }
 0xea4   :  { %4323 = vmatpush1.msra.mxu0 %v10423_v45  ;;  %4394 = vmatpush1.msra.mxu1 %v10424_v2  ;;  %v4460_v45 = vld [vmem:[%s8790_s7] sm:$0xff]  ;;  %v4569_v2 = vld [vmem:[%s8792_s9 + $0x78] sm:$0xff] }
 0xea5   :  { %4324 = vmatprep.subr.mxu0 %v10425_v42  ;;  %4395 = vmatprep.subr.mxu1 %v10426_v50  ;;  %v4568_v42 = vld [vmem:[%s8792_s9 + $0x70] sm:$0xff]  ;;  %v4567_v50 = vld [vmem:[%s8792_s9 + $0x68] sm:$0xff] }
 0xea6   :  { %4325 = vmatpush1.msra.mxu0 %v10427_v62  ;;  %4396 = vmatpush1.msra.mxu1 %v10428_v58  ;;  %v4566_v62 = vld [vmem:[%s8792_s9 + $0x60] sm:$0xff]  ;;  %v4565_v58 = vld [vmem:[%s8792_s9 + $0x58] sm:$0xff] }
 0xea7   :  { %4326 = vmatprep.subr.mxu0 %v10429_v0  ;;  %4397 = vmatprep.subr.mxu1 %v10430_v52  ;;  %v4564_v0 = vld [vmem:[%s8792_s9 + $0x50] sm:$0xff]  ;;  %v4563_v52 = vld [vmem:[%s8792_s9 + $0x48] sm:$0xff] }
 0xea8   :  { %4327 = vmatpush1.msra.mxu0 %v10431_v10  ;;  %4360 = vmatprep.mubr.f32.mxu0 %v10432_v51  ;;  %v4562_v10 = vld [vmem:[%s8792_s9 + $0x40] sm:$0xff] }
 0xea9   :  { %4398 = vmatpush1.msra.mxu1 %v10433_v46  ;;  %4431 = vmatprep.mubr.f32.mxu1 %v10432_v51  ;;  %v4561_v46 = vld [vmem:[%s8792_s9 + $0x38] sm:$0xff] }
 0xeaa   :  { %4708 = vmatprep.subr.mxu0 %v10432_v51  ;;  %4743 = vmatprep.subr.mxu1 %v10432_v51 }
 0xf49   :  { %v4198_v16 = vpop.f32.mrf.mxu0  ;;  %v4269_v3 = vpop.f32.mrf.mxu1 }
 0xf4a   :  { %v4274_v30 = vadd.f32 %v4198_v16, %v2703_v41  ;;  %v4276_v29 = vadd.f32 %v4269_v3, %v2774_v27  ;;  %v4559_v41 = vld [vmem:[%s8792_s9 + $0x28] sm:$0xff]  ;;  %v4558_v16 = vld [vmem:[%s8792_s9 + $0x20] sm:$0xff] }
 0xf4b   :  { %v4200_v11 = vpop.f32.mrf.mxu0  ;;  %v4271_v31 = vpop.f32.mrf.mxu1 }
 0xf4c   :  { %v4278_v59 = vmul.f32 0.5, %v4274_v30  ;;  %v4275_v24 = vadd.f32 %v4200_v11, %v2705_v26  ;;  %v4277_v53 = vadd.f32 %v4271_v31, %v2776_v22  ;;  %v10440_v26 = vld [vmem:[#allocation101_spill] sm:$0xff] }
 0xf4d   :  { %v3009_v30 = vadd.f32 %v10440_v26, %v10434_v40  ;;  %v10441_v11 = vld [vmem:[#allocation105_spill] sm:$0xff]  ;;  %v10443_v40 = vld [vmem:[#allocation106_spill] sm:$0xff] }
 0xf4e   :  { %4931 = vtanh.f32 %v4278_v59  ;;  %v4282_v18 = vmul.f32 0.5, %v4275_v24  ;;  %v4287_v49 = vmul.f32 0.5, %v4277_v53  ;;  %v3011_v23 = vadd.f32 %v10441_v11, %v10436_v38 }
 0xf50   :  { %4933 = vtanh.f32 %v4282_v18 }
 0xf51   :  { %4935 = vtanh.f32 %v4276_v29  ;;  %v10442_v29 = vld [vmem:[#allocation103_spill] sm:$0xff] }
 0xf52   :  { %4937 = vtanh.f32 %v4287_v49  ;;  %v3080_v18 = vadd.f32 %v10442_v29, %v8028_v34 }
 0xf5b   :  { %v4932_v56 = vpop.eup %4931 }
 0xf5c   :  { %v4280_v44 = vmul.f32 0.5, %v4932_v56  ;;  %v3082_v56 = vadd.f32 %v10443_v40, %v8040_v35 }
 0xf5d   :  { %v4934_v9 = vpop.eup %4933 }
 0xf5e   :  { %v4281_v25 = vadd.f32 0.5, %v4280_v44  ;;  %v4284_v5 = vmul.f32 0.5, %v4934_v9  ;;  %v4936_v20 = vpop.eup %4935 }
 0xf5f   :  { %v4938_v60 = vpop.eup %4937 }
 0xf60   :  { %v4285_v19 = vadd.f32 0.5, %v4284_v5  ;;  %v4292_v1 = vmul.f32 %v4936_v20, %v4281_v25  ;;  %v4289_v6 = vmul.f32 0.5, %v4938_v60 }
 0xf62   :  { %v4291_v12 = vmul.f32 %v4285_v19, %v8562_v61  ;;  %v4290_v54 = vadd.f32 0.5, %v4289_v6  ;;  %v4474_v61 = vld [vmem:[%s8790_s7 + $0x70] sm:$0xff] }
 0xf64   :  { %v8640_v55 = vadd.f32 %v4292_v1, %v4291_v12 }
 0xf66   :  { %4939 = vtanh.f32 %v8640_v55 }
 0xf73   :  { %v4940_v39 = vpop.eup %4939 }
 0xf74   :  { %v4295_v47 = vmul.f32 %v4940_v39, %v4290_v54 }
 0xf76   :  { %4361 = vmatmul.mubr.f32.vlgmr.msra.gmra.mxu0 %v4295_v47  ;;  %4432 = vmatmul.mubr.f32.vlgmr.msra.gmra.mxu1 %v4295_v47 }
 0xf77   :  { %4709 = vmatpush3.msra.mxu0 %v4475_v48  ;;  %4740 = vmatprep.mubr.msk.f32.mxu0 %vm5474_vm2, %v10432_v51 }
 0xf78   :  { %4710 = vmatprep.subr.mxu0 %v10432_v51  ;;  %4775 = vmatprep.mubr.msk.f32.mxu1 %vm5474_vm2, %v10432_v51 }
 0xf79   :  { %4711 = vmatpush3.msra.mxu0 %v4474_v61  ;;  %4744 = vmatpush3.msra.mxu1 %v4569_v2  ;;  %v4556_v61 = vld [vmem:[%s8792_s9 + $0x10] sm:$0xff] }
 0xf7a   :  { %4712 = vmatprep.subr.mxu0 %v10432_v51  ;;  %4745 = vmatprep.subr.mxu1 %v10432_v51 }
 0xf7b   :  { %4713 = vmatpush3.msra.mxu0 %v4473_v43  ;;  %4746 = vmatpush3.msra.mxu1 %v4568_v42  ;;  %v4555_v43 = vld [vmem:[%s8792_s9 + $0x8] sm:$0xff] }
 0xf7c   :  { %4714 = vmatprep.subr.mxu0 %v10432_v51  ;;  %4747 = vmatprep.subr.mxu1 %v10432_v51 }
 0xf7d   :  { %4715 = vmatpush3.msra.mxu0 %v4472_v7  ;;  %4748 = vmatpush3.msra.mxu1 %v4567_v50  ;;  %v4672_v7 = vld [vmem:[#allocation13] ss:$0 sm:$0xff] }
 0xf7e   :  { %4716 = vmatprep.subr.mxu0 %v10432_v51  ;;  %4749 = vmatprep.subr.mxu1 %v10432_v51 }
 0xf7f   :  { %4717 = vmatpush3.msra.mxu0 %v4471_v21  ;;  %4750 = vmatpush3.msra.mxu1 %v4566_v62 }
 0xf80   :  { %4718 = vmatprep.subr.mxu0 %v10432_v51  ;;  %4751 = vmatprep.subr.mxu1 %v10432_v51 }
 0xf81   :  { %4719 = vmatpush3.msra.mxu0 %v4470_v17  ;;  %4752 = vmatpush3.msra.mxu1 %v4565_v58 }
 0xf82   :  { %4720 = vmatprep.subr.mxu0 %v10432_v51  ;;  %4753 = vmatprep.subr.mxu1 %v10432_v51 }
 0xf83   :  { %4721 = vmatpush3.msra.mxu0 %v4469_v36  ;;  %4754 = vmatpush3.msra.mxu1 %v4564_v0 }
 0xf84   :  { %4722 = vmatprep.subr.mxu0 %v10432_v51  ;;  %4755 = vmatprep.subr.mxu1 %v10432_v51 }
 0xf85   :  { %4723 = vmatpush3.msra.mxu0 %v4468_v15  ;;  %4756 = vmatpush3.msra.mxu1 %v4563_v52 }
 0xf86   :  { %4724 = vmatprep.subr.mxu0 %v10432_v51  ;;  %4757 = vmatprep.subr.mxu1 %v10432_v51 }
 0xf87   :  { %4725 = vmatpush3.msra.mxu0 %v4467_v28  ;;  %4758 = vmatpush3.msra.mxu1 %v4562_v10  ;;  %v4673_v28 = vld [vmem:[#allocation14] ss:$0 sm:$0xff] }
 0xf88   :  { %4726 = vmatprep.subr.mxu0 %v10432_v51  ;;  %4759 = vmatprep.subr.mxu1 %v10432_v51 }
 0xf89   :  { %4727 = vmatpush3.msra.mxu0 %v4466_v32  ;;  %4760 = vmatpush3.msra.mxu1 %v4561_v46 }
 0xf8a   :  { %4728 = vmatprep.subr.mxu0 %v10432_v51  ;;  %4761 = vmatprep.subr.mxu1 %v10432_v51 }
 0xf8b   :  { %4729 = vmatpush3.msra.mxu0 %v4465_v33  ;;  %4762 = vmatpush3.msra.mxu1 %v4560_v37 }
 0xf8c   :  { %4730 = vmatprep.subr.mxu0 %v10432_v51  ;;  %4763 = vmatprep.subr.mxu1 %v10432_v51 }
 0xf8d   :  { %4731 = vmatpush3.msra.mxu0 %v4464_v4  ;;  %4764 = vmatpush3.msra.mxu1 %v4559_v41 }
 0xf8e   :  { %4732 = vmatprep.subr.mxu0 %v10432_v51  ;;  %4765 = vmatprep.subr.mxu1 %v10432_v51 }
 0xf8f   :  { %4733 = vmatpush3.msra.mxu0 %v4463_v14  ;;  %4766 = vmatpush3.msra.mxu1 %v4558_v16 }
 0xf90   :  { %4734 = vmatprep.subr.mxu0 %v10432_v51  ;;  %4767 = vmatprep.subr.mxu1 %v10432_v51 }
 0xf91   :  { %4735 = vmatpush3.msra.mxu0 %v4462_v63  ;;  %4768 = vmatpush3.msra.mxu1 %v4557_v57 }
 0xf92   :  { %4736 = vmatprep.subr.mxu0 %v10432_v51  ;;  %4769 = vmatprep.subr.mxu1 %v10432_v51 }
 0xf93   :  { %4737 = vmatpush3.msra.mxu0 %v4461_v8  ;;  %4770 = vmatpush3.msra.mxu1 %v4556_v61 }
 0xf94   :  { %4738 = vmatprep.subr.mxu0 %v10432_v51  ;;  %4771 = vmatprep.subr.mxu1 %v10432_v51 }
 0xf95   :  { %4739 = vmatpush3.msra.mxu0 %v4460_v45  ;;  %4772 = vmatpush3.msra.mxu1 %v4555_v43 }
 0xf96   :  { %4773 = vmatprep.subr.mxu1 %v10432_v51 }
0x1036   :  { %v4362_v3 = vpop.f32.mrf.mxu0  ;;  %v4433_v59 = vpop.f32.mrf.mxu1 }
0x1037   :  { %v4438_v27 = vadd.f32 %v4362_v3, %v3009_v30  ;;  %v4440_v22 = vadd.f32 %v4433_v59, %v3080_v18 }
0x1038   :  { %v4364_v24 = vpop.f32.mrf.mxu0  ;;  %v4435_v49 = vpop.f32.mrf.mxu1 }
0x1039   :  { %v4442_v31 = vmul.f32 0.5, %v4438_v27  ;;  %v4439_v13 = vadd.f32 %v4364_v24, %v3011_v23  ;;  %v4441_v44 = vadd.f32 %v4435_v49, %v3082_v56 }
0x103b   :  { %4941 = vtanh.f32 %v4442_v31  ;;  %v4446_v53 = vmul.f32 0.5, %v4439_v13  ;;  %v4451_v9 = vmul.f32 0.5, %v4441_v44 }
0x103d   :  { %4943 = vtanh.f32 %v4446_v53 }
0x103e   :  { %4945 = vtanh.f32 %v4440_v22 }
0x103f   :  { %4947 = vtanh.f32 %v4451_v9 }
0x1048   :  { %v4942_v38 = vpop.eup %4941 }
0x1049   :  { %v4444_v25 = vmul.f32 0.5, %v4942_v38 }
0x104a   :  { %v4944_v5 = vpop.eup %4943 }
0x104b   :  { %v4445_v20 = vadd.f32 0.5, %v4444_v25  ;;  %v4448_v19 = vmul.f32 0.5, %v4944_v5  ;;  %v4946_v34 = vpop.eup %4945 }
0x104c   :  { %v4948_v54 = vpop.eup %4947 }
0x104d   :  { %v4449_v1 = vadd.f32 0.5, %v4448_v19  ;;  %v4456_v12 = vmul.f32 %v4946_v34, %v4445_v20  ;;  %v4453_v39 = vmul.f32 0.5, %v4948_v54 }
0x104f   :  { %v4455_v60 = vmul.f32 %v4449_v1, %v8640_v55  ;;  %v4454_v47 = vadd.f32 0.5, %v4453_v39  ;;  %v4554_v55 = vld [vmem:[%s8792_s9] sm:$0xff] }
0x1050   :  { %4774 = vmatpush3.msra.mxu1 %v4554_v55 }
0x1051   :  { %v4457_v6 = vadd.f32 %v4456_v12, %v4455_v60 }
0x1053   :  { %4949 = vtanh.f32 %v4457_v6 }
0x1060   :  { %v4950_v48 = vpop.eup %4949 }
0x1061   :  { %v4459_v35 = vmul.f32 %v4950_v48, %v4454_v47 }
0x1063   :  { %4741 = vmatmul.mubr.f32.vlgmr.msra.gmra.mxu0 %v4459_v35 }
0x1123   :  { %v4549_v21 = vpop.f32.mrf.mxu0 }
0x1124   :  { %v4550_v17 = vadd.f32 %v4672_v7, %v4549_v21 }
0x1125   :  { %v4742_v36 = vpop.f32.mrf.mxu0 }
0x1126   :  { %v4553_v15 = vmax.f32 %v4550_v17, 0.0 }
0x1128   :  { %4776 = vmatmul.mubr.f32.vlgmr.msra.gmra.mxu1 %v4553_v15 }
0x11e8   :  { %v4643_v32 = vpop.f32.mrf.mxu1 }
0x11e9   :  { %v4644_v33 = vadd.f32 %v4673_v28, %v4643_v32 }
0x11ea   :  { %v4777_v4 = vpop.f32.mrf.mxu1 }
0x11eb   :  { %4648 = vst.msk [vmem:[#allocation16] sm:$0x3] %vm4647_vm3, %v4644_v33 }
0x11ec   :  { %5442 = shalt.err (!%p5439_p2)
}
0x11ed   :  { %4658 = dma.vmem_to_hbm [thread:$0]  %s4656_s25, 32, %s8794_s11, [#allocation4]  }
0x11ee   :  { %5461 = dma.done.wait [#allocation4], 32  }
0x11ef   :  { %5462 = vsyncadd [#allocation4], 4294967264 }
0x11f0   :  { %4662 = vsyncpa [#allocation3], 1 }
0x11f1   :  { %4663 = vsyncpa [#allocation6], 1 }
0x11f2   :  { %4664 = vsyncpa [#allocation9], 1 }
0x11f3   :  { %4665 = vsyncpa [#allocation12], 1 }
0x11f4   :  { %4666 = vsyncpa [#allocation15], 1 }
0x11f5   :  { %4667 = vsyncpa [#allocation4], 1 }

</bundles_post_ra>
